<compile_context>
chip_gen: v5e
topology: v5e:2x2
jax: 0.10.0
libtpu: 0.0.40
codegen_flags: <defaults>
</compile_context>

<pallas_src>
import jax
import jax.numpy as jnp
from jax.experimental import pallas as pl
from jax.experimental.pallas import tpu as pltpu

EPS = 1e-5


# --------------------------------------------------------------------------- #
# in-kernel helpers
# --------------------------------------------------------------------------- #
def _conv3x3_acc(a, w_ref):
    """3x3 / stride-1 / pad-1 conv on an NHWC tile as 3 kh-grouped MXU GEMMs.

    a:     (nb, H, W, C) activations in the matmul dtype (nb images per tile;
           shifting along axis=1 per-image gives correct zero padding at every
           image boundary, no masking needed).
    w_ref: (3, 3*C, Cout) weight ref; w_ref[kh] rows are (kw, cin) flattened.
    Returns an (nb*H*W, Cout) float32 accumulator.
    """
    nb, H, W, C = a.shape
    zrow = jnp.zeros((nb, 1, W, C), a.dtype)
    zcol = jnp.zeros((nb, H, 1, C), a.dtype)
    acc = None
    for kh, dh in enumerate((-1, 0, 1)):
        if dh == -1:            # output row h reads input row h-1 -> zero top
            sh = jnp.concatenate([zrow, a[:, :-1]], axis=1)
        elif dh == 1:           # reads row h+1 -> zero bottom
            sh = jnp.concatenate([a[:, 1:], zrow], axis=1)
        else:
            sh = a
        left = jnp.concatenate([zcol, sh[:, :, :-1, :]], axis=2)    # reads w-1
        right = jnp.concatenate([sh[:, :, 1:, :], zcol], axis=2)    # reads w+1
        patch = jnp.concatenate([left, sh, right], axis=-1)         # (nb,H,W,3C)
        part = jnp.dot(patch.reshape(nb * H * W, 3 * C), w_ref[kh],
                       preferred_element_type=jnp.float32)
        acc = part if acc is None else acc + part
    return acc


def _write_stats(st_ref, y, cout):
    """Per-tile BN partials: st_ref[0] = [[sum], [centered sum of squares]].

    Mean-centered sums of squares + Chan's merge on the host avoid the
    catastrophic cancellation of the single-pass E[x^2] - E[x]^2 formula.
    """
    m = y.shape[0]
    s = jnp.sum(y, axis=0).reshape(1, cout)
    mu = s * (1.0 / m)
    d = y - mu
    q = jnp.sum(d * d, axis=0).reshape(1, cout)
    st_ref[0] = jnp.concatenate([s, q], axis=0)


# --------------------------------------------------------------------------- #
# kernels (nb images per grid step)
# --------------------------------------------------------------------------- #
def _conv_stats_kernel(x_ref, w_ref, y_ref, st_ref):
    """pass 1: y = conv3x3(x) (bias dropped: cancelled by training-mode BN)."""
    nb, H, W, _ = x_ref.shape
    cout = w_ref.shape[2]
    acc = _conv3x3_acc(x_ref[...], w_ref)                     # (nb*H*W, Cout) f32
    y_ref[...] = acc.reshape(nb, H, W, cout).astype(y_ref.dtype)
    _write_stats(st_ref, acc, cout)


def _bn_relu_conv_stats_kernel(y1_ref, c1_ref, w_ref, y_ref, st_ref):
    """pass 2: a = relu(bn1(y1)); y = conv3x3(a); plus BN2 partial stats."""
    nb, H, W, C = y1_ref.shape
    cout = w_ref.shape[2]
    scale = c1_ref[0, :].reshape(1, 1, 1, C)
    shift = c1_ref[1, :].reshape(1, 1, 1, C)
    a = jnp.maximum(y1_ref[...].astype(jnp.float32) * scale + shift, 0.0)
    acc = _conv3x3_acc(a.astype(w_ref.dtype), w_ref)
    y_ref[...] = acc.reshape(nb, H, W, cout).astype(y_ref.dtype)
    _write_stats(st_ref, acc, cout)


def _bn_add_relu_kernel(y2_ref, x_ref, c2_ref, o_ref):
    """pass 3: out = relu(x + bn2(y2))."""
    C = x_ref.shape[3]
    scale = c2_ref[0, :].reshape(1, 1, 1, C)
    shift = c2_ref[1, :].reshape(1, 1, 1, C)
    y = y2_ref[...].astype(jnp.float32) * scale + shift
    o_ref[...] = jnp.maximum(x_ref[...] + y, 0.0)


# --------------------------------------------------------------------------- #
# host-side helpers
# --------------------------------------------------------------------------- #
def _bn_affine_coeffs(stats, gamma, beta, tile_count, total_count):
    """Merge per-tile [sum, centered SSQ] (Chan) -> training-mode BN scale/shift."""
    s = stats[:, 0, :].astype(jnp.float32)          # (T, C) per-tile sums
    q = stats[:, 1, :].astype(jnp.float32)          # (T, C) per-tile centered SSQ
    mean = jnp.sum(s, axis=0) / total_count
    tile_mean = s / tile_count
    m2 = jnp.sum(q, axis=0) + tile_count * jnp.sum((tile_mean - mean) ** 2, axis=0)
    var = m2 / total_count                          # biased variance (PyTorch training BN)
    scale = gamma.astype(jnp.float32) * jax.lax.rsqrt(var + EPS)
    shift = beta.astype(jnp.float32) - mean * scale
    return jnp.stack([scale, shift], axis=0)        # (2, C)


def _vmem_limit_bytes():
    """Per-generation scoped-VMEM budget (v7x has half the VMEM of v5e/v6e)."""
    try:
        kind = jax.devices()[0].device_kind.lower()
    except Exception:
        kind = ""
    if "v7" in kind or "7x" in kind:
        return 40 * 1024 * 1024      # 64 MiB physical: leave pipelining headroom
    if "v5" in kind or "v6" in kind:
        return 80 * 1024 * 1024      # 128 MiB physical: bigger tiles / deeper pipeline
    return 32 * 1024 * 1024


def _pick_nb(n, h, w, cin, cout, budget_bytes=12 * 1024 * 1024):
    """Images per grid step: divisor of N, VMEM-bounded, keep >= 2 grid steps."""
    per_img = h * w * (4 * (cin + cout)              # double-buffered bf16 in/out tiles
                       + 4 * cout                    # f32 accumulator
                       + 2 * 3 * max(cin, cout) * 2)  # kh-group patch + shifted taps
    cap = max(1, min(8, budget_bytes // max(per_img, 1)))
    if n >= 2:
        cap = min(cap, n // 2)       # >= 2 parallel steps (megacore on v7x)
    nb = 1
    for d in range(1, cap + 1):
        if n % d == 0:
            nb = d
    return nb


# --------------------------------------------------------------------------- #
# host-side wrapper
# --------------------------------------------------------------------------- #
def resnet_basic_block_nhwc(x, w1, b1, g1, be1, w2, b2, g2, be2, *,
                            matmul_dtype=jnp.bfloat16):
    """x: (N, H, W, C) NHWC.  Conv weights in PyTorch OIHW layout, stride=1.

    Conv biases b1/b2 are accepted for interface parity but unused: the
    training-mode BatchNorm following each conv subtracts the batch mean, which
    cancels any per-channel bias exactly.  (Not valid for eval/running stats.)

    With the default bf16 matmul dtype the inter-pass activations y1/y2 are
    also stored in bf16 (halves HBM traffic); outputs drift by bf16 rounding
    relative to an f32 reference.  Pass matmul_dtype=jnp.float32 for exact-math
    parity.
    """
    del b1, b2
    x = x.astype(jnp.float32)
    N, H, W, Cin = x.shape
    Cout = w1.shape[0]
    assert w1.shape == (Cout, Cin, 3, 3) and w2.shape == (Cout, Cout, 3, 3)
    assert Cin == Cout, "residual add requires in_channels == out_channels (stride=1)"

    M = N * H * W
    nb = _pick_nb(N, H, W, Cin, Cout)
    G = N // nb
    tile_count = float(nb * H * W)

    # OIHW -> (kh, kw, cin, cout) -> (3, 3*cin, cout); w[kh] matches the per-kh
    # (dw=-1, 0, +1) channel-concat order used in _conv3x3_acc.
    w1m = jnp.transpose(w1, (2, 3, 1, 0)).reshape(3, 3 * Cin, Cout).astype(matmul_dtype)
    w2m = jnp.transpose(w2, (2, 3, 1, 0)).reshape(3, 3 * Cout, Cout).astype(matmul_dtype)
    x_mm = x.astype(matmul_dtype)        # bf16 feed for conv1 (kernel cast it anyway)
    act_dtype = matmul_dtype             # bf16 inter-pass activations
    isz = jnp.dtype(matmul_dtype).itemsize

    cparams = pltpu.CompilerParams(
        dimension_semantics=("parallel",),       # shard batch tiles over TCs (v7x)
        vmem_limit_bytes=_vmem_limit_bytes(),
    )
    img_spec = lambda C_: pl.BlockSpec((nb, H, W, C_), lambda n: (n, 0, 0, 0))
    w_spec = lambda K: pl.BlockSpec((3, K, Cout), lambda n: (0, 0, 0))
    coef_spec = pl.BlockSpec((2, Cout), lambda n: (0, 0))
    stats_spec = pl.BlockSpec((1, 2, Cout), lambda n: (n, 0, 0))

    # ---- pass 1: conv1 + per-tile BN1 partial statistics --------------------
    y1, st1 = pl.pallas_call(
        _conv_stats_kernel,
        grid=(G,),
        in_specs=[img_spec(Cin), w_spec(3 * Cin)],
        out_specs=[img_spec(Cout), stats_spec],
        out_shape=[jax.ShapeDtypeStruct((N, H, W, Cout), act_dtype),
                   jax.ShapeDtypeStruct((G, 2, Cout), jnp.float32)],
        compiler_params=cparams,
        cost_estimate=pl.CostEstimate(
            flops=2 * M * 9 * Cin * Cout, transcendentals=0,
            bytes_accessed=isz * (M * Cin + M * Cout + 9 * Cin * Cout)
                           + 4 * G * 2 * Cout),
    )(x_mm, w1m)

    c1 = _bn_affine_coeffs(st1, g1, be1, tile_count, float(M))   # tiny O(C) glue

    # ---- pass 2: bn1-affine + relu + conv2 + per-tile BN2 partials -----------
    y2, st2 = pl.pallas_call(
        _bn_relu_conv_stats_kernel,
        grid=(G,),
        in_specs=[img_spec(Cout), coef_spec, w_spec(3 * Cout)],
        out_specs=[img_spec(Cout), stats_spec],
        out_shape=[jax.ShapeDtypeStruct((N, H, W, Cout), act_dtype),
                   jax.ShapeDtypeStruct((G, 2, Cout), jnp.float32)],
        compiler_params=cparams,
        cost_estimate=pl.CostEstimate(
            flops=2 * M * 9 * Cout * Cout + 3 * M * Cout, transcendentals=0,
            bytes_accessed=isz * (2 * M * Cout + 9 * Cout * Cout)
                           + 4 * (2 * Cout + G * 2 * Cout)),
    )(y1, c1, w2m)

    c2 = _bn_affine_coeffs(st2, g2, be2, tile_count, float(M))

    # ---- pass 3: bn2-affine + residual add + relu ----------------------------
    out = pl.pallas_call(
        _bn_add_relu_kernel,
        grid=(G,),
        in_specs=[img_spec(Cout), img_spec(Cin), coef_spec],
        out_specs=img_spec(Cout),
        out_shape=jax.ShapeDtypeStruct((N, H, W, Cout), jnp.float32),
        compiler_params=cparams,
        cost_estimate=pl.CostEstimate(
            flops=3 * M * Cout, transcendentals=0,
            bytes_accessed=isz * M * Cout + 4 * (2 * M * Cout + 2 * Cout)),
    )(y2, x, c2)
    return out


def resnet_basic_block(x_nchw, w1, b1, g1, be1, w2, b2, g2, be2, *,
                       matmul_dtype=jnp.bfloat16):
    """PyTorch-layout entry point: x (N, C, H, W), conv weights OIHW, stride=1.

    The NCHW<->NHWC transposes live outside the Pallas kernels and fuse under
    jit; keep the surrounding model in NHWC to drop them entirely.
    """
    x = jnp.transpose(x_nchw, (0, 2, 3, 1))
    y = resnet_basic_block_nhwc(x, w1, b1, g1, be1, w2, b2, g2, be2,
                                matmul_dtype=matmul_dtype)
    return jnp.transpose(y, (0, 3, 1, 2))


# --------------------------------------------------------------------------- #
# plain-JAX reference (mirrors the PyTorch forward, training-mode BN, with bias)
# --------------------------------------------------------------------------- #
def _reference_block(x, w1, b1, g1, be1, w2, b2, g2, be2):
    def conv(x, w, b):
        y = jax.lax.conv_general_dilated(
            x, w, window_strides=(1, 1), padding=((1, 1), (1, 1)),
            dimension_numbers=("NCHW", "OIHW", "NCHW"))
        return y + b[None, :, None, None]

    def bn(y, g, be):
        mean = y.mean(axis=(0, 2, 3), keepdims=True)
        var = ((y - mean) ** 2).mean(axis=(0, 2, 3), keepdims=True)
        return ((y - mean) / jnp.sqrt(var + EPS)) * g[None, :, None, None] \
               + be[None, :, None, None]

    y = jax.nn.relu(bn(conv(x, w1, b1), g1, be1))
    y = bn(conv(y, w2, b2), g2, be2)
    return jax.nn.relu(x + y)


if __name__ == "__main__":
    # small shapes: batch=4 (exercises the multi-image tile path, nb=2),
    # channels=4, spatial=16x16, stride=1
    N, C, H, W = 4, 4, 16, 16
    key = jax.random.PRNGKey(0)
    kx, kw1, kb1, kw2, kb2 = jax.random.split(key, 5)

    x = jax.random.normal(kx, (N, C, H, W), dtype=jnp.float32)
    w1 = 0.1 * jax.random.normal(kw1, (C, C, 3, 3), dtype=jnp.float32)   # OIHW
    b1 = 0.1 * jax.random.normal(kb1, (C,), dtype=jnp.float32)
    w2 = 0.1 * jax.random.normal(kw2, (C, C, 3, 3), dtype=jnp.float32)
    b2 = 0.1 * jax.random.normal(kb2, (C,), dtype=jnp.float32)
    g1 = jnp.ones((C,), jnp.float32)
    be1 = jnp.zeros((C,), jnp.float32)
    g2 = jnp.ones((C,), jnp.float32)
    be2 = jnp.zeros((C,), jnp.float32)

    block = jax.jit(resnet_basic_block, static_argnames=("matmul_dtype",))
    ref = _reference_block(x, w1, b1, g1, be1, w2, b2, g2, be2)

    # f32-operand path: tight parity with the f32 reference (exact-math check).
    out_f32 = jax.block_until_ready(
        block(x, w1, b1, g1, be1, w2, b2, g2, be2, matmul_dtype=jnp.float32))
    assert out_f32.shape == (N, C, H, W)
    assert jnp.allclose(out_f32, ref, atol=1e-3, rtol=1e-3), "f32 path mismatch"

    # default path: bf16 matmul operands AND bf16 inter-pass activations
    # (f32 accumulation); tolerance covers bf16 rounding only.
    out = jax.block_until_ready(block(x, w1, b1, g1, be1, w2, b2, g2, be2))
    assert out.shape == (N, C, H, W)
    assert jnp.allclose(out, ref, atol=1e-1, rtol=1e-1), "bf16 path mismatch"

    print("KERNEL_OK")
</pallas_src>

<mosaic_0001>
module attributes {stable_mosaic.version = 11 : i64} {
  func.func @_conv_stats_kernel(%arg0: i32, %arg1: memref<2x16x16x4xf32, #tpu.memory_space<vmem>>, %arg2: memref<3x12x4xf32, #tpu.memory_space<vmem>>, %arg3: memref<2x16x16x4xf32, #tpu.memory_space<vmem>>, %arg4: memref<1x2x4xf32, #tpu.memory_space<vmem>>) attributes {dimension_semantics = [#tpu.dimension_semantics<parallel>], iteration_bounds = array<i64: 2>, scalar_prefetch = 0 : i64, scratch_operands = 0 : i64, tpu.core_type = #tpu.core_type<tc>, window_params = [{transform_indices = @transform_0, window_bounds = array<i64: 2, 16, 16, 4>}, {pipeline_mode = #tpu.pipeline_mode<synchronous>, transform_indices = @transform_1, window_bounds = array<i64: 3, 12, 4>}, {transform_indices = @transform_2, window_bounds = array<i64: 2, 16, 16, 4>}, {transform_indices = @transform_3, window_bounds = array<i64: 1, 2, 4>}]} {
    %c0 = arith.constant 0 : index
    %c0_0 = arith.constant 0 : index
    %c0_1 = arith.constant 0 : index
    %c0_2 = arith.constant 0 : index
    %0 = vector.load %arg1[%c0, %c0_0, %c0_1, %c0_2] : memref<2x16x16x4xf32, #tpu.memory_space<vmem>>, vector<2x16x16x4xf32>
    %cst = arith.constant 0.000000e+00 : f32
    %1 = vector.broadcast %cst : f32 to vector<2x1x16x4xf32>
    %cst_3 = arith.constant 0.000000e+00 : f32
    %2 = vector.broadcast %cst_3 : f32 to vector<2x16x1x4xf32>
    %3 = vector.extract_strided_slice %0 {offsets = [0, 0, 0, 0], sizes = [2, 15, 16, 4], strides = [1, 1, 1, 1]} : vector<2x16x16x4xf32> to vector<2x15x16x4xf32>
    %4 = tpu.concatenate %1, %3 in 1 : vector<2x1x16x4xf32>, vector<2x15x16x4xf32> -> vector<2x16x16x4xf32>
    %5 = vector.extract_strided_slice %4 {offsets = [0, 0, 0, 0], sizes = [2, 16, 15, 4], strides = [1, 1, 1, 1]} : vector<2x16x16x4xf32> to vector<2x16x15x4xf32>
    %6 = tpu.concatenate %2, %5 in 2 : vector<2x16x1x4xf32>, vector<2x16x15x4xf32> -> vector<2x16x16x4xf32>
    %7 = vector.extract_strided_slice %4 {offsets = [0, 0, 1, 0], sizes = [2, 16, 15, 4], strides = [1, 1, 1, 1]} : vector<2x16x16x4xf32> to vector<2x16x15x4xf32>
    %8 = tpu.concatenate %7, %2 in 2 : vector<2x16x15x4xf32>, vector<2x16x1x4xf32> -> vector<2x16x16x4xf32>
    %9 = tpu.concatenate %6, %4, %8 in 3 : vector<2x16x16x4xf32>, vector<2x16x16x4xf32>, vector<2x16x16x4xf32> -> vector<2x16x16x12xf32>
    %10 = vector.shape_cast %9 : vector<2x16x16x12xf32> to vector<512x12xf32>
    %c0_4 = arith.constant 0 : index
    %c0_5 = arith.constant 0 : index
    %c0_6 = arith.constant 0 : index
    %11 = vector.load %arg2[%c0_4, %c0_5, %c0_6] : memref<3x12x4xf32, #tpu.memory_space<vmem>>, vector<1x12x4xf32>
    %12 = vector.shape_cast %11 : vector<1x12x4xf32> to vector<12x4xf32>
    %cst_7 = arith.constant dense<0.000000e+00> : vector<512x4xf32>
    %13 = tpu.matmul %10, %12, %cst_7 {dimension_numbers = #tpu.dot_dimension_numbers<[1], [0], [0], [1], [0, 0, 1, 1], [], []>} : vector<512x12xf32>, vector<12x4xf32>, vector<512x4xf32> -> vector<512x4xf32>
    %14 = vector.extract_strided_slice %0 {offsets = [0, 0, 0, 0], sizes = [2, 16, 15, 4], strides = [1, 1, 1, 1]} : vector<2x16x16x4xf32> to vector<2x16x15x4xf32>
    %15 = tpu.concatenate %2, %14 in 2 : vector<2x16x1x4xf32>, vector<2x16x15x4xf32> -> vector<2x16x16x4xf32>
    %16 = vector.extract_strided_slice %0 {offsets = [0, 0, 1, 0], sizes = [2, 16, 15, 4], strides = [1, 1, 1, 1]} : vector<2x16x16x4xf32> to vector<2x16x15x4xf32>
    %17 = tpu.concatenate %16, %2 in 2 : vector<2x16x15x4xf32>, vector<2x16x1x4xf32> -> vector<2x16x16x4xf32>
    %18 = tpu.concatenate %15, %0, %17 in 3 : vector<2x16x16x4xf32>, vector<2x16x16x4xf32>, vector<2x16x16x4xf32> -> vector<2x16x16x12xf32>
    %19 = vector.shape_cast %18 : vector<2x16x16x12xf32> to vector<512x12xf32>
    %c1 = arith.constant 1 : index
    %c0_8 = arith.constant 0 : index
    %c0_9 = arith.constant 0 : index
    %20 = vector.load %arg2[%c1, %c0_8, %c0_9] : memref<3x12x4xf32, #tpu.memory_space<vmem>>, vector<1x12x4xf32>
    %21 = vector.shape_cast %20 : vector<1x12x4xf32> to vector<12x4xf32>
    %cst_10 = arith.constant dense<0.000000e+00> : vector<512x4xf32>
    %22 = tpu.matmul %19, %21, %cst_10 {dimension_numbers = #tpu.dot_dimension_numbers<[1], [0], [0], [1], [0, 0, 1, 1], [], []>} : vector<512x12xf32>, vector<12x4xf32>, vector<512x4xf32> -> vector<512x4xf32>
    %23 = arith.addf %13, %22 : vector<512x4xf32>
    %24 = vector.extract_strided_slice %0 {offsets = [0, 1, 0, 0], sizes = [2, 15, 16, 4], strides = [1, 1, 1, 1]} : vector<2x16x16x4xf32> to vector<2x15x16x4xf32>
    %25 = tpu.concatenate %24, %1 in 1 : vector<2x15x16x4xf32>, vector<2x1x16x4xf32> -> vector<2x16x16x4xf32>
    %26 = vector.extract_strided_slice %25 {offsets = [0, 0, 0, 0], sizes = [2, 16, 15, 4], strides = [1, 1, 1, 1]} : vector<2x16x16x4xf32> to vector<2x16x15x4xf32>
    %27 = tpu.concatenate %2, %26 in 2 : vector<2x16x1x4xf32>, vector<2x16x15x4xf32> -> vector<2x16x16x4xf32>
    %28 = vector.extract_strided_slice %25 {offsets = [0, 0, 1, 0], sizes = [2, 16, 15, 4], strides = [1, 1, 1, 1]} : vector<2x16x16x4xf32> to vector<2x16x15x4xf32>
    %29 = tpu.concatenate %28, %2 in 2 : vector<2x16x15x4xf32>, vector<2x16x1x4xf32> -> vector<2x16x16x4xf32>
    %30 = tpu.concatenate %27, %25, %29 in 3 : vector<2x16x16x4xf32>, vector<2x16x16x4xf32>, vector<2x16x16x4xf32> -> vector<2x16x16x12xf32>
    %31 = vector.shape_cast %30 : vector<2x16x16x12xf32> to vector<512x12xf32>
    %c2 = arith.constant 2 : index
    %c0_11 = arith.constant 0 : index
    %c0_12 = arith.constant 0 : index
    %32 = vector.load %arg2[%c2, %c0_11, %c0_12] : memref<3x12x4xf32, #tpu.memory_space<vmem>>, vector<1x12x4xf32>
    %33 = vector.shape_cast %32 : vector<1x12x4xf32> to vector<12x4xf32>
    %cst_13 = arith.constant dense<0.000000e+00> : vector<512x4xf32>
    %34 = tpu.matmul %31, %33, %cst_13 {dimension_numbers = #tpu.dot_dimension_numbers<[1], [0], [0], [1], [0, 0, 1, 1], [], []>} : vector<512x12xf32>, vector<12x4xf32>, vector<512x4xf32> -> vector<512x4xf32>
    %35 = arith.addf %23, %34 : vector<512x4xf32>
    %36 = vector.shape_cast %35 : vector<512x4xf32> to vector<2x16x16x4xf32>
    %c0_14 = arith.constant 0 : index
    %c0_15 = arith.constant 0 : index
    %c0_16 = arith.constant 0 : index
    %c0_17 = arith.constant 0 : index
    %37 = vector.load %arg3[%c0_14, %c0_15, %c0_16, %c0_17] : memref<2x16x16x4xf32, #tpu.memory_space<vmem>>, vector<2x16x16x4xf32>
    tpu.vector_store %arg3[%c0_14, %c0_15, %c0_16, %c0_17], %36 {strides = array<i32>} : memref<2x16x16x4xf32, #tpu.memory_space<vmem>>, vector<2x16x16x4xf32>,
    %cst_18 = arith.constant dense<0.000000e+00> : vector<4xf32>
    %38 = vector.multi_reduction <add>, %35, %cst_18 [0] : vector<512x4xf32> to vector<4xf32>
    %39 = vector.shape_cast %38 : vector<4xf32> to vector<1x4xf32>
    %cst_19 = arith.constant 0.001953125 : f32
    %40 = vector.broadcast %cst_19 : f32 to vector<1x4xf32>
    %41 = arith.mulf %39, %40 : vector<1x4xf32>
    %42 = vector.broadcast %41 : vector<1x4xf32> to vector<512x4xf32>
    %43 = arith.subf %35, %42 : vector<512x4xf32>
    %44 = arith.mulf %43, %43 : vector<512x4xf32>
    %cst_20 = arith.constant dense<0.000000e+00> : vector<4xf32>
    %45 = vector.multi_reduction <add>, %44, %cst_20 [0] : vector<512x4xf32> to vector<4xf32>
    %46 = vector.shape_cast %45 : vector<4xf32> to vector<1x4xf32>
    %47 = tpu.concatenate %39, %46 in 0 : vector<1x4xf32>, vector<1x4xf32> -> vector<2x4xf32>
    %c0_21 = arith.constant 0 : index
    %c0_22 = arith.constant 0 : index
    %c0_23 = arith.constant 0 : index
    %48 = vector.load %arg4[%c0_21, %c0_22, %c0_23] : memref<1x2x4xf32, #tpu.memory_space<vmem>>, vector<1x2x4xf32>
    %49 = vector.shape_cast %48 : vector<1x2x4xf32> to vector<2x4xf32>
    %50 = vector.shape_cast %47 : vector<2x4xf32> to vector<1x2x4xf32>
    tpu.vector_store %arg4[%c0_21, %c0_22, %c0_23], %50 {strides = array<i32>} : memref<1x2x4xf32, #tpu.memory_space<vmem>>, vector<1x2x4xf32>,
    return
  }
  func.func @transform_0(%arg0: i32) -> (i32, i32, i32, i32) {
    %c0_i32 = arith.constant 0 : i32
    %c0_i32_0 = arith.constant 0 : i32
    %c0_i32_1 = arith.constant 0 : i32
    %c0_i32_2 = arith.constant 0 : i32
    return %arg0, %c0_i32, %c0_i32_0, %c0_i32_1 : i32, i32, i32, i32
  }
  func.func @transform_1(%arg0: i32) -> (i32, i32, i32) {
    %c0_i32 = arith.constant 0 : i32
    %c0_i32_0 = arith.constant 0 : i32
    %c0_i32_1 = arith.constant 0 : i32
    %c0_i32_2 = arith.constant 0 : i32
    return %c0_i32, %c0_i32_0, %c0_i32_1 : i32, i32, i32
  }
  func.func @transform_2(%arg0: i32) -> (i32, i32, i32, i32) {
    %c0_i32 = arith.constant 0 : i32
    %c0_i32_0 = arith.constant 0 : i32
    %c0_i32_1 = arith.constant 0 : i32
    %c0_i32_2 = arith.constant 0 : i32
    return %arg0, %c0_i32, %c0_i32_0, %c0_i32_1 : i32, i32, i32, i32
  }
  func.func @transform_3(%arg0: i32) -> (i32, i32, i32) {
    %c0_i32 = arith.constant 0 : i32
    %c0_i32_0 = arith.constant 0 : i32
    %c0_i32_1 = arith.constant 0 : i32
    return %arg0, %c0_i32, %c0_i32_0 : i32, i32, i32
  }
}

module attributes {stable_mosaic.version = 11 : i64} {
  func.func @_bn_add_relu_kernel(%arg0: i32, %arg1: memref<2x16x16x4xf32, #tpu.memory_space<vmem>>, %arg2: memref<2x16x16x4xf32, #tpu.memory_space<vmem>>, %arg3: memref<2x4xf32, #tpu.memory_space<vmem>>, %arg4: memref<2x16x16x4xf32, #tpu.memory_space<vmem>>) attributes {dimension_semantics = [#tpu.dimension_semantics<parallel>], iteration_bounds = array<i64: 2>, scalar_prefetch = 0 : i64, scratch_operands = 0 : i64, tpu.core_type = #tpu.core_type<tc>, window_params = [{transform_indices = @transform_0, window_bounds = array<i64: 2, 16, 16, 4>}, {transform_indices = @transform_1, window_bounds = array<i64: 2, 16, 16, 4>}, {pipeline_mode = #tpu.pipeline_mode<synchronous>, transform_indices = @transform_2, window_bounds = array<i64: 2, 4>}, {transform_indices = @transform_3, window_bounds = array<i64: 2, 16, 16, 4>}]} {
    %c0 = arith.constant 0 : index
    %c0_0 = arith.constant 0 : index
    %0 = vector.load %arg3[%c0, %c0_0] : memref<2x4xf32, #tpu.memory_space<vmem>>, vector<1x4xf32>
    %1 = vector.shape_cast %0 : vector<1x4xf32> to vector<4xf32>
    %2 = vector.shape_cast %1 : vector<4xf32> to vector<1x1x1x4xf32>
    %c1 = arith.constant 1 : index
    %c0_1 = arith.constant 0 : index
    %3 = vector.load %arg3[%c1, %c0_1] : memref<2x4xf32, #tpu.memory_space<vmem>>, vector<1x4xf32>
    %4 = vector.shape_cast %3 : vector<1x4xf32> to vector<4xf32>
    %5 = vector.shape_cast %4 : vector<4xf32> to vector<1x1x1x4xf32>
    %c0_2 = arith.constant 0 : index
    %c0_3 = arith.constant 0 : index
    %c0_4 = arith.constant 0 : index
    %c0_5 = arith.constant 0 : index
    %6 = vector.load %arg1[%c0_2, %c0_3, %c0_4, %c0_5] : memref<2x16x16x4xf32, #tpu.memory_space<vmem>>, vector<2x16x16x4xf32>
    %7 = vector.broadcast %2 : vector<1x1x1x4xf32> to vector<2x16x16x4xf32>
    %8 = arith.mulf %6, %7 : vector<2x16x16x4xf32>
    %9 = vector.broadcast %5 : vector<1x1x1x4xf32> to vector<2x16x16x4xf32>
    %10 = arith.addf %8, %9 : vector<2x16x16x4xf32>
    %c0_6 = arith.constant 0 : index
    %c0_7 = arith.constant 0 : index
    %c0_8 = arith.constant 0 : index
    %c0_9 = arith.constant 0 : index
    %11 = vector.load %arg2[%c0_6, %c0_7, %c0_8, %c0_9] : memref<2x16x16x4xf32, #tpu.memory_space<vmem>>, vector<2x16x16x4xf32>
    %12 = arith.addf %11, %10 : vector<2x16x16x4xf32>
    %cst = arith.constant 0.000000e+00 : f32
    %13 = vector.broadcast %cst : f32 to vector<2x16x16x4xf32>
    %14 = arith.maximumf %12, %13 : vector<2x16x16x4xf32>
    %c0_10 = arith.constant 0 : index
    %c0_11 = arith.constant 0 : index
    %c0_12 = arith.constant 0 : index
    %c0_13 = arith.constant 0 : index
    %15 = vector.load %arg4[%c0_10, %c0_11, %c0_12, %c0_13] : memref<2x16x16x4xf32, #tpu.memory_space<vmem>>, vector<2x16x16x4xf32>
    tpu.vector_store %arg4[%c0_10, %c0_11, %c0_12, %c0_13], %14 {strides = array<i32>} : memref<2x16x16x4xf32, #tpu.memory_space<vmem>>, vector<2x16x16x4xf32>,
    return
  }
  func.func @transform_0(%arg0: i32) -> (i32, i32, i32, i32) {
    %c0_i32 = arith.constant 0 : i32
    %c0_i32_0 = arith.constant 0 : i32
    %c0_i32_1 = arith.constant 0 : i32
    %c0_i32_2 = arith.constant 0 : i32
    return %arg0, %c0_i32, %c0_i32_0, %c0_i32_1 : i32, i32, i32, i32
  }
  func.func @transform_1(%arg0: i32) -> (i32, i32, i32, i32) {
    %c0_i32 = arith.constant 0 : i32
    %c0_i32_0 = arith.constant 0 : i32
    %c0_i32_1 = arith.constant 0 : i32
    %c0_i32_2 = arith.constant 0 : i32
    return %arg0, %c0_i32, %c0_i32_0, %c0_i32_1 : i32, i32, i32, i32
  }
  func.func @transform_2(%arg0: i32) -> (i32, i32) {
    %c0_i32 = arith.constant 0 : i32
    %c0_i32_0 = arith.constant 0 : i32
    %c0_i32_1 = arith.constant 0 : i32
    return %c0_i32, %c0_i32_0 : i32, i32
  }
  func.func @transform_3(%arg0: i32) -> (i32, i32, i32, i32) {
    %c0_i32 = arith.constant 0 : i32
    %c0_i32_0 = arith.constant 0 : i32
    %c0_i32_1 = arith.constant 0 : i32
    %c0_i32_2 = arith.constant 0 : i32
    return %arg0, %c0_i32, %c0_i32_0, %c0_i32_1 : i32, i32, i32, i32
  }
}

module attributes {stable_mosaic.version = 11 : i64} {
  func.func @_bn_relu_conv_stats_kernel(%arg0: i32, %arg1: memref<2x16x16x4xf32, #tpu.memory_space<vmem>>, %arg2: memref<2x4xf32, #tpu.memory_space<vmem>>, %arg3: memref<3x12x4xf32, #tpu.memory_space<vmem>>, %arg4: memref<2x16x16x4xf32, #tpu.memory_space<vmem>>, %arg5: memref<1x2x4xf32, #tpu.memory_space<vmem>>) attributes {dimension_semantics = [#tpu.dimension_semantics<parallel>], iteration_bounds = array<i64: 2>, scalar_prefetch = 0 : i64, scratch_operands = 0 : i64, tpu.core_type = #tpu.core_type<tc>, window_params = [{transform_indices = @transform_0, window_bounds = array<i64: 2, 16, 16, 4>}, {pipeline_mode = #tpu.pipeline_mode<synchronous>, transform_indices = @transform_1, window_bounds = array<i64: 2, 4>}, {pipeline_mode = #tpu.pipeline_mode<synchronous>, transform_indices = @transform_2, window_bounds = array<i64: 3, 12, 4>}, {transform_indices = @transform_3, window_bounds = array<i64: 2, 16, 16, 4>}, {transform_indices = @transform_4, window_bounds = array<i64: 1, 2, 4>}]} {
    %c0 = arith.constant 0 : index
    %c0_0 = arith.constant 0 : index
    %0 = vector.load %arg2[%c0, %c0_0] : memref<2x4xf32, #tpu.memory_space<vmem>>, vector<1x4xf32>
    %1 = vector.shape_cast %0 : vector<1x4xf32> to vector<4xf32>
    %2 = vector.shape_cast %1 : vector<4xf32> to vector<1x1x1x4xf32>
    %c1 = arith.constant 1 : index
    %c0_1 = arith.constant 0 : index
    %3 = vector.load %arg2[%c1, %c0_1] : memref<2x4xf32, #tpu.memory_space<vmem>>, vector<1x4xf32>
    %4 = vector.shape_cast %3 : vector<1x4xf32> to vector<4xf32>
    %5 = vector.shape_cast %4 : vector<4xf32> to vector<1x1x1x4xf32>
    %c0_2 = arith.constant 0 : index
    %c0_3 = arith.constant 0 : index
    %c0_4 = arith.constant 0 : index
    %c0_5 = arith.constant 0 : index
    %6 = vector.load %arg1[%c0_2, %c0_3, %c0_4, %c0_5] : memref<2x16x16x4xf32, #tpu.memory_space<vmem>>, vector<2x16x16x4xf32>
    %7 = vector.broadcast %2 : vector<1x1x1x4xf32> to vector<2x16x16x4xf32>
    %8 = arith.mulf %6, %7 : vector<2x16x16x4xf32>
    %9 = vector.broadcast %5 : vector<1x1x1x4xf32> to vector<2x16x16x4xf32>
    %10 = arith.addf %8, %9 : vector<2x16x16x4xf32>
    %cst = arith.constant 0.000000e+00 : f32
    %11 = vector.broadcast %cst : f32 to vector<2x16x16x4xf32>
    %12 = arith.maximumf %10, %11 : vector<2x16x16x4xf32>
    %cst_6 = arith.constant 0.000000e+00 : f32
    %13 = vector.broadcast %cst_6 : f32 to vector<2x1x16x4xf32>
    %cst_7 = arith.constant 0.000000e+00 : f32
    %14 = vector.broadcast %cst_7 : f32 to vector<2x16x1x4xf32>
    %15 = vector.extract_strided_slice %12 {offsets = [0, 0, 0, 0], sizes = [2, 15, 16, 4], strides = [1, 1, 1, 1]} : vector<2x16x16x4xf32> to vector<2x15x16x4xf32>
    %16 = tpu.concatenate %13, %15 in 1 : vector<2x1x16x4xf32>, vector<2x15x16x4xf32> -> vector<2x16x16x4xf32>
    %17 = vector.extract_strided_slice %16 {offsets = [0, 0, 0, 0], sizes = [2, 16, 15, 4], strides = [1, 1, 1, 1]} : vector<2x16x16x4xf32> to vector<2x16x15x4xf32>
    %18 = tpu.concatenate %14, %17 in 2 : vector<2x16x1x4xf32>, vector<2x16x15x4xf32> -> vector<2x16x16x4xf32>
    %19 = vector.extract_strided_slice %16 {offsets = [0, 0, 1, 0], sizes = [2, 16, 15, 4], strides = [1, 1, 1, 1]} : vector<2x16x16x4xf32> to vector<2x16x15x4xf32>
    %20 = tpu.concatenate %19, %14 in 2 : vector<2x16x15x4xf32>, vector<2x16x1x4xf32> -> vector<2x16x16x4xf32>
    %21 = tpu.concatenate %18, %16, %20 in 3 : vector<2x16x16x4xf32>, vector<2x16x16x4xf32>, vector<2x16x16x4xf32> -> vector<2x16x16x12xf32>
    %22 = vector.shape_cast %21 : vector<2x16x16x12xf32> to vector<512x12xf32>
    %c0_8 = arith.constant 0 : index
    %c0_9 = arith.constant 0 : index
    %c0_10 = arith.constant 0 : index
    %23 = vector.load %arg3[%c0_8, %c0_9, %c0_10] : memref<3x12x4xf32, #tpu.memory_space<vmem>>, vector<1x12x4xf32>
    %24 = vector.shape_cast %23 : vector<1x12x4xf32> to vector<12x4xf32>
    %cst_11 = arith.constant dense<0.000000e+00> : vector<512x4xf32>
    %25 = tpu.matmul %22, %24, %cst_11 {dimension_numbers = #tpu.dot_dimension_numbers<[1], [0], [0], [1], [0, 0, 1, 1], [], []>} : vector<512x12xf32>, vector<12x4xf32>, vector<512x4xf32> -> vector<512x4xf32>
    %26 = vector.extract_strided_slice %12 {offsets = [0, 0, 0, 0], sizes = [2, 16, 15, 4], strides = [1, 1, 1, 1]} : vector<2x16x16x4xf32> to vector<2x16x15x4xf32>
    %27 = tpu.concatenate %14, %26 in 2 : vector<2x16x1x4xf32>, vector<2x16x15x4xf32> -> vector<2x16x16x4xf32>
    %28 = vector.extract_strided_slice %12 {offsets = [0, 0, 1, 0], sizes = [2, 16, 15, 4], strides = [1, 1, 1, 1]} : vector<2x16x16x4xf32> to vector<2x16x15x4xf32>
    %29 = tpu.concatenate %28, %14 in 2 : vector<2x16x15x4xf32>, vector<2x16x1x4xf32> -> vector<2x16x16x4xf32>
    %30 = tpu.concatenate %27, %12, %29 in 3 : vector<2x16x16x4xf32>, vector<2x16x16x4xf32>, vector<2x16x16x4xf32> -> vector<2x16x16x12xf32>
    %31 = vector.shape_cast %30 : vector<2x16x16x12xf32> to vector<512x12xf32>
    %c1_12 = arith.constant 1 : index
    %c0_13 = arith.constant 0 : index
    %c0_14 = arith.constant 0 : index
    %32 = vector.load %arg3[%c1_12, %c0_13, %c0_14] : memref<3x12x4xf32, #tpu.memory_space<vmem>>, vector<1x12x4xf32>
    %33 = vector.shape_cast %32 : vector<1x12x4xf32> to vector<12x4xf32>
    %cst_15 = arith.constant dense<0.000000e+00> : vector<512x4xf32>
    %34 = tpu.matmul %31, %33, %cst_15 {dimension_numbers = #tpu.dot_dimension_numbers<[1], [0], [0], [1], [0, 0, 1, 1], [], []>} : vector<512x12xf32>, vector<12x4xf32>, vector<512x4xf32> -> vector<512x4xf32>
    %35 = arith.addf %25, %34 : vector<512x4xf32>
    %36 = vector.extract_strided_slice %12 {offsets = [0, 1, 0, 0], sizes = [2, 15, 16, 4], strides = [1, 1, 1, 1]} : vector<2x16x16x4xf32> to vector<2x15x16x4xf32>
    %37 = tpu.concatenate %36, %13 in 1 : vector<2x15x16x4xf32>, vector<2x1x16x4xf32> -> vector<2x16x16x4xf32>
    %38 = vector.extract_strided_slice %37 {offsets = [0, 0, 0, 0], sizes = [2, 16, 15, 4], strides = [1, 1, 1, 1]} : vector<2x16x16x4xf32> to vector<2x16x15x4xf32>
    %39 = tpu.concatenate %14, %38 in 2 : vector<2x16x1x4xf32>, vector<2x16x15x4xf32> -> vector<2x16x16x4xf32>
    %40 = vector.extract_strided_slice %37 {offsets = [0, 0, 1, 0], sizes = [2, 16, 15, 4], strides = [1, 1, 1, 1]} : vector<2x16x16x4xf32> to vector<2x16x15x4xf32>
    %41 = tpu.concatenate %40, %14 in 2 : vector<2x16x15x4xf32>, vector<2x16x1x4xf32> -> vector<2x16x16x4xf32>
    %42 = tpu.concatenate %39, %37, %41 in 3 : vector<2x16x16x4xf32>, vector<2x16x16x4xf32>, vector<2x16x16x4xf32> -> vector<2x16x16x12xf32>
    %43 = vector.shape_cast %42 : vector<2x16x16x12xf32> to vector<512x12xf32>
    %c2 = arith.constant 2 : index
    %c0_16 = arith.constant 0 : index
    %c0_17 = arith.constant 0 : index
    %44 = vector.load %arg3[%c2, %c0_16, %c0_17] : memref<3x12x4xf32, #tpu.memory_space<vmem>>, vector<1x12x4xf32>
    %45 = vector.shape_cast %44 : vector<1x12x4xf32> to vector<12x4xf32>
    %cst_18 = arith.constant dense<0.000000e+00> : vector<512x4xf32>
    %46 = tpu.matmul %43, %45, %cst_18 {dimension_numbers = #tpu.dot_dimension_numbers<[1], [0], [0], [1], [0, 0, 1, 1], [], []>} : vector<512x12xf32>, vector<12x4xf32>, vector<512x4xf32> -> vector<512x4xf32>
    %47 = arith.addf %35, %46 : vector<512x4xf32>
    %48 = vector.shape_cast %47 : vector<512x4xf32> to vector<2x16x16x4xf32>
    %c0_19 = arith.constant 0 : index
    %c0_20 = arith.constant 0 : index
    %c0_21 = arith.constant 0 : index
    %c0_22 = arith.constant 0 : index
    %49 = vector.load %arg4[%c0_19, %c0_20, %c0_21, %c0_22] : memref<2x16x16x4xf32, #tpu.memory_space<vmem>>, vector<2x16x16x4xf32>
    tpu.vector_store %arg4[%c0_19, %c0_20, %c0_21, %c0_22], %48 {strides = array<i32>} : memref<2x16x16x4xf32, #tpu.memory_space<vmem>>, vector<2x16x16x4xf32>,
    %cst_23 = arith.constant dense<0.000000e+00> : vector<4xf32>
    %50 = vector.multi_reduction <add>, %47, %cst_23 [0] : vector<512x4xf32> to vector<4xf32>
    %51 = vector.shape_cast %50 : vector<4xf32> to vector<1x4xf32>
    %cst_24 = arith.constant 0.001953125 : f32
    %52 = vector.broadcast %cst_24 : f32 to vector<1x4xf32>
    %53 = arith.mulf %51, %52 : vector<1x4xf32>
    %54 = vector.broadcast %53 : vector<1x4xf32> to vector<512x4xf32>
    %55 = arith.subf %47, %54 : vector<512x4xf32>
    %56 = arith.mulf %55, %55 : vector<512x4xf32>
    %cst_25 = arith.constant dense<0.000000e+00> : vector<4xf32>
    %57 = vector.multi_reduction <add>, %56, %cst_25 [0] : vector<512x4xf32> to vector<4xf32>
    %58 = vector.shape_cast %57 : vector<4xf32> to vector<1x4xf32>
    %59 = tpu.concatenate %51, %58 in 0 : vector<1x4xf32>, vector<1x4xf32> -> vector<2x4xf32>
    %c0_26 = arith.constant 0 : index
    %c0_27 = arith.constant 0 : index
    %c0_28 = arith.constant 0 : index
    %60 = vector.load %arg5[%c0_26, %c0_27, %c0_28] : memref<1x2x4xf32, #tpu.memory_space<vmem>>, vector<1x2x4xf32>
    %61 = vector.shape_cast %60 : vector<1x2x4xf32> to vector<2x4xf32>
    %62 = vector.shape_cast %59 : vector<2x4xf32> to vector<1x2x4xf32>
    tpu.vector_store %arg5[%c0_26, %c0_27, %c0_28], %62 {strides = array<i32>} : memref<1x2x4xf32, #tpu.memory_space<vmem>>, vector<1x2x4xf32>,
    return
  }
  func.func @transform_0(%arg0: i32) -> (i32, i32, i32, i32) {
    %c0_i32 = arith.constant 0 : i32
    %c0_i32_0 = arith.constant 0 : i32
    %c0_i32_1 = arith.constant 0 : i32
    %c0_i32_2 = arith.constant 0 : i32
    return %arg0, %c0_i32, %c0_i32_0, %c0_i32_1 : i32, i32, i32, i32
  }
  func.func @transform_1(%arg0: i32) -> (i32, i32) {
    %c0_i32 = arith.constant 0 : i32
    %c0_i32_0 = arith.constant 0 : i32
    %c0_i32_1 = arith.constant 0 : i32
    return %c0_i32, %c0_i32_0 : i32, i32
  }
  func.func @transform_2(%arg0: i32) -> (i32, i32, i32) {
    %c0_i32 = arith.constant 0 : i32
    %c0_i32_0 = arith.constant 0 : i32
    %c0_i32_1 = arith.constant 0 : i32
    %c0_i32_2 = arith.constant 0 : i32
    return %c0_i32, %c0_i32_0, %c0_i32_1 : i32, i32, i32
  }
  func.func @transform_3(%arg0: i32) -> (i32, i32, i32, i32) {
    %c0_i32 = arith.constant 0 : i32
    %c0_i32_0 = arith.constant 0 : i32
    %c0_i32_1 = arith.constant 0 : i32
    %c0_i32_2 = arith.constant 0 : i32
    return %arg0, %c0_i32, %c0_i32_0, %c0_i32_1 : i32, i32, i32, i32
  }
  func.func @transform_4(%arg0: i32) -> (i32, i32, i32) {
    %c0_i32 = arith.constant 0 : i32
    %c0_i32_0 = arith.constant 0 : i32
    %c0_i32_1 = arith.constant 0 : i32
    return %arg0, %c0_i32, %c0_i32_0 : i32, i32, i32
  }
}

</mosaic_0001>

<bundles_post_ra>
// kernel: resnet_basic_block.5
= control target key start
LH: loop header
LB: loop body
LE: loop exit
PB: predicated region body
PF: predicated region fallthrough
CT: control target
= control target key end

     0   :  { %s784_s12 = smov 0   ;;  %s1209_s0 = inlined_call_operand.vmem [shape: f32[4,16,16,4], index: 0, kind: input, shape index: {}]   ;;  %s1210_s1 = inlined_call_operand.vmem [shape: f32[4,16,16,4], index: 1, kind: input, shape index: {}]   ;;  %s1211_s2 = inlined_call_operand.vmem [shape: f32[2,4], index: 2, kind: input, shape index: {}]   ;;  %s1212_s3 = inlined_call_operand.vmem [shape: f32[4,16,16,4], index: 3, kind: output, shape index: {}]  }
   0x1 LB: > { %s727_s13 = sadd.s32 4294967295, %s762_s12   ;;  %p731_p0 = scmp.ge.s32.totalorder %s762_s12, 1  ;;  %s762_s12 = sphi %s784_s12, %s13_s12  }
   0x2   : > { %p151_p1 = scmp.lt.s32.totalorder %s762_s12, 3 }
   0x4   : > { %p152_p2 = pnand %p731_p0, %p151_p1 }
   0x5   : > { %s732_s14 = sshll.u32 (!%p152_p2), %s727_s13, 1 }
   0x6   : > { %155 = sbr.rel (%p152_p2) target bundleno = 87 (0x57), region = 32  ;;  %p184_p3 = scmp.lt.s32.totalorder (!%p152_p2), %s732_s14, 3 }
   0xb   : > { %s1214_s14 = smov (!%p184_p3, %s732_s14), 3  ;;  %v795_v0 = vld [vmem:[%s1211_s2] ss:$0 sm:$0xff]  ;;  %v814_v1 = vld [vmem:[%s1211_s2 + $0x1] ss:$0 sm:$0xff]  ;;  %vm592_vm0 = vcmask 31744  }
   0xc   : > { %s797_s17 = sshll.u32 %s1214_s14, 8 }
   0xd   : > { %s803_s20 = scalar_lea.vmem %s1209_s0, %s797_s17  ;;  %s809_s23 = scalar_lea.vmem %s1210_s1, %s797_s17 }
   0xe   : > { %v206_v2 = vld [vmem:[%s803_s20] sm:$0xff]  ;;  %v207_v3 = vld [vmem:[%s803_s20 + $0x8] sm:$0xff]  ;;  %v208_v7 = vld [vmem:[%s803_s20 + $0x10] sm:$0xff]  ;;  %s845_s28 = scalar_lea.vmem %s1212_s3, %s797_s17 }
   0xf   : > { %v271_v4 = vmul.f32 %v795_v0, %v206_v2  ;;  %v400_v5 = vld [vmem:[%s809_s23] sm:$0xff]  ;;  %v272_v6 = vmul.f32 %v795_v0, %v207_v3  ;;  %v401_v8 = vld [vmem:[%s809_s23 + $0x8] sm:$0xff]  ;;  %v273_v9 = vmul.f32 %v795_v0, %v208_v7  ;;  %v209_v10 = vld [vmem:[%s803_s20 + $0x18] sm:$0xff] }
  0x10   : > { %v210_v11 = vld [vmem:[%s803_s20 + $0x20] sm:$0xff]  ;;  %v402_v14 = vld [vmem:[%s809_s23 + $0x10] sm:$0xff]  ;;  %v274_v15 = vmul.f32 %v795_v0, %v209_v10  ;;  %v403_v16 = vld [vmem:[%s809_s23 + $0x18] sm:$0xff] }
  0x11   : > { %v336_v12 = vadd.f32 %v814_v1, %v271_v4  ;;  %v337_v13 = vadd.f32 %v814_v1, %v272_v6  ;;  %v275_v17 = vmul.f32 %v795_v0, %v210_v11  ;;  %v211_v18 = vld [vmem:[%s803_s20 + $0x28] sm:$0xff]  ;;  %v338_v19 = vadd.f32 %v814_v1, %v273_v9  ;;  %v404_v20 = vld [vmem:[%s809_s23 + $0x20] sm:$0xff]  ;;  %v212_v22 = vld [vmem:[%s803_s20 + $0x30] sm:$0xff] }
  0x12   : > { %v276_v21 = vmul.f32 %v795_v0, %v211_v18  ;;  %v213_v23 = vld [vmem:[%s803_s20 + $0x38] sm:$0xff]  ;;  %v339_v26 = vadd.f32 %v814_v1, %v274_v15  ;;  %v405_v28 = vld [vmem:[%s809_s23 + $0x28] sm:$0xff]  ;;  %v277_v31 = vmul.f32 %v795_v0, %v212_v22  ;;  %v214_v33 = vld [vmem:[%s803_s20 + $0x40] sm:$0xff] }
  0x13   : > { %v464_v24 = vadd.f32 %v400_v5, %v336_v12  ;;  %v465_v25 = vadd.f32 %v401_v8, %v337_v13  ;;  %v340_v27 = vadd.f32 %v814_v1, %v275_v17  ;;  %v466_v29 = vadd.f32 %v402_v14, %v338_v19  ;;  %v215_v34 = vld [vmem:[%s803_s20 + $0x48] sm:$0xff]  ;;  %v406_v39 = vld [vmem:[%s809_s23 + $0x30] sm:$0xff]  ;;  %v407_v40 = vld [vmem:[%s809_s23 + $0x38] sm:$0xff] }
  0x14   : > { %v341_v30 = vadd.f32 %v814_v1, %v276_v21  ;;  %v278_v32 = vmul.f32 %v795_v0, %v213_v23  ;;  %v467_v37 = vadd.f32 %v403_v16, %v339_v26  ;;  %v216_v41 = vld [vmem:[%s803_s20 + $0x50] sm:$0xff]  ;;  %v342_v44 = vadd.f32 %v814_v1, %v277_v31  ;;  %v217_v46 = vld [vmem:[%s803_s20 + $0x58] sm:$0xff]  ;;  %v218_v47 = vld [vmem:[%s803_s20 + $0x60] sm:$0xff] }
  0x15   : > { %v528_v35 = vmax.f32 %v464_v24, 0.0  ;;  %v529_v36 = vmax.f32 %v465_v25, 0.0  ;;  %v468_v38 = vadd.f32 %v404_v20, %v340_v27  ;;  %v530_v42 = vmax.f32 %v466_v29, 0.0  ;;  %v219_v52 = vld [vmem:[%s803_s20 + $0x68] sm:$0xff]  ;;  %v408_v56 = vld [vmem:[%s809_s23 + $0x40] sm:$0xff]  ;;  %v410_v61 = vld [vmem:[%s809_s23 + $0x50] sm:$0xff] }
  0x16   : > { %v469_v43 = vadd.f32 %v405_v28, %v341_v30  ;;  %v343_v45 = vadd.f32 %v814_v1, %v278_v32  ;;  %v531_v48 = vmax.f32 %v467_v37, 0.0  ;;  %v279_v50 = vmul.f32 %v795_v0, %v214_v33  ;;  %v409_v57 = vld [vmem:[%s809_s23 + $0x48] sm:$0xff]  ;;  %v220_v2 = vld [vmem:[%s803_s20 + $0x70] sm:$0xff]  ;;  %v221_v3 = vld [vmem:[%s803_s20 + $0x78] sm:$0xff] }
  0x17   : > { %593 = vst.msk [vmem:[%s845_s28] sm:$0xff] %vm592_vm0, %v528_v35  ;;  %v532_v49 = vmax.f32 %v468_v38, 0.0  ;;  %v280_v51 = vmul.f32 %v795_v0, %v215_v34  ;;  %v470_v54 = vadd.f32 %v406_v39, %v342_v44  ;;  %v281_v58 = vmul.f32 %v795_v0, %v216_v41  ;;  %v411_v7 = vld [vmem:[%s809_s23 + $0x58] sm:$0xff]  ;;  %v412_v8 = vld [vmem:[%s809_s23 + $0x60] sm:$0xff]  ;;  %v413_v14 = vld [vmem:[%s809_s23 + $0x68] sm:$0xff] }
  0x18   : > { %594 = vst.msk [vmem:[%s845_s28 + $0x8] sm:$0xff] %vm592_vm0, %v529_v36  ;;  %v533_v53 = vmax.f32 %v469_v43, 0.0  ;;  %v471_v55 = vadd.f32 %v407_v40, %v343_v45  ;;  %v344_v59 = vadd.f32 %v814_v1, %v279_v50  ;;  %v282_v62 = vmul.f32 %v795_v0, %v217_v46  ;;  %v222_v19 = vld [vmem:[%s803_s20 + $0x80] sm:$0xff]  ;;  %v223_v20 = vld [vmem:[%s803_s20 + $0x88] sm:$0xff]  ;;  %v414_v25 = vld [vmem:[%s809_s23 + $0x70] sm:$0xff] }
  0x19   : > { %595 = vst.msk [vmem:[%s845_s28 + $0x10] sm:$0xff] %vm592_vm0, %v530_v42  ;;  %v345_v60 = vadd.f32 %v814_v1, %v280_v51  ;;  %v283_v63 = vmul.f32 %v795_v0, %v218_v47  ;;  %v534_v4 = vmax.f32 %v470_v54, 0.0  ;;  %v346_v6 = vadd.f32 %v814_v1, %v281_v58  ;;  %v415_v26 = vld [vmem:[%s809_s23 + $0x78] sm:$0xff]  ;;  %v224_v27 = vld [vmem:[%s803_s20 + $0x90] sm:$0xff]  ;;  %v226_v33 = vld [vmem:[%s803_s20 + $0xa0] sm:$0xff] }
  0x1a   : > { %596 = vst.msk [vmem:[%s845_s28 + $0x18] sm:$0xff] %vm592_vm0, %v531_v48  ;;  %v535_v5 = vmax.f32 %v471_v55, 0.0  ;;  %v284_v9 = vmul.f32 %v795_v0, %v219_v52  ;;  %v472_v10 = vadd.f32 %v408_v56, %v344_v59  ;;  %v347_v12 = vadd.f32 %v814_v1, %v282_v62  ;;  %v225_v32 = vld [vmem:[%s803_s20 + $0x98] sm:$0xff]  ;;  %v227_v38 = vld [vmem:[%s803_s20 + $0xa8] sm:$0xff]  ;;  %v416_v42 = vld [vmem:[%s809_s23 + $0x80] sm:$0xff] }
  0x1b   : > { %597 = vst.msk [vmem:[%s845_s28 + $0x20] sm:$0xff] %vm592_vm0, %v532_v49  ;;  %v473_v11 = vadd.f32 %v409_v57, %v345_v60  ;;  %v348_v13 = vadd.f32 %v814_v1, %v283_v63  ;;  %v474_v15 = vadd.f32 %v410_v61, %v346_v6  ;;  %v285_v17 = vmul.f32 %v795_v0, %v220_v2  ;;  %v417_v43 = vld [vmem:[%s809_s23 + $0x88] sm:$0xff]  ;;  %v418_v47 = vld [vmem:[%s809_s23 + $0x90] sm:$0xff]  ;;  %v229_v51 = vld [vmem:[%s803_s20 + $0xb8] sm:$0xff] }
  0x1c   : > { %598 = vst.msk [vmem:[%s845_s28 + $0x28] sm:$0xff] %vm592_vm0, %v533_v53  ;;  %v349_v16 = vadd.f32 %v814_v1, %v284_v9  ;;  %v286_v18 = vmul.f32 %v795_v0, %v221_v3  ;;  %v536_v21 = vmax.f32 %v472_v10, 0.0  ;;  %v475_v23 = vadd.f32 %v411_v7, %v347_v12  ;;  %v228_v50 = vld [vmem:[%s803_s20 + $0xb0] sm:$0xff]  ;;  %v419_v55 = vld [vmem:[%s809_s23 + $0x98] sm:$0xff]  ;;  %v420_v56 = vld [vmem:[%s809_s23 + $0xa0] sm:$0xff] }
  0x1d   : > { %599 = vst.msk [vmem:[%s845_s28 + $0x30] sm:$0xff] %vm592_vm0, %v534_v4  ;;  %v537_v22 = vmax.f32 %v473_v11, 0.0  ;;  %v476_v24 = vadd.f32 %v412_v8, %v348_v13  ;;  %v538_v28 = vmax.f32 %v474_v15, 0.0  ;;  %v350_v30 = vadd.f32 %v814_v1, %v285_v17  ;;  %v421_v62 = vld [vmem:[%s809_s23 + $0xa8] sm:$0xff]  ;;  %v422_v11 = vld [vmem:[%s809_s23 + $0xb0] sm:$0xff]  ;;  %v423_v12 = vld [vmem:[%s809_s23 + $0xb8] sm:$0xff] }
  0x1e   : > { %600 = vst.msk [vmem:[%s845_s28 + $0x38] sm:$0xff] %vm592_vm0, %v535_v5  ;;  %v477_v29 = vadd.f32 %v413_v14, %v349_v16  ;;  %v351_v31 = vadd.f32 %v814_v1, %v286_v18  ;;  %v539_v34 = vmax.f32 %v475_v23, 0.0  ;;  %v287_v36 = vmul.f32 %v795_v0, %v222_v19  ;;  %v230_v5 = vld [vmem:[%s803_s20 + $0xc0] sm:$0xff]  ;;  %v231_v6 = vld [vmem:[%s803_s20 + $0xc8] sm:$0xff]  ;;  %v232_v13 = vld [vmem:[%s803_s20 + $0xd0] sm:$0xff] }
  0x1f   : > { %601 = vst.msk [vmem:[%s845_s28 + $0x40] sm:$0xff] %vm592_vm0, %v536_v21  ;;  %v540_v35 = vmax.f32 %v476_v24, 0.0  ;;  %v288_v37 = vmul.f32 %v795_v0, %v223_v20  ;;  %v478_v40 = vadd.f32 %v414_v25, %v350_v30  ;;  %v289_v44 = vmul.f32 %v795_v0, %v224_v27  ;;  %v233_v18 = vld [vmem:[%s803_s20 + $0xd8] sm:$0xff]  ;;  %v234_v19 = vld [vmem:[%s803_s20 + $0xe0] sm:$0xff]  ;;  %v235_v24 = vld [vmem:[%s803_s20 + $0xe8] sm:$0xff] }
  0x20   : > { %602 = vst.msk [vmem:[%s845_s28 + $0x48] sm:$0xff] %vm592_vm0, %v537_v22  ;;  %v541_v39 = vmax.f32 %v477_v29, 0.0  ;;  %v479_v41 = vadd.f32 %v415_v26, %v351_v31  ;;  %v352_v45 = vadd.f32 %v814_v1, %v287_v36  ;;  %v290_v48 = vmul.f32 %v795_v0, %v225_v32  ;;  %v425_v29 = vld [vmem:[%s809_s23 + $0xc8] sm:$0xff]  ;;  %v236_v36 = vld [vmem:[%s803_s20 + $0xf0] sm:$0xff] }
  0x21   : > { %603 = vst.msk [vmem:[%s845_s28 + $0x50] sm:$0xff] %vm592_vm0, %v538_v28  ;;  %v353_v46 = vadd.f32 %v814_v1, %v288_v37  ;;  %v291_v49 = vmul.f32 %v795_v0, %v226_v33  ;;  %v542_v52 = vmax.f32 %v478_v40, 0.0  ;;  %v354_v54 = vadd.f32 %v814_v1, %v289_v44  ;;  %v424_v28 = vld [vmem:[%s809_s23 + $0xc0] sm:$0xff]  ;;  %v426_v33 = vld [vmem:[%s809_s23 + $0xd0] sm:$0xff]  ;;  %v237_v37 = vld [vmem:[%s803_s20 + $0xf8] sm:$0xff] }
  0x22   : > { %604 = vst.msk [vmem:[%s845_s28 + $0x58] sm:$0xff] %vm592_vm0, %v539_v34  ;;  %v543_v53 = vmax.f32 %v479_v41, 0.0  ;;  %v292_v57 = vmul.f32 %v795_v0, %v227_v38  ;;  %v480_v58 = vadd.f32 %v416_v42, %v352_v45  ;;  %v355_v60 = vadd.f32 %v814_v1, %v290_v48  ;;  %v427_v41 = vld [vmem:[%s809_s23 + $0xd8] sm:$0xff]  ;;  %v428_v42 = vld [vmem:[%s809_s23 + $0xe0] sm:$0xff]  ;;  %v429_v48 = vld [vmem:[%s809_s23 + $0xe8] sm:$0xff] }
  0x23   : > { %605 = vst.msk [vmem:[%s845_s28 + $0x60] sm:$0xff] %vm592_vm0, %v540_v35  ;;  %v481_v59 = vadd.f32 %v417_v43, %v353_v46  ;;  %v356_v61 = vadd.f32 %v814_v1, %v291_v49  ;;  %v482_v63 = vadd.f32 %v418_v47, %v354_v54  ;;  %v293_v3 = vmul.f32 %v795_v0, %v228_v50  ;;  %v239_v54 = vld [vmem:[%s803_s20 + $0x108] sm:$0xff] }
  0x24   : > { %606 = vst.msk [vmem:[%s845_s28 + $0x68] sm:$0xff] %vm592_vm0, %v541_v39  ;;  %v357_v2 = vadd.f32 %v814_v1, %v292_v57  ;;  %v294_v4 = vmul.f32 %v795_v0, %v229_v51  ;;  %v544_v7 = vmax.f32 %v480_v58, 0.0  ;;  %v483_v9 = vadd.f32 %v419_v55, %v355_v60  ;;  %v431_v60 = vld [vmem:[%s809_s23 + $0xf8] sm:$0xff] }
  0x25   : > { %607 = vst.msk [vmem:[%s845_s28 + $0x70] sm:$0xff] %vm592_vm0, %v542_v52  ;;  %v545_v8 = vmax.f32 %v481_v59, 0.0  ;;  %v484_v10 = vadd.f32 %v420_v56, %v356_v61  ;;  %v546_v14 = vmax.f32 %v482_v63, 0.0  ;;  %v358_v16 = vadd.f32 %v814_v1, %v293_v3  ;;  %v430_v59 = vld [vmem:[%s809_s23 + $0xf0] sm:$0xff] }
  0x26   : > { %608 = vst.msk [vmem:[%s845_s28 + $0x78] sm:$0xff] %vm592_vm0, %v543_v53  ;;  %v485_v15 = vadd.f32 %v421_v62, %v357_v2  ;;  %v359_v17 = vadd.f32 %v814_v1, %v294_v4  ;;  %v547_v20 = vmax.f32 %v483_v9, 0.0  ;;  %v295_v22 = vmul.f32 %v795_v0, %v230_v5  ;;  %v238_v53 = vld [vmem:[%s803_s20 + $0x100] sm:$0xff]  ;;  %v240_v61 = vld [vmem:[%s803_s20 + $0x110] sm:$0xff]  ;;  %v241_v4 = vld [vmem:[%s803_s20 + $0x118] sm:$0xff] }
  0x27   : > { %609 = vst.msk [vmem:[%s845_s28 + $0x80] sm:$0xff] %vm592_vm0, %v544_v7  ;;  %v548_v21 = vmax.f32 %v484_v10, 0.0  ;;  %v296_v23 = vmul.f32 %v795_v0, %v231_v6  ;;  %v486_v26 = vadd.f32 %v422_v11, %v358_v16  ;;  %v297_v30 = vmul.f32 %v795_v0, %v232_v13  ;;  %v242_v5 = vld [vmem:[%s803_s20 + $0x120] sm:$0xff]  ;;  %v243_v10 = vld [vmem:[%s803_s20 + $0x128] sm:$0xff] }
  0x28   : > { %610 = vst.msk [vmem:[%s845_s28 + $0x88] sm:$0xff] %vm592_vm0, %v545_v8  ;;  %v549_v25 = vmax.f32 %v485_v15, 0.0  ;;  %v487_v27 = vadd.f32 %v423_v12, %v359_v17  ;;  %v360_v31 = vadd.f32 %v814_v1, %v295_v22  ;;  %v298_v34 = vmul.f32 %v795_v0, %v233_v18  ;;  %v433_v15 = vld [vmem:[%s809_s23 + $0x108] sm:$0xff]  ;;  %v244_v22 = vld [vmem:[%s803_s20 + $0x130] sm:$0xff] }
  0x29   : > { %611 = vst.msk [vmem:[%s845_s28 + $0x90] sm:$0xff] %vm592_vm0, %v546_v14  ;;  %v361_v32 = vadd.f32 %v814_v1, %v296_v23  ;;  %v299_v35 = vmul.f32 %v795_v0, %v234_v19  ;;  %v550_v38 = vmax.f32 %v486_v26, 0.0  ;;  %v362_v40 = vadd.f32 %v814_v1, %v297_v30  ;;  %v432_v14 = vld [vmem:[%s809_s23 + $0x100] sm:$0xff]  ;;  %v434_v19 = vld [vmem:[%s809_s23 + $0x110] sm:$0xff]  ;;  %v245_v23 = vld [vmem:[%s803_s20 + $0x138] sm:$0xff] }
  0x2a   : > { %612 = vst.msk [vmem:[%s845_s28 + $0x98] sm:$0xff] %vm592_vm0, %v547_v20  ;;  %v551_v39 = vmax.f32 %v487_v27, 0.0  ;;  %v300_v43 = vmul.f32 %v795_v0, %v235_v24  ;;  %v488_v44 = vadd.f32 %v424_v28, %v360_v31  ;;  %v363_v46 = vadd.f32 %v814_v1, %v298_v34  ;;  %v435_v27 = vld [vmem:[%s809_s23 + $0x118] sm:$0xff]  ;;  %v436_v28 = vld [vmem:[%s809_s23 + $0x120] sm:$0xff]  ;;  %v437_v34 = vld [vmem:[%s809_s23 + $0x128] sm:$0xff] }
  0x2b   : > { %613 = vst.msk [vmem:[%s845_s28 + $0xa0] sm:$0xff] %vm592_vm0, %v548_v21  ;;  %v489_v45 = vadd.f32 %v425_v29, %v361_v32  ;;  %v364_v47 = vadd.f32 %v814_v1, %v299_v35  ;;  %v490_v49 = vadd.f32 %v426_v33, %v362_v40  ;;  %v301_v51 = vmul.f32 %v795_v0, %v236_v36  ;;  %v247_v40 = vld [vmem:[%s803_s20 + $0x148] sm:$0xff] }
  0x2c   : > { %614 = vst.msk [vmem:[%s845_s28 + $0xa8] sm:$0xff] %vm592_vm0, %v549_v25  ;;  %v365_v50 = vadd.f32 %v814_v1, %v300_v43  ;;  %v302_v52 = vmul.f32 %v795_v0, %v237_v37  ;;  %v552_v55 = vmax.f32 %v488_v44, 0.0  ;;  %v491_v57 = vadd.f32 %v427_v41, %v363_v46  ;;  %v439_v46 = vld [vmem:[%s809_s23 + $0x138] sm:$0xff] }
  0x2d   : > { %615 = vst.msk [vmem:[%s845_s28 + $0xb0] sm:$0xff] %vm592_vm0, %v550_v38  ;;  %v553_v56 = vmax.f32 %v489_v45, 0.0  ;;  %v492_v58 = vadd.f32 %v428_v42, %v364_v47  ;;  %v554_v62 = vmax.f32 %v490_v49, 0.0  ;;  %v366_v2 = vadd.f32 %v814_v1, %v301_v51  ;;  %v438_v45 = vld [vmem:[%s809_s23 + $0x130] sm:$0xff] }
  0x2e   : > { %616 = vst.msk [vmem:[%s845_s28 + $0xb8] sm:$0xff] %vm592_vm0, %v551_v39  ;;  %v493_v63 = vadd.f32 %v429_v48, %v365_v50  ;;  %v367_v3 = vadd.f32 %v814_v1, %v302_v52  ;;  %v555_v6 = vmax.f32 %v491_v57, 0.0  ;;  %v303_v8 = vmul.f32 %v795_v0, %v238_v53  ;;  %v246_v39 = vld [vmem:[%s803_s20 + $0x140] sm:$0xff]  ;;  %v248_v47 = vld [vmem:[%s803_s20 + $0x150] sm:$0xff]  ;;  %v249_v52 = vld [vmem:[%s803_s20 + $0x158] sm:$0xff] }
  0x2f   : > { %617 = vst.msk [vmem:[%s845_s28 + $0xc0] sm:$0xff] %vm592_vm0, %v552_v55  ;;  %v556_v7 = vmax.f32 %v492_v58, 0.0  ;;  %v304_v9 = vmul.f32 %v795_v0, %v239_v54  ;;  %v494_v12 = vadd.f32 %v430_v59, %v366_v2  ;;  %v305_v16 = vmul.f32 %v795_v0, %v240_v61  ;;  %v250_v53 = vld [vmem:[%s803_s20 + $0x160] sm:$0xff]  ;;  %v251_v58 = vld [vmem:[%s803_s20 + $0x168] sm:$0xff] }
  0x30   : > { %618 = vst.msk [vmem:[%s845_s28 + $0xc8] sm:$0xff] %vm592_vm0, %v553_v56  ;;  %v557_v11 = vmax.f32 %v493_v63, 0.0  ;;  %v495_v13 = vadd.f32 %v431_v60, %v367_v3  ;;  %v368_v17 = vadd.f32 %v814_v1, %v303_v8  ;;  %v306_v20 = vmul.f32 %v795_v0, %v241_v4  ;;  %v441_v63 = vld [vmem:[%s809_s23 + $0x148] sm:$0xff]  ;;  %v252_v8 = vld [vmem:[%s803_s20 + $0x170] sm:$0xff] }
  0x31   : > { %619 = vst.msk [vmem:[%s845_s28 + $0xd0] sm:$0xff] %vm592_vm0, %v554_v62  ;;  %v369_v18 = vadd.f32 %v814_v1, %v304_v9  ;;  %v307_v21 = vmul.f32 %v795_v0, %v242_v5  ;;  %v558_v24 = vmax.f32 %v494_v12, 0.0  ;;  %v370_v26 = vadd.f32 %v814_v1, %v305_v16  ;;  %v440_v62 = vld [vmem:[%s809_s23 + $0x140] sm:$0xff]  ;;  %v442_v5 = vld [vmem:[%s809_s23 + $0x150] sm:$0xff]  ;;  %v253_v9 = vld [vmem:[%s803_s20 + $0x178] sm:$0xff] }
  0x32   : > { %620 = vst.msk [vmem:[%s845_s28 + $0xd8] sm:$0xff] %vm592_vm0, %v555_v6  ;;  %v559_v25 = vmax.f32 %v495_v13, 0.0  ;;  %v308_v29 = vmul.f32 %v795_v0, %v243_v10  ;;  %v496_v30 = vadd.f32 %v432_v14, %v368_v17  ;;  %v371_v32 = vadd.f32 %v814_v1, %v306_v20  ;;  %v443_v13 = vld [vmem:[%s809_s23 + $0x158] sm:$0xff]  ;;  %v444_v14 = vld [vmem:[%s809_s23 + $0x160] sm:$0xff]  ;;  %v445_v20 = vld [vmem:[%s809_s23 + $0x168] sm:$0xff] }
  0x33   : > { %621 = vst.msk [vmem:[%s845_s28 + $0xe0] sm:$0xff] %vm592_vm0, %v556_v7  ;;  %v497_v31 = vadd.f32 %v433_v15, %v369_v18  ;;  %v372_v33 = vadd.f32 %v814_v1, %v307_v21  ;;  %v498_v35 = vadd.f32 %v434_v19, %v370_v26  ;;  %v309_v37 = vmul.f32 %v795_v0, %v244_v22  ;;  %v255_v26 = vld [vmem:[%s803_s20 + $0x188] sm:$0xff] }
  0x34   : > { %622 = vst.msk [vmem:[%s845_s28 + $0xe8] sm:$0xff] %vm592_vm0, %v557_v11  ;;  %v373_v36 = vadd.f32 %v814_v1, %v308_v29  ;;  %v310_v38 = vmul.f32 %v795_v0, %v245_v23  ;;  %v560_v41 = vmax.f32 %v496_v30, 0.0  ;;  %v499_v43 = vadd.f32 %v435_v27, %v371_v32  ;;  %v447_v32 = vld [vmem:[%s809_s23 + $0x178] sm:$0xff] }
  0x35   : > { %623 = vst.msk [vmem:[%s845_s28 + $0xf0] sm:$0xff] %vm592_vm0, %v558_v24  ;;  %v561_v42 = vmax.f32 %v497_v31, 0.0  ;;  %v500_v44 = vadd.f32 %v436_v28, %v372_v33  ;;  %v562_v48 = vmax.f32 %v498_v35, 0.0  ;;  %v374_v50 = vadd.f32 %v814_v1, %v309_v37  ;;  %v446_v31 = vld [vmem:[%s809_s23 + $0x170] sm:$0xff] }
  0x36   : > { %624 = vst.msk [vmem:[%s845_s28 + $0xf8] sm:$0xff] %vm592_vm0, %v559_v25  ;;  %v501_v49 = vadd.f32 %v437_v34, %v373_v36  ;;  %v375_v51 = vadd.f32 %v814_v1, %v310_v38  ;;  %v563_v54 = vmax.f32 %v499_v43, 0.0  ;;  %v311_v56 = vmul.f32 %v795_v0, %v246_v39  ;;  %v254_v25 = vld [vmem:[%s803_s20 + $0x180] sm:$0xff]  ;;  %v256_v33 = vld [vmem:[%s803_s20 + $0x190] sm:$0xff]  ;;  %v257_v38 = vld [vmem:[%s803_s20 + $0x198] sm:$0xff] }
  0x37   : > { %625 = vst.msk [vmem:[%s845_s28 + $0x100] sm:$0xff] %vm592_vm0, %v560_v41  ;;  %v564_v55 = vmax.f32 %v500_v44, 0.0  ;;  %v312_v57 = vmul.f32 %v795_v0, %v247_v40  ;;  %v502_v60 = vadd.f32 %v438_v45, %v374_v50  ;;  %v313_v2 = vmul.f32 %v795_v0, %v248_v47  ;;  %v258_v39 = vld [vmem:[%s803_s20 + $0x1a0] sm:$0xff]  ;;  %v259_v44 = vld [vmem:[%s803_s20 + $0x1a8] sm:$0xff] }
  0x38   : > { %626 = vst.msk [vmem:[%s845_s28 + $0x108] sm:$0xff] %vm592_vm0, %v561_v42  ;;  %v565_v59 = vmax.f32 %v501_v49, 0.0  ;;  %v503_v61 = vadd.f32 %v439_v46, %v375_v51  ;;  %v376_v3 = vadd.f32 %v814_v1, %v311_v56  ;;  %v314_v6 = vmul.f32 %v795_v0, %v249_v52  ;;  %v449_v49 = vld [vmem:[%s809_s23 + $0x188] sm:$0xff]  ;;  %v260_v56 = vld [vmem:[%s803_s20 + $0x1b0] sm:$0xff] }
  0x39   : > { %627 = vst.msk [vmem:[%s845_s28 + $0x110] sm:$0xff] %vm592_vm0, %v562_v48  ;;  %v377_v4 = vadd.f32 %v814_v1, %v312_v57  ;;  %v315_v7 = vmul.f32 %v795_v0, %v250_v53  ;;  %v566_v10 = vmax.f32 %v502_v60, 0.0  ;;  %v378_v12 = vadd.f32 %v814_v1, %v313_v2  ;;  %v448_v48 = vld [vmem:[%s809_s23 + $0x180] sm:$0xff]  ;;  %v450_v53 = vld [vmem:[%s809_s23 + $0x190] sm:$0xff]  ;;  %v261_v57 = vld [vmem:[%s803_s20 + $0x1b8] sm:$0xff] }
  0x3a   : > { %628 = vst.msk [vmem:[%s845_s28 + $0x118] sm:$0xff] %vm592_vm0, %v563_v54  ;;  %v567_v11 = vmax.f32 %v503_v61, 0.0  ;;  %v316_v15 = vmul.f32 %v795_v0, %v251_v58  ;;  %v504_v16 = vadd.f32 %v440_v62, %v376_v3  ;;  %v379_v18 = vadd.f32 %v814_v1, %v314_v6  ;;  %v451_v61 = vld [vmem:[%s809_s23 + $0x198] sm:$0xff]  ;;  %v452_v62 = vld [vmem:[%s809_s23 + $0x1a0] sm:$0xff]  ;;  %v453_v6 = vld [vmem:[%s809_s23 + $0x1a8] sm:$0xff] }
  0x3b   : > { %629 = vst.msk [vmem:[%s845_s28 + $0x120] sm:$0xff] %vm592_vm0, %v564_v55  ;;  %v505_v17 = vadd.f32 %v441_v63, %v377_v4  ;;  %v380_v19 = vadd.f32 %v814_v1, %v315_v7  ;;  %v506_v21 = vadd.f32 %v442_v5, %v378_v12  ;;  %v317_v23 = vmul.f32 %v795_v0, %v252_v8  ;;  %v263_v12 = vld [vmem:[%s803_s20 + $0x1c8] sm:$0xff] }
  0x3c   : > { %630 = vst.msk [vmem:[%s845_s28 + $0x128] sm:$0xff] %vm592_vm0, %v565_v59  ;;  %v381_v22 = vadd.f32 %v814_v1, %v316_v15  ;;  %v318_v24 = vmul.f32 %v795_v0, %v253_v9  ;;  %v568_v27 = vmax.f32 %v504_v16, 0.0  ;;  %v507_v29 = vadd.f32 %v443_v13, %v379_v18  ;;  %v455_v18 = vld [vmem:[%s809_s23 + $0x1b8] sm:$0xff] }
  0x3d   : > { %631 = vst.msk [vmem:[%s845_s28 + $0x130] sm:$0xff] %vm592_vm0, %v566_v10  ;;  %v569_v28 = vmax.f32 %v505_v17, 0.0  ;;  %v508_v30 = vadd.f32 %v444_v14, %v380_v19  ;;  %v570_v34 = vmax.f32 %v506_v21, 0.0  ;;  %v382_v36 = vadd.f32 %v814_v1, %v317_v23  ;;  %v454_v17 = vld [vmem:[%s809_s23 + $0x1b0] sm:$0xff] }
  0x3e   : > { %632 = vst.msk [vmem:[%s845_s28 + $0x138] sm:$0xff] %vm592_vm0, %v567_v11  ;;  %v509_v35 = vadd.f32 %v445_v20, %v381_v22  ;;  %v383_v37 = vadd.f32 %v814_v1, %v318_v24  ;;  %v571_v40 = vmax.f32 %v507_v29, 0.0  ;;  %v319_v42 = vmul.f32 %v795_v0, %v254_v25  ;;  %v262_v11 = vld [vmem:[%s803_s20 + $0x1c0] sm:$0xff]  ;;  %v264_v19 = vld [vmem:[%s803_s20 + $0x1d0] sm:$0xff]  ;;  %v265_v24 = vld [vmem:[%s803_s20 + $0x1d8] sm:$0xff] }
  0x3f   : > { %633 = vst.msk [vmem:[%s845_s28 + $0x140] sm:$0xff] %vm592_vm0, %v568_v27  ;;  %v572_v41 = vmax.f32 %v508_v30, 0.0  ;;  %v320_v43 = vmul.f32 %v795_v0, %v255_v26  ;;  %v510_v46 = vadd.f32 %v446_v31, %v382_v36  ;;  %v321_v50 = vmul.f32 %v795_v0, %v256_v33  ;;  %v266_v25 = vld [vmem:[%s803_s20 + $0x1e0] sm:$0xff]  ;;  %v267_v30 = vld [vmem:[%s803_s20 + $0x1e8] sm:$0xff] }
  0x40   : > { %634 = vst.msk [vmem:[%s845_s28 + $0x148] sm:$0xff] %vm592_vm0, %v569_v28  ;;  %v573_v45 = vmax.f32 %v509_v35, 0.0  ;;  %v511_v47 = vadd.f32 %v447_v32, %v383_v37  ;;  %v384_v51 = vadd.f32 %v814_v1, %v319_v42  ;;  %v322_v54 = vmul.f32 %v795_v0, %v257_v38  ;;  %v457_v35 = vld [vmem:[%s809_s23 + $0x1c8] sm:$0xff]  ;;  %v268_v42 = vld [vmem:[%s803_s20 + $0x1f0] sm:$0xff] }
  0x41   : > { %635 = vst.msk [vmem:[%s845_s28 + $0x150] sm:$0xff] %vm592_vm0, %v570_v34  ;;  %v385_v52 = vadd.f32 %v814_v1, %v320_v43  ;;  %v323_v55 = vmul.f32 %v795_v0, %v258_v39  ;;  %v574_v58 = vmax.f32 %v510_v46, 0.0  ;;  %v386_v60 = vadd.f32 %v814_v1, %v321_v50  ;;  %v456_v34 = vld [vmem:[%s809_s23 + $0x1c0] sm:$0xff]  ;;  %v458_v39 = vld [vmem:[%s809_s23 + $0x1d0] sm:$0xff]  ;;  %v269_v43 = vld [vmem:[%s803_s20 + $0x1f8] sm:$0xff] }
  0x42   : > { %636 = vst.msk [vmem:[%s845_s28 + $0x158] sm:$0xff] %vm592_vm0, %v571_v40  ;;  %v575_v59 = vmax.f32 %v511_v47, 0.0  ;;  %v324_v63 = vmul.f32 %v795_v0, %v259_v44  ;;  %v512_v2 = vadd.f32 %v448_v48, %v384_v51  ;;  %v387_v4 = vadd.f32 %v814_v1, %v322_v54  ;;  %v459_v47 = vld [vmem:[%s809_s23 + $0x1d8] sm:$0xff]  ;;  %v460_v48 = vld [vmem:[%s809_s23 + $0x1e0] sm:$0xff]  ;;  %v461_v54 = vld [vmem:[%s809_s23 + $0x1e8] sm:$0xff] }
  0x43   : > { %637 = vst.msk [vmem:[%s845_s28 + $0x160] sm:$0xff] %vm592_vm0, %v572_v41  ;;  %v513_v3 = vadd.f32 %v449_v49, %v385_v52  ;;  %v388_v5 = vadd.f32 %v814_v1, %v323_v55  ;;  %v514_v7 = vadd.f32 %v450_v53, %v386_v60  ;;  %v325_v9 = vmul.f32 %v795_v0, %v260_v56 }
  0x44   : > { %638 = vst.msk [vmem:[%s845_s28 + $0x168] sm:$0xff] %vm592_vm0, %v573_v45  ;;  %v389_v8 = vadd.f32 %v814_v1, %v324_v63  ;;  %v326_v10 = vmul.f32 %v795_v0, %v261_v57  ;;  %v576_v13 = vmax.f32 %v512_v2, 0.0  ;;  %v515_v15 = vadd.f32 %v451_v61, %v387_v4  ;;  %v462_v63 = vld [vmem:[%s809_s23 + $0x1f0] sm:$0xff]  ;;  %v463_v2 = vld [vmem:[%s809_s23 + $0x1f8] sm:$0xff] }
  0x45   : > { %639 = vst.msk [vmem:[%s845_s28 + $0x170] sm:$0xff] %vm592_vm0, %v574_v58  ;;  %v577_v14 = vmax.f32 %v513_v3, 0.0  ;;  %v516_v16 = vadd.f32 %v452_v62, %v388_v5  ;;  %v578_v20 = vmax.f32 %v514_v7, 0.0  ;;  %v390_v22 = vadd.f32 %v814_v1, %v325_v9 }
  0x46   : > { %640 = vst.msk [vmem:[%s845_s28 + $0x178] sm:$0xff] %vm592_vm0, %v575_v59  ;;  %v517_v21 = vadd.f32 %v453_v6, %v389_v8  ;;  %v391_v23 = vadd.f32 %v814_v1, %v326_v10  ;;  %v579_v26 = vmax.f32 %v515_v15, 0.0  ;;  %v327_v28 = vmul.f32 %v795_v0, %v262_v11 }
  0x47   : > { %641 = vst.msk [vmem:[%s845_s28 + $0x180] sm:$0xff] %vm592_vm0, %v576_v13  ;;  %v580_v27 = vmax.f32 %v516_v16, 0.0  ;;  %v328_v29 = vmul.f32 %v795_v0, %v263_v12  ;;  %v518_v32 = vadd.f32 %v454_v17, %v390_v22  ;;  %v329_v36 = vmul.f32 %v795_v0, %v264_v19 }
  0x48   : > { %642 = vst.msk [vmem:[%s845_s28 + $0x188] sm:$0xff] %vm592_vm0, %v577_v14  ;;  %v581_v31 = vmax.f32 %v517_v21, 0.0  ;;  %v519_v33 = vadd.f32 %v455_v18, %v391_v23  ;;  %v392_v37 = vadd.f32 %v814_v1, %v327_v28  ;;  %v330_v40 = vmul.f32 %v795_v0, %v265_v24 }
  0x49   : > { %643 = vst.msk [vmem:[%s845_s28 + $0x190] sm:$0xff] %vm592_vm0, %v578_v20  ;;  %v393_v38 = vadd.f32 %v814_v1, %v328_v29  ;;  %v331_v41 = vmul.f32 %v795_v0, %v266_v25  ;;  %v582_v44 = vmax.f32 %v518_v32, 0.0  ;;  %v394_v46 = vadd.f32 %v814_v1, %v329_v36 }
  0x4a   : > { %644 = vst.msk [vmem:[%s845_s28 + $0x198] sm:$0xff] %vm592_vm0, %v579_v26  ;;  %v583_v45 = vmax.f32 %v519_v33, 0.0  ;;  %v332_v49 = vmul.f32 %v795_v0, %v267_v30  ;;  %v520_v50 = vadd.f32 %v456_v34, %v392_v37  ;;  %v395_v52 = vadd.f32 %v814_v1, %v330_v40 }
  0x4b   : > { %645 = vst.msk [vmem:[%s845_s28 + $0x1a0] sm:$0xff] %vm592_vm0, %v580_v27  ;;  %v521_v51 = vadd.f32 %v457_v35, %v393_v38  ;;  %v396_v53 = vadd.f32 %v814_v1, %v331_v41  ;;  %v522_v55 = vadd.f32 %v458_v39, %v394_v46  ;;  %v333_v57 = vmul.f32 %v795_v0, %v268_v42 }
  0x4c   : > { %646 = vst.msk [vmem:[%s845_s28 + $0x1a8] sm:$0xff] %vm592_vm0, %v581_v31  ;;  %v397_v56 = vadd.f32 %v814_v1, %v332_v49  ;;  %v334_v58 = vmul.f32 %v795_v0, %v269_v43  ;;  %v584_v59 = vmax.f32 %v520_v50, 0.0  ;;  %v523_v61 = vadd.f32 %v459_v47, %v395_v52 }
  0x4d   : > { %647 = vst.msk [vmem:[%s845_s28 + $0x1b0] sm:$0xff] %vm592_vm0, %v582_v44  ;;  %v585_v60 = vmax.f32 %v521_v51, 0.0  ;;  %v524_v62 = vadd.f32 %v460_v48, %v396_v53  ;;  %v586_v3 = vmax.f32 %v522_v55, 0.0  ;;  %v398_v0 = vadd.f32 %v814_v1, %v333_v57 }
  0x4e   : > { %648 = vst.msk [vmem:[%s845_s28 + $0x1b8] sm:$0xff] %vm592_vm0, %v583_v45  ;;  %v525_v4 = vadd.f32 %v461_v54, %v397_v56  ;;  %v399_v5 = vadd.f32 %v814_v1, %v334_v58  ;;  %v587_v6 = vmax.f32 %v523_v61, 0.0 }
  0x4f   : > { %649 = vst.msk [vmem:[%s845_s28 + $0x1c0] sm:$0xff] %vm592_vm0, %v584_v59  ;;  %v588_v7 = vmax.f32 %v524_v62, 0.0  ;;  %v526_v9 = vadd.f32 %v462_v63, %v398_v0 }
  0x50   : > { %650 = vst.msk [vmem:[%s845_s28 + $0x1c8] sm:$0xff] %vm592_vm0, %v585_v60  ;;  %v589_v8 = vmax.f32 %v525_v4, 0.0  ;;  %v527_v10 = vadd.f32 %v463_v2, %v399_v5 }
  0x51   : > { %651 = vst.msk [vmem:[%s845_s28 + $0x1d0] sm:$0xff] %vm592_vm0, %v586_v3  ;;  %v590_v11 = vmax.f32 %v526_v9, 0.0 }
  0x52   : > { %652 = vst.msk [vmem:[%s845_s28 + $0x1d8] sm:$0xff] %vm592_vm0, %v587_v6  ;;  %v591_v12 = vmax.f32 %v527_v10, 0.0 }
  0x53   : > { %653 = vst.msk [vmem:[%s845_s28 + $0x1e0] sm:$0xff] %vm592_vm0, %v588_v7 }
  0x54   : > { %654 = vst.msk [vmem:[%s845_s28 + $0x1e8] sm:$0xff] %vm592_vm0, %v589_v8 }
  0x55   : > { %655 = vst.msk [vmem:[%s845_s28 + $0x1f0] sm:$0xff] %vm592_vm0, %v590_v11 }
  0x56   : > { %656 = vst.msk [vmem:[%s845_s28 + $0x1f8] sm:$0xff] %vm592_vm0, %v591_v12 }
  0x57 PF: > { %s13_s12 = sadd.s32 1, %s762_s12  }
  0x58   : > { %p10_p4 = scmp.ge.s32.totalorder %s13_s12, 4  }
  0x5a   :  { %12 = sbr.rel (!%p10_p4) target bundleno = 1 (0x1), region = 65 }

// kernel: resnet_basic_block.3
= control target key start
LH: loop header
LB: loop body
LE: loop exit
PB: predicated region body
PF: predicated region fallthrough
CT: control target
= control target key end

     0   :  { %s2969_s12 = smov 0   ;;  %s5012_s0 = inlined_call_operand.vmem [shape: f32[4,16,16,4], index: 0, kind: input, shape index: {}]   ;;  %s5013_s1 = inlined_call_operand.vmem [shape: f32[3,12,4], index: 1, kind: input, shape index: {}]   ;;  %s5014_s2 = inlined_call_operand.vmem [shape: f32[4,16,16,4], index: 2, kind: output, shape index: {0}]   ;;  %s5015_s3 = inlined_call_operand.vmem [shape: f32[2,2,4], index: 3, kind: output, shape index: {1}]  }
   0x1 LB: > { %s2975_s13 = sadd.s32 4294967295, %s2944_s12   ;;  %p2705_p0 = scmp.ge.s32.totalorder %s2944_s12, 1  ;;  %s2944_s12 = sphi %s2969_s12, %s14_s12  }
   0x2   : > { %p142_p1 = scmp.lt.s32.totalorder %s2944_s12, 3 }
   0x4   : > { %p143_p2 = pnand %p2705_p0, %p142_p1 }
   0x6   : > { %146 = sbr.rel (%p143_p2) target bundleno = 896 (0x380), region = 28 }
   0xb   : > { %s2706_s14 = sshll.u32 %s2975_s13, 1  ;;  %v2946_v0 = vmov 0.0   ;;  %s2947_s15 = smov 4   ;;  %vm501_vm0 = vcmask 1046528   ;;  %v1183_v50 = vld [vmem:[%s5013_s1 + $0x8] sm:$0xf] }
   0xc   : > { %656 = vrot.lane.b32.xlu1 %v2946_v0, %s2947_s15  ;;  %p173_p3 = scmp.lt.s32.totalorder %s2706_s14, 3  ;;  %v502_v1 = vrot.slane %v2946_v0, 1  ;;  %s2948_s20 = smov 8   ;;  %vm1440_vm1 = vcmask 1043456   ;;  %v1182_v53 = vld [vmem:[%s5013_s1] sm:$0xff]  ;;  %v2713_v58 = vld [vmem:[%s5013_s1 + $0x10] sm:$0xff] }
   0xd   : > { %2780 = vmatpush.msk.msra.mxu1 %vm1440_vm1, %v1183_v50  ;;  %v2714_v57 = vld [vmem:[%s5013_s1 + $0x18] sm:$0xf]  ;;  %vm315_vm2 = vcmask 1040384   ;;  %vm1056_vm3 = vcmask 31744   ;;  %vm1119_vm4 = vcmask 64512   ;;  %vm1247_vm5 = vcmask 97280  }
   0xe   : > { %s5137_s14 = smov (!%p173_p3, %s2706_s14), 3  ;;  %v625_v2 = vsel %vm501_vm0, %v502_v1, 0.0  ;;  %2715 = vmatpush.msk.msra.mxu0 %vm1440_vm1, %v2714_v57  ;;  %2916 = vmatpush.msk.msra.mxu3 %vm1440_vm1, %v2714_v57  ;;  %p186_p4 = scmp.lt.s32.totalorder %s2975_s13, 1  ;;  %vm2610_vm6 = vcmask 25600  }
   0xf   : > { %v2933_v3 = vpack.i.bf16 %v625_v2, %v502_v1  ;;  %s2914_s16 = sshll.u32 %s5137_s14, 8  ;;  %1677 = vmatpush.msra.mxu1 %v1182_v53  ;;  %v3161_v1 = vld [vmem:[%s5013_s1 + $0x28] sm:$0xf] }
  0x10   : > { %s2992_s19 = scalar_lea.vmem %s5012_s0, %s2914_s16  ;;  %1459 = vmatpush.msra.mxu0 %v2713_v58  ;;  %2917 = vmatpush.msra.mxu3 %v2713_v58  ;;  %s3700_s8 = scalar_lea.vmem %s5014_s2, %s2914_s16 }
  0x11   : > { %2934 = vrot.lane.b32.xlu2 %v2933_v3, %s2948_s20  ;;  %v2996_v4 = vld [vmem:[%s2992_s19 + $0x10] sm:$0xff]  ;;  %v2999_v5 = vld [vmem:[%s2992_s19] sm:$0xff]  ;;  %v3002_v6 = vld [vmem:[%s2992_s19 + $0x18] sm:$0xff]  ;;  %2847 = vmatpush.msk.msra.mxu2 %vm1440_vm1, %v3161_v1  ;;  %s5139_s13 = smov (!%p186_p4, %s2975_s13), 1 }
  0x12   : > { %662 = vrot.lane.b32.xlu0 %v2996_v4, %s2947_s15  ;;  %v504_v7 = vrot.slane %v2999_v5, 1  ;;  %v3008_v8 = vld [vmem:[%s2992_s19 + $0x8] sm:$0xff]  ;;  %v507_v9 = vrot.slane %v2996_v4, 1  ;;  %v508_v10 = vrot.slane %v3002_v6, 1  ;;  %v3022_v15 = vld [vmem:[%s2992_s19 + $0x20] sm:$0xff]  ;;  %v3040_v22 = vld [vmem:[%s2992_s19 + $0x30] sm:$0xff]  ;;  %2918 = vmatpush.msk.msrb.mxu3 %vm1440_vm1, %v1183_v50 }
  0x13   : > { %v505_v11 = vrot.slane %v3008_v8, 1  ;;  %v3025_v16 = vld [vmem:[%s2992_s19 + $0x28] sm:$0xff]  ;;  %v510_v17 = vrot.slane %v3022_v15, 1  ;;  %v3043_v23 = vld [vmem:[%s2992_s19 + $0x38] sm:$0xff]  ;;  %v513_v24 = vrot.slane %v3040_v22, 1  ;;  %v3050_v26 = vld [vmem:[%s2992_s19 + $0x180] sm:$0xff] }
  0x14   : > { %658 = vrot.lane.b32.xlu1 %v2999_v5, %s2947_s15  ;;  %v509_v13 = vsel %vm501_vm0, %v507_v9, %v508_v10  ;;  %v627_v14 = vsel %vm501_vm0, %v508_v10, 0.0  ;;  %v511_v18 = vrot.slane %v3025_v16, 1  ;;  %v514_v25 = vrot.slane %v3043_v23, 1  ;;  %v3059_v29 = vld [vmem:[%s2992_s19 + $0x188] sm:$0xff]  ;;  %v3071_v33 = vld [vmem:[%s2992_s19 + $0x40] sm:$0xff]  ;;  %v3075_v34 = vld [vmem:[%s2992_s19 + $0x190] sm:$0xff]  ;;  %2919 = vmatpush.msrb.mxu3 %v1182_v53 }
  0x15   : > { %v506_v12 = vsel %vm501_vm0, %v504_v7, %v505_v11  ;;  %v626_v20 = vsel %vm501_vm0, %v505_v11, 0.0  ;;  %v573_v28 = vrot.slane %v3050_v26, 1  ;;  %v574_v30 = vrot.slane %v3059_v29, 1  ;;  %v3078_v35 = vld [vmem:[%s2992_s19 + $0x198] sm:$0xff]  ;;  %v3088_v39 = vld [vmem:[%s2992_s19 + $0x48] sm:$0xff]  ;;  %v3105_v46 = vld [vmem:[%s2992_s19 + $0x50] sm:$0xff] }
  0x16   : > { %v512_v19 = vsel %vm501_vm0, %v510_v17, %v511_v18  ;;  %v628_v21 = vsel %vm501_vm0, %v511_v18, 0.0  ;;  %v515_v27 = vsel %vm501_vm0, %v513_v24, %v514_v25  ;;  %v629_v32 = vsel %vm501_vm0, %v514_v25, 0.0  ;;  %v3108_v47 = vld [vmem:[%s2992_s19 + $0x1a0] sm:$0xff]  ;;  %v3115_v49 = vld [vmem:[%s2992_s19 + $0x58] sm:$0xff]  ;;  %v3129_v54 = vld [vmem:[%s2992_s19 + $0x1a8] sm:$0xff]  ;;  %s2712_s9 = sshll.u32 %s5139_s13, 1 }
  0x17   : > { %v575_v31 = vsel %vm501_vm0, %v573_v28, %v574_v30  ;;  %v576_v36 = vrot.slane %v3075_v34, 1  ;;  %v577_v37 = vrot.slane %v3078_v35, 1  ;;  %v649_v38 = vsel %vm501_vm0, %v574_v30, 0.0  ;;  %v3152_v61 = vld [vmem:[%s2992_s19 + $0x60] sm:$0xff]  ;;  %v3155_v62 = vld [vmem:[%s2992_s19 + $0x68] sm:$0xff]  ;;  %v3176_v10 = vld [vmem:[%s2992_s19 + $0x1b0] sm:$0xff]  ;;  %s189_s14 = scalar_lea.vmem %s5015_s3, %s2712_s9 }
  0x18   : > { %v516_v41 = vrot.slane %v3071_v33, 1  ;;  %v517_v42 = vrot.slane %v3088_v39, 1  ;;  %v519_v48 = vrot.slane %v3105_v46, 1  ;;  %v520_v51 = vrot.slane %v3115_v49, 1  ;;  %v3171_v7 = vld [vmem:[%s5013_s1 + $0x20] sm:$0xff] }
  0x19   : > { %874 = vrot.lane.b32.xlu2 %v506_v12, %s2948_s20  ;;  %v578_v40 = vsel %vm501_vm0, %v576_v36, %v577_v37  ;;  %v650_v45 = vsel %vm501_vm0, %v577_v37, 0.0  ;;  %v579_v55 = vrot.slane %v3108_v47, 1  ;;  %v580_v56 = vrot.slane %v3129_v54, 1  ;;  %1892 = vmatpush.msra.mxu2 %v3171_v7  ;;  %v3213_v36 = vld [vmem:[%s2992_s19 + $0x70] sm:$0xff] }
  0x1a   : > { %878 = vrot.lane.b32.xlu0 %v509_v13, %s2948_s20  ;;  %v518_v43 = vsel %vm501_vm0, %v516_v41, %v517_v42  ;;  %v630_v44 = vsel %vm501_vm0, %v517_v42, 0.0  ;;  %v521_v52 = vsel %vm501_vm0, %v519_v48, %v520_v51  ;;  %v522_v2 = vrot.slane %v3152_v61, 1 }
  0x1b   : > { %v581_v59 = vsel %vm501_vm0, %v579_v55, %v580_v56  ;;  %v651_v60 = vsel %vm501_vm0, %v580_v56, 0.0  ;;  %v523_v3 = vrot.slane %v3155_v62, 1  ;;  %v631_v9 = vsel %vm501_vm0, %v520_v51, 0.0  ;;  %v3244_v56 = vld [vmem:[%s2992_s19 + $0x78] sm:$0xff] }
  0x1c   : > { %880 = vrot.lane.b32.xlu1 %v627_v14, %s2948_s20  ;;  %v319_v12 = vrot.slane %v3008_v8, 7  ;;  %v582_v13 = vrot.slane %v3176_v10, 1  ;;  %v3185_v14 = vld [vmem:[%s2992_s19 + $0x1b8] sm:$0xff]  ;;  %v318_v18 = vrot.slane %v2999_v5, 7  ;;  %v325_v28 = vrot.slane %v3025_v16, 7 }
  0x1d   : > { %v524_v11 = vsel %vm501_vm0, %v522_v2, %v523_v3  ;;  %v321_v48 = vrot.slane %v2996_v4, 7 }
  0x1e   : > { %v471_v42 = vsel %vm315_vm2, 0.0, %v318_v18 }
  0x1f   : > { %v472_v4 = vsel %vm315_vm2, 0.0, %v321_v48 }
  0x21   : > { %660 = vrot.lane.b32.xlu2 %v3008_v8, %s2947_s15  ;;  %v316_v8 = vrot.slane %v2946_v0, 7  ;;  %v632_v0 = vsel %vm501_vm0, %v523_v3, 0.0 }
  0x22   : > { %664 = vrot.lane.b32.xlu0 %v3002_v6, %s2947_s15 }
  0x23   : > { %v470_v25 = vsel %vm315_vm2, 0.0, %v316_v8 }
  0x24   : > { %666 = vrot.lane.b32.xlu1 %v3022_v15, %s2947_s15 }
  0x29   : > { %882 = vrot.lane.b32.xlu2 %v512_v19, %s2948_s20  ;;  %v583_v19 = vrot.slane %v3185_v14, 1 }
  0x2a   : > { %876 = vrot.lane.b32.xlu0 %v626_v20, %s2948_s20 }
  0x2b   : > { %v584_v20 = vsel %vm501_vm0, %v582_v13, %v583_v19  ;;  %v652_v55 = vsel %vm501_vm0, %v583_v19, 0.0  ;;  %v388_v13 = vrot.slane %v3059_v29, 7 }
  0x2c   : > { %884 = vrot.lane.b32.xlu1 %v628_v21, %s2948_s20  ;;  %v3192_v21 = vsel %vm315_vm2, %v318_v18, %v319_v12  ;;  %v387_v18 = vrot.slane %v3050_v26, 7 }
  0x31   : > { %670 = vrot.lane.b32.xlu2 %v3040_v22, %s2947_s15 }
  0x32   : > { %668 = vrot.lane.b32.xlu0 %v3025_v16, %s2947_s15 }
  0x34   : > { %886 = vrot.lane.b32.xlu1 %v515_v27, %s2948_s20 }
  0x39   : > { %966 = vrot.lane.b32.xlu2 %v575_v31, %s2948_s20 }
  0x3a   : > { %750 = vrot.lane.b32.xlu0 %v3050_v26, %s2947_s15 }
  0x3c   : > { %752 = vrot.lane.b32.xlu1 %v3059_v29, %s2947_s15 }
  0x41   : > { %888 = vrot.lane.b32.xlu2 %v629_v32, %s2948_s20  ;;  %v324_v32 = vrot.slane %v3022_v15, 7 }
  0x42   : > { %672 = vrot.lane.b32.xlu0 %v3043_v23, %s2947_s15 }
  0x43   : > { %v3226_v15 = vsel %vm315_vm2, %v324_v32, %v325_v28  ;;  %v473_v26 = vsel %vm315_vm2, 0.0, %v324_v32 }
  0x44   : > { %674 = vrot.lane.b32.xlu1 %v3071_v33, %s2947_s15 }
  0x49   : > { %754 = vrot.lane.b32.xlu2 %v3075_v34, %s2947_s15 }
  0x4a   : > { %968 = vrot.lane.b32.xlu0 %v649_v38, %s2948_s20  ;;  %v3217_v38 = vld [vmem:[%s2992_s19 + $0x1c0] sm:$0xff] }
  0x4c   : > { %970 = vrot.lane.b32.xlu1 %v578_v40, %s2948_s20  ;;  %v3220_v40 = vld [vmem:[%s2992_s19 + $0x1c8] sm:$0xff] }
  0x51   : > { %676 = vrot.lane.b32.xlu2 %v3088_v39, %s2947_s15 }
  0x52   : > { %890 = vrot.lane.b32.xlu0 %v518_v43, %s2948_s20 }
  0x54   : > { %892 = vrot.lane.b32.xlu1 %v630_v44, %s2948_s20  ;;  %v585_v44 = vrot.slane %v3217_v38, 1 }
  0x59   : > { %972 = vrot.lane.b32.xlu2 %v650_v45, %s2948_s20  ;;  %v586_v45 = vrot.slane %v3220_v40, 1 }
  0x5a   : > { %756 = vrot.lane.b32.xlu0 %v3078_v35, %s2947_s15 }
  0x5b   : > { %v587_v57 = vsel %vm501_vm0, %v585_v44, %v586_v45 }
  0x5c   : > { %758 = vrot.lane.b32.xlu1 %v3108_v47, %s2947_s15 }
  0x61   : > { %894 = vrot.lane.b32.xlu2 %v521_v52, %s2948_s20 }
  0x62   : > { %678 = vrot.lane.b32.xlu0 %v3105_v46, %s2947_s15 }
  0x64   : > { %680 = vrot.lane.b32.xlu1 %v3115_v49, %s2947_s15 }
  0x69   : > { %760 = vrot.lane.b32.xlu2 %v3129_v54, %s2947_s15 }
  0x6a   : > { %974 = vrot.lane.b32.xlu0 %v581_v59, %s2948_s20  ;;  %v525_v59 = vrot.slane %v3213_v36, 1 }
  0x6b   : > { %v2935_v63 = vpop.permute.xlu2 %2934 }
  0x6c   : > { %976 = vrot.lane.b32.xlu1 %v651_v60, %s2948_s20  ;;  %v2936_v5 = vunpack.i.l.bf16 %v2935_v63  ;;  %v2937_v37 = vunpack.i.h.bf16 %v2935_v63  ;;  %v526_v60 = vrot.slane %v3244_v56, 1 }
  0x6e   : > { %v527_v12 = vsel %vm501_vm0, %v525_v59, %v526_v60 }
  0x71   : > { %682 = vrot.lane.b32.xlu2 %v3152_v61, %s2947_s15 }
  0x72   : > { %896 = vrot.lane.b32.xlu0 %v631_v9, %s2948_s20 }
  0x73   : > { %v875_v17 = vpop.permute.xlu2 %874 }
  0x74   : > { %898 = vrot.lane.b32.xlu1 %v524_v11, %s2948_s20  ;;  %v322_v11 = vrot.slane %v3002_v6, 7 }
  0x76   : > { %v323_v19 = vsel %vm315_vm2, %v321_v48, %v322_v11  ;;  %v3336_v11 = vld [vmem:[%s2992_s19 + $0x90] sm:$0xff] }
  0x79   : > { %978 = vrot.lane.b32.xlu2 %v584_v20, %s2948_s20  ;;  %v3273_v20 = vsel %vm315_vm2, %v387_v18, %v388_v13 }
  0x7a   : > { %762 = vrot.lane.b32.xlu0 %v3176_v10, %s2947_s15 }
  0x7b   : > { %v3198_v24 = vpop.permute.xlu2 %660 }
  0x7c   : > { %764 = vrot.lane.b32.xlu1 %v3185_v14, %s2947_s15 }
  0x7e   : > { %v657_v27 = vpop.permute.xlu1 %656 }
  0x7f   : > { %v1057_v30 = vsel %vm1056_vm3, %v470_v25, %v657_v27  ;;  %v1058_v16 = vsel %vm1056_vm3, %v316_v8, %v657_v27  ;;  %v653_v27 = vsel %vm501_vm0, %v586_v45, 0.0 }
  0x80   : > { %v3207_v31 = vsel %vm1119_vm4, %v1057_v30, %v2936_v5  ;;  %v3235_v51 = vsel %vm1119_vm4, %v1058_v16, %v2937_v37  ;;  %v3285_v30 = vld [vmem:[%s2992_s19 + $0x80] sm:$0xff]  ;;  %v1060_v37 = vsel %vm1056_vm3, %v3192_v21, %v3198_v24 }
  0x81   : > { %2781 = vmatmul.msk.f32.vlgmr.msra.gmra.mxu1 %vm1247_vm5, %v3207_v31  ;;  %900 = vrot.lane.b32.xlu2 %v632_v0, %s2948_s20  ;;  %v3281_v0 = vld [vmem:[%s2992_s19 + $0x1d0] sm:$0xff]  ;;  %v528_v32 = vrot.slane %v3285_v30, 1 }
  0x82   : > { %684 = vrot.lane.b32.xlu0 %v3155_v62, %s2947_s15 }
  0x83   : > { %v883_v41 = vpop.permute.xlu2 %882 }
  0x84   : > { %686 = vrot.lane.b32.xlu1 %v3213_v36, %s2947_s15  ;;  %v663_v43 = vpop.permute.xlu0 %662 }
  0x85   : > { %v1061_v63 = vsel %vm1056_vm3, %v472_v4, %v663_v43 }
  0x86   : > { %v659_v50 = vpop.permute.xlu1 %658 }
  0x87   : > { %v1059_v52 = vsel %vm1056_vm3, %v471_v42, %v659_v50  ;;  %v3299_v42 = vld [vmem:[%s2992_s19 + $0x88] sm:$0xff]  ;;  %v3312_v50 = vld [vmem:[%s2992_s19 + $0x1d8] sm:$0xff] }
  0x88   : > { %v1122_v53 = vsel %vm1119_vm4, %v1059_v52, %v875_v17  ;;  %v633_v17 = vsel %vm501_vm0, %v526_v60, 0.0  ;;  %v529_v45 = vrot.slane %v3299_v42, 1 }
  0x89   : > { %2716 = vmatmul.msk.f32.vlgmr.msra.gmra.mxu0 %vm1247_vm5, %v1122_v53  ;;  %2782 = vmatmul.msk.f32.gmra.mxu1 %vm1247_vm5, %v3235_v51 }
  0x8a   : > { %766 = vrot.lane.b32.xlu2 %v3217_v38, %s2947_s15  ;;  %980 = vrot.lane.b32.xlu0 %v652_v55, %s2948_s20  ;;  %v530_v48 = vsel %vm501_vm0, %v528_v32, %v529_v45  ;;  %v589_v55 = vrot.slane %v3312_v50, 1 }
  0x8b   : > { %v3251_v58 = vpop.permute.xlu2 %670 }
  0x8c   : > { %982 = vrot.lane.b32.xlu1 %v587_v57, %s2948_s20  ;;  %v879_v2 = vpop.permute.xlu0 %878 }
  0x8d   : > { %v1124_v3 = vsel %vm1119_vm4, %v1061_v63, %v879_v2  ;;  %v654_v2 = vsel %vm501_vm0, %v589_v55, 0.0 }
  0x8e   : > { %v881_v9 = vpop.permute.xlu1 %880  ;;  %2848 = vmatmul.msk.f32.vlgmr.msra.gmra.mxu2 %vm1247_vm5, %v1124_v3 }
  0x91   : > { %2783 = vmatmul.msk.f32.gmra.mxu1 %vm1247_vm5, %v1122_v53  ;;  %v588_v53 = vrot.slane %v3281_v0, 1 }
  0x92   : > { %688 = vrot.lane.b32.xlu2 %v3244_v56, %s2947_s15  ;;  %902 = vrot.lane.b32.xlu0 %v527_v12, %s2948_s20 }
  0x93   : > { %v3269_v6 = vpop.permute.xlu2 %966  ;;  %v590_v63 = vsel %vm501_vm0, %v588_v53, %v589_v55  ;;  %v330_v53 = vrot.slane %v3071_v33, 7 }
  0x94   : > { %904 = vrot.lane.b32.xlu1 %v633_v17, %s2948_s20  ;;  %v665_v29 = vpop.permute.xlu0 %664 }
  0x95   : > { %v1062_v8 = vsel %vm1056_vm3, %v323_v19, %v665_v29  ;;  %v475_v33 = vsel %vm315_vm2, 0.0, %v330_v53 }
  0x96   : > { %v667_v5 = vpop.permute.xlu1 %666  ;;  %v1125_v25 = vsel %vm1119_vm4, %v1062_v8, %v881_v9 }
  0x97   : > { %2849 = vmatmul.msk.f32.gmra.mxu2 %vm1247_vm5, %v1125_v25  ;;  %v1063_v28 = vsel %vm1056_vm3, %v473_v26, %v667_v5  ;;  %v328_v5 = vrot.slane %v3043_v23, 7  ;;  %v634_v26 = vsel %vm501_vm0, %v529_v45, 0.0 }
  0x98   : > { %v3302_v44 = vsel %vm1119_vm4, %v1063_v28, %v883_v41  ;;  %v327_v41 = vrot.slane %v3040_v22, 7 }
  0x9a   : > { %984 = vrot.lane.b32.xlu2 %v653_v27, %s2948_s20  ;;  %768 = vrot.lane.b32.xlu0 %v3220_v40, %s2947_s15  ;;  %v474_v60 = vsel %vm315_vm2, 0.0, %v327_v41  ;;  %v329_v23 = vsel %vm315_vm2, %v327_v41, %v328_v5  ;;  %v333_v41 = vrot.slane %v3105_v46, 7  ;;  %v391_v5 = vrot.slane %v3078_v35, 7 }
  0x9b   : > { %v3294_v16 = vpop.permute.xlu2 %888  ;;  %v1065_v9 = vsel %vm1056_vm3, %v474_v60, %v3251_v58  ;;  %v531_v58 = vrot.slane %v3336_v11, 1  ;;  %v3424_v60 = vld [vmem:[%s2992_s19 + $0xa0] sm:$0xff] }
  0x9c   : > { %770 = vrot.lane.b32.xlu1 %v3281_v0, %s2947_s15  ;;  %v877_v43 = vpop.permute.xlu0 %876 }
  0x9d   : > { %v1123_v21 = vsel %vm1119_vm4, %v1060_v37, %v877_v43  ;;  %v3382_v37 = vld [vmem:[%s2992_s19 + $0x1e8] sm:$0xff] }
  0x9e   : > { %v885_v24 = vpop.permute.xlu1 %884  ;;  %2717 = vmatmul.msk.f32.gmra.mxu0 %vm1247_vm5, %v1123_v21  ;;  %2784 = vmatmul.msk.f32.gmra.mxu1 %vm1247_vm5, %v1123_v21  ;;  %v592_v32 = vrot.slane %v3382_v37, 1 }
  0x9f   : > { %2850 = vmatmul.msk.f32.gmra.mxu2 %vm1247_vm5, %v3302_v44 }
  0xa2   : > { %906 = vrot.lane.b32.xlu2 %v530_v48, %s2948_s20  ;;  %690 = vrot.lane.b32.xlu0 %v3285_v30, %s2947_s15  ;;  %v390_v48 = vrot.slane %v3075_v34, 7 }
  0xa3   : > { %v3318_v52 = vpop.permute.xlu2 %754 }
  0xa4   : > { %692 = vrot.lane.b32.xlu1 %v3299_v42, %s2947_s15  ;;  %v669_v57 = vpop.permute.xlu0 %668  ;;  %v495_v55 = vsel %vm315_vm2, 0.0, %v390_v48  ;;  %v392_v35 = vsel %vm315_vm2, %v390_v48, %v391_v5 }
  0xa5   : > { %v1064_v4 = vsel %vm1056_vm3, %v3226_v15, %v669_v57  ;;  %v3339_v15 = vld [vmem:[%s2992_s19 + $0x98] sm:$0xff] }
  0xa6   : > { %v887_v59 = vpop.permute.xlu1 %886  ;;  %2718 = vmatmul.msk.f32.gmra.mxu0 %vm1247_vm5, %v1124_v3  ;;  %2785 = vmatmul.msk.f32.gmra.mxu1 %vm1247_vm5, %v1124_v3  ;;  %v1127_v22 = vsel %vm1119_vm4, %v1064_v4, %v885_v24  ;;  %v494_v3 = vsel %vm315_vm2, 0.0, %v387_v18  ;;  %v532_v19 = vrot.slane %v3339_v15, 1  ;;  %v334_v24 = vrot.slane %v3115_v49, 7 }
  0xa7   : > { %2851 = vmatmul.msk.f32.gmra.mxu2 %vm1247_vm5, %v1127_v22  ;;  %v3349_v17 = vsel %vm1119_vm4, %v1065_v9, %v887_v59  ;;  %v1107_v59 = vsel %vm1056_vm3, %v495_v55, %v3318_v52  ;;  %v331_v9 = vrot.slane %v3088_v39, 7 }
  0xa8   : > { %v533_v27 = vsel %vm501_vm0, %v531_v58, %v532_v19  ;;  %v3409_v34 = vsel %vm315_vm2, %v333_v41, %v334_v24 }
  0xa9   : > { %v332_v39 = vsel %vm315_vm2, %v330_v53, %v331_v9  ;;  %v396_v53 = vrot.slane %v3176_v10, 7  ;;  %v3509_v10 = vld [vmem:[%s2992_s19 + $0x170] sm:$0xff] }
  0xaa   : > { %772 = vrot.lane.b32.xlu2 %v3312_v50, %s2947_s15  ;;  %986 = vrot.lane.b32.xlu0 %v590_v63, %s2948_s20  ;;  %v3428_v63 = vld [vmem:[%s2992_s19 + $0x1f0] sm:$0xff] }
  0xab   : > { %v3345_v12 = vpop.permute.xlu2 %676  ;;  %v1203_v58 = vrot.slane %v3428_v63, 1  ;;  %v3514_v9 = vld [vmem:[%s2992_s19 + $0xb0] sm:$0xff] }
  0xac   : > { %988 = vrot.lane.b32.xlu1 %v654_v2, %s2948_s20  ;;  %v751_v13 = vpop.permute.xlu0 %750  ;;  %v3431_v2 = vld [vmem:[%s2992_s19 + $0x1f8] sm:$0xff] }
  0xad   : > { %v1105_v29 = vsel %vm1056_vm3, %v494_v3, %v751_v13 }
  0xae   : > { %v753_v8 = vpop.permute.xlu1 %752  ;;  %2719 = vmatmul.msk.f32.gmra.mxu0 %vm1247_vm5, %v1125_v25  ;;  %2786 = vmatmul.msk.f32.gmra.mxu1 %vm1247_vm5, %v1125_v25  ;;  %v3358_v18 = vsel %vm1119_vm4, %v1105_v29, %v3269_v6  ;;  %v3370_v25 = vld [vmem:[%s2992_s19 + $0x1e0] sm:$0xff] }
  0xaf   : > { %2764 = vmatmul.msk.f32.vlgmr.msra.gmra.mxu3 %vm1247_vm5, %v3358_v18  ;;  %2852 = vmatmul.msk.f32.gmra.mxu2 %vm1247_vm5, %v3349_v17  ;;  %v591_v6 = vrot.slane %v3370_v25, 1  ;;  %v1106_v49 = vsel %vm1056_vm3, %v3273_v20, %v753_v8  ;;  %v635_v20 = vsel %vm501_vm0, %v532_v19, 0.0  ;;  %v1204_v19 = vrot.slane %v3431_v2, 1 }
  0xb0   : > { %2920 = vmatpush.msk.msra.mxu3 %vm1440_vm1, %v3161_v1 }
  0xb2   : > { %694 = vrot.lane.b32.xlu2 %v3336_v11, %s2947_s15  ;;  %908 = vrot.lane.b32.xlu0 %v634_v26, %s2948_s20  ;;  %v655_v26 = vsel %vm501_vm0, %v592_v32, 0.0 }
  0xb3   : > { %v3377_v28 = vpop.permute.xlu2 %972  ;;  %2921 = vmatpush.msra.mxu3 %v3171_v7  ;;  %v593_v7 = vsel %vm501_vm0, %v591_v6, %v592_v32  ;;  %v1068_v6 = vsel %vm1056_vm3, %v332_v39, %v3345_v12 }
  0xb4   : > { %910 = vrot.lane.b32.xlu1 %v533_v27, %s2948_s20  ;;  %v673_v1 = vpop.permute.xlu0 %672  ;;  %v3459_v27 = vld [vmem:[%s2992_s19 + $0xa8] sm:$0xff] }
  0xb5   : > { %v1066_v43 = vsel %vm1056_vm3, %v329_v23, %v673_v1  ;;  %v1205_v23 = vsel %vm501_vm0, %v1203_v58, %v1204_v19  ;;  %v535_v32 = vrot.slane %v3459_v27, 1 }
  0xb6   : > { %v675_v45 = vpop.permute.xlu1 %674  ;;  %2720 = vmatmul.msk.f32.gmra.mxu0 %vm1247_vm5, %v3302_v44  ;;  %2787 = vmatmul.msk.f32.gmra.mxu1 %vm1247_vm5, %v3302_v44  ;;  %v1129_v21 = vsel %vm1119_vm4, %v1066_v43, %v3294_v16 }
  0xb7   : > { %2853 = vmatmul.msk.f32.gmra.mxu2 %vm1247_vm5, %v1129_v21 }
  0xba   : > { %990 = vrot.lane.b32.xlu2 %v593_v7, %s2948_s20  ;;  %774 = vrot.lane.b32.xlu0 %v3370_v25, %s2947_s15 }
  0xbb   : > { %v3400_v44 = vpop.permute.xlu2 %894 }
  0xbc   : > { %776 = vrot.lane.b32.xlu1 %v3382_v37, %s2947_s15  ;;  %v969_v16 = vpop.permute.xlu0 %968 }
  0xbd   : > { %v3414_v57 = vsel %vm1119_vm4, %v1106_v49, %v969_v16  ;;  %v636_v49 = vsel %vm501_vm0, %v535_v32, 0.0  ;;  %v397_v16 = vrot.slane %v3185_v14, 7  ;;  %v393_v14 = vrot.slane %v3108_v47, 7 }
  0xbe   : > { %v971_v4 = vpop.permute.xlu1 %970  ;;  %2721 = vmatmul.msk.f32.gmra.mxu0 %vm1247_vm5, %v1127_v22  ;;  %2765 = vmatmul.msk.f32.gmra.mxu3 %vm1247_vm5, %v3414_v57 }
  0xbf   : > { %2788 = vmatmul.msk.f32.gmra.mxu1 %vm1247_vm5, %v1127_v22  ;;  %v3440_v52 = vsel %vm1119_vm4, %v1107_v59, %v971_v4  ;;  %v1067_v22 = vsel %vm1056_vm3, %v475_v33, %v675_v45  ;;  %v3500_v59 = vsel %vm315_vm2, %v396_v53, %v397_v16  ;;  %v496_v47 = vsel %vm315_vm2, 0.0, %v393_v14 }
  0xc0   : > { %v394_v33 = vrot.slane %v3129_v54, 7  ;;  %v497_v16 = vsel %vm315_vm2, 0.0, %v396_v53 }
  0xc2   : > { %912 = vrot.lane.b32.xlu2 %v635_v20, %s2948_s20  ;;  %696 = vrot.lane.b32.xlu0 %v3339_v15, %s2947_s15 }
  0xc3   : > { %v3437_v3 = vpop.permute.xlu2 %760 }
  0xc4   : > { %698 = vrot.lane.b32.xlu1 %v3424_v60, %s2947_s15  ;;  %v891_v13 = vpop.permute.xlu0 %890 }
  0xc5   : > { %v1130_v29 = vsel %vm1119_vm4, %v1067_v22, %v891_v13  ;;  %v3525_v13 = vld [vmem:[%s2992_s19 + $0xb8] sm:$0xff] }
  0xc6   : > { %v893_v8 = vpop.permute.xlu1 %892  ;;  %2722 = vmatmul.msk.f32.gmra.mxu0 %vm1247_vm5, %v3349_v17  ;;  %2766 = vmatmul.msk.f32.gmra.mxu3 %vm1247_vm5, %v3440_v52 }
  0xc7   : > { %2789 = vmatmul.msk.f32.gmra.mxu1 %vm1247_vm5, %v3349_v17  ;;  %2854 = vmatmul.msk.f32.gmra.mxu2 %vm1247_vm5, %v1130_v29  ;;  %v534_v17 = vrot.slane %v3424_v60, 1  ;;  %v1131_v45 = vsel %vm1119_vm4, %v1068_v6, %v893_v8  ;;  %v336_v6 = vrot.slane %v3152_v61, 7 }
  0xc9   : > { %v536_v48 = vsel %vm501_vm0, %v534_v17, %v535_v32  ;;  %v477_v61 = vsel %vm315_vm2, 0.0, %v336_v6 }
  0xca   : > { %1214 = vrot.lane.b32.xlu2 %v3428_v63, %s2947_s15  ;;  %992 = vrot.lane.b32.xlu0 %v655_v26, %s2948_s20 }
  0xcb   : > { %v3468_v1 = vpop.permute.xlu2 %682 }
  0xcc   : > { %1228 = vrot.lane.b32.xlu1 %v1205_v23, %s2948_s20  ;;  %v757_v43 = vpop.permute.xlu0 %756  ;;  %v3541_v23 = vld [vmem:[%s2992_s19 + $0x178] sm:$0xff] }
  0xcd   : > { %v1108_v12 = vsel %vm1056_vm3, %v392_v35, %v757_v43  ;;  %v570_v35 = vrot.slane %v3509_v10, 1  ;;  %v571_v32 = vrot.slane %v3541_v23, 1 }
  0xce   : > { %v759_v7 = vpop.permute.xlu1 %758  ;;  %2723 = vmatmul.msk.f32.gmra.mxu0 %vm1247_vm5, %v1129_v21  ;;  %v3478_v24 = vsel %vm1119_vm4, %v1108_v12, %v3377_v28  ;;  %v476_v28 = vsel %vm315_vm2, 0.0, %v333_v41  ;;  %v1209_v41 = vsel %vm501_vm0, %v1204_v19, 0.0  ;;  %v538_v19 = vrot.slane %v3525_v13, 1 }
  0xcf   : > { %2790 = vmatmul.msk.f32.gmra.mxu1 %vm1247_vm5, %v1129_v21  ;;  %2855 = vmatmul.msk.f32.gmra.mxu2 %vm1247_vm5, %v1131_v45  ;;  %v1109_v58 = vsel %vm1056_vm3, %v496_v47, %v759_v7  ;;  %v3593_v47 = vld [vmem:[%s2992_s19 + $0xc8] sm:$0xff] }
  0xd0   : > { %2767 = vmatmul.msk.f32.gmra.mxu3 %vm1247_vm5, %v3478_v24  ;;  %v637_v53 = vsel %vm501_vm0, %v538_v19, 0.0 }
  0xd2   : > { %700 = vrot.lane.b32.xlu2 %v3459_v27, %s2947_s15  ;;  %914 = vrot.lane.b32.xlu0 %v536_v48, %s2948_s20  ;;  %v572_v48 = vsel %vm501_vm0, %v570_v35, %v571_v32 }
  0xd3   : > { %v3493_v21 = vpop.permute.xlu2 %978 }
  0xd4   : > { %916 = vrot.lane.b32.xlu1 %v636_v49, %s2948_s20  ;;  %v679_v55 = vpop.permute.xlu0 %678  ;;  %v1071_v49 = vsel %vm1056_vm3, %v477_v61, %v3468_v1 }
  0xd5   : > { %v1069_v4 = vsel %vm1056_vm3, %v476_v28, %v679_v55 }
  0xd6   : > { %v681_v20 = vpop.permute.xlu1 %680  ;;  %2724 = vmatmul.msk.f32.gmra.mxu0 %vm1247_vm5, %v1130_v29  ;;  %v1132_v46 = vsel %vm1119_vm4, %v1069_v4, %v3400_v44  ;;  %v537_v44 = vrot.slane %v3514_v9, 1 }
  0xd7   : > { %2791 = vmatmul.msk.f32.gmra.mxu1 %vm1247_vm5, %v1130_v29  ;;  %2856 = vmatmul.msk.f32.gmra.mxu2 %vm1247_vm5, %v1132_v46  ;;  %v395_v29 = vsel %vm315_vm2, %v393_v14, %v394_v33  ;;  %v3596_v33 = vld [vmem:[%s2992_s19 + $0xd0] sm:$0xff] }
  0xd8   : > { %v539_v5 = vsel %vm501_vm0, %v537_v44, %v538_v19  ;;  %v1110_v26 = vsel %vm1056_vm3, %v395_v29, %v3437_v3  ;;  %v1070_v3 = vsel %vm1056_vm3, %v3409_v34, %v681_v20  ;;  %v648_v34 = vsel %vm501_vm0, %v571_v32, 0.0 }
  0xd9   : > { %v337_v20 = vrot.slane %v3155_v62, 7  ;;  %v543_v19 = vrot.slane %v3596_v33, 1 }
  0xda   : > { %1230 = vrot.lane.b32.xlu2 %v1209_v41, %s2948_s20  ;;  %1216 = vrot.lane.b32.xlu0 %v3431_v2, %s2947_s15  ;;  %v3590_v41 = vld [vmem:[%s2992_s19 + $0xc0] sm:$0xff] }
  0xdb   : > { %v3520_v22 = vpop.permute.xlu2 %900  ;;  %v338_v62 = vsel %vm315_vm2, %v336_v6, %v337_v20  ;;  %v540_v44 = vrot.slane %v3590_v41, 1 }
  0xdc   : > { %746 = vrot.lane.b32.xlu1 %v3509_v10, %s2947_s15  ;;  %v975_v54 = vpop.permute.xlu0 %974 }
  0xdd   : > { %v3531_v8 = vsel %vm1119_vm4, %v1109_v58, %v975_v54  ;;  %v541_v58 = vrot.slane %v3593_v47, 1 }
  0xde   : > { %v977_v39 = vpop.permute.xlu1 %976  ;;  %2725 = vmatmul.msk.f32.gmra.mxu0 %vm1247_vm5, %v1131_v45  ;;  %2768 = vmatmul.msk.f32.gmra.mxu3 %vm1247_vm5, %v3531_v8 }
  0xdf   : > { %2792 = vmatmul.msk.f32.gmra.mxu1 %vm1247_vm5, %v1131_v45  ;;  %v3549_v17 = vsel %vm1119_vm4, %v1110_v26, %v977_v39  ;;  %v542_v6 = vsel %vm501_vm0, %v540_v44, %v541_v58 }
  0xe2   : > { %918 = vrot.lane.b32.xlu2 %v539_v5, %s2948_s20  ;;  %702 = vrot.lane.b32.xlu0 %v3514_v9, %s2947_s15 }
  0xe4   : > { %704 = vrot.lane.b32.xlu1 %v3525_v13, %s2947_s15  ;;  %v897_v43 = vpop.permute.xlu0 %896  ;;  %v3556_v45 = vpop.permute.xlu2 %766 }
  0xe5   : > { %v1133_v12 = vsel %vm1119_vm4, %v1070_v3, %v897_v43  ;;  %v343_v3 = vrot.slane %v3299_v42, 7  ;;  %v399_v43 = vrot.slane %v3217_v38, 7  ;;  %v339_v42 = vrot.slane %v3213_v36, 7 }
  0xe6   : > { %v899_v7 = vpop.permute.xlu1 %898  ;;  %2726 = vmatmul.msk.f32.gmra.mxu0 %vm1247_vm5, %v1132_v46  ;;  %2769 = vmatmul.msk.f32.gmra.mxu3 %vm1247_vm5, %v3549_v17 }
  0xe7   : > { %2793 = vmatmul.msk.f32.gmra.mxu1 %vm1247_vm5, %v1132_v46  ;;  %2857 = vmatmul.msk.f32.gmra.mxu2 %vm1247_vm5, %v1133_v12  ;;  %v1134_v55 = vsel %vm1119_vm4, %v1071_v49, %v899_v7  ;;  %v498_v38 = vsel %vm315_vm2, 0.0, %v399_v43 }
  0xe8   : > { %v1113_v36 = vsel %vm1056_vm3, %v498_v38, %v3556_v45  ;;  %v3693_v38 = vld [vmem:[%s2992_s19 + $0xf8] sm:$0xff] }
  0xea   : > { %748 = vrot.lane.b32.xlu2 %v3541_v23, %s2947_s15  ;;  %962 = vrot.lane.b32.xlu0 %v572_v48, %s2948_s20 }
  0xec   : > { %964 = vrot.lane.b32.xlu1 %v648_v34, %s2948_s20  ;;  %v763_v28 = vpop.permute.xlu0 %762  ;;  %v3582_v46 = vpop.permute.xlu2 %688 }
  0xed   : > { %v1111_v14 = vsel %vm1056_vm3, %v497_v16, %v763_v28  ;;  %v3645_v16 = vld [vmem:[%s2992_s19 + $0xe0] sm:$0xff]  ;;  %v478_v28 = vsel %vm315_vm2, 0.0, %v339_v42 }
  0xee   : > { %v765_v4 = vpop.permute.xlu1 %764  ;;  %2727 = vmatmul.msk.f32.gmra.mxu0 %vm1247_vm5, %v1133_v12  ;;  %v3579_v1 = vsel %vm1119_vm4, %v1111_v14, %v3493_v21  ;;  %v3599_v21 = vld [vmem:[%s2992_s19 + $0xd8] sm:$0xff]  ;;  %v3650_v14 = vld [vmem:[%s2992_s19 + $0xe8] sm:$0xff] }
  0xef   : > { %2794 = vmatmul.msk.f32.gmra.mxu1 %vm1247_vm5, %v1133_v12  ;;  %2858 = vmatmul.msk.f32.gmra.mxu2 %vm1247_vm5, %v1134_v55  ;;  %v544_v29 = vrot.slane %v3599_v21, 1  ;;  %v638_v12 = vsel %vm501_vm0, %v541_v58, 0.0  ;;  %v1112_v7 = vsel %vm1056_vm3, %v3500_v59, %v765_v4  ;;  %v400_v58 = vrot.slane %v3220_v40, 7 }
  0xf0   : > { %2770 = vmatmul.msk.f32.gmra.mxu3 %vm1247_vm5, %v3579_v1 }
  0xf1   : > { %v545_v35 = vsel %vm501_vm0, %v543_v19, %v544_v29  ;;  %v639_v19 = vsel %vm501_vm0, %v544_v29, 0.0 }
  0xf2   : > { %706 = vrot.lane.b32.xlu2 %v3590_v41, %s2947_s15  ;;  %920 = vrot.lane.b32.xlu0 %v637_v53, %s2948_s20 }
  0xf4   : > { %708 = vrot.lane.b32.xlu1 %v3593_v47, %s2947_s15  ;;  %v685_v54 = vpop.permute.xlu0 %684  ;;  %v985_v32 = vpop.permute.xlu2 %984 }
  0xf5   : > { %v1072_v39 = vsel %vm1056_vm3, %v338_v62, %v685_v54 }
  0xf6   : > { %v687_v5 = vpop.permute.xlu1 %686  ;;  %2728 = vmatmul.msk.f32.gmra.mxu0 %vm1247_vm5, %v1134_v55  ;;  %v1135_v26 = vsel %vm1119_vm4, %v1072_v39, %v3520_v22  ;;  %v342_v22 = vrot.slane %v3285_v30, 7 }
  0xf7   : > { %2795 = vmatmul.msk.f32.gmra.mxu1 %vm1247_vm5, %v1134_v55  ;;  %2859 = vmatmul.msk.f32.gmra.mxu2 %vm1247_vm5, %v1135_v26  ;;  %v340_v55 = vrot.slane %v3244_v56, 7  ;;  %v1073_v45 = vsel %vm1056_vm3, %v478_v28, %v687_v5  ;;  %v547_v56 = vrot.slane %v3650_v14, 1 }
  0xf8   : > { %v3636_v49 = vsel %vm315_vm2, %v342_v22, %v343_v3 }
  0xf9   : > { %v341_v62 = vsel %vm315_vm2, %v339_v42, %v340_v55  ;;  %v640_v5 = vsel %vm501_vm0, %v547_v56, 0.0  ;;  %v3690_v42 = vld [vmem:[%s2992_s19 + $0xf0] sm:$0xff] }
  0xfa   : > { %922 = vrot.lane.b32.xlu0 %v542_v6, %s2948_s20  ;;  %924 = vrot.lane.b32.xlu2 %v638_v12, %s2948_s20  ;;  %v1074_v39 = vsel %vm1056_vm3, %v341_v62, %v3582_v46  ;;  %v401_v6 = vsel %vm315_vm2, %v399_v43, %v400_v58  ;;  %v546_v12 = vrot.slane %v3645_v16, 1  ;;  %v1200_v62 = vrot.slane %v3690_v42, 1 }
  0xfb   : > { %v402_v58 = vrot.slane %v3281_v0, 7 }
  0xfc   : > { %926 = vrot.lane.b32.xlu1 %v545_v35, %s2948_s20  ;;  %v981_v61 = vpop.permute.xlu0 %980  ;;  %v907_v4 = vpop.permute.xlu2 %906  ;;  %v548_v28 = vsel %vm501_vm0, %v546_v12, %v547_v56 }
  0xfd   : > { %v3631_v48 = vsel %vm1119_vm4, %v1112_v7, %v981_v61 }
  0xfe   : > { %v983_v34 = vpop.permute.xlu1 %982  ;;  %2729 = vmatmul.msk.f32.gmra.mxu0 %vm1247_vm5, %v1135_v26  ;;  %2771 = vmatmul.msk.f32.gmra.mxu3 %vm1247_vm5, %v3631_v48  ;;  %v1679_v59 = vpop.f32.mrf.mxu1 }
  0xff   : > { %2796 = vmatmul.msk.f32.gmra.mxu1 %vm1247_vm5, %v1135_v26  ;;  %v3655_v20 = vsel %vm1119_vm4, %v1113_v36, %v983_v34  ;;  %v3704_v36 = vld [vmem:[%s2992_s19 + $0x110] sm:$0xff] }
 0x102   : > { %710 = vrot.lane.b32.xlu0 %v3596_v33, %s2947_s15  ;;  %712 = vrot.lane.b32.xlu2 %v3599_v21, %s2947_s15 }
 0x104   : > { %714 = vrot.lane.b32.xlu1 %v3645_v16, %s2947_s15  ;;  %v903_v53 = vpop.permute.xlu0 %902  ;;  %v773_v3 = vpop.permute.xlu2 %772 }
 0x105   : > { %v1136_v44 = vsel %vm1119_vm4, %v1073_v45, %v903_v53  ;;  %v479_v45 = vsel %vm315_vm2, 0.0, %v342_v22  ;;  %v552_v22 = vrot.slane %v3704_v36, 1 }
 0x106   : > { %2730 = vmatmul.msk.f32.gmra.mxu0 %vm1247_vm5, %v1136_v44  ;;  %2772 = vmatmul.msk.f32.gmra.mxu3 %vm1247_vm5, %v3655_v20  ;;  %v905_v54 = vpop.permute.xlu1 %904  ;;  %v1682_v26 = vpop.f32.mrf.mxu1 }
 0x107   : > { %2797 = vmatmul.msk.f32.gmra.mxu1 %vm1247_vm5, %v1136_v44  ;;  %2860 = vmatmul.msk.f32.gmra.mxu2 %vm1247_vm5, %v1136_v44  ;;  %v1137_v40 = vsel %vm1119_vm4, %v1074_v39, %v905_v54  ;;  %v1461_v29 = vpop.f32.mrf.mxu0  ;;  %v1201_v44 = vrot.slane %v3693_v38, 1 }
 0x108   : > { %v1680_v61 = vadd.f32 %v1679_v59, %v1461_v29  ;;  %v3707_v59 = vld [vmem:[%s2992_s19 + $0x118] sm:$0xff]  ;;  %v403_v29 = vrot.slane %v3312_v50, 7 }
 0x109   : > { %v553_v56 = vrot.slane %v3707_v59, 1 }
 0x10a   : > { %928 = vrot.lane.b32.xlu0 %v639_v19, %s2948_s20  ;;  %930 = vrot.lane.b32.xlu2 %v548_v28, %s2948_s20  ;;  %v404_v28 = vsel %vm315_vm2, %v402_v58, %v403_v29 }
 0x10b   : > { %v554_v0 = vsel %vm501_vm0, %v552_v22, %v553_v56 }
 0x10c   : > { %932 = vrot.lane.b32.xlu1 %v640_v5, %s2948_s20  ;;  %v769_v35 = vpop.permute.xlu0 %768 }
 0x10d   : > { %v1114_v46 = vsel %vm1056_vm3, %v401_v6, %v769_v35  ;;  %v695_v6 = vpop.permute.xlu2 %694  ;;  %v499_v35 = vsel %vm315_vm2, 0.0, %v402_v58  ;;  %v345_v58 = vrot.slane %v3336_v11, 7 }
 0x10e   : > { %2731 = vmatmul.msk.f32.gmra.mxu0 %vm1247_vm5, %v1137_v40  ;;  %v3683_v43 = vsel %vm1119_vm4, %v1114_v46, %v985_v32  ;;  %v771_v7 = vpop.permute.xlu1 %770  ;;  %v406_v32 = vrot.slane %v3382_v37, 7  ;;  %v405_v37 = vrot.slane %v3370_v25, 7  ;;  %v1685_v53 = vpop.f32.mrf.mxu1 }
 0x10f   : > { %2798 = vmatmul.msk.f32.gmra.mxu1 %vm1247_vm5, %v1137_v40  ;;  %2861 = vmatmul.msk.f32.gmra.mxu2 %vm1247_vm5, %v1137_v40  ;;  %v1202_v40 = vsel %vm501_vm0, %v1200_v62, %v1201_v44 }
 0x110   : > { %2773 = vmatmul.msk.f32.gmra.mxu3 %vm1247_vm5, %v3683_v43  ;;  %v3733_v19 = vsel %vm315_vm2, %v405_v37, %v406_v32 }
 0x111   : > { %v1894_v34 = vpop.f32.mrf.mxu2 }
 0x112   : > { %v3710_v55 = vadd.f32 %v1894_v34, %v1680_v61  ;;  %716 = vrot.lane.b32.xlu0 %v3650_v14, %s2947_s15  ;;  %1210 = vrot.lane.b32.xlu2 %v3690_v42, %s2947_s15  ;;  %v1115_v61 = vsel %vm1056_vm3, %v499_v35, %v771_v7  ;;  %v3763_v7 = vld [vmem:[%s2992_s19 + $0x100] sm:$0xff] }
 0x113   : > { %v549_v35 = vrot.slane %v3763_v7, 1 }
 0x114   : > { %5048 = vst [vmem:[#allocation2_spill] sm:$0xff] %v3710_v55  ;;  %1212 = vrot.lane.b32.xlu1 %v3693_v38, %s2947_s15  ;;  %v691_v30 = vpop.permute.xlu0 %690 }
 0x115   : > { %2150 = vst.msk [vmem:[%s3700_s8] sm:$0xff] %vm1056_vm3, %v3710_v55  ;;  %v1075_v54 = vsel %vm1056_vm3, %v479_v45, %v691_v30  ;;  %v1116_v30 = vsel %vm1056_vm3, %v404_v28, %v773_v3  ;;  %v991_v22 = vpop.permute.xlu2 %990 }
 0x116   : > { %v1138_v39 = vsel %vm1119_vm4, %v1075_v54, %v907_v4  ;;  %v693_v5 = vpop.permute.xlu1 %692 }
 0x117   : > { %2732 = vmatmul.msk.f32.gmra.mxu0 %vm1247_vm5, %v1138_v39  ;;  %2799 = vmatmul.msk.f32.gmra.mxu1 %vm1247_vm5, %v1138_v39  ;;  %v1076_v11 = vsel %vm1056_vm3, %v3636_v49, %v693_v5 }
 0x118   : > { %2862 = vmatmul.msk.f32.gmra.mxu2 %vm1247_vm5, %v1138_v39 }
 0x11a   : > { %v1897_v4 = vpop.f32.mrf.mxu2  ;;  %1224 = vrot.lane.b32.xlu0 %v1202_v40, %s2948_s20 }
 0x11b   : > { %v1464_v46 = vpop.f32.mrf.mxu0  ;;  %v1688_v12 = vpop.f32.mrf.mxu1 }
 0x11c   : > { %938 = vrot.lane.b32.xlu1 %v554_v0, %s2948_s20  ;;  %v1683_v32 = vadd.f32 %v1682_v26, %v1464_v46  ;;  %v987_v34 = vpop.permute.xlu0 %986  ;;  %v3766_v26 = vld [vmem:[%s2992_s19 + $0x108] sm:$0xff]  ;;  %v480_v46 = vsel %vm315_vm2, 0.0, %v345_v58 }
 0x11d   : > { %v3752_v50 = vsel %vm1119_vm4, %v1115_v61, %v987_v34  ;;  %v550_v3 = vrot.slane %v3766_v26, 1  ;;  %v1077_v5 = vsel %vm1056_vm3, %v480_v46, %v695_v6 }
 0x11e   : > { %v3754_v45 = vadd.f32 %v1897_v4, %v1683_v32  ;;  %2774 = vmatmul.msk.f32.gmra.mxu3 %vm1247_vm5, %v3752_v50  ;;  %v989_v62 = vpop.permute.xlu1 %988 }
 0x11f   : > { %v3772_v0 = vsel %vm1119_vm4, %v1116_v30, %v989_v62  ;;  %v551_v49 = vsel %vm501_vm0, %v549_v35, %v550_v3  ;;  %v641_v28 = vsel %vm501_vm0, %v550_v3, 0.0  ;;  %v500_v30 = vsel %vm315_vm2, 0.0, %v405_v37 }
 0x120   : > { %5049 = vst [vmem:[#allocation3_spill] sm:$0xff] %v3754_v45  ;;  %v346_v37 = vrot.slane %v3339_v15, 7 }
 0x121   : > { %2151 = vst.msk [vmem:[%s3700_s8 + $0x8] sm:$0xff] %vm1056_vm3, %v3754_v45 }
 0x122   : > { %v1900_v54 = vpop.f32.mrf.mxu2  ;;  %722 = vrot.lane.b32.xlu0 %v3704_v36, %s2947_s15  ;;  %v347_v15 = vsel %vm315_vm2, %v345_v58, %v346_v37  ;;  %v3830_v58 = vld [vmem:[%s2992_s19 + $0x120] sm:$0xff] }
 0x123   : > { %v1467_v39 = vpop.f32.mrf.mxu0  ;;  %v1691_v40 = vpop.f32.mrf.mxu1 }
 0x124   : > { %724 = vrot.lane.b32.xlu1 %v3707_v59, %s2947_s15  ;;  %v1686_v29 = vadd.f32 %v1685_v53, %v1467_v39  ;;  %v909_v4 = vpop.permute.xlu0 %908  ;;  %v1208_v53 = vsel %vm501_vm0, %v1201_v44, 0.0 }
 0x125   : > { %v1139_v61 = vsel %vm1119_vm4, %v1076_v11, %v909_v4  ;;  %1226 = vrot.lane.b32.xlu2 %v1208_v53, %s2948_s20 }
 0x126   : > { %v3782_v32 = vadd.f32 %v1900_v54, %v1686_v29  ;;  %2733 = vmatmul.msk.f32.gmra.mxu0 %vm1247_vm5, %v1139_v61  ;;  %2775 = vmatmul.msk.f32.gmra.mxu3 %vm1247_vm5, %v3772_v0  ;;  %v911_v34 = vpop.permute.xlu1 %910  ;;  %v913_v54 = vpop.permute.xlu2 %912 }
 0x127   : > { %2800 = vmatmul.msk.f32.gmra.mxu1 %vm1247_vm5, %v1139_v61  ;;  %2863 = vmatmul.msk.f32.gmra.mxu2 %vm1247_vm5, %v1139_v61  ;;  %v1140_v35 = vsel %vm1119_vm4, %v1077_v5, %v911_v34 }
 0x128   : > { %5050 = vst [vmem:[#allocation4_spill] sm:$0xff] %v3782_v32 }
 0x129   : > { %2152 = vst.msk [vmem:[%s3700_s8 + $0x10] sm:$0xff] %vm1056_vm3, %v3782_v32 }
 0x12a   : > { %v1903_v62 = vpop.f32.mrf.mxu2  ;;  %934 = vrot.lane.b32.xlu0 %v551_v49, %s2948_s20 }
 0x12b   : > { %v1470_v39 = vpop.f32.mrf.mxu0  ;;  %v1694_v44 = vpop.f32.mrf.mxu1 }
 0x12c   : > { %936 = vrot.lane.b32.xlu1 %v641_v28, %s2948_s20  ;;  %v1689_v6 = vadd.f32 %v1688_v12, %v1470_v39  ;;  %v775_v11 = vpop.permute.xlu0 %774 }
 0x12d   : > { %v1117_v3 = vsel %vm1056_vm3, %v500_v30, %v775_v11  ;;  %718 = vrot.lane.b32.xlu2 %v3763_v7, %s2947_s15  ;;  %v3833_v30 = vld [vmem:[%s2992_s19 + $0x128] sm:$0xff]  ;;  %v5017_v11 = vrot.slane %v3514_v9, 7 }
 0x12e   : > { %v3804_v29 = vadd.f32 %v1903_v62, %v1689_v6  ;;  %2734 = vmatmul.msk.f32.gmra.mxu0 %vm1247_vm5, %v1140_v35  ;;  %v3808_v25 = vsel %vm1119_vm4, %v1117_v3, %v991_v22  ;;  %v777_v4 = vpop.permute.xlu1 %776  ;;  %v1215_v49 = vpop.permute.xlu2 %1214  ;;  %v5016_v39 = vrot.slane %v3833_v30, 1 }
 0x12f   : > { %2801 = vmatmul.msk.f32.gmra.mxu1 %vm1247_vm5, %v1140_v35  ;;  %2864 = vmatmul.msk.f32.gmra.mxu2 %vm1247_vm5, %v1140_v35  ;;  %v1191_v35 = vrot.slane %v3428_v63, 7  ;;  %v1118_v37 = vsel %vm1056_vm3, %v3733_v19, %v777_v4 }
 0x130   : > { %5051 = vst [vmem:[#allocation5_spill] sm:$0xff] %v3804_v29  ;;  %2776 = vmatmul.msk.f32.gmra.mxu3 %vm1247_vm5, %v3808_v25 }
 0x131   : > { %2153 = vst.msk [vmem:[%s3700_s8 + $0x18] sm:$0xff] %vm1056_vm3, %v3804_v29  ;;  %v1199_v63 = vsel %vm315_vm2, 0.0, %v1191_v35 }
 0x132   : > { %v1906_v12 = vpop.f32.mrf.mxu2  ;;  %720 = vrot.lane.b32.xlu0 %v3766_v26, %s2947_s15 }
 0x133   : > { %v1473_v22 = vpop.f32.mrf.mxu0  ;;  %v1697_v46 = vpop.f32.mrf.mxu1 }
 0x134   : > { %v1692_v61 = vadd.f32 %v1691_v40, %v1473_v22  ;;  %v697_v34 = vpop.permute.xlu0 %696  ;;  %v555_v40 = vrot.slane %v3830_v58, 1  ;;  %728 = vrot.lane.b32.xlu1 %v3833_v30, %s2947_s15 }
 0x135   : > { %v1078_v53 = vsel %vm1056_vm3, %v347_v15, %v697_v34 }
 0x136   : > { %v3824_v5 = vadd.f32 %v1906_v12, %v1692_v61  ;;  %v1141_v28 = vsel %vm1119_vm4, %v1078_v53, %v913_v54  ;;  %v699_v62 = vpop.permute.xlu1 %698  ;;  %v352_v54 = vrot.slane %v3525_v13, 7  ;;  %v557_v6 = vsel %vm501_vm0, %v555_v40, %v5016_v39 }
 0x137   : > { %2735 = vmatmul.msk.f32.gmra.mxu0 %vm1247_vm5, %v1141_v28  ;;  %2802 = vmatmul.msk.f32.gmra.mxu1 %vm1247_vm5, %v1141_v28  ;;  %v348_v13 = vrot.slane %v3424_v60, 7  ;;  %v1238_v60 = vsel %vm1056_vm3, %v1199_v63, %v1215_v49  ;;  %v349_v40 = vrot.slane %v3459_v27, 7  ;;  %v1192_v27 = vrot.slane %v3431_v2, 7  ;;  %v3888_v63 = vld [vmem:[%s2992_s19 + $0x130] sm:$0xff] }
 0x138   : > { %5052 = vst [vmem:[#allocation6_spill] sm:$0xff] %v3824_v5  ;;  %2865 = vmatmul.msk.f32.gmra.mxu2 %vm1247_vm5, %v1141_v28  ;;  %v3860_v53 = vsel %vm315_vm2, %v5017_v11, %v352_v54  ;;  %v558_v2 = vrot.slane %v3888_v63, 1 }
 0x139   : > { %2154 = vst.msk [vmem:[%s3700_s8 + $0x20] sm:$0xff] %vm1056_vm3, %v3824_v5  ;;  %v481_v4 = vsel %vm315_vm2, 0.0, %v348_v13 }
 0x13a   : > { %942 = vrot.lane.b32.xlu0 %v557_v6, %s2948_s20  ;;  %v1909_v61 = vpop.f32.mrf.mxu2 }
 0x13b   : > { %v1476_v3 = vpop.f32.mrf.mxu0 }
 0x13c   : > { %v1695_v12 = vadd.f32 %v1694_v44, %v1476_v3  ;;  %v1700_v15 = vpop.f32.mrf.mxu1  ;;  %v993_v22 = vpop.permute.xlu0 %992  ;;  %v1079_v3 = vsel %vm1056_vm3, %v481_v4, %v699_v62  ;;  %v642_v62 = vsel %vm501_vm0, %v553_v56, 0.0  ;;  %v1193_v56 = vsel %vm315_vm2, %v1191_v35, %v1192_v27 }
 0x13d   : > { %v3855_v34 = vsel %vm1119_vm4, %v1118_v37, %v993_v22  ;;  %v701_v44 = vpop.permute.xlu2 %700  ;;  %v350_v22 = vsel %vm315_vm2, %v348_v13, %v349_v40  ;;  %v3891_v13 = vld [vmem:[%s2992_s19 + $0x138] sm:$0xff]  ;;  %940 = vrot.lane.b32.xlu2 %v642_v62, %s2948_s20 }
 0x13e   : > { %v3862_v28 = vadd.f32 %v1909_v61, %v1695_v12  ;;  %2777 = vmatmul.msk.f32.gmra.mxu3 %vm1247_vm5, %v3855_v34  ;;  %v1229_v19 = vpop.permute.xlu1 %1228  ;;  %v559_v4 = vrot.slane %v3891_v13, 1 }
 0x13f   : > { %v3873_v6 = vsel %vm1119_vm4, %v1238_v60, %v1229_v19  ;;  %v1080_v19 = vsel %vm1056_vm3, %v350_v22, %v701_v44 }
 0x140   : > { %5053 = vst [vmem:[#allocation7_spill] sm:$0xff] %v3862_v28 }
 0x141   : > { %2155 = vst.msk [vmem:[%s3700_s8 + $0x28] sm:$0xff] %vm1056_vm3, %v3862_v28 }
 0x142   : > { %730 = vrot.lane.b32.xlu0 %v3888_v63, %s2947_s15 }
 0x143   : > { %v1479_v54 = vpop.f32.mrf.mxu0 }
 0x144   : > { %v1703_v37 = vpop.f32.mrf.mxu1  ;;  %v915_v12 = vpop.permute.xlu0 %914  ;;  %v1698_v40 = vadd.f32 %v1697_v46, %v1479_v54 }
 0x145   : > { %v1142_v61 = vsel %vm1119_vm4, %v1079_v3, %v915_v12  ;;  %v1231_v60 = vpop.permute.xlu2 %1230  ;;  %v560_v12 = vsel %vm501_vm0, %v558_v2, %v559_v4  ;;  %726 = vrot.lane.b32.xlu2 %v3830_v58, %s2947_s15  ;;  %v644_v2 = vsel %vm501_vm0, %v559_v4, 0.0 }
 0x146   : > { %2736 = vmatmul.msk.f32.gmra.mxu0 %vm1247_vm5, %v1142_v61  ;;  %2778 = vmatmul.msk.f32.gmra.mxu3 %vm1247_vm5, %v3873_v6  ;;  %v917_v49 = vpop.permute.xlu1 %916 }
 0x147   : > { %2803 = vmatmul.msk.f32.gmra.mxu1 %vm1247_vm5, %v1142_v61  ;;  %2866 = vmatmul.msk.f32.gmra.mxu2 %vm1247_vm5, %v1142_v61  ;;  %v3901_v61 = vpop.f32.mrf.mxu3  ;;  %v1143_v62 = vsel %vm1119_vm4, %v1080_v19, %v917_v49 }
 0x148   : > { %946 = vrot.lane.b32.xlu1 %v560_v12, %s2948_s20 }
 0x14a   : > { %v1912_v3 = vpop.f32.mrf.mxu2  ;;  %948 = vrot.lane.b32.xlu0 %v644_v2, %s2948_s20 }
 0x14b   : > { %v3903_v44 = vadd.f32 %v1912_v3, %v1698_v40  ;;  %v1482_v22 = vpop.f32.mrf.mxu0 }
 0x14c   : > { %v3907_v39 = vpop.f32.mrf.mxu1  ;;  %v1217_v11 = vpop.permute.xlu0 %1216  ;;  %v1701_v27 = vadd.f32 %v1700_v15, %v1482_v22  ;;  %v384_v15 = vrot.slane %v3509_v10, 7 }
 0x14d   : > { %5054 = vst [vmem:[#allocation8_spill] sm:$0xff] %v3903_v44  ;;  %v1239_v46 = vsel %vm1056_vm3, %v1193_v56, %v1217_v11  ;;  %v5055_v11 = vrot.slane %v3514_v9, 7 }
 0x14e   : > { %2156 = vst.msk [vmem:[%s3700_s8 + $0x30] sm:$0xff] %vm1056_vm3, %v3903_v44  ;;  %2737 = vmatmul.msk.f32.gmra.mxu0 %vm1247_vm5, %v1143_v62  ;;  %v3915_v35 = vsel %vm1119_vm4, %v1239_v46, %v1231_v60  ;;  %v747_v54 = vpop.permute.xlu1 %746  ;;  %v919_v60 = vpop.permute.xlu2 %918  ;;  %v3943_v46 = vld [vmem:[%s2992_s19 + $0x140] sm:$0xff] }
 0x14f   : > { %2804 = vmatmul.msk.f32.gmra.mxu1 %vm1247_vm5, %v1143_v62  ;;  %2867 = vmatmul.msk.f32.gmra.mxu2 %vm1247_vm5, %v1143_v62  ;;  %v482_v19 = vsel %vm315_vm2, 0.0, %v5055_v11  ;;  %v3927_v40 = vpop.f32.mrf.mxu3  ;;  %v493_v11 = vsel %vm315_vm2, 0.0, %v384_v15 }
 0x150   : > { %2779 = vmatmul.msk.f32.gmra.mxu3 %vm1247_vm5, %v3915_v35  ;;  %5056 = vst [vmem:[#allocation9_spill] sm:$0xff] %v3927_v40  ;;  %734 = vrot.lane.b32.xlu1 %v3943_v46, %s2947_s15 }
 0x152   : > { %v1915_v49 = vpop.f32.mrf.mxu2 }
 0x153   : > { %v3929_v3 = vadd.f32 %v1915_v49, %v1701_v27  ;;  %v1485_v56 = vpop.f32.mrf.mxu0  ;;  %v5058_v27 = vrot.slane %v3833_v30, 1 }
 0x154   : > { %v3932_v12 = vpop.f32.mrf.mxu1  ;;  %v703_v62 = vpop.permute.xlu0 %702  ;;  %v1704_v10 = vadd.f32 %v1703_v37, %v1485_v56 }
 0x155   : > { %5057 = vst [vmem:[#allocation10_spill] sm:$0xff] %v3929_v3  ;;  %v1081_v9 = vsel %vm1056_vm3, %v482_v19, %v703_v62  ;;  %v643_v49 = vsel %vm501_vm0, %v5058_v27, 0.0 }
 0x156   : > { %2157 = vst.msk [vmem:[%s3700_s8 + $0x38] sm:$0xff] %vm1056_vm3, %v3929_v3  ;;  %v1144_v22 = vsel %vm1119_vm4, %v1081_v9, %v919_v60  ;;  %v705_v4 = vpop.permute.xlu1 %704  ;;  %944 = vrot.lane.b32.xlu2 %v643_v49, %s2948_s20  ;;  %v385_v60 = vrot.slane %v3541_v23, 7  ;;  %v749_v62 = vpop.permute.xlu2 %748  ;;  %v1103_v9 = vsel %vm1056_vm3, %v493_v11, %v747_v54  ;;  %v3971_v49 = vld [vmem:[%s2992_s19 + $0x148] sm:$0xff] }
 0x157   : > { %2738 = vmatmul.msk.f32.gmra.mxu0 %vm1247_vm5, %v1144_v22  ;;  %2805 = vmatmul.msk.f32.gmra.mxu1 %vm1247_vm5, %v1144_v22  ;;  %v562_v54 = vrot.slane %v3971_v49, 1 }
 0x158   : > { %2868 = vmatmul.msk.f32.gmra.mxu2 %vm1247_vm5, %v1144_v22  ;;  %v3957_v22 = vpop.f32.mrf.mxu3  ;;  %v386_v23 = vsel %vm315_vm2, %v384_v15, %v385_v60  ;;  %736 = vrot.lane.b32.xlu0 %v3971_v49, %s2947_s15  ;;  %v1082_v15 = vsel %vm1056_vm3, %v3860_v53, %v705_v4  ;;  %v3999_v4 = vld [vmem:[%s2992_s19 + $0x150] sm:$0xff] }
 0x159   : > { %5060 = vst [vmem:[#allocation12_spill] sm:$0xff] %v3957_v22 }
 0x15a   : > { %v1918_v19 = vpop.f32.mrf.mxu2 }
 0x15b   : > { %v3954_v2 = vadd.f32 %v1918_v19, %v1704_v10  ;;  %v1488_v27 = vpop.f32.mrf.mxu0  ;;  %v1104_v10 = vsel %vm1056_vm3, %v386_v23, %v749_v62  ;;  %v354_v19 = vrot.slane %v3590_v41, 7 }
 0x15c   : > { %v963_v3 = vpop.permute.xlu0 %962  ;;  %v3962_v37 = vpop.f32.mrf.mxu1 }
 0x15d   : > { %5059 = vst [vmem:[#allocation11_spill] sm:$0xff] %v3954_v2  ;;  %v3965_v56 = vsel %vm1119_vm4, %v1103_v9, %v963_v3  ;;  %v645_v3 = vsel %vm501_vm0, %v562_v54, 0.0  ;;  %v483_v53 = vsel %vm315_vm2, 0.0, %v354_v19 }
 0x15e   : > { %2158 = vst.msk [vmem:[%s3700_s8 + $0x40] sm:$0xff] %vm1056_vm3, %v3954_v2  ;;  %2829 = vmatmul.msk.f32.vlgmr.msrb.gmra.mxu3 %vm1247_vm5, %v3965_v56  ;;  %v965_v11 = vpop.permute.xlu1 %964  ;;  %732 = vrot.lane.b32.xlu2 %v3891_v13, %s2947_s15  ;;  %v707_v22 = vpop.permute.xlu2 %706 }
 0x15f   : > { %952 = vrot.lane.b32.xlu1 %v645_v3, %s2948_s20  ;;  %v3985_v9 = vsel %vm1119_vm4, %v1104_v10, %v965_v11  ;;  %v4002_v10 = vld [vmem:[%s2992_s19 + $0x158] sm:$0xff]  ;;  %v564_v11 = vrot.slane %v3999_v4, 1  ;;  %v1083_v40 = vsel %vm1056_vm3, %v483_v53, %v707_v22  ;;  %v361_v22 = vrot.slane %v3650_v14, 7 }
 0x160   : > { %v3990_v2 = vpop.f32.mrf.mxu3  ;;  %v5028_v3 = vrot.slane %v4002_v10, 1 }
 0x161   : > { %5061 = vst [vmem:[#allocation13_spill] sm:$0xff] %v3990_v2 }
 0x163   : > { %v1491_v23 = vpop.f32.mrf.mxu0 }
 0x164   : > { %v921_v60 = vpop.permute.xlu0 %920  ;;  %v3992_v41 = vpop.f32.mrf.mxu1 }
 0x165   : > { %v1145_v62 = vsel %vm1119_vm4, %v1082_v15, %v921_v60  ;;  %v1707_v15 = vadd.f32 %v3907_v39, %v1488_v27  ;;  %v355_v60 = vrot.slane %v3593_v47, 7 }
 0x166   : > { %2739 = vmatmul.msk.f32.gmra.mxu0 %vm1247_vm5, %v1145_v62  ;;  %2806 = vmatmul.msk.f32.gmra.mxu1 %vm1247_vm5, %v1145_v62  ;;  %v709_v5 = vpop.permute.xlu1 %708 }
 0x167   : > { %2830 = vmatmul.msk.f32.gmra.mxu3 %vm1247_vm5, %v3985_v9  ;;  %2869 = vmatmul.msk.f32.gmra.mxu2 %vm1247_vm5, %v1145_v62  ;;  %v566_v62 = vsel %vm501_vm0, %v564_v11, %v5028_v3  ;;  %v356_v39 = vsel %vm315_vm2, %v354_v19, %v355_v60  ;;  %v357_v19 = vrot.slane %v3596_v33, 7  ;;  %v1710_v11 = vadd.f32 %v3932_v12, %v1491_v23  ;;  %v4058_v23 = vld [vmem:[%s2992_s19 + $0x168] sm:$0xff] }
 0x168   : > { %954 = vrot.lane.b32.xlu0 %v566_v62, %s2948_s20  ;;  %740 = vrot.lane.b32.xlu1 %v4002_v10, %s2947_s15  ;;  %v4025_v27 = vpop.f32.mrf.mxu3  ;;  %v360_v60 = vrot.slane %v3645_v16, 7 }
 0x169   : > { %5063 = vst [vmem:[#allocation15_spill] sm:$0xff] %v4025_v27  ;;  %v484_v12 = vsel %vm315_vm2, 0.0, %v357_v19 }
 0x16a   : > { %v1921_v2 = vpop.f32.mrf.mxu2  ;;  %v4043_v33 = vsel %vm315_vm2, %v360_v60, %v361_v22  ;;  %v568_v22 = vrot.slane %v4058_v23, 1 }
 0x16b   : > { %v4012_v44 = vadd.f32 %v1921_v2, %v1707_v15  ;;  %v561_v2 = vrot.slane %v3943_v46, 1  ;;  %v1494_v53 = vpop.f32.mrf.mxu0 }
 0x16c   : > { %v923_v28 = vpop.permute.xlu0 %922  ;;  %v4034_v15 = vpop.f32.mrf.mxu1 }
 0x16d   : > { %5062 = vst [vmem:[#allocation14_spill] sm:$0xff] %v4012_v44  ;;  %v1146_v47 = vsel %vm1119_vm4, %v1083_v40, %v923_v28  ;;  %v1084_v28 = vsel %vm1056_vm3, %v356_v39, %v709_v5  ;;  %v925_v40 = vpop.permute.xlu2 %924 }
 0x16e   : > { %2159 = vst.msk [vmem:[%s3700_s8 + $0x48] sm:$0xff] %vm1056_vm3, %v4012_v44  ;;  %2740 = vmatmul.msk.f32.gmra.mxu0 %vm1247_vm5, %v1146_v47  ;;  %2807 = vmatmul.msk.f32.gmra.mxu1 %vm1247_vm5, %v1146_v47  ;;  %v1147_v14 = vsel %vm1119_vm4, %v1084_v28, %v925_v40  ;;  %v927_v16 = vpop.permute.xlu1 %926  ;;  %v1713_v40 = vadd.f32 %v3962_v37, %v1494_v53 }
 0x16f   : > { %2831 = vmatmul.msk.f32.gmra.mxu3 %vm1247_vm5, %v3358_v18  ;;  %2870 = vmatmul.msk.f32.gmra.mxu2 %vm1247_vm5, %v1146_v47  ;;  %v563_v47 = vsel %vm501_vm0, %v561_v2, %v562_v54  ;;  %v4055_v54 = vld [vmem:[%s2992_s19 + $0x160] sm:$0xff] }
 0x170   : > { %950 = vrot.lane.b32.xlu2 %v563_v47, %s2948_s20  ;;  %v567_v2 = vrot.slane %v4055_v54, 1  ;;  %742 = vrot.lane.b32.xlu0 %v4055_v54, %s2947_s15  ;;  %v4065_v28 = vpop.f32.mrf.mxu3 }
 0x171   : > { %5064 = vst [vmem:[#allocation16_spill] sm:$0xff] %v4065_v28 }
 0x172   : > { %v1924_v62 = vpop.f32.mrf.mxu2 }
 0x173   : > { %v4038_v3 = vadd.f32 %v1924_v62, %v1710_v11  ;;  %v358_v11 = vrot.slane %v3599_v21, 7  ;;  %v1497_v62 = vpop.f32.mrf.mxu0 }
 0x174   : > { %v711_v5 = vpop.permute.xlu0 %710  ;;  %v4070_v27 = vpop.f32.mrf.mxu1 }
 0x175   : > { %2160 = vst.msk [vmem:[%s3700_s8 + $0x50] sm:$0xff] %vm1056_vm3, %v4038_v3  ;;  %v1085_v39 = vsel %vm1056_vm3, %v484_v12, %v711_v5  ;;  %v359_v21 = vsel %vm315_vm2, %v357_v19, %v358_v11  ;;  %v713_v37 = vpop.permute.xlu2 %712 }
 0x176   : > { %2741 = vmatmul.msk.f32.gmra.mxu0 %vm1247_vm5, %v1147_v14  ;;  %2808 = vmatmul.msk.f32.gmra.mxu1 %vm1247_vm5, %v1147_v14  ;;  %v1148_v12 = vsel %vm1119_vm4, %v1085_v39, %v927_v16  ;;  %v1086_v16 = vsel %vm1056_vm3, %v359_v21, %v713_v37  ;;  %v647_v39 = vsel %vm501_vm0, %v568_v22, 0.0  ;;  %v1716_v37 = vadd.f32 %v3992_v41, %v1497_v62 }
 0x177   : > { %2832 = vmatmul.msk.f32.gmra.mxu3 %vm1247_vm5, %v3414_v57  ;;  %2871 = vmatmul.msk.f32.gmra.mxu2 %vm1247_vm5, %v1147_v14  ;;  %v569_v14 = vsel %vm501_vm0, %v567_v2, %v568_v22  ;;  %v715_v2 = vpop.permute.xlu1 %714 }
 0x178   : > { %958 = vrot.lane.b32.xlu1 %v569_v14, %s2948_s20  ;;  %738 = vrot.lane.b32.xlu2 %v3999_v4, %s2947_s15  ;;  %v485_v14 = vsel %vm315_vm2, 0.0, %v360_v60  ;;  %v5067_v60 = vrot.slane %v4002_v10, 1 }
 0x179   : > { %960 = vrot.lane.b32.xlu0 %v647_v39, %s2948_s20  ;;  %v1087_v22 = vsel %vm1056_vm3, %v485_v14, %v715_v2 }
 0x17a   : > { %v1927_v47 = vpop.f32.mrf.mxu2 }
 0x17b   : > { %v4072_v5 = vadd.f32 %v1927_v47, %v1713_v40  ;;  %v4091_v40 = vpop.f32.mrf.mxu3  ;;  %v1500_v11 = vpop.f32.mrf.mxu0 }
 0x17c   : > { %v929_v53 = vpop.permute.xlu0 %928  ;;  %5066 = vst [vmem:[#allocation18_spill] sm:$0xff] %v4091_v40  ;;  %v4093_v47 = vpop.f32.mrf.mxu1  ;;  %v1719_v14 = vadd.f32 %v4034_v15, %v1500_v11  ;;  %v1189_v11 = vrot.slane %v3693_v38, 7 }
 0x17d   : > { %5065 = vst [vmem:[#allocation17_spill] sm:$0xff] %v4072_v5  ;;  %v1149_v19 = vsel %vm1119_vm4, %v1086_v16, %v929_v53  ;;  %v646_v16 = vsel %vm501_vm0, %v5067_v60, 0.0 }
 0x17e   : > { %2161 = vst.msk [vmem:[%s3700_s8 + $0x58] sm:$0xff] %vm1056_vm3, %v4072_v5  ;;  %2742 = vmatmul.msk.f32.gmra.mxu0 %vm1247_vm5, %v1148_v12  ;;  %2809 = vmatmul.msk.f32.gmra.mxu1 %vm1247_vm5, %v1148_v12 }
 0x17f   : > { %2833 = vmatmul.msk.f32.gmra.mxu3 %vm1247_vm5, %v3440_v52  ;;  %2872 = vmatmul.msk.f32.gmra.mxu2 %vm1247_vm5, %v1148_v12  ;;  %v931_v12 = vpop.permute.xlu2 %930  ;;  %v933_v21 = vpop.permute.xlu1 %932 }
 0x180   : > { %v1150_v40 = vsel %vm1119_vm4, %v1087_v22, %v931_v12  ;;  %956 = vrot.lane.b32.xlu2 %v646_v16, %s2948_s20  ;;  %v1188_v22 = vrot.slane %v3690_v42, 7 }
 0x183   : > { %v4110_v5 = vpop.f32.mrf.mxu3  ;;  %v1503_v2 = vpop.f32.mrf.mxu0 }
 0x184   : > { %v717_v28 = vpop.permute.xlu0 %716  ;;  %5069 = vst [vmem:[#allocation20_spill] sm:$0xff] %v4110_v5  ;;  %v4117_v41 = vpop.f32.mrf.mxu1 }
 0x186   : > { %2743 = vmatmul.msk.f32.gmra.mxu0 %vm1247_vm5, %v1149_v19  ;;  %2810 = vmatmul.msk.f32.gmra.mxu1 %vm1247_vm5, %v1149_v19 }
 0x187   : > { %2834 = vmatmul.msk.f32.gmra.mxu3 %vm1247_vm5, %v3478_v24  ;;  %2873 = vmatmul.msk.f32.gmra.mxu2 %vm1247_vm5, %v1149_v19  ;;  %v1088_v19 = vsel %vm1056_vm3, %v4043_v33, %v717_v28  ;;  %v1211_v12 = vpop.permute.xlu2 %1210 }
 0x188   : > { %v1151_v16 = vsel %vm1119_vm4, %v1088_v19, %v933_v21  ;;  %744 = vrot.lane.b32.xlu2 %v4058_v23, %s2947_s15  ;;  %v1722_v19 = vadd.f32 %v4070_v27, %v1503_v2  ;;  %v363_v2 = vrot.slane %v3763_v7, 7 }
 0x18a   : > { %v1930_v53 = vpop.f32.mrf.mxu2 }
 0x18b   : > { %v4106_v39 = vadd.f32 %v1930_v53, %v1716_v37  ;;  %v1213_v53 = vpop.permute.xlu1 %1212  ;;  %v4137_v42 = vpop.f32.mrf.mxu3 }
 0x18c   : > { %v1225_v62 = vpop.permute.xlu0 %1224  ;;  %5071 = vst [vmem:[#allocation22_spill] sm:$0xff] %v4137_v42  ;;  %v1506_v15 = vpop.f32.mrf.mxu0 }
 0x18d   : > { %5068 = vst [vmem:[#allocation19_spill] sm:$0xff] %v4106_v39  ;;  %v4143_v28 = vpop.f32.mrf.mxu1 }
 0x18e   : > { %2162 = vst.msk [vmem:[%s3700_s8 + $0x60] sm:$0xff] %vm1056_vm3, %v4106_v39  ;;  %2744 = vmatmul.msk.f32.gmra.mxu0 %vm1247_vm5, %v1150_v40  ;;  %2811 = vmatmul.msk.f32.gmra.mxu1 %vm1247_vm5, %v1150_v40  ;;  %v1190_v39 = vsel %vm315_vm2, %v1188_v22, %v1189_v11  ;;  %v364_v11 = vrot.slane %v3766_v26, 7 }
 0x18f   : > { %2835 = vmatmul.msk.f32.gmra.mxu3 %vm1247_vm5, %v3531_v8  ;;  %2874 = vmatmul.msk.f32.gmra.mxu2 %vm1247_vm5, %v1150_v40  ;;  %v1198_v40 = vsel %vm315_vm2, 0.0, %v1188_v22  ;;  %v1227_v5 = vpop.permute.xlu2 %1226  ;;  %v1237_v38 = vsel %vm1056_vm3, %v1190_v39, %v1213_v53 }
 0x190   : > { %v1236_v33 = vsel %vm1056_vm3, %v1198_v40, %v1211_v12  ;;  %v1241_v12 = vsel %vm1119_vm4, %v1237_v38, %v1227_v5  ;;  %v486_v40 = vsel %vm315_vm2, 0.0, %v363_v2  ;;  %v1725_v5 = vadd.f32 %v4093_v47, %v1506_v15 }
 0x192   : > { %v1933_v37 = vpop.f32.mrf.mxu2 }
 0x193   : > { %v4126_v60 = vadd.f32 %v1933_v37, %v1719_v14  ;;  %v1240_v37 = vsel %vm1119_vm4, %v1236_v33, %v1225_v62  ;;  %v4161_v27 = vpop.f32.mrf.mxu3 }
 0x194   : > { %v723_v21 = vpop.permute.xlu0 %722  ;;  %5072 = vst [vmem:[#allocation23_spill] sm:$0xff] %v4161_v27  ;;  %v1509_v62 = vpop.f32.mrf.mxu0 }
 0x195   : > { %5070 = vst [vmem:[#allocation21_spill] sm:$0xff] %v4126_v60  ;;  %v4164_v22 = vpop.f32.mrf.mxu1  ;;  %v1728_v15 = vadd.f32 %v4117_v41, %v1509_v62 }
 0x196   : > { %2163 = vst.msk [vmem:[%s3700_s8 + $0x68] sm:$0xff] %vm1056_vm3, %v4126_v60  ;;  %2745 = vmatmul.msk.f32.gmra.mxu0 %vm1247_vm5, %v1151_v16  ;;  %2812 = vmatmul.msk.f32.gmra.mxu1 %vm1247_vm5, %v1151_v16  ;;  %v939_v60 = vpop.permute.xlu1 %938 }
 0x197   : > { %2836 = vmatmul.msk.f32.gmra.mxu3 %vm1247_vm5, %v3549_v17  ;;  %2875 = vmatmul.msk.f32.gmra.mxu2 %vm1247_vm5, %v1151_v16  ;;  %v719_v33 = vpop.permute.xlu2 %718 }
 0x198   : > { %v1089_v7 = vsel %vm1056_vm3, %v486_v40, %v719_v33 }
 0x19b   : > { %v1936_v14 = vpop.f32.mrf.mxu2 }
 0x19c   : > { %v4148_v42 = vadd.f32 %v1936_v14, %v1722_v19  ;;  %v935_v16 = vpop.permute.xlu0 %934 }
 0x19d   : > { %v1152_v27 = vsel %vm1119_vm4, %v1089_v7, %v935_v16 }
 0x19e   : > { %2164 = vst.msk [vmem:[%s3700_s8 + $0x70] sm:$0xff] %vm1056_vm3, %v4148_v42  ;;  %2746 = vmatmul.msk.f32.gmra.mxu0 %vm1247_vm5, %v1240_v37  ;;  %2813 = vmatmul.msk.f32.gmra.mxu1 %vm1247_vm5, %v3207_v31  ;;  %v725_v39 = vpop.permute.xlu1 %724 }
 0x19f   : > { %2837 = vmatmul.msk.f32.gmra.mxu3 %vm1247_vm5, %v3579_v1  ;;  %2876 = vmatmul.msk.f32.gmra.mxu2 %vm1247_vm5, %v1240_v37 }
 0x1a1   : > { %v4176_v53 = vpop.f32.mrf.mxu3 }
 0x1a3   : > { %v1512_v19 = vpop.f32.mrf.mxu0 }
 0x1a4   : > { %v4179_v37 = vpop.f32.mrf.mxu1  ;;  %v721_v40 = vpop.permute.xlu0 %720  ;;  %v1731_v62 = vadd.f32 %v4143_v28, %v1512_v19 }
 0x1a6   : > { %2747 = vmatmul.msk.f32.gmra.mxu0 %vm1247_vm5, %v1241_v12  ;;  %2814 = vmatmul.msk.f32.gmra.mxu1 %vm1247_vm5, %v3235_v51  ;;  %v937_v47 = vpop.permute.xlu1 %936 }
 0x1a7   : > { %2838 = vmatmul.msk.f32.gmra.mxu3 %vm1247_vm5, %v3631_v48  ;;  %2877 = vmatmul.msk.f32.gmra.mxu2 %vm1247_vm5, %v1241_v12  ;;  %v365_v12 = vsel %vm315_vm2, %v363_v2, %v364_v11  ;;  %v366_v2 = vrot.slane %v3704_v36, 7 }
 0x1a8   : > { %v1090_v26 = vsel %vm1056_vm3, %v365_v12, %v721_v40 }
 0x1a9   : > { %v4197_v33 = vpop.f32.mrf.mxu3  ;;  %v487_v41 = vsel %vm315_vm2, 0.0, %v366_v2 }
 0x1aa   : > { %v1939_v14 = vpop.f32.mrf.mxu2  ;;  %v1091_v36 = vsel %vm1056_vm3, %v487_v41, %v723_v21 }
 0x1ab   : > { %v4181_v38 = vadd.f32 %v1939_v14, %v1725_v5  ;;  %v1515_v5 = vpop.f32.mrf.mxu0  ;;  %v367_v14 = vrot.slane %v3707_v59, 7  ;;  %v369_v59 = vrot.slane %v3830_v58, 7 }
 0x1ac   : > { %v4202_v11 = vpop.f32.mrf.mxu1 }
 0x1ad   : > { %2165 = vst.msk [vmem:[%s3700_s8 + $0x78] sm:$0xff] %vm1056_vm3, %v4181_v38  ;;  %v368_v28 = vsel %vm315_vm2, %v366_v2, %v367_v14  ;;  %v488_v41 = vsel %vm315_vm2, 0.0, %v369_v59  ;;  %v1734_v14 = vadd.f32 %v4164_v22, %v1515_v5 }
 0x1ae   : > { %2748 = vmatmul.msk.f32.gmra.mxu0 %vm1247_vm5, %v1152_v27  ;;  %2815 = vmatmul.msk.f32.gmra.mxu1 %vm1247_vm5, %v1152_v27  ;;  %v1153_v27 = vsel %vm1119_vm4, %v1090_v26, %v937_v47  ;;  %v1154_v26 = vsel %vm1119_vm4, %v1091_v36, %v939_v60  ;;  %v1092_v60 = vsel %vm1056_vm3, %v368_v28, %v725_v39  ;;  %v943_v39 = vpop.permute.xlu0 %942 }
 0x1af   : > { %2839 = vmatmul.msk.f32.gmra.mxu3 %vm1247_vm5, %v3655_v20  ;;  %2878 = vmatmul.msk.f32.gmra.mxu2 %vm1247_vm5, %v3207_v31 }
 0x1b2   : > { %v1942_v16 = vpop.f32.mrf.mxu2 }
 0x1b3   : > { %v4199_v7 = vadd.f32 %v1942_v16, %v1728_v15  ;;  %v4220_v47 = vpop.f32.mrf.mxu3  ;;  %v941_v15 = vpop.permute.xlu2 %940 }
 0x1b4   : > { %v1518_v16 = vpop.f32.mrf.mxu0  ;;  %v4228_v21 = vpop.f32.mrf.mxu1 }
 0x1b5   : > { %2166 = vst.msk [vmem:[%s3700_s8 + $0x80] sm:$0xff] %vm1056_vm3, %v4199_v7 }
 0x1b6   : > { %2749 = vmatmul.msk.f32.gmra.mxu0 %vm1247_vm5, %v1153_v27  ;;  %2816 = vmatmul.msk.f32.gmra.mxu1 %vm1247_vm5, %v1153_v27  ;;  %v1155_v27 = vsel %vm1119_vm4, %v1092_v60, %v941_v15 }
 0x1b7   : > { %2840 = vmatmul.msk.f32.gmra.mxu3 %vm1247_vm5, %v3683_v43  ;;  %2879 = vmatmul.msk.f32.gmra.mxu2 %vm1247_vm5, %v3235_v51 }
 0x1bb   : > { %v1945_v12 = vpop.f32.mrf.mxu2  ;;  %v727_v36 = vpop.permute.xlu2 %726 }
 0x1bc   : > { %v4217_v40 = vadd.f32 %v1945_v12, %v1731_v62  ;;  %v1093_v58 = vsel %vm1056_vm3, %v488_v41, %v727_v36  ;;  %v370_v12 = vrot.slane %v3833_v30, 7  ;;  %v376_v30 = vrot.slane %v3971_v49, 7 }
 0x1bd   : > { %v1156_v28 = vsel %vm1119_vm4, %v1093_v58, %v943_v39  ;;  %v1737_v36 = vadd.f32 %v4179_v37, %v1518_v16  ;;  %v375_v39 = vrot.slane %v3943_v46, 7  ;;  %v373_v16 = vrot.slane %v3891_v13, 7 }
 0x1be   : > { %2167 = vst.msk [vmem:[%s3700_s8 + $0x88] sm:$0xff] %vm1056_vm3, %v4217_v40  ;;  %2750 = vmatmul.msk.f32.gmra.mxu0 %vm1247_vm5, %v1154_v26  ;;  %2817 = vmatmul.msk.f32.gmra.mxu1 %vm1247_vm5, %v1154_v26  ;;  %v371_v60 = vsel %vm315_vm2, %v369_v59, %v370_v12  ;;  %v372_v59 = vrot.slane %v3888_v63, 7 }
 0x1bf   : > { %2841 = vmatmul.msk.f32.gmra.mxu3 %vm1247_vm5, %v3752_v50  ;;  %2880 = vmatmul.msk.f32.gmra.mxu2 %vm1247_vm5, %v1154_v26 }
 0x1c0   : > { %v489_v49 = vsel %vm315_vm2, 0.0, %v372_v59 }
 0x1c1   : > { %v4235_v19 = vpop.f32.mrf.mxu3 }
 0x1c2   : > { %5073 = vst [vmem:[#allocation24_spill] sm:$0xff] %v4235_v19  ;;  %v729_v19 = vpop.permute.xlu1 %728 }
 0x1c3   : > { %v1521_v2 = vpop.f32.mrf.mxu0  ;;  %v1094_v5 = vsel %vm1056_vm3, %v371_v60, %v729_v19  ;;  %v945_v41 = vpop.permute.xlu2 %944 }
 0x1c4   : > { %v4241_v62 = vpop.f32.mrf.mxu1  ;;  %v731_v19 = vpop.permute.xlu0 %730  ;;  %v1740_v60 = vadd.f32 %v4202_v11, %v1521_v2 }
 0x1c5   : > { %v1095_v63 = vsel %vm1056_vm3, %v489_v49, %v731_v19 }
 0x1c6   : > { %2751 = vmatmul.msk.f32.gmra.mxu0 %vm1247_vm5, %v1155_v27  ;;  %2818 = vmatmul.msk.f32.gmra.mxu1 %vm1247_vm5, %v1155_v27 }
 0x1c7   : > { %2842 = vmatmul.msk.f32.gmra.mxu3 %vm1247_vm5, %v3772_v0  ;;  %2881 = vmatmul.msk.f32.gmra.mxu2 %vm1247_vm5, %v1155_v27 }
 0x1c9   : > { %v4258_v27 = vpop.f32.mrf.mxu3 }
 0x1ca   : > { %v1948_v26 = vpop.f32.mrf.mxu2  ;;  %5075 = vst [vmem:[#allocation26_spill] sm:$0xff] %v4258_v27  ;;  %v947_v46 = vpop.permute.xlu1 %946  ;;  %v374_v27 = vsel %vm315_vm2, %v372_v59, %v373_v16 }
 0x1cb   : > { %v4249_v15 = vadd.f32 %v1948_v26, %v1734_v14  ;;  %v1524_v22 = vpop.f32.mrf.mxu0  ;;  %v1157_v26 = vsel %vm1119_vm4, %v1094_v5, %v945_v41 }
 0x1cc   : > { %v4267_v58 = vpop.f32.mrf.mxu1  ;;  %v949_v11 = vpop.permute.xlu0 %948  ;;  %v1743_v16 = vadd.f32 %v4228_v21, %v1524_v22 }
 0x1cd   : > { %5074 = vst [vmem:[#allocation25_spill] sm:$0xff] %v4249_v15 }
 0x1ce   : > { %2168 = vst.msk [vmem:[%s3700_s8 + $0x90] sm:$0xff] %vm1056_vm3, %v4249_v15  ;;  %2752 = vmatmul.msk.f32.gmra.mxu0 %vm1247_vm5, %v1156_v28  ;;  %2819 = vmatmul.msk.f32.gmra.mxu1 %vm1247_vm5, %v1156_v28 }
 0x1cf   : > { %2843 = vmatmul.msk.f32.gmra.mxu3 %vm1247_vm5, %v3808_v25  ;;  %2882 = vmatmul.msk.f32.gmra.mxu2 %vm1247_vm5, %v1156_v28  ;;  %v377_v28 = vsel %vm315_vm2, %v375_v39, %v376_v30 }
 0x1d2   : > { %v1951_v14 = vpop.f32.mrf.mxu2 }
 0x1d3   : > { %v4270_v12 = vadd.f32 %v1951_v14, %v1737_v36  ;;  %v4284_v37 = vpop.f32.mrf.mxu3  ;;  %v1158_v36 = vsel %vm1119_vm4, %v1095_v63, %v947_v46  ;;  %v490_v63 = vsel %vm315_vm2, 0.0, %v375_v39  ;;  %v735_v46 = vpop.permute.xlu1 %734 }
 0x1d4   : > { %5076 = vst [vmem:[#allocation27_spill] sm:$0xff] %v4284_v37  ;;  %v1527_v30 = vpop.f32.mrf.mxu0  ;;  %v4288_v5 = vpop.f32.mrf.mxu1 }
 0x1d5   : > { %2169 = vst.msk [vmem:[%s3700_s8 + $0x98] sm:$0xff] %vm1056_vm3, %v4270_v12 }
 0x1d6   : > { %2753 = vmatmul.msk.f32.gmra.mxu0 %vm1247_vm5, %v1157_v26  ;;  %2820 = vmatmul.msk.f32.gmra.mxu1 %vm1247_vm5, %v1157_v26 }
 0x1d7   : > { %2844 = vmatmul.msk.f32.gmra.mxu3 %vm1247_vm5, %v3855_v34  ;;  %2883 = vmatmul.msk.f32.gmra.mxu2 %vm1247_vm5, %v1157_v26  ;;  %v733_v26 = vpop.permute.xlu2 %732 }
 0x1d8   : > { %v1096_v13 = vsel %vm1056_vm3, %v374_v27, %v733_v26 }
 0x1d9   : > { %v1159_v19 = vsel %vm1119_vm4, %v1096_v13, %v949_v11  ;;  %v1746_v11 = vadd.f32 %v4241_v62, %v1527_v30 }
 0x1db   : > { %v1954_v41 = vpop.f32.mrf.mxu2  ;;  %v953_v22 = vpop.permute.xlu1 %952 }
 0x1dc   : > { %v4291_v14 = vadd.f32 %v1954_v41, %v1740_v60 }
 0x1de   : > { %2170 = vst.msk [vmem:[%s3700_s8 + $0xa0] sm:$0xff] %vm1056_vm3, %v4291_v14  ;;  %2754 = vmatmul.msk.f32.gmra.mxu0 %vm1247_vm5, %v1158_v36  ;;  %2821 = vmatmul.msk.f32.gmra.mxu1 %vm1247_vm5, %v1158_v36 }
 0x1df   : > { %2884 = vmatmul.msk.f32.gmra.mxu2 %vm1247_vm5, %v1158_v36  ;;  %2896 = vmatmul.msk.f32.vlgmr.msra.gmra.mxu3 %vm1247_vm5, %v3440_v52  ;;  %v1097_v52 = vsel %vm1056_vm3, %v490_v63, %v735_v46  ;;  %v951_v27 = vpop.permute.xlu2 %950 }
 0x1e0   : > { %v1160_v13 = vsel %vm1119_vm4, %v1097_v52, %v951_v27 }
 0x1e1   : > { %v4303_v2 = vpop.f32.mrf.mxu3 }
 0x1e3   : > { %v1530_v49 = vpop.f32.mrf.mxu0  ;;  %v4305_v59 = vpop.f32.mrf.mxu1 }
 0x1e4   : > { %v1749_v30 = vadd.f32 %v4267_v58, %v1530_v49  ;;  %v381_v49 = vrot.slane %v4055_v54, 7 }
 0x1e6   : > { %2755 = vmatmul.msk.f32.gmra.mxu0 %vm1247_vm5, %v1159_v19  ;;  %2822 = vmatmul.msk.f32.gmra.mxu1 %vm1247_vm5, %v1159_v19 }
 0x1e7   : > { %2885 = vmatmul.msk.f32.gmra.mxu2 %vm1247_vm5, %v1159_v19  ;;  %2897 = vmatmul.msk.f32.gmra.mxu3 %vm1247_vm5, %v3478_v24  ;;  %v737_v24 = vpop.permute.xlu0 %736  ;;  %v378_v19 = vrot.slane %v3999_v4, 7 }
 0x1e8   : > { %v1098_v21 = vsel %vm1056_vm3, %v377_v28, %v737_v24  ;;  %v739_v28 = vpop.permute.xlu2 %738 }
 0x1ea   : > { %v4316_v60 = vpop.f32.mrf.mxu3  ;;  %v1957_v41 = vpop.f32.mrf.mxu2 }
 0x1eb   : > { %v4318_v36 = vadd.f32 %v1957_v41, %v1743_v16  ;;  %v1533_v39 = vpop.f32.mrf.mxu0  ;;  %v4320_v26 = vpop.f32.mrf.mxu1  ;;  %v1161_v41 = vsel %vm1119_vm4, %v1098_v21, %v953_v22 }
 0x1ed   : > { %2171 = vst.msk [vmem:[%s3700_s8 + $0xa8] sm:$0xff] %vm1056_vm3, %v4318_v36 }
 0x1ee   : > { %2756 = vmatmul.msk.f32.gmra.mxu0 %vm1247_vm5, %v1160_v13  ;;  %2823 = vmatmul.msk.f32.gmra.mxu1 %vm1247_vm5, %v1160_v13 }
 0x1ef   : > { %2886 = vmatmul.msk.f32.gmra.mxu2 %vm1247_vm5, %v1160_v13  ;;  %2898 = vmatmul.msk.f32.gmra.mxu3 %vm1247_vm5, %v3531_v8  ;;  %v491_v8 = vsel %vm315_vm2, 0.0, %v378_v19  ;;  %v955_v62 = vpop.permute.xlu0 %954  ;;  %v379_v13 = vrot.slane %v4002_v10, 7 }
 0x1f0   : > { %v1099_v4 = vsel %vm1056_vm3, %v491_v8, %v739_v28  ;;  %v741_v8 = vpop.permute.xlu1 %740  ;;  %v957_v58 = vpop.permute.xlu2 %956  ;;  %v1752_v28 = vadd.f32 %v4288_v5, %v1533_v39 }
 0x1f2   : > { %v4334_v63 = vpop.f32.mrf.mxu3  ;;  %v1960_v46 = vpop.f32.mrf.mxu2 }
 0x1f3   : > { %v4336_v52 = vadd.f32 %v1960_v46, %v1746_v11  ;;  %v1536_v27 = vpop.f32.mrf.mxu0  ;;  %v4338_v16 = vpop.f32.mrf.mxu1 }
 0x1f4   : > { %v1755_v39 = vadd.f32 %v4305_v59, %v1536_v27 }
 0x1f5   : > { %2172 = vst.msk [vmem:[%s3700_s8 + $0xb0] sm:$0xff] %vm1056_vm3, %v4336_v52 }
 0x1f6   : > { %2757 = vmatmul.msk.f32.gmra.mxu0 %vm1247_vm5, %v1161_v41  ;;  %2824 = vmatmul.msk.f32.gmra.mxu1 %vm1247_vm5, %v1161_v41 }
 0x1f7   : > { %2887 = vmatmul.msk.f32.gmra.mxu2 %vm1247_vm5, %v1161_v41  ;;  %2899 = vmatmul.msk.f32.gmra.mxu3 %vm1247_vm5, %v3549_v17  ;;  %v1162_v41 = vsel %vm1119_vm4, %v1099_v4, %v955_v62  ;;  %v380_v17 = vsel %vm315_vm2, %v378_v19, %v379_v13 }
 0x1f8   : > { %v1100_v10 = vsel %vm1056_vm3, %v380_v17, %v741_v8  ;;  %v959_v5 = vpop.permute.xlu1 %958  ;;  %v382_v17 = vrot.slane %v4058_v23, 7 }
 0x1fa   : > { %v4353_v24 = vpop.f32.mrf.mxu3  ;;  %v1963_v21 = vpop.f32.mrf.mxu2 }
 0x1fb   : > { %v4355_v22 = vadd.f32 %v1963_v21, %v1749_v30  ;;  %v1539_v11 = vpop.f32.mrf.mxu0  ;;  %v4357_v46 = vpop.f32.mrf.mxu1  ;;  %v1163_v21 = vsel %vm1119_vm4, %v1100_v10, %v957_v58 }
 0x1fc   : > { %v1758_v27 = vadd.f32 %v4320_v26, %v1539_v11 }
 0x1fd   : > { %2173 = vst.msk [vmem:[%s3700_s8 + $0xb8] sm:$0xff] %vm1056_vm3, %v4355_v22 }
 0x1fe   : > { %2758 = vmatmul.msk.f32.gmra.mxu0 %vm1247_vm5, %v1162_v41  ;;  %2825 = vmatmul.msk.f32.gmra.mxu1 %vm1247_vm5, %v1162_v41 }
 0x1ff   : > { %2888 = vmatmul.msk.f32.gmra.mxu2 %vm1247_vm5, %v1162_v41  ;;  %2900 = vmatmul.msk.f32.gmra.mxu3 %vm1247_vm5, %v3579_v1  ;;  %v492_v1 = vsel %vm315_vm2, 0.0, %v381_v49  ;;  %v743_v41 = vpop.permute.xlu0 %742 }
 0x200   : > { %v1101_v54 = vsel %vm1056_vm3, %v492_v1, %v743_v41  ;;  %v745_v1 = vpop.permute.xlu2 %744 }
 0x202   : > { %v4372_v4 = vpop.f32.mrf.mxu3  ;;  %v1966_v19 = vpop.f32.mrf.mxu2 }
 0x203   : > { %v4374_v62 = vadd.f32 %v1966_v19, %v1752_v28  ;;  %v1542_v30 = vpop.f32.mrf.mxu0  ;;  %v1766_v13 = vpop.f32.mrf.mxu1  ;;  %v1164_v19 = vsel %vm1119_vm4, %v1101_v54, %v959_v5 }
 0x204   : > { %v1761_v26 = vadd.f32 %v4338_v16, %v1542_v30 }
 0x205   : > { %2174 = vst.msk [vmem:[%s3700_s8 + $0xc0] sm:$0xff] %vm1056_vm3, %v4374_v62 }
 0x206   : > { %2759 = vmatmul.msk.f32.gmra.mxu0 %vm1247_vm5, %v1163_v21  ;;  %2826 = vmatmul.msk.f32.gmra.mxu1 %vm1247_vm5, %v1163_v21 }
 0x207   : > { %2889 = vmatmul.msk.f32.gmra.mxu2 %vm1247_vm5, %v1163_v21  ;;  %2901 = vmatmul.msk.f32.gmra.mxu3 %vm1247_vm5, %v3631_v48  ;;  %v383_v21 = vsel %vm315_vm2, %v381_v49, %v382_v17  ;;  %v961_v59 = vpop.permute.xlu0 %960 }
 0x208   : > { %v1102_v23 = vsel %vm1056_vm3, %v383_v21, %v745_v1 }
 0x20a   : > { %v4389_v8 = vpop.f32.mrf.mxu3  ;;  %v1969_v10 = vpop.f32.mrf.mxu2 }
 0x20b   : > { %v4391_v58 = vadd.f32 %v1969_v10, %v1755_v39  ;;  %v1545_v28 = vpop.f32.mrf.mxu0  ;;  %v1769_v48 = vpop.f32.mrf.mxu1  ;;  %v1165_v39 = vsel %vm1119_vm4, %v1102_v23, %v961_v59 }
 0x20d   : > { %5077 = vst [vmem:[#allocation28_spill] sm:$0xff] %v4391_v58 }
 0x20e   : > { %2175 = vst.msk [vmem:[%s3700_s8 + $0xc8] sm:$0xff] %vm1056_vm3, %v4391_v58  ;;  %2760 = vmatmul.msk.f32.gmra.mxu0 %vm1247_vm5, %v1164_v19  ;;  %2827 = vmatmul.msk.f32.gmra.mxu1 %vm1247_vm5, %v1164_v19 }
 0x20f   : > { %2890 = vmatmul.msk.f32.gmra.mxu2 %vm1247_vm5, %v1164_v19  ;;  %2902 = vmatmul.msk.f32.gmra.mxu3 %vm1247_vm5, %v3655_v20 }
 0x212   : > { %v4405_v41 = vpop.f32.mrf.mxu3  ;;  %v1972_v54 = vpop.f32.mrf.mxu2 }
 0x213   : > { %v4407_v49 = vadd.f32 %v1972_v54, %v1758_v27  ;;  %v1548_v5 = vpop.f32.mrf.mxu0  ;;  %v1772_v20 = vpop.f32.mrf.mxu1 }
 0x215   : > { %2176 = vst.msk [vmem:[%s3700_s8 + $0xd0] sm:$0xff] %vm1056_vm3, %v4407_v49 }
 0x216   : > { %2761 = vmatmul.msk.f32.gmra.mxu0 %vm1247_vm5, %v1165_v39  ;;  %2828 = vmatmul.msk.f32.gmra.mxu1 %vm1247_vm5, %v1165_v39 }
 0x217   : > { %2891 = vmatmul.msk.f32.gmra.mxu2 %vm1247_vm5, %v1165_v39  ;;  %2903 = vmatmul.msk.f32.gmra.mxu3 %vm1247_vm5, %v3683_v43  ;;  %v1764_v43 = vadd.f32 %v4357_v46, %v1545_v28 }
 0x21a   : > { %v4419_v11 = vpop.f32.mrf.mxu3  ;;  %v1975_v17 = vpop.f32.mrf.mxu2 }
 0x21b   : > { %v4421_v10 = vadd.f32 %v1975_v17, %v1761_v26  ;;  %v1551_v19 = vpop.f32.mrf.mxu0  ;;  %v1775_v16 = vpop.f32.mrf.mxu1 }
 0x21d   : > { %2177 = vst.msk [vmem:[%s3700_s8 + $0xd8] sm:$0xff] %vm1056_vm3, %v4421_v10 }
 0x21e   : > { %2762 = vmatmul.msk.f32.gmra.mxu0 %vm1247_vm5, %v3965_v56 }
 0x21f   : > { %2892 = vmatmul.msk.f32.gmra.mxu2 %vm1247_vm5, %v3965_v56  ;;  %2904 = vmatmul.msk.f32.gmra.mxu3 %vm1247_vm5, %v3752_v50  ;;  %v1767_v50 = vadd.f32 %v1766_v13, %v1548_v5 }
 0x222   : > { %v4433_v30 = vpop.f32.mrf.mxu3  ;;  %v1978_v21 = vpop.f32.mrf.mxu2 }
 0x223   : > { %v4435_v1 = vadd.f32 %v1978_v21, %v1764_v43  ;;  %v1554_v23 = vpop.f32.mrf.mxu0  ;;  %v1778_v28 = vpop.f32.mrf.mxu1 }
 0x225   : > { %2178 = vst.msk [vmem:[%s3700_s8 + $0xe0] sm:$0xff] %vm1056_vm3, %v4435_v1 }
 0x226   : > { %2763 = vmatmul.msk.f32.gmra.mxu0 %vm1247_vm5, %v3985_v9 }
 0x227   : > { %2893 = vmatmul.msk.f32.gmra.mxu2 %vm1247_vm5, %v3985_v9  ;;  %2905 = vmatmul.msk.f32.gmra.mxu3 %vm1247_vm5, %v3772_v0  ;;  %v1770_v0 = vadd.f32 %v1769_v48, %v1551_v19 }
 0x22a   : > { %v4446_v56 = vpop.f32.mrf.mxu3  ;;  %v1981_v46 = vpop.f32.mrf.mxu2 }
 0x22b   : > { %v4448_v59 = vadd.f32 %v1981_v46, %v1767_v50  ;;  %v1557_v27 = vpop.f32.mrf.mxu0  ;;  %v1781_v39 = vpop.f32.mrf.mxu1 }
 0x22c   : > { %v1776_v43 = vadd.f32 %v1775_v16, %v1557_v27 }
 0x22d   : > { %5078 = vst [vmem:[#allocation29_spill] sm:$0xff] %v4448_v59 }
 0x22e   : > { %2179 = vst.msk [vmem:[%s3700_s8 + $0xe8] sm:$0xff] %vm1056_vm3, %v4448_v59 }
 0x22f   : > { %2894 = vmatmul.msk.f32.gmra.mxu2 %vm1247_vm5, %v3358_v18  ;;  %2906 = vmatmul.msk.f32.gmra.mxu3 %vm1247_vm5, %v3808_v25  ;;  %v1773_v18 = vadd.f32 %v1772_v20, %v1554_v23 }
 0x232   : > { %v4457_v9 = vpop.f32.mrf.mxu3  ;;  %v1984_v13 = vpop.f32.mrf.mxu2 }
 0x233   : > { %v4459_v54 = vadd.f32 %v1984_v13, %v1770_v0  ;;  %v1560_v5 = vpop.f32.mrf.mxu0  ;;  %v1784_v19 = vpop.f32.mrf.mxu1 }
 0x234   : > { %v1779_v23 = vadd.f32 %v1778_v28, %v1560_v5 }
 0x235   : > { %2180 = vst.msk [vmem:[%s3700_s8 + $0xf0] sm:$0xff] %vm1056_vm3, %v4459_v54 }
 0x237   : > { %2895 = vmatmul.msk.f32.gmra.mxu2 %vm1247_vm5, %v3414_v57  ;;  %2907 = vmatmul.msk.f32.gmra.mxu3 %vm1247_vm5, %v3855_v34 }
 0x23a   : > { %v4468_v25 = vpop.f32.mrf.mxu3  ;;  %v1987_v48 = vpop.f32.mrf.mxu2 }
 0x23b   : > { %v4470_v26 = vadd.f32 %v1987_v48, %v1773_v18  ;;  %v1563_v17 = vpop.f32.mrf.mxu0  ;;  %v1787_v50 = vpop.f32.mrf.mxu1 }
 0x23c   : > { %v1782_v27 = vadd.f32 %v1781_v39, %v1563_v17  ;;  %v2215_v17 = vsel %vm1056_vm3, %v3754_v45, 0.0 }
 0x23d   : > { %2181 = vst.msk [vmem:[%s3700_s8 + $0xf8] sm:$0xff] %vm1056_vm3, %v4470_v26 }
 0x23f   : > { %2908 = vmatmul.msk.f32.gmra.mxu3 %vm1247_vm5, %v3873_v6 }
 0x242   : > { %v4477_v57 = vpop.f32.mrf.mxu3  ;;  %v1990_v21 = vpop.f32.mrf.mxu2 }
 0x243   : > { %5079 = vst [vmem:[#allocation30_spill] sm:$0xff] %v4477_v57  ;;  %v4479_v34 = vadd.f32 %v1990_v21, %v1776_v43  ;;  %v1566_v20 = vpop.f32.mrf.mxu0  ;;  %v5088_v57 = vld [vmem:[#allocation11_spill] sm:$0xff] }
 0x244   : > { %v1785_v48 = vadd.f32 %v1784_v19, %v1566_v20  ;;  %v1824_v19 = vadd.f32 %v4303_v2, %v3901_v61  ;;  %v5084_v2 = vld [vmem:[#allocation7_spill] sm:$0xff] }
 0x245   : > { %2182 = vst.msk [vmem:[%s3700_s8 + $0x100] sm:$0xff] %vm1056_vm3, %v4479_v34 }
 0x247   : > { %2909 = vmatmul.msk.f32.gmra.mxu3 %vm1247_vm5, %v3915_v35  ;;  %v1790_v35 = vpop.f32.mrf.mxu1 }
 0x24a   : > { %v4486_v46 = vpop.f32.mrf.mxu3  ;;  %v1993_v0 = vpop.f32.mrf.mxu2 }
 0x24b   : > { %5080 = vst [vmem:[#allocation31_spill] sm:$0xff] %v4486_v46  ;;  %v4488_v6 = vadd.f32 %v1993_v0, %v1779_v23  ;;  %v1569_v16 = vpop.f32.mrf.mxu0  ;;  %v2214_v0 = vsel %vm1056_vm3, %v3710_v55, 0.0 }
 0x24c   : > { %v1788_v20 = vadd.f32 %v1787_v50, %v1569_v16  ;;  %v2223_v50 = vsel %vm1056_vm3, %v5084_v2, 0.0 }
 0x24d   : > { %2183 = vst.msk [vmem:[%s3700_s8 + $0x108] sm:$0xff] %vm1056_vm3, %v4488_v6 }
 0x24f   : > { %2910 = vmatmul.msk.f32.gmra.mxu3 %vm1247_vm5, %v3207_v31  ;;  %v1793_v39 = vpop.f32.mrf.mxu1 }
 0x252   : > { %v4495_v13 = vpop.f32.mrf.mxu3  ;;  %v1996_v18 = vpop.f32.mrf.mxu2 }
 0x253   : > { %5081 = vst [vmem:[#allocation32_spill] sm:$0xff] %v4495_v13  ;;  %v4497_v28 = vadd.f32 %v1996_v18, %v1782_v27  ;;  %v1572_v5 = vpop.f32.mrf.mxu0  ;;  %v2216_v27 = vadd.f32 %v2215_v17, %v2214_v0  ;;  %v5083_v13 = vld [vmem:[#allocation6_spill] sm:$0xff]  ;;  %v5085_v0 = vld [vmem:[#allocation8_spill] sm:$0xff] }
 0x254   : > { %v2221_v55 = vsel %vm1056_vm3, %v5083_v13, 0.0 }
 0x255   : > { %2184 = vst.msk [vmem:[%s3700_s8 + $0x110] sm:$0xff] %vm1056_vm3, %v4497_v28 }
 0x257   : > { %2911 = vmatmul.msk.f32.gmra.mxu3 %vm1247_vm5, %v3235_v51  ;;  %v2217_v51 = vsel %vm1056_vm3, %v3782_v32, 0.0  ;;  %v1796_v16 = vpop.f32.mrf.mxu1 }
 0x258   : > { %v2218_v37 = vadd.f32 %v2217_v51, %v2216_v27  ;;  %v2225_v51 = vsel %vm1056_vm3, %v5085_v0, 0.0  ;;  %v1791_v27 = vadd.f32 %v1790_v35, %v1572_v5 }
 0x25a   : > { %v4504_v43 = vpop.f32.mrf.mxu3  ;;  %v1999_v21 = vpop.f32.mrf.mxu2 }
 0x25b   : > { %5082 = vst [vmem:[#allocation33_spill] sm:$0xff] %v4504_v43  ;;  %v4506_v23 = vadd.f32 %v1999_v21, %v1785_v48  ;;  %v1575_v31 = vpop.f32.mrf.mxu0  ;;  %v2219_v21 = vsel %vm1056_vm3, %v3804_v29, 0.0 }
 0x25c   : > { %v2220_v61 = vadd.f32 %v2219_v21, %v2218_v37  ;;  %v5087_v21 = vld [vmem:[#allocation10_spill] sm:$0xff] }
 0x25d   : > { %2185 = vst.msk [vmem:[%s3700_s8 + $0x118] sm:$0xff] %vm1056_vm3, %v4506_v23  ;;  %v2227_v13 = vsel %vm1056_vm3, %v5087_v21, 0.0 }
 0x25e   : > { %v2222_v17 = vadd.f32 %v2221_v55, %v2220_v61  ;;  %v2229_v55 = vsel %vm1056_vm3, %v5088_v57, 0.0 }
 0x262   : > { %v2002_v18 = vpop.f32.mrf.mxu2  ;;  %v2038_v48 = vpop.f32.mrf.mxu3 }
 0x263   : > { %v4521_v43 = vadd.f32 %v2002_v18, %v1788_v20  ;;  %v4523_v45 = vadd.f32 %v2038_v48, %v1824_v19  ;;  %v1578_v32 = vpop.f32.mrf.mxu0  ;;  %v5086_v19 = vld [vmem:[#allocation9_spill] sm:$0xff]  ;;  %v2224_v18 = vadd.f32 %v2223_v50, %v2222_v17  ;;  %v2233_v50 = vsel %vm1056_vm3, %v4038_v3, 0.0  ;;  %v5089_v17 = vld [vmem:[#allocation12_spill] sm:$0xff] }
 0x264   : > { %v1827_v20 = vadd.f32 %v4316_v60, %v5086_v19  ;;  %v2231_v60 = vsel %vm1056_vm3, %v4012_v44, 0.0  ;;  %v1794_v19 = vadd.f32 %v1793_v39, %v1575_v31  ;;  %v5092_v31 = vld [vmem:[#allocation21_spill] sm:$0xff] }
 0x265   : > { %2186 = vst.msk [vmem:[%s3700_s8 + $0x120] sm:$0xff] %vm1056_vm3, %v4521_v43  ;;  %v2226_v2 = vadd.f32 %v2225_v51, %v2224_v18  ;;  %v1830_v51 = vadd.f32 %v4334_v63, %v5089_v17  ;;  %v5090_v18 = vld [vmem:[#allocation17_spill] sm:$0xff]  ;;  %v2239_v39 = vsel %vm1056_vm3, %v5092_v31, 0.0 }
 0x266   : > { %2198 = vst.msk [vmem:[%s3700_s8 + $0x180] sm:$0xff] %vm1056_vm3, %v4523_v45 }
 0x267   : > { %v2228_v61 = vadd.f32 %v2227_v13, %v2226_v2 }
 0x269   : > { %v2230_v5 = vadd.f32 %v2229_v55, %v2228_v61  ;;  %v5091_v55 = vld [vmem:[#allocation19_spill] sm:$0xff] }
 0x26a   : > { %v2005_v48 = vpop.f32.mrf.mxu2  ;;  %v2041_v37 = vpop.f32.mrf.mxu3  ;;  %v2237_v61 = vsel %vm1056_vm3, %v5091_v55, 0.0 }
 0x26b   : > { %v4541_v29 = vadd.f32 %v2005_v48, %v1791_v27  ;;  %v4543_v46 = vadd.f32 %v2041_v37, %v1827_v20  ;;  %v1581_v35 = vpop.f32.mrf.mxu0  ;;  %v1799_v20 = vpop.f32.mrf.mxu1  ;;  %v2232_v27 = vadd.f32 %v2231_v60, %v2230_v5  ;;  %v2235_v48 = vsel %vm1056_vm3, %v5090_v18, 0.0 }
 0x26c   : > { %v2241_v5 = vsel %vm1056_vm3, %v4148_v42, 0.0 }
 0x26d   : > { %2187 = vst.msk [vmem:[%s3700_s8 + $0x128] sm:$0xff] %vm1056_vm3, %v4541_v29  ;;  %v2234_v57 = vadd.f32 %v2233_v50, %v2232_v27  ;;  %v5093_v50 = vld [vmem:[#allocation13_spill] sm:$0xff] }
 0x26e   : > { %2199 = vst.msk [vmem:[%s3700_s8 + $0x188] sm:$0xff] %vm1056_vm3, %v4543_v46  ;;  %v1833_v17 = vadd.f32 %v4353_v24, %v5093_v50  ;;  %v2247_v24 = vsel %vm1056_vm3, %v4217_v40, 0.0  ;;  %v1800_v50 = vadd.f32 %v1799_v20, %v1581_v35  ;;  %v2255_v35 = vsel %vm1056_vm3, %v4318_v36, 0.0 }
 0x26f   : > { %v2236_v63 = vadd.f32 %v2235_v48, %v2234_v57 }
 0x271   : > { %v2238_v60 = vadd.f32 %v2237_v61, %v2236_v63  ;;  %v2245_v63 = vsel %vm1056_vm3, %v4199_v7, 0.0 }
 0x272   : > { %v2008_v13 = vpop.f32.mrf.mxu2  ;;  %v2044_v2 = vpop.f32.mrf.mxu3 }
 0x273   : > { %v4561_v37 = vadd.f32 %v2008_v13, %v1794_v19  ;;  %v4563_v44 = vadd.f32 %v2044_v2, %v1830_v51  ;;  %v1797_v51 = vadd.f32 %v1796_v16, %v1578_v32  ;;  %v1584_v19 = vpop.f32.mrf.mxu0  ;;  %v2240_v27 = vadd.f32 %v2239_v39, %v2238_v60  ;;  %v1802_v48 = vpop.f32.mrf.mxu1  ;;  %v5094_v60 = vld [vmem:[#allocation15_spill] sm:$0xff] }
 0x274   : > { %v2243_v2 = vsel %vm1056_vm3, %v4181_v38, 0.0  ;;  %v2249_v39 = vsel %vm1056_vm3, %v4249_v15, 0.0 }
 0x275   : > { %2188 = vst.msk [vmem:[%s3700_s8 + $0x130] sm:$0xff] %vm1056_vm3, %v4561_v37  ;;  %v2242_v61 = vadd.f32 %v2241_v5, %v2240_v27  ;;  %v1836_v5 = vadd.f32 %v4372_v4, %v5094_v60  ;;  %v1803_v60 = vadd.f32 %v1802_v48, %v1584_v19  ;;  %v2263_v19 = vsel %vm1056_vm3, %v4391_v58, 0.0 }
 0x276   : > { %2200 = vst.msk [vmem:[%s3700_s8 + $0x190] sm:$0xff] %vm1056_vm3, %v4563_v44 }
 0x277   : > { %v2244_v32 = vadd.f32 %v2243_v2, %v2242_v61 }
 0x279   : > { %v2246_v16 = vadd.f32 %v2245_v63, %v2244_v32  ;;  %v2253_v32 = vsel %vm1056_vm3, %v4291_v14, 0.0 }
 0x27a   : > { %v2011_v13 = vpop.f32.mrf.mxu2  ;;  %v2047_v57 = vpop.f32.mrf.mxu3 }
 0x27b   : > { %v4581_v55 = vadd.f32 %v2011_v13, %v1797_v51  ;;  %v4583_v31 = vadd.f32 %v2047_v57, %v1833_v17  ;;  %v2248_v17 = vadd.f32 %v2247_v24, %v2246_v16  ;;  %v2251_v13 = vsel %vm1056_vm3, %v4270_v12, 0.0  ;;  %v1587_v57 = vpop.f32.mrf.mxu0  ;;  %v1805_v15 = vpop.f32.mrf.mxu1  ;;  %v5095_v16 = vld [vmem:[#allocation16_spill] sm:$0xff] }
 0x27c   : > { %v2257_v24 = vsel %vm1056_vm3, %v4336_v52, 0.0 }
 0x27d   : > { %2189 = vst.msk [vmem:[%s3700_s8 + $0x138] sm:$0xff] %vm1056_vm3, %v4581_v55  ;;  %v2250_v63 = vadd.f32 %v2249_v39, %v2248_v17  ;;  %v1839_v39 = vadd.f32 %v4389_v8, %v5095_v16  ;;  %v2265_v16 = vsel %vm1056_vm3, %v4407_v49, 0.0 }
 0x27e   : > { %2201 = vst.msk [vmem:[%s3700_s8 + $0x198] sm:$0xff] %vm1056_vm3, %v4583_v31 }
 0x27f   : > { %v2252_v4 = vadd.f32 %v2251_v13, %v2250_v63 }
 0x281   : > { %v2254_v20 = vadd.f32 %v2253_v32, %v2252_v4  ;;  %v2261_v32 = vsel %vm1056_vm3, %v4374_v62, 0.0 }
 0x282   : > { %v2014_v51 = vpop.f32.mrf.mxu2  ;;  %v2050_v27 = vpop.f32.mrf.mxu3 }
 0x283   : > { %v4601_v2 = vadd.f32 %v2014_v51, %v1800_v50  ;;  %v4603_v61 = vadd.f32 %v2050_v27, %v1836_v5  ;;  %v2256_v5 = vadd.f32 %v2255_v35, %v2254_v20  ;;  %v2259_v51 = vsel %vm1056_vm3, %v4355_v22, 0.0  ;;  %v1590_v4 = vpop.f32.mrf.mxu0  ;;  %v1808_v48 = vpop.f32.mrf.mxu1  ;;  %v5096_v20 = vld [vmem:[#allocation18_spill] sm:$0xff] }
 0x285   : > { %2190 = vst.msk [vmem:[%s3700_s8 + $0x140] sm:$0xff] %vm1056_vm3, %v4601_v2  ;;  %v2258_v63 = vadd.f32 %v2257_v24, %v2256_v5  ;;  %v1842_v24 = vadd.f32 %v4405_v41, %v5096_v20  ;;  %v2273_v20 = vsel %vm1056_vm3, %v4459_v54, 0.0 }
 0x286   : > { %2202 = vst.msk [vmem:[%s3700_s8 + $0x1a0] sm:$0xff] %vm1056_vm3, %v4603_v61 }
 0x287   : > { %v2260_v8 = vadd.f32 %v2259_v51, %v2258_v63 }
 0x289   : > { %v2262_v35 = vadd.f32 %v2261_v32, %v2260_v8  ;;  %v2269_v32 = vsel %vm1056_vm3, %v4435_v1, 0.0 }
 0x28a   : > { %v2017_v50 = vpop.f32.mrf.mxu2  ;;  %v2053_v17 = vpop.f32.mrf.mxu3 }
 0x28b   : > { %v4621_v27 = vadd.f32 %v2017_v50, %v1803_v60  ;;  %v4623_v13 = vadd.f32 %v2053_v17, %v1839_v39  ;;  %v1806_v39 = vadd.f32 %v1805_v15, %v1587_v57  ;;  %v2264_v60 = vadd.f32 %v2263_v19, %v2262_v35  ;;  %v1593_v57 = vpop.f32.mrf.mxu0  ;;  %v5097_v19 = vld [vmem:[#allocation20_spill] sm:$0xff] }
 0x28c   : > { %v2267_v17 = vsel %vm1056_vm3, %v4421_v10, 0.0  ;;  %v2271_v15 = vsel %vm1056_vm3, %v4448_v59, 0.0  ;;  %v1845_v35 = vadd.f32 %v4419_v11, %v5097_v19 }
 0x28d   : > { %2191 = vst.msk [vmem:[%s3700_s8 + $0x148] sm:$0xff] %vm1056_vm3, %v4621_v27  ;;  %v2266_v58 = vadd.f32 %v2265_v16, %v2264_v60  ;;  %v1809_v16 = vadd.f32 %v1808_v48, %v1590_v4  ;;  %v2279_v4 = vsel %vm1056_vm3, %v4488_v6, 0.0 }
 0x28e   : > { %2203 = vst.msk [vmem:[%s3700_s8 + $0x1a8] sm:$0xff] %vm1056_vm3, %v4623_v13 }
 0x28f   : > { %v2268_v41 = vadd.f32 %v2267_v17, %v2266_v58 }
 0x291   : > { %v2270_v8 = vadd.f32 %v2269_v32, %v2268_v41  ;;  %v2277_v32 = vsel %vm1056_vm3, %v4479_v34, 0.0  ;;  %v5098_v41 = vld [vmem:[#allocation22_spill] sm:$0xff] }
 0x292   : > { %v2020_v5 = vpop.f32.mrf.mxu2  ;;  %v2056_v50 = vpop.f32.mrf.mxu3 }
 0x293   : > { %v4641_v51 = vadd.f32 %v2020_v5, %v1806_v39  ;;  %v4643_v63 = vadd.f32 %v2056_v50, %v1842_v24  ;;  %v1811_v24 = vpop.f32.mrf.mxu1  ;;  %v2272_v39 = vadd.f32 %v2271_v15, %v2270_v8  ;;  %v2275_v5 = vsel %vm1056_vm3, %v4470_v26, 0.0 }
 0x294   : > { %v1848_v15 = vadd.f32 %v4433_v30, %v5098_v41  ;;  %v2281_v8 = vsel %vm1056_vm3, %v4497_v28, 0.0  ;;  %v1812_v19 = vadd.f32 %v1811_v24, %v1593_v57  ;;  %v2285_v30 = vsel %vm1056_vm3, %v4521_v43, 0.0 }
 0x295   : > { %2192 = vst.msk [vmem:[%s3700_s8 + $0x150] sm:$0xff] %vm1056_vm3, %v4641_v51  ;;  %v2274_v59 = vadd.f32 %v2273_v20, %v2272_v39  ;;  %v2283_v39 = vsel %vm1056_vm3, %v4506_v23, 0.0  ;;  %v2287_v24 = vsel %vm1056_vm3, %v4541_v29, 0.0  ;;  %v2289_v41 = vsel %vm1056_vm3, %v4561_v37, 0.0 }
 0x296   : > { %2204 = vst.msk [vmem:[%s3700_s8 + $0x1b0] sm:$0xff] %vm1056_vm3, %v4643_v63 }
 0x297   : > { %v2276_v11 = vadd.f32 %v2275_v5, %v2274_v59 }
 0x299   : > { %v2278_v48 = vadd.f32 %v2277_v32, %v2276_v11 }
 0x29a   : > { %v2023_v58 = vpop.f32.mrf.mxu2  ;;  %v2059_v60 = vpop.f32.mrf.mxu3 }
 0x29b   : > { %v4661_v50 = vadd.f32 %v2023_v58, %v1809_v16  ;;  %v4663_v17 = vadd.f32 %v2059_v60, %v1845_v35  ;;  %v1596_v35 = vpop.f32.mrf.mxu0  ;;  %v2280_v20 = vadd.f32 %v2279_v4, %v2278_v48  ;;  %v1814_v32 = vpop.f32.mrf.mxu1  ;;  %v5100_v4 = vld [vmem:[#allocation23_spill] sm:$0xff] }
 0x29c   : > { %v1851_v48 = vadd.f32 %v4446_v56, %v5100_v4  ;;  %v2297_v4 = vsel %vm1056_vm3, %v4641_v51, 0.0 }
 0x29d   : > { %2193 = vst.msk [vmem:[%s3700_s8 + $0x158] sm:$0xff] %vm1056_vm3, %v4661_v50  ;;  %v2282_v5 = vadd.f32 %v2281_v8, %v2280_v20 }
 0x29e   : > { %2205 = vst.msk [vmem:[%s3700_s8 + $0x1b8] sm:$0xff] %vm1056_vm3, %v4663_v17 }
 0x29f   : > { %v2284_v57 = vadd.f32 %v2283_v39, %v2282_v5 }
 0x2a1   : > { %v2286_v11 = vadd.f32 %v2285_v30, %v2284_v57  ;;  %v2293_v57 = vsel %vm1056_vm3, %v4601_v2, 0.0 }
 0x2a2   : > { %v2026_v16 = vpop.f32.mrf.mxu2  ;;  %v2062_v59 = vpop.f32.mrf.mxu3 }
 0x2a3   : > { %v4681_v58 = vadd.f32 %v2026_v16, %v1812_v19  ;;  %v4683_v60 = vadd.f32 %v2062_v59, %v1848_v15  ;;  %v1815_v15 = vadd.f32 %v1814_v32, %v1596_v35  ;;  %v2288_v8 = vadd.f32 %v2287_v24, %v2286_v11  ;;  %v1599_v30 = vpop.f32.mrf.mxu0  ;;  %v1817_v35 = vpop.f32.mrf.mxu1 }
 0x2a4   : > { %v2291_v16 = vsel %vm1056_vm3, %v4581_v55, 0.0  ;;  %v2295_v32 = vsel %vm1056_vm3, %v4621_v27, 0.0  ;;  %v1854_v11 = vadd.f32 %v4457_v9, %v4176_v53 }
 0x2a5   : > { %5099 = vst [vmem:[#allocation8_spill] sm:$0xff] %v4683_v60  ;;  %v2290_v5 = vadd.f32 %v2289_v41, %v2288_v8 }
 0x2a6   : > { %2194 = vst.msk [vmem:[%s3700_s8 + $0x160] sm:$0xff] %vm1056_vm3, %v4681_v58 }
 0x2a7   : > { %2206 = vst.msk [vmem:[%s3700_s8 + $0x1c0] sm:$0xff] %vm1056_vm3, %v4683_v60  ;;  %v2292_v56 = vadd.f32 %v2291_v16, %v2290_v5 }
 0x2a9   : > { %v2294_v24 = vadd.f32 %v2293_v57, %v2292_v56  ;;  %v2301_v57 = vsel %vm1056_vm3, %v4681_v58, 0.0 }
 0x2aa   : > { %v2029_v19 = vpop.f32.mrf.mxu2  ;;  %v2065_v20 = vpop.f32.mrf.mxu3 }
 0x2ab   : > { %v4701_v59 = vadd.f32 %v2029_v19, %v1815_v15  ;;  %v4703_v39 = vadd.f32 %v2065_v20, %v1851_v48  ;;  %v1818_v48 = vadd.f32 %v1817_v35, %v1599_v30  ;;  %v2296_v41 = vadd.f32 %v2295_v32, %v2294_v24  ;;  %v1602_v9 = vpop.f32.mrf.mxu0  ;;  %v1820_v56 = vpop.f32.mrf.mxu1 }
 0x2ac   : > { %v2299_v19 = vsel %vm1056_vm3, %v4661_v50, 0.0  ;;  %v1857_v32 = vadd.f32 %v4468_v25, %v4197_v33  ;;  %v1821_v24 = vadd.f32 %v1820_v56, %v1602_v9  ;;  %v2309_v33 = vsel %vm1056_vm3, %v4523_v45, 0.0 }
 0x2ad   : > { %5101 = vst [vmem:[#allocation9_spill] sm:$0xff] %v4701_v59  ;;  %v2298_v5 = vadd.f32 %v2297_v4, %v2296_v41  ;;  %v2303_v30 = vsel %vm1056_vm3, %v4701_v59, 0.0  ;;  %v2311_v9 = vsel %vm1056_vm3, %v4543_v46, 0.0 }
 0x2ae   : > { %5102 = vst [vmem:[#allocation10_spill] sm:$0xff] %v4703_v39 }
 0x2af   : > { %2195 = vst.msk [vmem:[%s3700_s8 + $0x168] sm:$0xff] %vm1056_vm3, %v4701_v59  ;;  %v2300_v53 = vadd.f32 %v2299_v19, %v2298_v5 }
 0x2b0   : > { %2207 = vst.msk [vmem:[%s3700_s8 + $0x1c8] sm:$0xff] %vm1056_vm3, %v4703_v39 }
 0x2b1   : > { %v2302_v35 = vadd.f32 %v2301_v57, %v2300_v53  ;;  %v5104_v57 = vld [vmem:[#allocation30_spill] sm:$0xff] }
 0x2b2   : > { %v2032_v15 = vpop.f32.mrf.mxu2  ;;  %v2068_v8 = vpop.f32.mrf.mxu3  ;;  %v1860_v53 = vadd.f32 %v5104_v57, %v4220_v47  ;;  %v2317_v47 = vsel %vm1056_vm3, %v4603_v61, 0.0  ;;  %v2321_v57 = vsel %vm1056_vm3, %v4643_v63, 0.0 }
 0x2b3   : > { %v4721_v20 = vadd.f32 %v2032_v15, %v1818_v48  ;;  %v4723_v16 = vadd.f32 %v2068_v8, %v1854_v11  ;;  %v2304_v4 = vadd.f32 %v2303_v30, %v2302_v35  ;;  %v2313_v35 = vsel %vm1056_vm3, %v4563_v44, 0.0 }
 0x2b5   : > { %5103 = vst [vmem:[#allocation12_spill] sm:$0xff] %v4723_v16  ;;  %v2305_v11 = vsel %vm1056_vm3, %v4721_v20, 0.0 }
 0x2b6   : > { %2196 = vst.msk [vmem:[%s3700_s8 + $0x170] sm:$0xff] %vm1056_vm3, %v4721_v20  ;;  %v2306_v19 = vadd.f32 %v2305_v11, %v2304_v4  ;;  %v2315_v11 = vsel %vm1056_vm3, %v4583_v31, 0.0 }
 0x2b7   : > { %2208 = vst.msk [vmem:[%s3700_s8 + $0x1d0] sm:$0xff] %vm1056_vm3, %v4723_v16 }
 0x2ba   : > { %v2035_v48 = vpop.f32.mrf.mxu2  ;;  %v2071_v41 = vpop.f32.mrf.mxu3 }
 0x2bb   : > { %v2133_v15 = vadd.f32 %v2035_v48, %v1821_v24  ;;  %v2145_v8 = vadd.f32 %v2071_v41, %v1857_v32  ;;  %v5105_v48 = vld [vmem:[#allocation24_spill] sm:$0xff]  ;;  %v5106_v41 = vld [vmem:[#allocation31_spill] sm:$0xff] }
 0x2bd   : > { %2197 = vst.msk [vmem:[%s3700_s8 + $0x178] sm:$0xff] %vm1056_vm3, %v2133_v15  ;;  %v2307_v5 = vsel %vm1056_vm3, %v2133_v15, 0.0 }
 0x2be   : > { %v2308_v59 = vadd.f32 %v2307_v5, %v2306_v19  ;;  %2209 = vst.msk [vmem:[%s3700_s8 + $0x1d8] sm:$0xff] %vm1056_vm3, %v2145_v8  ;;  %v1863_v19 = vadd.f32 %v5106_v41, %v5105_v48  ;;  %v2319_v5 = vsel %vm1056_vm3, %v4623_v13, 0.0 }
 0x2c0   : > { %v2310_v25 = vadd.f32 %v2309_v33, %v2308_v59 }
 0x2c2   : > { %v2312_v30 = vadd.f32 %v2311_v9, %v2310_v25  ;;  %v2074_v56 = vpop.f32.mrf.mxu3 }
 0x2c3   : > { %v2146_v32 = vadd.f32 %v2074_v56, %v1860_v53 }
 0x2c4   : > { %v2314_v24 = vadd.f32 %v2313_v35, %v2312_v30  ;;  %v2323_v30 = vsel %vm1056_vm3, %v4663_v17, 0.0  ;;  %v2325_v35 = vsel %vm1056_vm3, %v4683_v60, 0.0 }
 0x2c5   : > { %2210 = vst.msk [vmem:[%s3700_s8 + $0x1e0] sm:$0xff] %vm1056_vm3, %v2146_v32 }
 0x2c6   : > { %v2316_v59 = vadd.f32 %v2315_v11, %v2314_v24  ;;  %v5107_v11 = vld [vmem:[#allocation26_spill] sm:$0xff] }
 0x2c8   : > { %v2318_v4 = vadd.f32 %v2317_v47, %v2316_v59  ;;  %v5108_v59 = vld [vmem:[#allocation32_spill] sm:$0xff] }
 0x2c9   : > { %v1866_v47 = vadd.f32 %v5108_v59, %v5107_v11 }
 0x2ca   : > { %v2320_v33 = vadd.f32 %v2319_v5, %v2318_v4  ;;  %v2077_v25 = vpop.f32.mrf.mxu3  ;;  %v2327_v4 = vsel %vm1056_vm3, %v4703_v39, 0.0 }
 0x2cb   : > { %v2147_v53 = vadd.f32 %v2077_v25, %v1863_v19  ;;  %v2329_v19 = vsel %vm1056_vm3, %v4723_v16, 0.0  ;;  %v2331_v25 = vsel %vm1056_vm3, %v2145_v8, 0.0 }
 0x2cc   : > { %v2322_v9 = vadd.f32 %v2321_v57, %v2320_v33 }
 0x2cd   : > { %2211 = vst.msk [vmem:[%s3700_s8 + $0x1e8] sm:$0xff] %vm1056_vm3, %v2147_v53 }
 0x2ce   : > { %v2324_v56 = vadd.f32 %v2323_v30, %v2322_v9  ;;  %v2333_v9 = vsel %vm1056_vm3, %v2146_v32, 0.0 }
 0x2d0   : > { %v2326_v24 = vadd.f32 %v2325_v35, %v2324_v56  ;;  %v5109_v56 = vld [vmem:[#allocation27_spill] sm:$0xff]  ;;  %v5110_v35 = vld [vmem:[#allocation33_spill] sm:$0xff] }
 0x2d1   : > { %v1869_v11 = vadd.f32 %v5110_v35, %v5109_v56 }
 0x2d2   : > { %v2328_v48 = vadd.f32 %v2327_v4, %v2326_v24  ;;  %v2080_v41 = vpop.f32.mrf.mxu3  ;;  %v2335_v24 = vsel %vm1056_vm3, %v2147_v53, 0.0 }
 0x2d3   : > { %v2148_v5 = vadd.f32 %v2080_v41, %v1866_v47 }
 0x2d4   : > { %v2330_v33 = vadd.f32 %v2329_v19, %v2328_v48 }
 0x2d5   : > { %2212 = vst.msk [vmem:[%s3700_s8 + $0x1f0] sm:$0xff] %vm1056_vm3, %v2148_v5  ;;  %v2337_v39 = vsel %vm1056_vm3, %v2148_v5, 0.0 }
 0x2d6   : > { %v2332_v57 = vadd.f32 %v2331_v25, %v2330_v33 }
 0x2d8   : > { %v2334_v30 = vadd.f32 %v2333_v9, %v2332_v57 }
 0x2da   : > { %v2336_v59 = vadd.f32 %v2335_v24, %v2334_v30  ;;  %v2083_v4 = vpop.f32.mrf.mxu3 }
 0x2db   : > { %v2149_v16 = vadd.f32 %v2083_v4, %v1869_v11  ;;  %v5115_v4 = vld [vmem:[#allocation2_spill] sm:$0xff] }
 0x2dc   : > { %v2338_v47 = vadd.f32 %v2337_v39, %v2336_v59 }
 0x2dd   : > { %2213 = vst.msk [vmem:[%s3700_s8 + $0x1f8] sm:$0xff] %vm1056_vm3, %v2149_v16  ;;  %v2339_v48 = vsel %vm1056_vm3, %v2149_v16, 0.0 }
 0x2de   : > { %v2340_v41 = vadd.f32 %v2339_v48, %v2338_v47 }
 0x2e0   : > { %v2341_v19 = vrot.slane %v2340_v41, 4 }
 0x2e2   : > { %v2342_v33 = vadd.f32 %v2341_v19, %v2340_v41 }
 0x2e4   : > { %v2343_v25 = vrot.slane %v2342_v33, 2 }
 0x2e6   : > { %v2344_v57 = vadd.f32 %v2343_v25, %v2342_v33 }
 0x2e8   : > { %v2345_v9 = vrot.slane %v2344_v57, 1 }
 0x2ea   : > { %v4787_v60 = vadd.f32 %v2345_v9, %v2344_v57 }
 0x2ec   : > { %5111 = vst [vmem:[#allocation17_spill] sm:$0xff] %v4787_v60  ;;  %v4790_v56 = vmul.f32 0.001953125, %v4787_v60 }
 0x2ee   : > { %v4793_v30 = vsub.f32 %v2133_v15, %v4790_v56  ;;  %v4796_v39 = vsub.f32 %v2145_v8, %v4790_v56  ;;  %v4799_v35 = vsub.f32 %v2146_v32, %v4790_v56  ;;  %v4802_v11 = vsub.f32 %v2147_v53, %v4790_v56  ;;  %v5116_v15 = vld [vmem:[#allocation3_spill] sm:$0xff]  ;;  %v5117_v8 = vld [vmem:[#allocation4_spill] sm:$0xff]  ;;  %v5118_v32 = vld [vmem:[#allocation5_spill] sm:$0xff] }
 0x2ef   : > { %v4805_v24 = vsub.f32 %v2148_v5, %v4790_v56  ;;  %v4808_v59 = vsub.f32 %v2149_v16, %v4790_v56  ;;  %v2348_v47 = vsub.f32 %v5115_v4, %v4790_v56  ;;  %v2349_v48 = vsub.f32 %v5116_v15, %v4790_v56  ;;  %v5119_v5 = vld [vmem:[#allocation6_spill] sm:$0xff]  ;;  %v5120_v16 = vld [vmem:[#allocation7_spill] sm:$0xff] }
 0x2f0   : > { %5112 = vst [vmem:[#allocation13_spill] sm:$0xff] %v4802_v11  ;;  %v2350_v41 = vsub.f32 %v5117_v8, %v4790_v56  ;;  %v2351_v19 = vsub.f32 %v5118_v32, %v4790_v56  ;;  %v2352_v25 = vsub.f32 %v5119_v5, %v4790_v56  ;;  %v2353_v9 = vsub.f32 %v5120_v16, %v4790_v56 }
 0x2f1   : > { %5113 = vst [vmem:[#allocation15_spill] sm:$0xff] %v4805_v24  ;;  %v2412_v53 = vmul.f32 %v2348_v47, %v2348_v47  ;;  %v2413_v33 = vmul.f32 %v2349_v48, %v2349_v48  ;;  %v2354_v8 = vsub.f32 %v5085_v0, %v4790_v56  ;;  %v2355_v32 = vsub.f32 %v5087_v21, %v4790_v56  ;;  %v5122_v0 = vld [vmem:[#allocation14_spill] sm:$0xff] }
 0x2f2   : > { %5114 = vst [vmem:[#allocation16_spill] sm:$0xff] %v4808_v59  ;;  %v2414_v57 = vmul.f32 %v2350_v41, %v2350_v41  ;;  %v2415_v60 = vmul.f32 %v2351_v19, %v2351_v19  ;;  %v2416_v24 = vmul.f32 %v2352_v25, %v2352_v25  ;;  %v2417_v41 = vmul.f32 %v2353_v9, %v2353_v9  ;;  %v5121_v19 = vld [vmem:[#allocation11_spill] sm:$0xff] }
 0x2f3   : > { %v2476_v4 = vsel %vm1056_vm3, %v2412_v53, 0.0  ;;  %v2477_v15 = vsel %vm1056_vm3, %v2413_v33, 0.0  ;;  %v2356_v53 = vsub.f32 %v5121_v19, %v4790_v56  ;;  %v2418_v11 = vmul.f32 %v2354_v8, %v2354_v8 }
 0x2f4   : > { %v2478_v59 = vadd.f32 %v2477_v15, %v2476_v4  ;;  %v2479_v47 = vsel %vm1056_vm3, %v2414_v57, 0.0  ;;  %v2481_v5 = vsel %vm1056_vm3, %v2415_v60, 0.0  ;;  %v2483_v33 = vsel %vm1056_vm3, %v2416_v24, 0.0 }
 0x2f5   : > { %v2357_v25 = vsub.f32 %v5122_v0, %v4790_v56  ;;  %v2419_v15 = vmul.f32 %v2355_v32, %v2355_v32  ;;  %v2358_v21 = vsub.f32 %v4038_v3, %v4790_v56  ;;  %v2420_v9 = vmul.f32 %v2356_v53, %v2356_v53  ;;  %v5124_v3 = vld [vmem:[#allocation21_spill] sm:$0xff] }
 0x2f6   : > { %v2480_v48 = vadd.f32 %v2479_v47, %v2478_v59  ;;  %v2485_v59 = vsel %vm1056_vm3, %v2417_v41, 0.0  ;;  %v2487_v60 = vsel %vm1056_vm3, %v2418_v11, 0.0  ;;  %v2359_v8 = vsub.f32 %v5090_v18, %v4790_v56 }
 0x2f7   : > { %v2489_v24 = vsel %vm1056_vm3, %v2419_v15, 0.0  ;;  %v2422_v19 = vmul.f32 %v2358_v21, %v2358_v21  ;;  %v2491_v41 = vsel %vm1056_vm3, %v2420_v9, 0.0  ;;  %v2361_v53 = vsub.f32 %v5124_v3, %v4790_v56 }
 0x2f8   : > { %v2482_v16 = vadd.f32 %v2481_v5, %v2480_v48  ;;  %v2421_v48 = vmul.f32 %v2357_v25, %v2357_v25  ;;  %v2362_v18 = vsub.f32 %v4148_v42, %v4790_v56  ;;  %v2365_v42 = vsub.f32 %v4217_v40, %v4790_v56 }
 0x2f9   : > { %v2495_v15 = vsel %vm1056_vm3, %v2422_v19, 0.0  ;;  %v2425_v21 = vmul.f32 %v2361_v53, %v2361_v53  ;;  %v2368_v40 = vsub.f32 %v4291_v14, %v4790_v56  ;;  %v2371_v14 = vsub.f32 %v4355_v22, %v4790_v56 }
 0x2fa   : > { %v2484_v4 = vadd.f32 %v2483_v33, %v2482_v16  ;;  %v5123_v16 = vld [vmem:[#allocation19_spill] sm:$0xff]  ;;  %v2493_v11 = vsel %vm1056_vm3, %v2421_v48, 0.0  ;;  %v2429_v53 = vmul.f32 %v2365_v42, %v2365_v42  ;;  %v2374_v22 = vsub.f32 %v4407_v49, %v4790_v56  ;;  %v5127_v49 = vld [vmem:[#allocation29_spill] sm:$0xff] }
 0x2fb   : > { %v2360_v32 = vsub.f32 %v5123_v16, %v4790_v56  ;;  %v2501_v16 = vsel %vm1056_vm3, %v2425_v21, 0.0 }
 0x2fc   : > { %v2486_v57 = vadd.f32 %v2485_v59, %v2484_v4  ;;  %v2423_v4 = vmul.f32 %v2359_v8, %v2359_v8  ;;  %v2426_v8 = vmul.f32 %v2362_v18, %v2362_v18 }
 0x2fd   : > { %v2424_v25 = vmul.f32 %v2360_v32, %v2360_v32 }
 0x2fe   : > { %v2488_v47 = vadd.f32 %v2487_v60, %v2486_v57  ;;  %v2363_v57 = vsub.f32 %v4181_v38, %v4790_v56  ;;  %v2497_v9 = vsel %vm1056_vm3, %v2423_v4, 0.0  ;;  %v5125_v38 = vld [vmem:[#allocation25_spill] sm:$0xff] }
 0x2ff   : > { %v2499_v48 = vsel %vm1056_vm3, %v2424_v25, 0.0  ;;  %v2366_v19 = vsub.f32 %v5125_v38, %v4790_v56  ;;  %v2435_v38 = vmul.f32 %v2371_v14, %v2371_v14 }
 0x300   : > { %v2490_v5 = vadd.f32 %v2489_v24, %v2488_v47  ;;  %v2364_v47 = vsub.f32 %v4199_v7, %v4790_v56  ;;  %v2367_v7 = vsub.f32 %v4270_v12, %v4790_v56  ;;  %v2370_v12 = vsub.f32 %v4336_v52, %v4790_v56  ;;  %v5126_v52 = vld [vmem:[#allocation28_spill] sm:$0xff] }
 0x302   : > { %v2492_v33 = vadd.f32 %v2491_v41, %v2490_v5  ;;  %v2427_v5 = vmul.f32 %v2363_v57, %v2363_v57  ;;  %v2428_v41 = vmul.f32 %v2364_v47, %v2364_v47  ;;  %v2509_v57 = vsel %vm1056_vm3, %v2429_v53, 0.0 }
 0x303   : > { %v2434_v42 = vmul.f32 %v2370_v12, %v2370_v12 }
 0x304   : > { %v2494_v0 = vadd.f32 %v2493_v11, %v2492_v33  ;;  %v2503_v33 = vsel %vm1056_vm3, %v2426_v8, 0.0  ;;  %v2505_v4 = vsel %vm1056_vm3, %v2427_v5, 0.0  ;;  %v2507_v18 = vsel %vm1056_vm3, %v2428_v41, 0.0 }
 0x306   : > { %v2496_v59 = vadd.f32 %v2495_v15, %v2494_v0  ;;  %v2430_v0 = vmul.f32 %v2366_v19, %v2366_v19  ;;  %v2369_v15 = vsub.f32 %v4318_v36, %v4790_v56  ;;  %v2372_v36 = vsub.f32 %v4374_v62, %v4790_v56 }
 0x307   : > { %v2375_v62 = vsub.f32 %v4421_v10, %v4790_v56  ;;  %v2378_v10 = vsub.f32 %v4459_v54, %v4790_v56  ;;  %v2381_v54 = vsub.f32 %v4488_v6, %v4790_v56  ;;  %v2384_v6 = vsub.f32 %v4521_v43, %v4790_v56 }
 0x308   : > { %v2498_v60 = vadd.f32 %v2497_v9, %v2496_v59  ;;  %v2431_v59 = vmul.f32 %v2367_v7, %v2367_v7  ;;  %v2432_v9 = vmul.f32 %v2368_v40, %v2368_v40  ;;  %v2433_v8 = vmul.f32 %v2369_v15, %v2369_v15 }
 0x309   : > { %v2376_v40 = vsub.f32 %v4435_v1, %v4790_v56  ;;  %v2377_v15 = vsub.f32 %v5127_v49, %v4790_v56  ;;  %v2379_v1 = vsub.f32 %v4470_v26, %v4790_v56  ;;  %v2382_v26 = vsub.f32 %v4497_v28, %v4790_v56 }
 0x30a   : > { %v2500_v24 = vadd.f32 %v2499_v48, %v2498_v60  ;;  %v2511_v60 = vsel %vm1056_vm3, %v2430_v0, 0.0  ;;  %v2513_v48 = vsel %vm1056_vm3, %v2431_v59, 0.0  ;;  %v2515_v5 = vsel %vm1056_vm3, %v2432_v9, 0.0 }
 0x30b   : > { %v2517_v19 = vsel %vm1056_vm3, %v2433_v8, 0.0  ;;  %v2438_v0 = vmul.f32 %v2374_v22, %v2374_v22  ;;  %v2439_v59 = vmul.f32 %v2375_v62, %v2375_v62  ;;  %v2440_v12 = vmul.f32 %v2376_v40, %v2376_v40 }
 0x30c   : > { %v2502_v32 = vadd.f32 %v2501_v16, %v2500_v24  ;;  %v2385_v28 = vsub.f32 %v4541_v29, %v4790_v56  ;;  %v2448_v40 = vmul.f32 %v2384_v6, %v2384_v6  ;;  %v2387_v43 = vsub.f32 %v4581_v55, %v4790_v56 }
 0x30d   : > { %v2527_v9 = vsel %vm1056_vm3, %v2438_v0, 0.0  ;;  %v2529_v14 = vsel %vm1056_vm3, %v2439_v59, 0.0  ;;  %v2388_v29 = vsub.f32 %v4601_v2, %v4790_v56  ;;  %v2390_v55 = vsub.f32 %v4641_v51, %v4790_v56  ;;  %v5128_v51 = vld [vmem:[#allocation9_spill] sm:$0xff] }
 0x30e   : > { %v2504_v3 = vadd.f32 %v2503_v33, %v2502_v32  ;;  %v2373_v32 = vsub.f32 %v5126_v52, %v4790_v56  ;;  %v2436_v33 = vmul.f32 %v2372_v36, %v2372_v36  ;;  %v2531_v36 = vsel %vm1056_vm3, %v2440_v12, 0.0 }
 0x30f   : > { %v2391_v2 = vsub.f32 %v4661_v50, %v4790_v56  ;;  %v2394_v50 = vsub.f32 %v4721_v20, %v4790_v56  ;;  %v2459_v20 = vmul.f32 %v4793_v30, %v4793_v30  ;;  %v2400_v30 = vsub.f32 %v4603_v61, %v4790_v56 }
 0x310   : > { %v2506_v11 = vadd.f32 %v2505_v4, %v2504_v3  ;;  %v2519_v3 = vsel %vm1056_vm3, %v2434_v42, 0.0  ;;  %v2437_v53 = vmul.f32 %v2373_v32, %v2373_v32  ;;  %v2521_v4 = vsel %vm1056_vm3, %v2435_v38, 0.0 }
 0x311   : > { %v2403_v61 = vsub.f32 %v4663_v17, %v4790_v56  ;;  %v5131_v17 = vld [vmem:[#allocation12_spill] sm:$0xff] }
 0x312   : > { %v2508_v25 = vadd.f32 %v2507_v18, %v2506_v11  ;;  %v2523_v18 = vsel %vm1056_vm3, %v2436_v33, 0.0 }
 0x314   : > { %v2510_v21 = vadd.f32 %v2509_v57, %v2508_v25  ;;  %v2525_v57 = vsel %vm1056_vm3, %v2437_v53, 0.0 }
 0x316   : > { %v2512_v47 = vadd.f32 %v2511_v60, %v2510_v21 }
 0x318   : > { %v2514_v24 = vadd.f32 %v2513_v48, %v2512_v47  ;;  %v2441_v47 = vmul.f32 %v2377_v15, %v2377_v15  ;;  %v2380_v48 = vsub.f32 %v4479_v34, %v4790_v56  ;;  %v2383_v34 = vsub.f32 %v4506_v23, %v4790_v56 }
 0x319   : > { %v2386_v23 = vsub.f32 %v4561_v37, %v4790_v56  ;;  %v2389_v37 = vsub.f32 %v4621_v27, %v4790_v56  ;;  %v2392_v27 = vsub.f32 %v4681_v58, %v4790_v56 }
 0x31a   : > { %v2516_v16 = vadd.f32 %v2515_v5, %v2514_v24  ;;  %v2442_v24 = vmul.f32 %v2378_v10, %v2378_v10  ;;  %v2443_v5 = vmul.f32 %v2379_v1, %v2379_v1  ;;  %v2444_v32 = vmul.f32 %v2380_v48, %v2380_v48 }
 0x31b   : > { %v2447_v53 = vmul.f32 %v2383_v34, %v2383_v34  ;;  %v2450_v59 = vmul.f32 %v2386_v23, %v2386_v23  ;;  %v2451_v10 = vmul.f32 %v2387_v43, %v2387_v43 }
 0x31c   : > { %v2518_v41 = vadd.f32 %v2517_v19, %v2516_v16  ;;  %v2533_v16 = vsel %vm1056_vm3, %v2441_v47, 0.0  ;;  %v2535_v38 = vsel %vm1056_vm3, %v2442_v24, 0.0  ;;  %v2537_v22 = vsel %vm1056_vm3, %v2443_v5, 0.0 }
 0x31d   : > { %v2545_v49 = vsel %vm1056_vm3, %v2447_v53, 0.0  ;;  %v2551_v1 = vsel %vm1056_vm3, %v2450_v59, 0.0  ;;  %v2454_v24 = vmul.f32 %v2390_v55, %v2390_v55  ;;  %v2455_v5 = vmul.f32 %v2391_v2, %v2391_v2 }
 0x31e   : > { %v2520_v7 = vadd.f32 %v2519_v3, %v2518_v41  ;;  %v2445_v41 = vmul.f32 %v2381_v54, %v2381_v54  ;;  %v2446_v3 = vmul.f32 %v2382_v26, %v2382_v26  ;;  %v2393_v54 = vsub.f32 %v5128_v51, %v4790_v56 }
 0x31f   : > { %v2456_v26 = vmul.f32 %v2392_v27, %v2392_v27  ;;  %v2561_v58 = vsel %vm1056_vm3, %v2455_v5, 0.0 }
 0x320   : > { %v2522_v11 = vadd.f32 %v2521_v4, %v2520_v7  ;;  %v2539_v7 = vsel %vm1056_vm3, %v2444_v32, 0.0  ;;  %v2541_v4 = vsel %vm1056_vm3, %v2445_v41, 0.0  ;;  %v2543_v0 = vsel %vm1056_vm3, %v2446_v3, 0.0 }
 0x321   : > { %v2559_v32 = vsel %vm1056_vm3, %v2454_v24, 0.0  ;;  %v2396_v41 = vsub.f32 %v4523_v45, %v4790_v56  ;;  %v2397_v3 = vsub.f32 %v4543_v46, %v4790_v56 }
 0x322   : > { %v2524_v25 = vadd.f32 %v2523_v18, %v2522_v11 }
 0x323   : > { %v2460_v53 = vmul.f32 %v2396_v41, %v2396_v41  ;;  %v2461_v23 = vmul.f32 %v2397_v3, %v2397_v3  ;;  %v5134_v3 = vld [vmem:[#allocation16_spill] sm:$0xff] }
 0x324   : > { %v2526_v21 = vadd.f32 %v2525_v57, %v2524_v25  ;;  %v2449_v25 = vmul.f32 %v2385_v28, %v2385_v28  ;;  %v2547_v57 = vsel %vm1056_vm3, %v2448_v40, 0.0  ;;  %v2398_v28 = vsub.f32 %v4563_v44, %v4790_v56 }
 0x325   : > { %v2569_v40 = vsel %vm1056_vm3, %v2459_v20, 0.0  ;;  %v2401_v44 = vsub.f32 %v4623_v13, %v4790_v56  ;;  %v5129_v13 = vld [vmem:[#allocation8_spill] sm:$0xff] }
 0x326   : > { %v2528_v60 = vadd.f32 %v2527_v9, %v2526_v21  ;;  %v2549_v12 = vsel %vm1056_vm3, %v2449_v25, 0.0 }
 0x328   : > { %v2530_v8 = vadd.f32 %v2529_v14, %v2528_v60  ;;  %v2452_v60 = vmul.f32 %v2388_v29, %v2388_v29  ;;  %v2453_v14 = vmul.f32 %v2389_v37, %v2389_v37  ;;  %v2464_v29 = vmul.f32 %v2400_v30, %v2400_v30 }
 0x32a   : > { %v2532_v42 = vadd.f32 %v2531_v36, %v2530_v8  ;;  %v2553_v8 = vsel %vm1056_vm3, %v2451_v10, 0.0  ;;  %v2555_v36 = vsel %vm1056_vm3, %v2452_v60, 0.0  ;;  %v2579_v55 = vsel %vm1056_vm3, %v2464_v29, 0.0 }
 0x32c   : > { %v2534_v52 = vadd.f32 %v2533_v16, %v2532_v42  ;;  %v2557_v16 = vsel %vm1056_vm3, %v2453_v14, 0.0 }
 0x32e   : > { %v2536_v19 = vadd.f32 %v2535_v38, %v2534_v52 }
 0x330   : > { %v2538_v33 = vadd.f32 %v2537_v22, %v2536_v19  ;;  %v2457_v19 = vmul.f32 %v2393_v54, %v2393_v54  ;;  %v2458_v22 = vmul.f32 %v2394_v50, %v2394_v50 }
 0x332   : > { %v2540_v62 = vadd.f32 %v2539_v7, %v2538_v33  ;;  %v2563_v33 = vsel %vm1056_vm3, %v2456_v26, 0.0  ;;  %v2565_v7 = vsel %vm1056_vm3, %v2457_v19, 0.0  ;;  %v5132_v19 = vld [vmem:[#allocation13_spill] sm:$0xff] }
 0x334   : > { %v2542_v11 = vadd.f32 %v2541_v4, %v2540_v62  ;;  %v2567_v4 = vsel %vm1056_vm3, %v2458_v22, 0.0  ;;  %v5133_v22 = vld [vmem:[#allocation15_spill] sm:$0xff] }
 0x336   : > { %v2544_v18 = vadd.f32 %v2543_v0, %v2542_v11  ;;  %v2399_v11 = vsub.f32 %v4583_v31, %v4790_v56  ;;  %v2462_v0 = vmul.f32 %v2398_v28, %v2398_v28  ;;  %v2402_v31 = vsub.f32 %v4643_v63, %v4790_v56  ;;  %v5130_v63 = vld [vmem:[#allocation10_spill] sm:$0xff] }
 0x338   : > { %v2546_v15 = vadd.f32 %v2545_v49, %v2544_v18  ;;  %v2571_v18 = vsel %vm1056_vm3, %v2460_v53, 0.0  ;;  %v2463_v25 = vmul.f32 %v2399_v11, %v2399_v11  ;;  %v2573_v49 = vsel %vm1056_vm3, %v2461_v23, 0.0 }
 0x339   : > { %v2575_v59 = vsel %vm1056_vm3, %v2462_v0, 0.0  ;;  %v5135_v0 = vld [vmem:[#allocation17_spill] sm:$0xff] }
 0x33a   : > { %v2548_v21 = vadd.f32 %v2547_v57, %v2546_v15  ;;  %v2577_v37 = vsel %vm1056_vm3, %v2463_v25, 0.0 }
 0x33c   : > { %v2550_v9 = vadd.f32 %v2549_v12, %v2548_v21  ;;  %v2465_v21 = vmul.f32 %v2401_v44, %v2401_v44  ;;  %v2404_v12 = vsub.f32 %v5129_v13, %v4790_v56 }
 0x33e   : > { %v2552_v47 = vadd.f32 %v2551_v1, %v2550_v9  ;;  %v2466_v9 = vmul.f32 %v2402_v31, %v2402_v31  ;;  %v2405_v1 = vsub.f32 %v5130_v63, %v4790_v56  ;;  %v2581_v2 = vsel %vm1056_vm3, %v2465_v21, 0.0 }
 0x340   : > { %v2554_v48 = vadd.f32 %v2553_v8, %v2552_v47  ;;  %v2467_v47 = vmul.f32 %v2403_v61, %v2403_v61  ;;  %v2406_v8 = vsub.f32 %v5131_v17, %v4790_v56  ;;  %v2583_v27 = vsel %vm1056_vm3, %v2466_v9, 0.0 }
 0x341   : > { %v2472_v56 = vmul.f32 %v4799_v35, %v4799_v35  ;;  %v2475_v35 = vmul.f32 %v5134_v3, %v5134_v3 }
 0x342   : > { %v2556_v42 = vadd.f32 %v2555_v36, %v2554_v48  ;;  %v2468_v48 = vmul.f32 %v2404_v12, %v2404_v12  ;;  %v2469_v36 = vmul.f32 %v2405_v1, %v2405_v1  ;;  %v2470_v54 = vmul.f32 %v2406_v8, %v2406_v8 }
 0x343   : > { %v2601_v53 = vsel %vm1056_vm3, %v2475_v35, 0.0 }
 0x344   : > { %v2558_v52 = vadd.f32 %v2557_v16, %v2556_v42  ;;  %v2585_v42 = vsel %vm1056_vm3, %v2467_v47, 0.0  ;;  %v2587_v5 = vsel %vm1056_vm3, %v2468_v48, 0.0  ;;  %v2589_v50 = vsel %vm1056_vm3, %v2469_v36, 0.0 }
 0x346   : > { %v2560_v38 = vadd.f32 %v2559_v32, %v2558_v52  ;;  %v2471_v52 = vmul.f32 %v4796_v39, %v4796_v39  ;;  %v2591_v32 = vsel %vm1056_vm3, %v2470_v54, 0.0  ;;  %v2474_v39 = vmul.f32 %v5133_v22, %v5133_v22 }
 0x348   : > { %v2562_v34 = vadd.f32 %v2561_v58, %v2560_v38  ;;  %v2473_v58 = vmul.f32 %v5132_v19, %v5132_v19 }
 0x34a   : > { %v2564_v6 = vadd.f32 %v2563_v33, %v2562_v34  ;;  %v2593_v34 = vsel %vm1056_vm3, %v2471_v52, 0.0  ;;  %v2595_v33 = vsel %vm1056_vm3, %v2472_v56, 0.0  ;;  %v2597_v20 = vsel %vm1056_vm3, %v2473_v58, 0.0 }
 0x34c   : > { %v2566_v62 = vadd.f32 %v2565_v7, %v2564_v6 }
 0x34e   : > { %v2568_v45 = vadd.f32 %v2567_v4, %v2566_v62  ;;  %v2599_v62 = vsel %vm1056_vm3, %v2474_v39, 0.0 }
 0x350   : > { %v2570_v46 = vadd.f32 %v2569_v40, %v2568_v45 }
 0x352   : > { %v2572_v43 = vadd.f32 %v2571_v18, %v2570_v46 }
 0x354   : > { %v2574_v15 = vadd.f32 %v2573_v49, %v2572_v43 }
 0x356   : > { %v2576_v57 = vadd.f32 %v2575_v59, %v2574_v15 }
 0x358   : > { %v2578_v10 = vadd.f32 %v2577_v37, %v2576_v57 }
 0x35a   : > { %v2580_v60 = vadd.f32 %v2579_v55, %v2578_v10 }
 0x35c   : > { %v2582_v14 = vadd.f32 %v2581_v2, %v2580_v60 }
 0x35e   : > { %v2584_v24 = vadd.f32 %v2583_v27, %v2582_v14 }
 0x360   : > { %v2586_v51 = vadd.f32 %v2585_v42, %v2584_v24 }
 0x362   : > { %v2588_v16 = vadd.f32 %v2587_v5, %v2586_v51 }
 0x364   : > { %v2590_v26 = vadd.f32 %v2589_v50, %v2588_v16 }
 0x366   : > { %v2592_v38 = vadd.f32 %v2591_v32, %v2590_v26 }
 0x368   : > { %v2594_v41 = vadd.f32 %v2593_v34, %v2592_v38 }
 0x36a   : > { %v2596_v6 = vadd.f32 %v2595_v33, %v2594_v41 }
 0x36c   : > { %v2598_v7 = vadd.f32 %v2597_v20, %v2596_v6 }
 0x36e   : > { %v2600_v28 = vadd.f32 %v2599_v62, %v2598_v7 }
 0x370   : > { %v2602_v4 = vadd.f32 %v2601_v53, %v2600_v28 }
 0x372   : > { %v2603_v45 = vrot.slane %v2602_v4, 4 }
 0x374   : > { %v2604_v11 = vadd.f32 %v2603_v45, %v2602_v4 }
 0x376   : > { %v2605_v23 = vrot.slane %v2604_v11, 2 }
 0x378   : > { %v2606_v40 = vadd.f32 %v2605_v23, %v2604_v11 }
 0x37a   : > { %v2607_v46 = vrot.slane %v2606_v40, 1 }
 0x37c   : > { %v2608_v30 = vadd.f32 %v2607_v46, %v2606_v40 }
 0x37e   : > { %v2609_v18 = vsel %vm315_vm2, %v5135_v0, %v2608_v30 }
 0x37f   : > { %2611 = vst.msk [vmem:[%s189_s14] sm:$0x3] %vm2610_vm6, %v2609_v18 }
 0x380 PF: > { %s14_s12 = sadd.s32 1, %s2944_s12  }
 0x381   : > { %p11_p5 = scmp.ge.s32.totalorder %s14_s12, 4  }
 0x383   :  { %13 = sbr.rel (!%p11_p5) target bundleno = 1 (0x1), region = 72 }

// kernel: resnet_basic_block.4
= control target key start
LH: loop header
LB: loop body
LE: loop exit
PB: predicated region body
PF: predicated region fallthrough
CT: control target
= control target key end

     0   :  { %s3201_s15 = smov 0   ;;  %s5402_s0 = inlined_call_operand.vmem [shape: f32[4,16,16,4], index: 0, kind: input, shape index: {}]   ;;  %s5403_s1 = inlined_call_operand.vmem [shape: f32[2,4], index: 1, kind: input, shape index: {}]   ;;  %s5404_s2 = inlined_call_operand.vmem [shape: f32[3,12,4], index: 2, kind: input, shape index: {}]   ;;  %s5405_s3 = inlined_call_operand.vmem [shape: f32[4,16,16,4], index: 3, kind: output, shape index: {0}]   ;;  %s5406_s4 = inlined_call_operand.vmem [shape: f32[2,2,4], index: 4, kind: output, shape index: {1}]  }
   0x1 LB: > { %s3207_s16 = sadd.s32 4294967295, %s3171_s15   ;;  %p2928_p0 = scmp.ge.s32.totalorder %s3171_s15, 1  ;;  %s3171_s15 = sphi %s3201_s15, %s15_s15  }
   0x2   : > { %p167_p1 = scmp.lt.s32.totalorder %s3171_s15, 3 }
   0x4   : > { %p168_p2 = pnand %p2928_p0, %p167_p1 }
   0x6   : > { %171 = sbr.rel (%p168_p2) target bundleno = 902 (0x386), region = 32 }
   0xb   : > { %s2929_s17 = sshll.u32 %s3207_s16, 1  ;;  %v3173_v0 = vmov 0.0   ;;  %s3174_s18 = smov 4   ;;  %vm724_vm0 = vcmask 1046528   ;;  %v3220_v2 = vld [vmem:[%s5403_s1] ss:$0 sm:$0xff] }
   0xc   : > { %879 = vrot.lane.b32.xlu1 %v3173_v0, %s3174_s18  ;;  %p200_p3 = scmp.lt.s32.totalorder %s2929_s17, 3  ;;  %v725_v1 = vrot.slane %v3173_v0, 1  ;;  %v3234_v5 = vld [vmem:[%s5403_s1 + $0x1] ss:$0 sm:$0xff]  ;;  %s3175_s27 = smov 8   ;;  %vm1663_vm1 = vcmask 1043456  }
   0xd   : > { %vm538_vm2 = vcmask 1040384   ;;  %vm1279_vm3 = vcmask 31744   ;;  %vm1342_vm4 = vcmask 64512   ;;  %vm1470_vm5 = vcmask 97280   ;;  %p213_p4 = scmp.lt.s32.totalorder %s3207_s16, 1 }
   0xe   : > { %s5532_s17 = smov (!%p200_p3, %s2929_s17), 3  ;;  %v848_v3 = vsel %vm724_vm0, %v725_v1, 0.0  ;;  %vm2833_vm6 = vcmask 25600  }
   0xf   : > { %s3137_s21 = sshll.u32 %s5532_s17, 8  ;;  %v3156_v4 = vpack.i.bf16 %v848_v3, %v725_v1  ;;  %s5534_s16 = smov (!%p213_p4, %s3207_s16), 1 }
  0x10   : > { %s3229_s24 = scalar_lea.vmem %s5402_s0, %s3137_s21  ;;  %s4096_s26 = scalar_lea.vmem %s5405_s3, %s3137_s21 }
  0x11   : > { %v221_v6 = vld [vmem:[%s3229_s24 + $0x10] sm:$0xff]  ;;  %v219_v7 = vld [vmem:[%s3229_s24] sm:$0xff]  ;;  %v222_v8 = vld [vmem:[%s3229_s24 + $0x18] sm:$0xff]  ;;  %3157 = vrot.lane.b32.xlu2 %v3156_v4, %s3175_s27  ;;  %s2935_s17 = sshll.u32 %s5534_s16, 1 }
  0x12   : > { %v286_v9 = vmul.f32 %v3220_v2, %v221_v6  ;;  %v284_v10 = vmul.f32 %v3220_v2, %v219_v7  ;;  %v287_v11 = vmul.f32 %v3220_v2, %v222_v8  ;;  %v220_v12 = vld [vmem:[%s3229_s24 + $0x8] sm:$0xff]  ;;  %v223_v24 = vld [vmem:[%s3229_s24 + $0x20] sm:$0xff]  ;;  %v225_v35 = vld [vmem:[%s3229_s24 + $0x30] sm:$0xff] }
  0x13   : > { %v285_v13 = vmul.f32 %v3220_v2, %v220_v12  ;;  %v224_v22 = vld [vmem:[%s3229_s24 + $0x28] sm:$0xff]  ;;  %v288_v28 = vmul.f32 %v3220_v2, %v223_v24  ;;  %v226_v36 = vld [vmem:[%s3229_s24 + $0x38] sm:$0xff]  ;;  %v290_v39 = vmul.f32 %v3220_v2, %v225_v35  ;;  %v267_v44 = vld [vmem:[%s3229_s24 + $0x180] sm:$0xff] }
  0x14   : > { %v351_v14 = vadd.f32 %v3234_v5, %v286_v9  ;;  %v349_v15 = vadd.f32 %v3234_v5, %v284_v10  ;;  %v352_v16 = vadd.f32 %v3234_v5, %v287_v11  ;;  %v289_v27 = vmul.f32 %v3220_v2, %v224_v22  ;;  %v268_v47 = vld [vmem:[%s3229_s24 + $0x188] sm:$0xff]  ;;  %v227_v1 = vld [vmem:[%s3229_s24 + $0x40] sm:$0xff]  ;;  %v269_v3 = vld [vmem:[%s3229_s24 + $0x190] sm:$0xff] }
  0x15   : > { %v350_v17 = vadd.f32 %v3234_v5, %v285_v13  ;;  %v353_v32 = vadd.f32 %v3234_v5, %v288_v28  ;;  %v291_v40 = vmul.f32 %v3220_v2, %v226_v36  ;;  %v355_v45 = vadd.f32 %v3234_v5, %v290_v39  ;;  %v270_v4 = vld [vmem:[%s3229_s24 + $0x198] sm:$0xff]  ;;  %v228_v13 = vld [vmem:[%s3229_s24 + $0x48] sm:$0xff] }
  0x16   : > { %v3249_v18 = vmax.f32 %v351_v14, 0.0  ;;  %v3251_v19 = vmax.f32 %v349_v15, 0.0  ;;  %v3253_v20 = vmax.f32 %v352_v16, 0.0  ;;  %v354_v31 = vadd.f32 %v3234_v5, %v289_v27 }
  0x17   : > { %v3255_v21 = vmax.f32 %v350_v17, 0.0  ;;  %v3283_v37 = vmax.f32 %v353_v32, 0.0  ;;  %v356_v46 = vadd.f32 %v3234_v5, %v291_v40  ;;  %v332_v48 = vmul.f32 %v3220_v2, %v267_v44  ;;  %v230_v32 = vld [vmem:[%s3229_s24 + $0x58] sm:$0xff]  ;;  %v272_v44 = vld [vmem:[%s3229_s24 + $0x1a8] sm:$0xff] }
  0x18   : > { %885 = vrot.lane.b32.xlu0 %v3249_v18, %s3174_s18  ;;  %881 = vrot.lane.b32.xlu1 %v3251_v19, %s3174_s18  ;;  %v731_v23 = vrot.slane %v3253_v20, 1  ;;  %v727_v26 = vrot.slane %v3251_v19, 1  ;;  %v730_v33 = vrot.slane %v3249_v18, 1  ;;  %v3279_v34 = vmax.f32 %v354_v31, 0.0  ;;  %v271_v31 = vld [vmem:[%s3229_s24 + $0x1a0] sm:$0xff] }
  0x19   : > { %883 = vrot.lane.b32.xlu2 %v3255_v21, %s3174_s18  ;;  %v728_v25 = vrot.slane %v3255_v21, 1  ;;  %v733_v42 = vrot.slane %v3283_v37, 1  ;;  %v333_v49 = vmul.f32 %v3220_v2, %v268_v47  ;;  %v3303_v52 = vmax.f32 %v355_v45, 0.0 }
  0x1a   : > { %v850_v29 = vsel %vm724_vm0, %v731_v23, 0.0  ;;  %v732_v38 = vsel %vm724_vm0, %v730_v33, %v731_v23  ;;  %v734_v41 = vrot.slane %v3279_v34, 1  ;;  %v3305_v53 = vmax.f32 %v356_v46, 0.0 }
  0x1b   : > { %v729_v30 = vsel %vm724_vm0, %v727_v26, %v728_v25  ;;  %v849_v50 = vsel %vm724_vm0, %v728_v25, 0.0  ;;  %v397_v54 = vadd.f32 %v3234_v5, %v332_v48  ;;  %v398_v55 = vadd.f32 %v3234_v5, %v333_v49 }
  0x1c   : > { %v735_v43 = vsel %vm724_vm0, %v733_v42, %v734_v41  ;;  %v851_v51 = vsel %vm724_vm0, %v734_v41, 0.0  ;;  %v736_v56 = vrot.slane %v3303_v52, 1  ;;  %v737_v57 = vrot.slane %v3305_v53, 1 }
  0x1d   : > { %v3315_v58 = vmax.f32 %v397_v54, 0.0  ;;  %v3317_v59 = vmax.f32 %v398_v55, 0.0  ;;  %v292_v6 = vmul.f32 %v3220_v2, %v227_v1  ;;  %v334_v7 = vmul.f32 %v3220_v2, %v269_v3  ;;  %v1406_v54 = vld [vmem:[%s5404_s2 + $0x8] sm:$0xf]  ;;  %v1405_v55 = vld [vmem:[%s5404_s2] sm:$0xff] }
  0x1e   : > { %v738_v60 = vsel %vm724_vm0, %v736_v56, %v737_v57  ;;  %v335_v8 = vmul.f32 %v3220_v2, %v270_v4  ;;  %v852_v10 = vsel %vm724_vm0, %v737_v57, 0.0  ;;  %v293_v15 = vmul.f32 %v3220_v2, %v228_v13  ;;  %3003 = vmatpush.msk.msra.mxu1 %vm1663_vm1, %v1406_v54  ;;  %v231_v57 = vld [vmem:[%s3229_s24 + $0x60] sm:$0xff]  ;;  %v2937_v1 = vld [vmem:[%s5404_s2 + $0x18] sm:$0xf] }
  0x1f   : > { %v797_v61 = vrot.slane %v3317_v59, 1  ;;  %v796_v62 = vrot.slane %v3315_v58, 1  ;;  %v357_v9 = vadd.f32 %v3234_v5, %v292_v6  ;;  %v399_v11 = vadd.f32 %v3234_v5, %v334_v7  ;;  %v273_v6 = vld [vmem:[%s3229_s24 + $0x1b0] sm:$0xff]  ;;  %2938 = vmatpush.msk.msra.mxu0 %vm1663_vm1, %v2937_v1  ;;  %3139 = vmatpush.msk.msra.mxu3 %vm1663_vm1, %v2937_v1 }
  0x20   : > { %887 = vrot.lane.b32.xlu0 %v3253_v20, %s3174_s18  ;;  %1103 = vrot.lane.b32.xlu1 %v850_v29, %s3175_s27  ;;  %v400_v12 = vadd.f32 %v3234_v5, %v335_v8  ;;  %v358_v22 = vadd.f32 %v3234_v5, %v293_v15  ;;  %v336_v35 = vmul.f32 %v3220_v2, %v271_v31 }
  0x21   : > { %1097 = vrot.lane.b32.xlu2 %v729_v30, %s3175_s27  ;;  %v798_v63 = vsel %vm724_vm0, %v796_v62, %v797_v61  ;;  %v3343_v14 = vmax.f32 %v357_v9, 0.0  ;;  %v3346_v16 = vmax.f32 %v399_v11, 0.0  ;;  %v872_v25 = vsel %vm724_vm0, %v797_v61, 0.0  ;;  %v229_v30 = vld [vmem:[%s3229_s24 + $0x50] sm:$0xff]  ;;  %1900 = vmatpush.msra.mxu1 %v1405_v55  ;;  %v274_v9 = vld [vmem:[%s3229_s24 + $0x1b8] sm:$0xff] }
  0x22   : > { %v3348_v17 = vmax.f32 %v400_v12, 0.0  ;;  %v3360_v26 = vmax.f32 %v358_v22, 0.0  ;;  %v294_v33 = vmul.f32 %v3220_v2, %v229_v30  ;;  %v295_v36 = vmul.f32 %v3220_v2, %v230_v32  ;;  %v2936_v11 = vld [vmem:[%s5404_s2 + $0x10] sm:$0xff] }
  0x23   : > { %v799_v23 = vrot.slane %v3346_v16, 1  ;;  %v739_v28 = vrot.slane %v3343_v14, 1  ;;  %v401_v41 = vadd.f32 %v3234_v5, %v336_v35  ;;  %v337_v48 = vmul.f32 %v3220_v2, %v272_v44  ;;  %1682 = vmatpush.msra.mxu0 %v2936_v11  ;;  %3140 = vmatpush.msra.mxu3 %v2936_v11 }
  0x24   : > { %v800_v24 = vrot.slane %v3348_v17, 1  ;;  %v740_v29 = vrot.slane %v3360_v26, 1  ;;  %v359_v40 = vadd.f32 %v3234_v5, %v294_v33  ;;  %v360_v42 = vadd.f32 %v3234_v5, %v295_v36 }
  0x25   : > { %v3387_v46 = vmax.f32 %v401_v41, 0.0  ;;  %v402_v56 = vadd.f32 %v3234_v5, %v337_v48  ;;  %v296_v62 = vmul.f32 %v3220_v2, %v231_v57  ;;  %v338_v12 = vmul.f32 %v3220_v2, %v273_v6  ;;  %3141 = vmatpush.msk.msrb.mxu3 %vm1663_vm1, %v1406_v54 }
  0x26   : > { %v801_v27 = vsel %vm724_vm0, %v799_v23, %v800_v24  ;;  %v853_v39 = vsel %vm724_vm0, %v740_v29, 0.0  ;;  %v3385_v45 = vmax.f32 %v359_v40, 0.0  ;;  %v3389_v47 = vmax.f32 %v360_v42, 0.0  ;;  %v3469_v40 = vld [vmem:[%s5404_s2 + $0x28] sm:$0xf]  ;;  %v233_v42 = vld [vmem:[%s3229_s24 + $0x70] sm:$0xff] }
  0x27   : > { %v3410_v61 = vmax.f32 %v402_v56, 0.0  ;;  %v802_v3 = vrot.slane %v3387_v46, 1  ;;  %v361_v7 = vadd.f32 %v3234_v5, %v296_v62  ;;  %v339_v13 = vmul.f32 %v3220_v2, %v274_v9  ;;  %3142 = vmatpush.msrb.mxu3 %v1405_v55  ;;  %3070 = vmatpush.msk.msra.mxu2 %vm1663_vm1, %v3469_v40 }
  0x28   : > { %1101 = vrot.lane.b32.xlu0 %v732_v38, %s3175_s27  ;;  %889 = vrot.lane.b32.xlu1 %v3283_v37, %s3174_s18  ;;  %v741_v38 = vsel %vm724_vm0, %v739_v28, %v740_v29  ;;  %v743_v49 = vrot.slane %v3389_v47, 1  ;;  %v298_v54 = vmul.f32 %v3220_v2, %v233_v42  ;;  %v541_v9 = vrot.slane %v3251_v19, 7 }
  0x29   : > { %1105 = vrot.lane.b32.xlu2 %v735_v43, %s3175_s27  ;;  %v873_v43 = vsel %vm724_vm0, %v800_v24, 0.0  ;;  %v803_v4 = vrot.slane %v3410_v61, 1  ;;  %v3440_v23 = vmax.f32 %v361_v7, 0.0 }
  0x2a   : > { %v854_v33 = vsel %vm724_vm0, %v743_v49, 0.0  ;;  %v363_v1 = vadd.f32 %v3234_v5, %v298_v54  ;;  %v236_v54 = vld [vmem:[%s3229_s24 + $0x88] sm:$0xff] }
  0x2b   : > { %v804_v15 = vsel %vm724_vm0, %v802_v3, %v803_v4  ;;  %v874_v22 = vsel %vm724_vm0, %v803_v4, 0.0  ;;  %v745_v28 = vrot.slane %v3440_v23, 1  ;;  %v234_v4 = vld [vmem:[%s3229_s24 + $0x78] sm:$0xff] }
  0x2c   : > { %v3513_v11 = vmax.f32 %v363_v1, 0.0  ;;  %v301_v1 = vmul.f32 %v3220_v2, %v236_v54 }
  0x30   : > { %1099 = vrot.lane.b32.xlu0 %v849_v50, %s3175_s27  ;;  %1107 = vrot.lane.b32.xlu1 %v851_v51, %s3175_s27  ;;  %v742_v50 = vrot.slane %v3385_v45, 1 }
  0x31   : > { %893 = vrot.lane.b32.xlu2 %v3303_v52, %s3174_s18 }
  0x32   : > { %v744_v51 = vsel %vm724_vm0, %v742_v50, %v743_v49  ;;  %v275_v49 = vld [vmem:[%s3229_s24 + $0x1c0] sm:$0xff]  ;;  %v276_v50 = vld [vmem:[%s3229_s24 + $0x1c8] sm:$0xff] }
  0x33   : > { %v340_v56 = vmul.f32 %v3220_v2, %v275_v49  ;;  %v341_v57 = vmul.f32 %v3220_v2, %v276_v50 }
  0x35   : > { %v405_v6 = vadd.f32 %v3234_v5, %v340_v56  ;;  %v406_v7 = vadd.f32 %v3234_v5, %v341_v57 }
  0x38   : > { %891 = vrot.lane.b32.xlu0 %v3279_v34, %s3174_s18  ;;  %1109 = vrot.lane.b32.xlu1 %v738_v60, %s3175_s27  ;;  %v232_v60 = vld [vmem:[%s3229_s24 + $0x68] sm:$0xff] }
  0x39   : > { %1189 = vrot.lane.b32.xlu2 %v798_v63, %s3175_s27  ;;  %v297_v63 = vmul.f32 %v3220_v2, %v232_v60 }
  0x3b   : > { %v362_v8 = vadd.f32 %v3234_v5, %v297_v63 }
  0x3d   : > { %v3442_v24 = vmax.f32 %v362_v8, 0.0 }
  0x3f   : > { %v746_v29 = vrot.slane %v3442_v24, 1 }
  0x40   : > { %973 = vrot.lane.b32.xlu0 %v3315_v58, %s3174_s18  ;;  %975 = vrot.lane.b32.xlu1 %v3317_v59, %s3174_s18 }
  0x41   : > { %1111 = vrot.lane.b32.xlu2 %v852_v10, %s3175_s27  ;;  %v747_v35 = vsel %vm724_vm0, %v745_v28, %v746_v29  ;;  %v855_v62 = vsel %vm724_vm0, %v746_v29, 0.0 }
  0x48   : > { %895 = vrot.lane.b32.xlu0 %v3305_v53, %s3174_s18  ;;  %897 = vrot.lane.b32.xlu1 %v3343_v14, %s3174_s18 }
  0x49   : > { %977 = vrot.lane.b32.xlu2 %v3346_v16, %s3174_s18 }
  0x50   : > { %1191 = vrot.lane.b32.xlu0 %v872_v25, %s3175_s27  ;;  %1193 = vrot.lane.b32.xlu1 %v801_v27, %s3175_s27  ;;  %v403_v25 = vadd.f32 %v3234_v5, %v338_v12  ;;  %v404_v27 = vadd.f32 %v3234_v5, %v339_v13  ;;  %v299_v12 = vmul.f32 %v3220_v2, %v234_v4  ;;  %v3516_v13 = vmax.f32 %v405_v6, 0.0 }
  0x51   : > { %899 = vrot.lane.b32.xlu2 %v3360_v26, %s3174_s18 }
  0x52   : > { %v3455_v31 = vmax.f32 %v403_v25, 0.0  ;;  %v3457_v32 = vmax.f32 %v404_v27, 0.0  ;;  %v364_v25 = vadd.f32 %v3234_v5, %v299_v12  ;;  %v808_v29 = vrot.slane %v3516_v13, 1 }
  0x53   : > { %v366_v12 = vadd.f32 %v3234_v5, %v301_v1  ;;  %v237_v1 = vld [vmem:[%s3229_s24 + $0x90] sm:$0xff] }
  0x54   : > { %v806_v36 = vrot.slane %v3457_v32, 1  ;;  %v3540_v42 = vmax.f32 %v364_v25, 0.0  ;;  %v545_v25 = vrot.slane %v3253_v20, 7 }
  0x56   : > { %v749_v49 = vrot.slane %v3540_v42, 1 }
  0x58   : > { %1113 = vrot.lane.b32.xlu0 %v741_v38, %s3175_s27  ;;  %1115 = vrot.lane.b32.xlu1 %v853_v39, %s3175_s27  ;;  %v805_v38 = vrot.slane %v3455_v31, 1  ;;  %v539_v39 = vrot.slane %v3173_v0, 7  ;;  %v3479_v0 = vld [vmem:[%s5404_s2 + $0x20] sm:$0xff] }
  0x59   : > { %1195 = vrot.lane.b32.xlu2 %v873_v43, %s3175_s27  ;;  %2115 = vmatpush.msra.mxu2 %v3479_v0 }
  0x5a   : > { %v807_v41 = vsel %vm724_vm0, %v805_v38, %v806_v36  ;;  %v693_v44 = vsel %vm538_vm2, 0.0, %v539_v39 }
  0x60   : > { %979 = vrot.lane.b32.xlu0 %v3348_v17, %s3174_s18  ;;  %981 = vrot.lane.b32.xlu1 %v3387_v46, %s3174_s18 }
  0x61   : > { %1117 = vrot.lane.b32.xlu2 %v744_v51, %s3175_s27 }
  0x68   : > { %901 = vrot.lane.b32.xlu0 %v3385_v45, %s3174_s18  ;;  %903 = vrot.lane.b32.xlu1 %v3389_v47, %s3174_s18 }
  0x69   : > { %983 = vrot.lane.b32.xlu2 %v3410_v61, %s3174_s18 }
  0x6b   : > { %v3431_v10 = vpop.permute.xlu2 %3157 }
  0x6c   : > { %v3159_v43 = vunpack.i.l.bf16 %v3431_v10  ;;  %v3160_v63 = vunpack.i.h.bf16 %v3431_v10 }
  0x70   : > { %1197 = vrot.lane.b32.xlu0 %v804_v15, %s3175_s27  ;;  %1199 = vrot.lane.b32.xlu1 %v874_v22, %s3175_s27  ;;  %v3518_v15 = vmax.f32 %v406_v7, 0.0  ;;  %v694_v22 = vsel %vm538_vm2, 0.0, %v541_v9 }
  0x71   : > { %905 = vrot.lane.b32.xlu2 %v3440_v23, %s3174_s18 }
  0x73   : > { %v3453_v30 = vpop.permute.xlu2 %883 }
  0x78   : > { %1119 = vrot.lane.b32.xlu0 %v854_v33, %s3175_s27  ;;  %1121 = vrot.lane.b32.xlu1 %v747_v35, %s3175_s27  ;;  %v809_v33 = vrot.slane %v3518_v15, 1 }
  0x79   : > { %1201 = vrot.lane.b32.xlu2 %v807_v41, %s3175_s27  ;;  %v875_v41 = vsel %vm724_vm0, %v806_v36, 0.0  ;;  %v235_v36 = vld [vmem:[%s3229_s24 + $0x80] sm:$0xff] }
  0x7a   : > { %v876_v6 = vsel %vm724_vm0, %v809_v33, 0.0 }
  0x7b   : > { %v1098_v48 = vpop.permute.xlu2 %1097 }
  0x7e   : > { %v880_v51 = vpop.permute.xlu1 %879 }
  0x7f   : > { %v1280_v55 = vsel %vm1279_vm3, %v693_v44, %v880_v51  ;;  %v1281_v3 = vsel %vm1279_vm3, %v539_v39, %v880_v51  ;;  %v748_v44 = vrot.slane %v3513_v11, 1  ;;  %v277_v51 = vld [vmem:[%s3229_s24 + $0x1d0] sm:$0xff] }
  0x80   : > { %v3491_v60 = vsel %vm1342_vm4, %v1280_v55, %v3159_v43  ;;  %985 = vrot.lane.b32.xlu0 %v3455_v31, %s3174_s18  ;;  %987 = vrot.lane.b32.xlu1 %v3457_v32, %s3174_s18  ;;  %v3511_v10 = vsel %vm1342_vm4, %v1281_v3, %v3160_v63  ;;  %v810_v43 = vsel %vm724_vm0, %v808_v29, %v809_v33  ;;  %v544_v55 = vrot.slane %v3249_v18, 7 }
  0x81   : > { %3004 = vmatmul.msk.f32.vlgmr.msra.gmra.mxu1 %vm1470_vm5, %v3491_v60  ;;  %1123 = vrot.lane.b32.xlu2 %v855_v62, %s3175_s27  ;;  %v750_v57 = vsel %vm724_vm0, %v748_v44, %v749_v49  ;;  %v300_v62 = vmul.f32 %v3220_v2, %v235_v36  ;;  %v342_v63 = vmul.f32 %v3220_v2, %v277_v51  ;;  %v856_v3 = vsel %vm724_vm0, %v749_v49, 0.0 }
  0x82   : > { %v695_v4 = vsel %vm538_vm2, 0.0, %v544_v55  ;;  %v546_v20 = vsel %vm538_vm2, %v544_v55, %v545_v25  ;;  %v548_v25 = vrot.slane %v3279_v34, 7 }
  0x83   : > { %v3507_v8 = vpop.permute.xlu2 %1105  ;;  %v365_v18 = vadd.f32 %v3234_v5, %v300_v62  ;;  %v407_v7 = vadd.f32 %v3234_v5, %v342_v63  ;;  %v547_v62 = vrot.slane %v3283_v37, 7 }
  0x85   : > { %v3579_v44 = vmax.f32 %v407_v7, 0.0 }
  0x88   : > { %907 = vrot.lane.b32.xlu0 %v3442_v24, %s3174_s18  ;;  %909 = vrot.lane.b32.xlu1 %v3513_v11, %s3174_s18 }
  0x89   : > { %3005 = vmatmul.msk.f32.gmra.mxu1 %vm1470_vm5, %v3511_v10  ;;  %989 = vrot.lane.b32.xlu2 %v3516_v13, %s3174_s18 }
  0x8a   : > { %v886_v27 = vpop.permute.xlu0 %885  ;;  %v882_v28 = vpop.permute.xlu1 %881 }
  0x8b   : > { %v1282_v35 = vsel %vm1279_vm3, %v694_v22, %v882_v28  ;;  %v3535_v38 = vpop.permute.xlu2 %893  ;;  %v1284_v22 = vsel %vm1279_vm3, %v695_v4, %v886_v27  ;;  %v3582_v27 = vmax.f32 %v366_v12, 0.0 }
  0x8c   : > { %v1345_v39 = vsel %vm1342_vm4, %v1282_v35, %v1098_v48  ;;  %v278_v35 = vld [vmem:[%s3229_s24 + $0x1d8] sm:$0xff] }
  0x8d   : > { %2939 = vmatmul.msk.f32.vlgmr.msra.gmra.mxu0 %vm1470_vm5, %v1345_v39  ;;  %v343_v49 = vmul.f32 %v3220_v2, %v278_v35  ;;  %v752_v36 = vrot.slane %v3582_v27, 1 }
  0x90   : > { %1203 = vrot.lane.b32.xlu0 %v875_v41, %s3175_s27  ;;  %1205 = vrot.lane.b32.xlu1 %v810_v43, %s3175_s27  ;;  %v3577_v43 = vmax.f32 %v365_v18, 0.0  ;;  %v302_v18 = vmul.f32 %v3220_v2, %v237_v1 }
  0x91   : > { %3006 = vmatmul.msk.f32.gmra.mxu1 %vm1470_vm5, %v1345_v39  ;;  %911 = vrot.lane.b32.xlu2 %v3540_v42, %s3174_s18  ;;  %v542_v39 = vrot.slane %v3255_v21, 7 }
  0x92   : > { %v888_v48 = vpop.permute.xlu0 %887  ;;  %v1104_v50 = vpop.permute.xlu1 %1103  ;;  %v751_v51 = vrot.slane %v3577_v43, 1 }
  0x93   : > { %v3554_v56 = vpop.permute.xlu2 %1189  ;;  %v543_v21 = vsel %vm538_vm2, %v541_v9, %v542_v39  ;;  %v1285_v54 = vsel %vm1279_vm3, %v546_v20, %v888_v48  ;;  %v279_v39 = vld [vmem:[%s3229_s24 + $0x1e0] sm:$0xff] }
  0x94   : > { %v753_v19 = vsel %vm724_vm0, %v751_v51, %v752_v36  ;;  %v1283_v9 = vsel %vm1279_vm3, %v543_v21, %v3453_v30  ;;  %v696_v30 = vsel %vm538_vm2, 0.0, %v547_v62  ;;  %v280_v21 = vld [vmem:[%s3229_s24 + $0x1e8] sm:$0xff]  ;;  %v610_v51 = vrot.slane %v3315_v58, 7 }
  0x96   : > { %v717_v58 = vsel %vm538_vm2, 0.0, %v610_v51 }
  0x98   : > { %1125 = vrot.lane.b32.xlu0 %v750_v57, %s3175_s27  ;;  %1127 = vrot.lane.b32.xlu1 %v856_v3, %s3175_s27  ;;  %v408_v57 = vadd.f32 %v3234_v5, %v343_v49  ;;  %v238_v3 = vld [vmem:[%s3229_s24 + $0x98] sm:$0xff]  ;;  %v367_v49 = vadd.f32 %v3234_v5, %v302_v18 }
  0x99   : > { %1207 = vrot.lane.b32.xlu2 %v876_v6, %s3175_s27  ;;  %v1348_v6 = vsel %vm1342_vm4, %v1285_v54, %v1104_v50  ;;  %v303_v7 = vmul.f32 %v3220_v2, %v238_v3 }
  0x9a   : > { %v1102_v28 = vpop.permute.xlu0 %1101  ;;  %v890_v29 = vpop.permute.xlu1 %889  ;;  %v3612_v37 = vmax.f32 %v408_v57, 0.0  ;;  %v344_v57 = vmul.f32 %v3220_v2, %v279_v39 }
  0x9b   : > { %v1347_v33 = vsel %vm1342_vm4, %v1284_v22, %v1102_v28  ;;  %v3574_v41 = vpop.permute.xlu2 %1111  ;;  %v1286_v12 = vsel %vm1279_vm3, %v696_v30, %v890_v29  ;;  %v811_v22 = vrot.slane %v3579_v44, 1  ;;  %v368_v20 = vadd.f32 %v3234_v5, %v303_v7 }
  0x9c   : > { %3071 = vmatmul.msk.f32.vlgmr.msra.gmra.mxu2 %vm1470_vm5, %v1347_v33  ;;  %v812_v50 = vrot.slane %v3612_v37, 1  ;;  %v1349_v34 = vsel %vm1342_vm4, %v1286_v12, %v3507_v8  ;;  %v409_v1 = vadd.f32 %v3234_v5, %v344_v57 }
  0x9e   : > { %v813_v54 = vsel %vm724_vm0, %v811_v22, %v812_v50  ;;  %v3677_v39 = vmax.f32 %v409_v1, 0.0 }
  0xa0   : > { %991 = vrot.lane.b32.xlu0 %v3518_v15, %s3174_s18  ;;  %993 = vrot.lane.b32.xlu1 %v3579_v44, %s3174_s18 }
  0xa1   : > { %1129 = vrot.lane.b32.xlu2 %v753_v19, %s3175_s27  ;;  %v345_v19 = vmul.f32 %v3220_v2, %v280_v21 }
  0xa2   : > { %v1100_v55 = vpop.permute.xlu0 %1099  ;;  %v1108_v63 = vpop.permute.xlu1 %1107 }
  0xa3   : > { %v1346_v48 = vsel %vm1342_vm4, %v1283_v9, %v1100_v55  ;;  %v3606_v4 = vpop.permute.xlu2 %977  ;;  %v549_v9 = vsel %vm538_vm2, %v547_v62, %v548_v25  ;;  %v877_v55 = vsel %vm724_vm0, %v812_v50, 0.0  ;;  %v410_v3 = vadd.f32 %v3234_v5, %v345_v19  ;;  %v239_v19 = vld [vmem:[%s3229_s24 + $0xa0] sm:$0xff] }
  0xa4   : > { %2940 = vmatmul.msk.f32.gmra.mxu0 %vm1470_vm5, %v1346_v48  ;;  %3007 = vmatmul.msk.f32.gmra.mxu1 %vm1470_vm5, %v1346_v48  ;;  %v3646_v48 = vmax.f32 %v367_v49, 0.0  ;;  %v550_v62 = vrot.slane %v3303_v52, 7 }
  0xa5   : > { %3072 = vmatmul.msk.f32.gmra.mxu2 %vm1470_vm5, %v1348_v6  ;;  %v3679_v49 = vmax.f32 %v410_v3, 0.0 }
  0xa6   : > { %v754_v7 = vrot.slane %v3646_v48, 1 }
  0xa8   : > { %913 = vrot.lane.b32.xlu0 %v3577_v43, %s3174_s18  ;;  %915 = vrot.lane.b32.xlu1 %v3582_v27, %s3174_s18 }
  0xa9   : > { %995 = vrot.lane.b32.xlu2 %v3612_v37, %s3174_s18 }
  0xaa   : > { %v892_v28 = vpop.permute.xlu0 %891  ;;  %v3625_v35 = vpop.permute.xlu1 %1109 }
  0xab   : > { %v3633_v29 = vpop.permute.xlu2 %899  ;;  %v1287_v8 = vsel %vm1279_vm3, %v549_v9, %v892_v28  ;;  %v857_v28 = vsel %vm724_vm0, %v752_v36, 0.0  ;;  %v611_v9 = vrot.slane %v3317_v59, 7 }
  0xac   : > { %2941 = vmatmul.msk.f32.gmra.mxu0 %vm1470_vm5, %v1347_v33  ;;  %3008 = vmatmul.msk.f32.gmra.mxu1 %vm1470_vm5, %v1347_v33  ;;  %v3648_v33 = vmax.f32 %v368_v20, 0.0  ;;  %v1350_v25 = vsel %vm1342_vm4, %v1287_v8, %v1108_v63  ;;  %v697_v63 = vsel %vm538_vm2, 0.0, %v550_v62  ;;  %v814_v20 = vrot.slane %v3677_v39, 1 }
  0xad   : > { %3073 = vmatmul.msk.f32.gmra.mxu2 %vm1470_vm5, %v1349_v34  ;;  %v1288_v36 = vsel %vm1279_vm3, %v697_v63, %v3535_v38  ;;  %v612_v3 = vsel %vm538_vm2, %v610_v51, %v611_v9 }
  0xae   : > { %v755_v12 = vrot.slane %v3648_v33, 1  ;;  %v1351_v38 = vsel %vm1342_vm4, %v1288_v36, %v3625_v35 }
  0xb0   : > { %1209 = vrot.lane.b32.xlu0 %v813_v54, %s3175_s27  ;;  %1211 = vrot.lane.b32.xlu1 %v877_v55, %s3175_s27  ;;  %v551_v54 = vrot.slane %v3305_v53, 7  ;;  %v281_v55 = vld [vmem:[%s3229_s24 + $0x1f0] sm:$0xff]  ;;  %v304_v53 = vmul.f32 %v3220_v2, %v239_v19 }
  0xb1   : > { %917 = vrot.lane.b32.xlu2 %v3646_v48, %s3174_s18  ;;  %v346_v59 = vmul.f32 %v3220_v2, %v281_v55 }
  0xb2   : > { %v974_v30 = vpop.permute.xlu0 %973  ;;  %v976_v18 = vpop.permute.xlu1 %975  ;;  %v552_v8 = vsel %vm538_vm2, %v550_v62, %v551_v54  ;;  %v369_v62 = vadd.f32 %v3234_v5, %v304_v53 }
  0xb3   : > { %v1328_v22 = vsel %vm1279_vm3, %v717_v58, %v974_v30  ;;  %v3662_v50 = vpop.permute.xlu2 %1195  ;;  %v613_v30 = vrot.slane %v3346_v16, 7  ;;  %v411_v51 = vadd.f32 %v3234_v5, %v346_v59 }
  0xb4   : > { %2942 = vmatmul.msk.f32.gmra.mxu0 %vm1470_vm5, %v1348_v6  ;;  %3009 = vmatmul.msk.f32.gmra.mxu1 %vm1470_vm5, %v1348_v6  ;;  %v3669_v52 = vsel %vm1342_vm4, %v1328_v22, %v3554_v56  ;;  %v756_v56 = vsel %vm724_vm0, %v754_v7, %v755_v12  ;;  %v815_v6 = vrot.slane %v3679_v49, 1  ;;  %v240_v7 = vld [vmem:[%s3229_s24 + $0xa8] sm:$0xff]  ;;  %v1329_v22 = vsel %vm1279_vm3, %v612_v3, %v976_v18 }
  0xb5   : > { %3074 = vmatmul.msk.f32.gmra.mxu2 %vm1470_vm5, %v1350_v25  ;;  %2987 = vmatmul.msk.f32.vlgmr.msra.gmra.mxu3 %vm1470_vm5, %v3669_v52 }
  0xb6   : > { %3143 = vmatpush.msk.msra.mxu3 %vm1663_vm1, %v3469_v40  ;;  %v816_v21 = vsel %vm724_vm0, %v814_v20, %v815_v6 }
  0xb8   : > { %1131 = vrot.lane.b32.xlu0 %v857_v28, %s3175_s27  ;;  %3144 = vmatpush.msra.mxu3 %v3479_v0  ;;  %v282_v0 = vld [vmem:[%s3229_s24 + $0x1f8] sm:$0xff] }
  0xb9   : > { %1133 = vrot.lane.b32.xlu1 %v756_v56, %s3175_s27  ;;  %1213 = vrot.lane.b32.xlu2 %v816_v21, %s3175_s27  ;;  %v347_v1 = vmul.f32 %v3220_v2, %v282_v0  ;;  %v718_v56 = vsel %vm538_vm2, 0.0, %v613_v30  ;;  %v305_v21 = vmul.f32 %v3220_v2, %v240_v7 }
  0xba   : > { %v896_v40 = vpop.permute.xlu0 %895  ;;  %v898_v57 = vpop.permute.xlu1 %897  ;;  %v1330_v54 = vsel %vm1279_vm3, %v718_v56, %v3606_v4 }
  0xbb   : > { %v3701_v58 = vpop.permute.xlu2 %1117  ;;  %v1289_v35 = vsel %vm1279_vm3, %v552_v8, %v896_v40  ;;  %v412_v16 = vadd.f32 %v3234_v5, %v347_v1  ;;  %v3745_v40 = vmax.f32 %v411_v51, 0.0 }
  0xbc   : > { %2943 = vmatmul.msk.f32.gmra.mxu0 %vm1470_vm5, %v1349_v34  ;;  %3010 = vmatmul.msk.f32.gmra.mxu1 %vm1470_vm5, %v1349_v34  ;;  %v858_v34 = vsel %vm724_vm0, %v755_v12, 0.0  ;;  %v553_v12 = vrot.slane %v3343_v14, 7  ;;  %v1352_v18 = vsel %vm1342_vm4, %v1289_v35, %v3574_v41  ;;  %v3741_v14 = vmax.f32 %v369_v62, 0.0 }
  0xbd   : > { %3075 = vmatmul.msk.f32.gmra.mxu2 %vm1470_vm5, %v1351_v38  ;;  %v3747_v19 = vmax.f32 %v412_v16, 0.0  ;;  %v554_v41 = vrot.slane %v3360_v26, 7  ;;  %v1426_v8 = vrot.slane %v3745_v40, 1  ;;  %v878_v35 = vsel %vm724_vm0, %v815_v6, 0.0  ;;  %v241_v6 = vld [vmem:[%s3229_s24 + $0xb0] sm:$0xff] }
  0xbe   : > { %v698_v9 = vsel %vm538_vm2, 0.0, %v553_v12  ;;  %v265_v16 = vld [vmem:[%s3229_s24 + $0x170] sm:$0xff] }
  0xbf   : > { %v1290_v4 = vsel %vm1279_vm3, %v698_v9, %v898_v57  ;;  %v1427_v59 = vrot.slane %v3747_v19, 1  ;;  %v555_v3 = vsel %vm538_vm2, %v553_v12, %v554_v41  ;;  %v614_v57 = vrot.slane %v3348_v17, 7  ;;  %v242_v12 = vld [vmem:[%s3229_s24 + $0xb8] sm:$0xff] }
  0xc0   : > { %997 = vrot.lane.b32.xlu0 %v3677_v39, %s3174_s18  ;;  %v1291_v7 = vsel %vm1279_vm3, %v555_v3, %v3633_v29  ;;  %v330_v9 = vmul.f32 %v3220_v2, %v265_v16  ;;  %v307_v41 = vmul.f32 %v3220_v2, %v242_v12 }
  0xc1   : > { %999 = vrot.lane.b32.xlu1 %v3679_v49, %s3174_s18  ;;  %1135 = vrot.lane.b32.xlu2 %v858_v34, %s3175_s27  ;;  %v1428_v62 = vsel %vm724_vm0, %v1426_v8, %v1427_v59  ;;  %v615_v17 = vsel %vm538_vm2, %v613_v30, %v614_v57  ;;  %v266_v57 = vld [vmem:[%s3229_s24 + $0x178] sm:$0xff] }
  0xc2   : > { %v1192_v28 = vpop.permute.xlu0 %1191  ;;  %v1194_v63 = vpop.permute.xlu1 %1193 }
  0xc3   : > { %v3729_v20 = vsel %vm1342_vm4, %v1329_v22, %v1192_v28  ;;  %v3731_v36 = vpop.permute.xlu2 %983  ;;  %v3755_v55 = vsel %vm1342_vm4, %v1330_v54, %v1194_v63  ;;  %v757_v22 = vrot.slane %v3741_v14, 1  ;;  %v306_v54 = vmul.f32 %v3220_v2, %v241_v6 }
  0xc4   : > { %2944 = vmatmul.msk.f32.gmra.mxu0 %vm1470_vm5, %v1350_v25  ;;  %2988 = vmatmul.msk.f32.gmra.mxu3 %vm1470_vm5, %v3729_v20 }
  0xc5   : > { %3011 = vmatmul.msk.f32.gmra.mxu1 %vm1470_vm5, %v1350_v25  ;;  %3076 = vmatmul.msk.f32.gmra.mxu2 %vm1470_vm5, %v1352_v18  ;;  %v370_v25 = vadd.f32 %v3234_v5, %v305_v21  ;;  %v556_v21 = vrot.slane %v3385_v45, 7 }
  0xc7   : > { %v3772_v34 = vmax.f32 %v370_v25, 0.0  ;;  %v699_v45 = vsel %vm538_vm2, 0.0, %v556_v21 }
  0xc8   : > { %919 = vrot.lane.b32.xlu0 %v3648_v33, %s3174_s18 }
  0xc9   : > { %921 = vrot.lane.b32.xlu1 %v3741_v14, %s3174_s18  ;;  %1437 = vrot.lane.b32.xlu2 %v3745_v40, %s3174_s18  ;;  %v758_v28 = vrot.slane %v3772_v34, 1 }
  0xca   : > { %v1114_v0 = vpop.permute.xlu0 %1113  ;;  %v1116_v53 = vpop.permute.xlu1 %1115 }
  0xcb   : > { %v1353_v26 = vsel %vm1342_vm4, %v1290_v4, %v1114_v0  ;;  %v3765_v1 = vpop.permute.xlu2 %905  ;;  %v1354_v63 = vsel %vm1342_vm4, %v1291_v7, %v1116_v53  ;;  %v759_v56 = vsel %vm724_vm0, %v757_v22, %v758_v28  ;;  %v371_v4 = vadd.f32 %v3234_v5, %v306_v54 }
  0xcc   : > { %2945 = vmatmul.msk.f32.gmra.mxu0 %vm1470_vm5, %v1351_v38  ;;  %2989 = vmatmul.msk.f32.gmra.mxu3 %vm1470_vm5, %v3755_v55  ;;  %v395_v0 = vadd.f32 %v3234_v5, %v330_v9  ;;  %v372_v53 = vadd.f32 %v3234_v5, %v307_v41  ;;  %v331_v22 = vmul.f32 %v3220_v2, %v266_v57 }
  0xcd   : > { %3012 = vmatmul.msk.f32.gmra.mxu1 %vm1470_vm5, %v1351_v38  ;;  %3077 = vmatmul.msk.f32.gmra.mxu2 %vm1470_vm5, %v1353_v26  ;;  %v3827_v7 = vmax.f32 %v371_v4, 0.0 }
  0xce   : > { %v396_v2 = vadd.f32 %v3234_v5, %v331_v22 }
  0xd0   : > { %1215 = vrot.lane.b32.xlu0 %v878_v35, %s3175_s27  ;;  %v3859_v5 = vmax.f32 %v396_v2, 0.0 }
  0xd1   : > { %1451 = vrot.lane.b32.xlu1 %v1428_v62, %s3175_s27  ;;  %923 = vrot.lane.b32.xlu2 %v3772_v34, %s3174_s18  ;;  %v616_v62 = vrot.slane %v3387_v46, 7  ;;  %v617_v46 = vrot.slane %v3410_v61, 7 }
  0xd2   : > { %v980_v38 = vpop.permute.xlu0 %979  ;;  %v982_v51 = vpop.permute.xlu1 %981 }
  0xd3   : > { %v1331_v29 = vsel %vm1279_vm3, %v615_v17, %v980_v38  ;;  %v3806_v25 = vpop.permute.xlu2 %1201  ;;  %v3829_v17 = vmax.f32 %v395_v0, 0.0  ;;  %v719_v38 = vsel %vm538_vm2, 0.0, %v616_v62  ;;  %v618_v54 = vsel %vm538_vm2, %v616_v62, %v617_v46  ;;  %v246_v62 = vld [vmem:[%s3229_s24 + $0xd8] sm:$0xff] }
  0xd4   : > { %2946 = vmatmul.msk.f32.gmra.mxu0 %vm1470_vm5, %v1352_v18  ;;  %v3797_v30 = vsel %vm1342_vm4, %v1331_v29, %v3662_v50  ;;  %v859_v50 = vsel %vm724_vm0, %v758_v28, 0.0  ;;  %v3832_v28 = vmax.f32 %v372_v53, 0.0  ;;  %v1332_v61 = vsel %vm1279_vm3, %v719_v38, %v982_v51  ;;  %v243_v51 = vld [vmem:[%s3229_s24 + $0xc0] sm:$0xff] }
  0xd5   : > { %3013 = vmatmul.msk.f32.gmra.mxu1 %vm1470_vm5, %v1352_v18  ;;  %3078 = vmatmul.msk.f32.gmra.mxu2 %vm1470_vm5, %v1354_v63  ;;  %v1432_v18 = vsel %vm724_vm0, %v1427_v59, 0.0  ;;  %v1333_v41 = vsel %vm1279_vm3, %v618_v54, %v3731_v36  ;;  %v793_v36 = vrot.slane %v3829_v17, 1  ;;  %v619_v38 = vrot.slane %v3455_v31, 7 }
  0xd6   : > { %2990 = vmatmul.msk.f32.gmra.mxu3 %vm1470_vm5, %v3797_v30  ;;  %v761_v6 = vrot.slane %v3832_v28, 1 }
  0xd8   : > { %1137 = vrot.lane.b32.xlu0 %v759_v56, %s3175_s27  ;;  %v557_v56 = vrot.slane %v3389_v47, 7 }
  0xd9   : > { %1139 = vrot.lane.b32.xlu1 %v859_v50, %s3175_s27  ;;  %1453 = vrot.lane.b32.xlu2 %v1432_v18, %s3175_s27  ;;  %v559_v50 = vrot.slane %v3440_v23, 7 }
  0xda   : > { %v902_v8 = vpop.permute.xlu0 %901  ;;  %v904_v3 = vpop.permute.xlu1 %903  ;;  %v558_v47 = vsel %vm538_vm2, %v556_v21, %v557_v56  ;;  %v794_v21 = vrot.slane %v3859_v5, 1 }
  0xdb   : > { %v1292_v35 = vsel %vm1279_vm3, %v699_v45, %v902_v8  ;;  %v3837_v16 = vpop.permute.xlu2 %1123  ;;  %v1293_v23 = vsel %vm1279_vm3, %v558_v47, %v904_v3  ;;  %v244_v8 = vld [vmem:[%s3229_s24 + $0xc8] sm:$0xff]  ;;  %v700_v22 = vsel %vm538_vm2, 0.0, %v559_v50  ;;  %v3898_v3 = vld [vmem:[%s5403_s1 + $0x1] ss:$0 sm:$0xff] }
  0xdc   : > { %2947 = vmatmul.msk.f32.gmra.mxu0 %vm1470_vm5, %v1353_v26  ;;  %v1355_v59 = vsel %vm1342_vm4, %v1292_v35, %v3701_v58  ;;  %v760_v58 = vrot.slane %v3827_v7, 1  ;;  %v245_v35 = vld [vmem:[%s3229_s24 + $0xd0] sm:$0xff] }
  0xdd   : > { %3014 = vmatmul.msk.f32.gmra.mxu1 %vm1470_vm5, %v1353_v26  ;;  %3079 = vmatmul.msk.f32.gmra.mxu2 %vm1470_vm5, %v1355_v59 }
  0xde   : > { %v762_v26 = vsel %vm724_vm0, %v760_v58, %v761_v6  ;;  %v795_v58 = vsel %vm724_vm0, %v793_v36, %v794_v21 }
  0xe0   : > { %1439 = vrot.lane.b32.xlu0 %v3747_v19, %s3174_s18 }
  0xe1   : > { %969 = vrot.lane.b32.xlu1 %v3829_v17, %s3174_s18  ;;  %1141 = vrot.lane.b32.xlu2 %v762_v26, %s3175_s27  ;;  %v871_v26 = vsel %vm724_vm0, %v794_v21, 0.0  ;;  %v560_v21 = vrot.slane %v3442_v24, 7 }
  0xe2   : > { %v1198_v12 = vpop.permute.xlu0 %1197  ;;  %v1200_v29 = vpop.permute.xlu1 %1199 }
  0xe3   : > { %v3853_v9 = vsel %vm1342_vm4, %v1332_v61, %v1198_v12  ;;  %v3875_v18 = vsel %vm1342_vm4, %v1333_v41, %v1200_v29  ;;  %v3881_v4 = vpop.permute.xlu2 %989  ;;  %v1294_v12 = vsel %vm1279_vm3, %v700_v22, %v3765_v1  ;;  %v720_v29 = vsel %vm538_vm2, 0.0, %v619_v38 }
  0xe4   : > { %2948 = vmatmul.msk.f32.gmra.mxu0 %vm1470_vm5, %v1354_v63  ;;  %2991 = vmatmul.msk.f32.gmra.mxu3 %vm1470_vm5, %v3853_v9  ;;  %v561_v24 = vsel %vm538_vm2, %v559_v50, %v560_v21 }
  0xe5   : > { %3015 = vmatmul.msk.f32.gmra.mxu1 %vm1470_vm5, %v1354_v63  ;;  %v3871_v63 = vld [vmem:[%s5403_s1] ss:$0 sm:$0xff] }
  0xe6   : > { %v308_v45 = vmul.f32 %v3871_v63, %v243_v51  ;;  %v309_v2 = vmul.f32 %v3871_v63, %v244_v8  ;;  %v310_v61 = vmul.f32 %v3871_v63, %v245_v35  ;;  %v311_v31 = vmul.f32 %v3871_v63, %v246_v62 }
  0xe8   : > { %925 = vrot.lane.b32.xlu0 %v3827_v7, %s3174_s18  ;;  %v373_v46 = vadd.f32 %v3898_v3, %v308_v45  ;;  %v374_v56 = vadd.f32 %v3898_v3, %v309_v2  ;;  %v375_v41 = vadd.f32 %v3898_v3, %v310_v61  ;;  %v376_v47 = vadd.f32 %v3898_v3, %v311_v31 }
  0xe9   : > { %927 = vrot.lane.b32.xlu1 %v3832_v28, %s3174_s18  ;;  %971 = vrot.lane.b32.xlu2 %v3859_v5, %s3174_s18  ;;  %v620_v2 = vrot.slane %v3457_v32, 7 }
  0xea   : > { %v1120_v0 = vpop.permute.xlu0 %1119  ;;  %v1122_v53 = vpop.permute.xlu1 %1121  ;;  %v3941_v8 = vmax.f32 %v376_v47, 0.0 }
  0xeb   : > { %v1356_v57 = vsel %vm1342_vm4, %v1293_v23, %v1120_v0  ;;  %v1357_v51 = vsel %vm1342_vm4, %v1294_v12, %v1122_v53  ;;  %v3928_v23 = vpop.permute.xlu2 %911  ;;  %v860_v0 = vsel %vm724_vm0, %v761_v6, 0.0  ;;  %v3935_v53 = vmax.f32 %v374_v56, 0.0 }
  0xec   : > { %2949 = vmatmul.msk.f32.gmra.mxu0 %vm1470_vm5, %v1355_v59  ;;  %2992 = vmatmul.msk.f32.gmra.mxu3 %vm1470_vm5, %v3875_v18  ;;  %v767_v22 = vrot.slane %v3941_v8, 1  ;;  %v621_v32 = vsel %vm538_vm2, %v619_v38, %v620_v2  ;;  %v622_v56 = vrot.slane %v3516_v13, 7  ;;  %v562_v13 = vrot.slane %v3513_v11, 7 }
  0xed   : > { %3016 = vmatmul.msk.f32.gmra.mxu1 %vm1470_vm5, %v1355_v59  ;;  %3080 = vmatmul.msk.f32.gmra.mxu2 %vm1470_vm5, %v1356_v57  ;;  %v3912_v59 = vmax.f32 %v373_v46, 0.0  ;;  %v764_v35 = vrot.slane %v3935_v53, 1  ;;  %v247_v46 = vld [vmem:[%s3229_s24 + $0xe0] sm:$0xff] }
  0xee   : > { %v312_v31 = vmul.f32 %v3871_v63, %v247_v46  ;;  %v721_v21 = vsel %vm538_vm2, 0.0, %v622_v56 }
  0xef   : > { %v1336_v11 = vsel %vm1279_vm3, %v721_v21, %v3881_v4 }
  0xf0   : > { %1185 = vrot.lane.b32.xlu0 %v795_v58, %s3175_s27 }
  0xf1   : > { %1187 = vrot.lane.b32.xlu1 %v871_v26, %s3175_s27  ;;  %929 = vrot.lane.b32.xlu2 %v3912_v59, %s3174_s18 }
  0xf2   : > { %v986_v54 = vpop.permute.xlu0 %985  ;;  %v988_v45 = vpop.permute.xlu1 %987 }
  0xf3   : > { %v1334_v1 = vsel %vm1279_vm3, %v720_v29, %v986_v54  ;;  %v3962_v29 = vpop.permute.xlu2 %1207  ;;  %v248_v54 = vld [vmem:[%s3229_s24 + $0xe8] sm:$0xff]  ;;  %v1335_v47 = vsel %vm1279_vm3, %v621_v32, %v988_v45 }
  0xf4   : > { %2950 = vmatmul.msk.f32.gmra.mxu0 %vm1470_vm5, %v1356_v57  ;;  %v3925_v36 = vsel %vm1342_vm4, %v1334_v1, %v3806_v25  ;;  %v3939_v25 = vmax.f32 %v375_v41, 0.0  ;;  %v377_v41 = vadd.f32 %v3898_v3, %v312_v31 }
  0xf5   : > { %3017 = vmatmul.msk.f32.gmra.mxu1 %vm1470_vm5, %v1356_v57  ;;  %3081 = vmatmul.msk.f32.gmra.mxu2 %vm1470_vm5, %v1357_v51  ;;  %v763_v57 = vrot.slane %v3912_v59, 1 }
  0xf6   : > { %2993 = vmatmul.msk.f32.gmra.mxu3 %vm1470_vm5, %v3925_v36  ;;  %v766_v62 = vrot.slane %v3939_v25, 1  ;;  %v3986_v45 = vmax.f32 %v377_v41, 0.0 }
  0xf7   : > { %v765_v61 = vsel %vm724_vm0, %v763_v57, %v764_v35 }
  0xf8   : > { %1143 = vrot.lane.b32.xlu0 %v860_v0, %s3175_s27  ;;  %v768_v12 = vsel %vm724_vm0, %v766_v62, %v767_v22  ;;  %v563_v62 = vrot.slane %v3540_v42, 7  ;;  %v249_v42 = vld [vmem:[%s3229_s24 + $0xf0] sm:$0xff] }
  0xf9   : > { %931 = vrot.lane.b32.xlu1 %v3935_v53, %s3174_s18 }
  0xfa   : > { %v908_v6 = vpop.permute.xlu0 %907  ;;  %v910_v26 = vpop.permute.xlu1 %909  ;;  %v564_v31 = vsel %vm538_vm2, %v562_v13, %v563_v62 }
  0xfb   : > { %v1295_v58 = vsel %vm1279_vm3, %v561_v24, %v908_v6  ;;  %v701_v6 = vsel %vm538_vm2, 0.0, %v562_v13  ;;  %v3996_v46 = vpop.permute.xlu2 %1129  ;;  %v1297_v41 = vsel %vm1279_vm3, %v564_v31, %v3928_v23  ;;  %v254_v13 = vld [vmem:[%s3229_s24 + $0x118] sm:$0xff]  ;;  %v565_v31 = vrot.slane %v3577_v43, 7 }
  0xfc   : > { %2951 = vmatmul.msk.f32.gmra.mxu0 %vm1470_vm5, %v1357_v51  ;;  %v1358_v50 = vsel %vm1342_vm4, %v1295_v58, %v3837_v16  ;;  %v861_v16 = vsel %vm724_vm0, %v764_v35, 0.0  ;;  %v1296_v4 = vsel %vm1279_vm3, %v701_v6, %v910_v26  ;;  %v862_v26 = vsel %vm724_vm0, %v767_v22, 0.0 }
  0xfd   : > { %3018 = vmatmul.msk.f32.gmra.mxu1 %vm1470_vm5, %v1357_v51  ;;  %3082 = vmatmul.msk.f32.gmra.mxu2 %vm1470_vm5, %v1358_v50  ;;  %v313_v51 = vmul.f32 %v3871_v63, %v248_v54  ;;  %v623_v54 = vrot.slane %v3518_v15, 7  ;;  %v319_v22 = vmul.f32 %v3871_v63, %v254_v13  ;;  %v702_v43 = vsel %vm538_vm2, 0.0, %v565_v31 }
  0xfe   : > { %1147 = vrot.lane.b32.xlu2 %v861_v16, %s3175_s27  ;;  %v3983_v57 = vpop.f32.mrf.mxu1  ;;  %v314_v16 = vmul.f32 %v3871_v63, %v249_v42 }
  0xff   : > { %v378_v38 = vadd.f32 %v3898_v3, %v313_v51  ;;  %v624_v15 = vsel %vm538_vm2, %v622_v56, %v623_v54  ;;  %v384_v56 = vadd.f32 %v3898_v3, %v319_v22  ;;  %v251_v22 = vld [vmem:[%s3229_s24 + $0x100] sm:$0xff] }
 0x100   : > { %1145 = vrot.lane.b32.xlu0 %v765_v61, %s3175_s27  ;;  %v250_v61 = vld [vmem:[%s3229_s24 + $0xf8] sm:$0xff]  ;;  %v379_v23 = vadd.f32 %v3898_v3, %v314_v16 }
 0x101   : > { %1149 = vrot.lane.b32.xlu1 %v768_v12, %s3175_s27  ;;  %v3990_v35 = vmax.f32 %v378_v38, 0.0  ;;  %v315_v51 = vmul.f32 %v3871_v63, %v250_v61  ;;  %v253_v38 = vld [vmem:[%s3229_s24 + $0x110] sm:$0xff] }
 0x102   : > { %v1204_v1 = vpop.permute.xlu0 %1203  ;;  %v1206_v24 = vpop.permute.xlu1 %1205  ;;  %v318_v21 = vmul.f32 %v3871_v63, %v253_v38 }
 0x103   : > { %v3978_v0 = vsel %vm1342_vm4, %v1335_v47, %v1204_v1  ;;  %v3999_v58 = vsel %vm1342_vm4, %v1336_v11, %v1206_v24  ;;  %v380_v11 = vadd.f32 %v3898_v3, %v315_v51  ;;  %v4035_v62 = vpop.permute.xlu2 %995 }
 0x104   : > { %2952 = vmatmul.msk.f32.gmra.mxu0 %vm1470_vm5, %v1358_v50  ;;  %2994 = vmatmul.msk.f32.gmra.mxu3 %vm1470_vm5, %v3978_v0 }
 0x105   : > { %3019 = vmatmul.msk.f32.gmra.mxu1 %vm1470_vm5, %v1358_v50  ;;  %v770_v50 = vrot.slane %v3990_v35, 1 }
 0x106   : > { %935 = vrot.lane.b32.xlu2 %v3941_v8, %s3174_s18  ;;  %v4023_v1 = vpop.f32.mrf.mxu1 }
 0x107   : > { %v863_v47 = vsel %vm724_vm0, %v770_v50, 0.0 }
 0x108   : > { %933 = vrot.lane.b32.xlu0 %v3939_v25, %s3174_s18 }
 0x109   : > { %937 = vrot.lane.b32.xlu1 %v3986_v45, %s3174_s18 }
 0x10a   : > { %v1126_v2 = vpop.permute.xlu0 %1125  ;;  %v1128_v32 = vpop.permute.xlu1 %1127 }
 0x10b   : > { %v1359_v12 = vsel %vm1342_vm4, %v1296_v4, %v1126_v2  ;;  %v1360_v24 = vsel %vm1342_vm4, %v1297_v41, %v1128_v32  ;;  %v383_v4 = vadd.f32 %v3898_v3, %v318_v21  ;;  %v4050_v32 = vmax.f32 %v380_v11, 0.0  ;;  %v1684_v51 = vpop.f32.mrf.mxu0 }
 0x10c   : > { %2953 = vmatmul.msk.f32.gmra.mxu0 %vm1470_vm5, %v1359_v12  ;;  %2995 = vmatmul.msk.f32.gmra.mxu3 %vm1470_vm5, %v3999_v58 }
 0x10d   : > { %3020 = vmatmul.msk.f32.gmra.mxu1 %vm1470_vm5, %v1359_v12  ;;  %3083 = vmatmul.msk.f32.gmra.mxu2 %vm1470_vm5, %v1359_v12  ;;  %v4048_v12 = vmax.f32 %v379_v23, 0.0  ;;  %v4054_v54 = vmax.f32 %v383_v4, 0.0  ;;  %v1424_v38 = vrot.slane %v4050_v32, 1  ;;  %v625_v23 = vrot.slane %v3579_v44, 7  ;;  %v918_v4 = vpop.permute.xlu2 %917 }
 0x10e   : > { %v4063_v41 = vpop.f32.mrf.mxu1 }
 0x110   : > { %1151 = vrot.lane.b32.xlu0 %v862_v26, %s3175_s27  ;;  %v4056_v26 = vmax.f32 %v384_v56, 0.0 }
 0x111   : > { %1155 = vrot.lane.b32.xlu1 %v863_v47, %s3175_s27  ;;  %v1423_v47 = vrot.slane %v4048_v12, 1 }
 0x112   : > { %v992_v6 = vpop.permute.xlu0 %991  ;;  %v994_v42 = vpop.permute.xlu1 %993  ;;  %v5408_v21 = vrot.slane %v4056_v26, 1 }
 0x113   : > { %v1337_v2 = vsel %vm1279_vm3, %v624_v15, %v992_v6  ;;  %v775_v15 = vrot.slane %v4054_v54, 1  ;;  %v1425_v56 = vsel %vm724_vm0, %v1423_v47, %v1424_v38  ;;  %v626_v47 = vrot.slane %v3612_v37, 7 }
 0x114   : > { %2954 = vmatmul.msk.f32.gmra.mxu0 %vm1470_vm5, %v1360_v24  ;;  %v4043_v61 = vsel %vm1342_vm4, %v1337_v2, %v3962_v29  ;;  %v769_v29 = vrot.slane %v3986_v45, 1  ;;  %v316_v2 = vmul.f32 %v3871_v63, %v251_v22 }
 0x115   : > { %3021 = vmatmul.msk.f32.gmra.mxu1 %vm1470_vm5, %v1360_v24  ;;  %3084 = vmatmul.msk.f32.gmra.mxu2 %vm1470_vm5, %v1360_v24  ;;  %v777_v44 = vsel %vm724_vm0, %v775_v15, %v5408_v21 }
 0x116   : > { %2996 = vmatmul.msk.f32.gmra.mxu3 %vm1470_vm5, %v4043_v61  ;;  %v771_v16 = vsel %vm724_vm0, %v769_v29, %v770_v50  ;;  %v252_v50 = vld [vmem:[%s3229_s24 + $0x108] sm:$0xff]  ;;  %v381_v15 = vadd.f32 %v3898_v3, %v316_v2 }
 0x117   : > { %1153 = vrot.lane.b32.xlu2 %v771_v16, %s3175_s27  ;;  %v317_v29 = vmul.f32 %v3871_v63, %v252_v50 }
 0x118   : > { %939 = vrot.lane.b32.xlu0 %v3990_v35, %s3174_s18  ;;  %v4120_v2 = vmax.f32 %v381_v15, 0.0 }
 0x119   : > { %1435 = vrot.lane.b32.xlu1 %v4050_v32, %s3174_s18  ;;  %v382_v22 = vadd.f32 %v3898_v3, %v317_v29 }
 0x11a   : > { %v914_v13 = vpop.permute.xlu0 %913  ;;  %v916_v11 = vpop.permute.xlu1 %915 }
 0x11b   : > { %v1298_v24 = vsel %vm1279_vm3, %v702_v43, %v914_v13  ;;  %v1903_v43 = vadd.f32 %v3983_v57, %v1684_v51  ;;  %v4122_v29 = vmax.f32 %v382_v22, 0.0 }
 0x11c   : > { %v1361_v6 = vsel %vm1342_vm4, %v1298_v24, %v3996_v46  ;;  %v722_v46 = vsel %vm538_vm2, 0.0, %v625_v23  ;;  %v566_v24 = vrot.slane %v3582_v27, 7 }
 0x11d   : > { %2955 = vmatmul.msk.f32.gmra.mxu0 %vm1470_vm5, %v1361_v6  ;;  %3022 = vmatmul.msk.f32.gmra.mxu1 %vm1470_vm5, %v1361_v6  ;;  %v1338_v50 = vsel %vm1279_vm3, %v722_v46, %v994_v42  ;;  %v568_v46 = vrot.slane %v3646_v48, 7 }
 0x11e   : > { %3085 = vmatmul.msk.f32.gmra.mxu2 %vm1470_vm5, %v1361_v6  ;;  %v627_v6 = vsel %vm538_vm2, %v625_v23, %v626_v47  ;;  %v567_v23 = vsel %vm538_vm2, %v565_v31, %v566_v24 }
 0x11f   : > { %v2117_v16 = vpop.f32.mrf.mxu2  ;;  %1433 = vrot.lane.b32.xlu2 %v4048_v12, %s3174_s18  ;;  %v1339_v42 = vsel %vm1279_vm3, %v627_v6, %v4035_v62  ;;  %v772_v62 = vrot.slane %v4120_v2, 1  ;;  %v1299_v48 = vsel %vm1279_vm3, %v567_v23, %v916_v11  ;;  %v628_v6 = vrot.slane %v3677_v39, 7 }
 0x120   : > { %v4099_v13 = vadd.f32 %v2117_v16, %v1903_v43  ;;  %1447 = vrot.lane.b32.xlu0 %v1425_v56, %s3175_s27 }
 0x121   : > { %v1687_v57 = vpop.f32.mrf.mxu0  ;;  %v4102_v51 = vpop.f32.mrf.mxu1  ;;  %1161 = vrot.lane.b32.xlu1 %v777_v44, %s3175_s27 }
 0x122   : > { %5440 = vst [vmem:[#allocation2_spill] sm:$0xff] %v4099_v13  ;;  %v1210_v37 = vpop.permute.xlu0 %1209  ;;  %v1212_v43 = vpop.permute.xlu1 %1211  ;;  %v1906_v27 = vadd.f32 %v4023_v1, %v1687_v57  ;;  %v773_v1 = vrot.slane %v4122_v29, 1  ;;  %v703_v57 = vsel %vm538_vm2, 0.0, %v568_v46 }
 0x123   : > { %2373 = vst.msk [vmem:[%s4096_s26] sm:$0xff] %vm1279_vm3, %v4099_v13  ;;  %v4116_v56 = vsel %vm1342_vm4, %v1338_v50, %v1210_v37  ;;  %v1214_v44 = vpop.permute.xlu2 %1213  ;;  %v4136_v50 = vsel %vm1342_vm4, %v1339_v42, %v1212_v43  ;;  %v1431_v43 = vsel %vm724_vm0, %v1424_v38, 0.0  ;;  %v1300_v42 = vsel %vm1279_vm3, %v703_v57, %v918_v4 }
 0x124   : > { %2997 = vmatmul.msk.f32.gmra.mxu3 %vm1470_vm5, %v4116_v56  ;;  %v774_v11 = vsel %vm724_vm0, %v772_v62, %v773_v1  ;;  %v569_v57 = vrot.slane %v3648_v33, 7 }
 0x127   : > { %1449 = vrot.lane.b32.xlu2 %v1431_v43, %s3175_s27  ;;  %v256_v43 = vld [vmem:[%s3229_s24 + $0x128] sm:$0xff] }
 0x128   : > { %v2120_v16 = vpop.f32.mrf.mxu2  ;;  %945 = vrot.lane.b32.xlu0 %v4054_v54, %s3174_s18 }
 0x129   : > { %v4131_v47 = vadd.f32 %v2120_v16, %v1906_v27  ;;  %v1690_v15 = vpop.f32.mrf.mxu0  ;;  %v4133_v22 = vpop.f32.mrf.mxu1  ;;  %947 = vrot.lane.b32.xlu1 %v4056_v26, %s3174_s18  ;;  %v864_v27 = vsel %vm724_vm0, %v773_v1, 0.0  ;;  %v723_v16 = vsel %vm538_vm2, 0.0, %v628_v6 }
 0x12a   : > { %v1132_v31 = vpop.permute.xlu0 %1131  ;;  %v1909_v23 = vadd.f32 %v4063_v41, %v1690_v15 }
 0x12b   : > { %5441 = vst [vmem:[#allocation3_spill] sm:$0xff] %v4131_v47  ;;  %v1362_v37 = vsel %vm1342_vm4, %v1299_v48, %v1132_v31  ;;  %v1134_v24 = vpop.permute.xlu1 %1133  ;;  %v1136_v48 = vpop.permute.xlu2 %1135 }
 0x12c   : > { %2374 = vst.msk [vmem:[%s4096_s26 + $0x8] sm:$0xff] %vm1279_vm3, %v4131_v47  ;;  %2956 = vmatmul.msk.f32.gmra.mxu0 %vm1470_vm5, %v1362_v37  ;;  %2998 = vmatmul.msk.f32.gmra.mxu3 %vm1470_vm5, %v4136_v50  ;;  %v1363_v38 = vsel %vm1342_vm4, %v1300_v42, %v1134_v24 }
 0x12d   : > { %3023 = vmatmul.msk.f32.gmra.mxu1 %vm1470_vm5, %v1362_v37  ;;  %3086 = vmatmul.msk.f32.gmra.mxu2 %vm1470_vm5, %v1362_v37 }
 0x12f   : > { %941 = vrot.lane.b32.xlu2 %v4120_v2, %s3174_s18 }
 0x130   : > { %v2123_v39 = vpop.f32.mrf.mxu2  ;;  %1157 = vrot.lane.b32.xlu0 %v774_v11, %s3175_s27  ;;  %v255_v11 = vld [vmem:[%s3229_s24 + $0x120] sm:$0xff] }
 0x131   : > { %v4164_v62 = vadd.f32 %v2123_v39, %v1909_v23  ;;  %v1693_v31 = vpop.f32.mrf.mxu0  ;;  %v1917_v37 = vpop.f32.mrf.mxu1  ;;  %1159 = vrot.lane.b32.xlu1 %v864_v27, %s3175_s27  ;;  %v320_v33 = vmul.f32 %v3871_v63, %v255_v11  ;;  %v321_v27 = vmul.f32 %v3871_v63, %v256_v43 }
 0x132   : > { %v998_v4 = vpop.permute.xlu0 %997  ;;  %v1912_v24 = vadd.f32 %v4102_v51, %v1693_v31 }
 0x133   : > { %5442 = vst [vmem:[#allocation4_spill] sm:$0xff] %v4164_v62  ;;  %v1340_v41 = vsel %vm1279_vm3, %v723_v16, %v998_v4  ;;  %v1000_v15 = vpop.permute.xlu1 %999  ;;  %v1438_v4 = vpop.permute.xlu2 %1437  ;;  %v385_v51 = vadd.f32 %v3898_v3, %v320_v33  ;;  %v386_v31 = vadd.f32 %v3898_v3, %v321_v27  ;;  %v1414_v33 = vrot.slane %v3745_v40, 7 }
 0x134   : > { %2375 = vst.msk [vmem:[%s4096_s26 + $0x10] sm:$0xff] %vm1279_vm3, %v4164_v62  ;;  %2957 = vmatmul.msk.f32.gmra.mxu0 %vm1470_vm5, %v1363_v38  ;;  %v4174_v1 = vsel %vm1342_vm4, %v1340_v41, %v1214_v44  ;;  %v570_v44 = vsel %vm538_vm2, %v568_v46, %v569_v57  ;;  %v629_v41 = vrot.slane %v3679_v49, 7 }
 0x135   : > { %3024 = vmatmul.msk.f32.gmra.mxu1 %vm1470_vm5, %v1363_v38  ;;  %3087 = vmatmul.msk.f32.gmra.mxu2 %vm1470_vm5, %v1363_v38  ;;  %v4203_v11 = vmax.f32 %v385_v51, 0.0  ;;  %v4207_v43 = vmax.f32 %v386_v31, 0.0 }
 0x136   : > { %2999 = vmatmul.msk.f32.gmra.mxu3 %vm1470_vm5, %v4174_v1  ;;  %v630_v49 = vsel %vm538_vm2, %v628_v6, %v629_v41 }
 0x138   : > { %v2126_v42 = vpop.f32.mrf.mxu2  ;;  %943 = vrot.lane.b32.xlu0 %v4122_v29, %s3174_s18 }
 0x139   : > { %v4191_v23 = vadd.f32 %v2126_v42, %v1912_v24  ;;  %v1696_v39 = vpop.f32.mrf.mxu0  ;;  %v4193_v16 = vpop.f32.mrf.mxu1  ;;  %v778_v42 = vrot.slane %v4203_v11, 1  ;;  %951 = vrot.lane.b32.xlu1 %v4207_v43, %s3174_s18 }
 0x13a   : > { %v920_v38 = vpop.permute.xlu0 %919 }
 0x13b   : > { %5443 = vst [vmem:[#allocation5_spill] sm:$0xff] %v4191_v23  ;;  %v1301_v46 = vsel %vm1279_vm3, %v570_v44, %v920_v38  ;;  %v922_v57 = vpop.permute.xlu1 %921  ;;  %v1915_v44 = vadd.f32 %v4133_v22, %v1696_v39  ;;  %v1341_v22 = vsel %vm1279_vm3, %v630_v49, %v1000_v15  ;;  %v571_v39 = vrot.slane %v3741_v14, 7  ;;  %v924_v15 = vpop.permute.xlu2 %923  ;;  %v258_v14 = vld [vmem:[%s3229_s24 + $0x138] sm:$0xff] }
 0x13c   : > { %2376 = vst.msk [vmem:[%s4096_s26 + $0x18] sm:$0xff] %vm1279_vm3, %v4191_v23  ;;  %v1364_v24 = vsel %vm1342_vm4, %v1301_v46, %v1136_v48  ;;  %v5407_v48 = vrot.slane %v4207_v43, 1  ;;  %v1422_v46 = vsel %vm538_vm2, 0.0, %v1414_v33 }
 0x13d   : > { %2958 = vmatmul.msk.f32.gmra.mxu0 %vm1470_vm5, %v1364_v24  ;;  %3025 = vmatmul.msk.f32.gmra.mxu1 %vm1470_vm5, %v1364_v24  ;;  %v704_v49 = vsel %vm538_vm2, 0.0, %v571_v39 }
 0x13e   : > { %3088 = vmatmul.msk.f32.gmra.mxu2 %vm1470_vm5, %v1364_v24  ;;  %v780_v31 = vsel %vm724_vm0, %v778_v42, %v5407_v48  ;;  %v1461_v42 = vsel %vm1279_vm3, %v1422_v46, %v1438_v4 }
 0x140   : > { %v2129_v27 = vpop.f32.mrf.mxu2  ;;  %1165 = vrot.lane.b32.xlu0 %v780_v31, %s3175_s27  ;;  %v257_v31 = vld [vmem:[%s3229_s24 + $0x130] sm:$0xff] }
 0x141   : > { %v4217_v38 = vadd.f32 %v2129_v27, %v1915_v44  ;;  %v1699_v51 = vpop.f32.mrf.mxu0  ;;  %v572_v27 = vrot.slane %v3772_v34, 7  ;;  %v322_v21 = vmul.f32 %v3871_v63, %v257_v31 }
 0x142   : > { %v4223_v6 = vpop.f32.mrf.mxu1  ;;  %v1216_v40 = vpop.permute.xlu0 %1215  ;;  %v1918_v44 = vadd.f32 %v1917_v37, %v1699_v51  ;;  %v1302_v37 = vsel %vm1279_vm3, %v704_v49, %v922_v57  ;;  %v1415_v57 = vrot.slane %v3747_v19, 7 }
 0x143   : > { %5444 = vst [vmem:[#allocation6_spill] sm:$0xff] %v4217_v38  ;;  %v4232_v41 = vsel %vm1342_vm4, %v1341_v22, %v1216_v40  ;;  %v1452_v24 = vpop.permute.xlu1 %1451  ;;  %v323_v22 = vmul.f32 %v3871_v63, %v258_v14  ;;  %v387_v34 = vadd.f32 %v3898_v3, %v322_v21  ;;  %v573_v31 = vsel %vm538_vm2, %v571_v39, %v572_v27  ;;  %v1454_v27 = vpop.permute.xlu2 %1453 }
 0x144   : > { %2377 = vst.msk [vmem:[%s4096_s26 + $0x20] sm:$0xff] %vm1279_vm3, %v4217_v38  ;;  %3000 = vmatmul.msk.f32.gmra.mxu3 %vm1470_vm5, %v4232_v41  ;;  %v4246_v23 = vsel %vm1342_vm4, %v1461_v42, %v1452_v24  ;;  %v5446_v39 = vrot.slane %v4056_v26, 1  ;;  %v1303_v49 = vsel %vm1279_vm3, %v573_v31, %v924_v15 }
 0x145   : > { %v388_v46 = vadd.f32 %v3898_v3, %v323_v22  ;;  %v4262_v24 = vmax.f32 %v387_v34, 0.0 }
 0x146   : > { %v865_v42 = vsel %vm724_vm0, %v5446_v39, 0.0 }
 0x147   : > { %v4264_v21 = vmax.f32 %v388_v46, 0.0  ;;  %1163 = vrot.lane.b32.xlu2 %v865_v42, %s3175_s27  ;;  %v781_v19 = vrot.slane %v4262_v24, 1  ;;  %v4280_v46 = vpop.f32.mrf.mxu3 }
 0x148   : > { %v2132_v48 = vpop.f32.mrf.mxu2  ;;  %953 = vrot.lane.b32.xlu0 %v4262_v24, %s3174_s18  ;;  %5447 = vst [vmem:[#allocation8_spill] sm:$0xff] %v4280_v46 }
 0x149   : > { %v4243_v40 = vadd.f32 %v2132_v48, %v1918_v44  ;;  %v1702_v38 = vpop.f32.mrf.mxu0  ;;  %v782_v14 = vrot.slane %v4264_v21, 1 }
 0x14a   : > { %v4249_v4 = vpop.f32.mrf.mxu1  ;;  %v1138_v51 = vpop.permute.xlu0 %1137  ;;  %v1921_v22 = vadd.f32 %v4193_v16, %v1702_v38 }
 0x14b   : > { %5445 = vst [vmem:[#allocation7_spill] sm:$0xff] %v4243_v40  ;;  %v1365_v48 = vsel %vm1342_vm4, %v1302_v37, %v1138_v51  ;;  %v1140_v44 = vpop.permute.xlu1 %1139  ;;  %v1416_v51 = vsel %vm538_vm2, %v1414_v33, %v1415_v57  ;;  %v783_v34 = vsel %vm724_vm0, %v781_v19, %v782_v14  ;;  %v574_v57 = vrot.slane %v3827_v7, 7 }
 0x14c   : > { %2378 = vst.msk [vmem:[%s4096_s26 + $0x28] sm:$0xff] %vm1279_vm3, %v4243_v40  ;;  %2959 = vmatmul.msk.f32.gmra.mxu0 %vm1470_vm5, %v1365_v48  ;;  %3001 = vmatmul.msk.f32.gmra.mxu3 %vm1470_vm5, %v4246_v23 }
 0x14d   : > { %3026 = vmatmul.msk.f32.gmra.mxu1 %vm1470_vm5, %v1365_v48  ;;  %3089 = vmatmul.msk.f32.gmra.mxu2 %vm1470_vm5, %v1365_v48  ;;  %v1366_v48 = vsel %vm1342_vm4, %v1303_v49, %v1140_v44  ;;  %v705_v19 = vsel %vm538_vm2, 0.0, %v574_v57 }
 0x14e   : > { %1169 = vrot.lane.b32.xlu1 %v783_v34, %s3175_s27  ;;  %v259_v34 = vld [vmem:[%s3229_s24 + $0x140] sm:$0xff] }
 0x14f   : > { %949 = vrot.lane.b32.xlu2 %v4203_v11, %s3174_s18  ;;  %v4306_v7 = vpop.f32.mrf.mxu3 }
 0x150   : > { %v2135_v37 = vpop.f32.mrf.mxu2  ;;  %5449 = vst [vmem:[#allocation10_spill] sm:$0xff] %v4306_v7 }
 0x151   : > { %v4282_v15 = vadd.f32 %v2135_v37, %v1921_v22  ;;  %v1705_v31 = vpop.f32.mrf.mxu0  ;;  %v867_v22 = vsel %vm724_vm0, %v782_v14, 0.0  ;;  %v607_v14 = vrot.slane %v3829_v17, 7 }
 0x152   : > { %v4286_v39 = vpop.f32.mrf.mxu1  ;;  %v1440_v42 = vpop.permute.xlu0 %1439  ;;  %v1924_v44 = vadd.f32 %v4223_v6, %v1705_v31  ;;  %1171 = vrot.lane.b32.xlu0 %v867_v22, %s3175_s27  ;;  %v324_v6 = vmul.f32 %v3871_v63, %v259_v34  ;;  %v5451_v22 = vrot.slane %v4207_v43, 1 }
 0x153   : > { %5448 = vst [vmem:[#allocation9_spill] sm:$0xff] %v4282_v15  ;;  %v1462_v16 = vsel %vm1279_vm3, %v1416_v51, %v1440_v42  ;;  %v970_v33 = vpop.permute.xlu1 %969 }
 0x154   : > { %2379 = vst.msk [vmem:[%s4096_s26 + $0x30] sm:$0xff] %vm1279_vm3, %v4282_v15  ;;  %2960 = vmatmul.msk.f32.gmra.mxu0 %vm1470_vm5, %v1366_v48  ;;  %v4294_v38 = vsel %vm1342_vm4, %v1462_v16, %v1454_v27  ;;  %v1142_v27 = vpop.permute.xlu2 %1141  ;;  %v866_v34 = vsel %vm724_vm0, %v5451_v22, 0.0 }
 0x155   : > { %3027 = vmatmul.msk.f32.gmra.mxu1 %vm1470_vm5, %v1366_v48  ;;  %3090 = vmatmul.msk.f32.gmra.mxu2 %vm1470_vm5, %v1366_v48 }
 0x156   : > { %3002 = vmatmul.msk.f32.gmra.mxu3 %vm1470_vm5, %v4294_v38 }
 0x157   : > { %1167 = vrot.lane.b32.xlu2 %v866_v34, %s3175_s27 }
 0x158   : > { %v2138_v49 = vpop.f32.mrf.mxu2 }
 0x159   : > { %v4308_v37 = vadd.f32 %v2138_v49, %v1924_v44  ;;  %v1708_v51 = vpop.f32.mrf.mxu0  ;;  %v389_v44 = vadd.f32 %v3898_v3, %v324_v6  ;;  %v608_v6 = vrot.slane %v3859_v5, 7 }
 0x15a   : > { %v4312_v48 = vpop.f32.mrf.mxu1  ;;  %v926_v42 = vpop.permute.xlu0 %925  ;;  %v1927_v17 = vadd.f32 %v4249_v4, %v1708_v51 }
 0x15b   : > { %5450 = vst [vmem:[#allocation11_spill] sm:$0xff] %v4308_v37  ;;  %v1304_v31 = vsel %vm1279_vm3, %v705_v19, %v926_v42  ;;  %v928_v49 = vpop.permute.xlu1 %927  ;;  %v716_v19 = vsel %vm538_vm2, 0.0, %v607_v14  ;;  %v4342_v51 = vpop.f32.mrf.mxu3 }
 0x15c   : > { %2380 = vst.msk [vmem:[%s4096_s26 + $0x38] sm:$0xff] %vm1279_vm3, %v4308_v37  ;;  %v1367_v16 = vsel %vm1342_vm4, %v1304_v31, %v1142_v27  ;;  %v4328_v37 = vmax.f32 %v389_v44, 0.0  ;;  %v260_v27 = vld [vmem:[%s3229_s24 + $0x148] sm:$0xff]  ;;  %v1326_v44 = vsel %vm1279_vm3, %v716_v19, %v970_v33  ;;  %v609_v33 = vsel %vm538_vm2, %v607_v14, %v608_v6 }
 0x15d   : > { %2961 = vmatmul.msk.f32.gmra.mxu0 %vm1470_vm5, %v1367_v16  ;;  %3028 = vmatmul.msk.f32.gmra.mxu1 %vm1470_vm5, %v1367_v16  ;;  %v325_v31 = vmul.f32 %v3871_v63, %v260_v27  ;;  %5453 = vst [vmem:[#allocation13_spill] sm:$0xff] %v4342_v51  ;;  %v262_v51 = vld [vmem:[%s3229_s24 + $0x158] sm:$0xff] }
 0x15e   : > { %3091 = vmatmul.msk.f32.gmra.mxu2 %vm1470_vm5, %v1367_v16  ;;  %957 = vrot.lane.b32.xlu1 %v4328_v37, %s3174_s18  ;;  %v972_v16 = vpop.permute.xlu2 %971  ;;  %v327_v6 = vmul.f32 %v3871_v63, %v262_v51 }
 0x15f   : > { %v390_v4 = vadd.f32 %v3898_v3, %v325_v31  ;;  %955 = vrot.lane.b32.xlu2 %v4264_v21, %s3174_s18 }
 0x160   : > { %v2141_v42 = vpop.f32.mrf.mxu2 }
 0x161   : > { %v4338_v22 = vadd.f32 %v2141_v42, %v1927_v17  ;;  %v1711_v7 = vpop.f32.mrf.mxu0  ;;  %v575_v17 = vrot.slane %v3832_v28, 7  ;;  %v4356_v19 = vmax.f32 %v390_v4, 0.0  ;;  %v577_v4 = vrot.slane %v3912_v59, 7 }
 0x162   : > { %v1186_v34 = vpop.permute.xlu0 %1185  ;;  %v4347_v5 = vpop.f32.mrf.mxu1 }
 0x163   : > { %5452 = vst [vmem:[#allocation12_spill] sm:$0xff] %v4338_v22  ;;  %v4350_v27 = vsel %vm1342_vm4, %v1326_v44, %v1186_v34  ;;  %959 = vrot.lane.b32.xlu0 %v4356_v19, %s3174_s18  ;;  %v785_v42 = vrot.slane %v4356_v19, 1  ;;  %v576_v31 = vsel %vm538_vm2, %v574_v57, %v575_v17  ;;  %v1327_v44 = vsel %vm1279_vm3, %v609_v33, %v972_v16  ;;  %v1188_v28 = vpop.permute.xlu1 %1187  ;;  %v261_v34 = vld [vmem:[%s3229_s24 + $0x150] sm:$0xff] }
 0x164   : > { %2381 = vst.msk [vmem:[%s4096_s26 + $0x40] sm:$0xff] %vm1279_vm3, %v4338_v22  ;;  %3052 = vmatmul.msk.f32.vlgmr.msrb.gmra.mxu3 %vm1470_vm5, %v4350_v27  ;;  %v326_v14 = vmul.f32 %v3871_v63, %v261_v34  ;;  %v1305_v15 = vsel %vm1279_vm3, %v576_v31, %v928_v49  ;;  %v4374_v57 = vsel %vm1342_vm4, %v1327_v44, %v1188_v28  ;;  %v4385_v49 = vpop.f32.mrf.mxu3  ;;  %v578_v34 = vrot.slane %v3935_v53, 7 }
 0x165   : > { %v868_v22 = vsel %vm724_vm0, %v785_v42, 0.0  ;;  %v392_v17 = vadd.f32 %v3898_v3, %v327_v6  ;;  %5454 = vst [vmem:[#allocation14_spill] sm:$0xff] %v4385_v49  ;;  %v1930_v28 = vadd.f32 %v4286_v39, %v1711_v7 }
 0x166   : > { %1175 = vrot.lane.b32.xlu1 %v868_v22, %s3175_s27  ;;  %v391_v16 = vadd.f32 %v3898_v3, %v326_v14  ;;  %v930_v59 = vpop.permute.xlu2 %929  ;;  %v579_v39 = vsel %vm538_vm2, %v577_v4, %v578_v34 }
 0x167   : > { %v4383_v22 = vmax.f32 %v392_v17, 0.0 }
 0x168   : > { %v4381_v51 = vmax.f32 %v391_v16, 0.0 }
 0x169   : > { %v1714_v46 = vpop.f32.mrf.mxu0  ;;  %v5421_v44 = vrot.slane %v4383_v22, 1 }
 0x16a   : > { %v1144_v40 = vpop.permute.xlu0 %1143  ;;  %v4387_v31 = vpop.f32.mrf.mxu1 }
 0x16b   : > { %v1368_v33 = vsel %vm1342_vm4, %v1305_v15, %v1144_v40  ;;  %v706_v40 = vsel %vm538_vm2, 0.0, %v577_v4  ;;  %v787_v15 = vrot.slane %v4381_v51, 1  ;;  %v932_v49 = vpop.permute.xlu1 %931  ;;  %v1933_v4 = vadd.f32 %v4312_v48, %v1714_v46 }
 0x16c   : > { %2962 = vmatmul.msk.f32.gmra.mxu0 %vm1470_vm5, %v1368_v33  ;;  %3029 = vmatmul.msk.f32.gmra.mxu1 %vm1470_vm5, %v1368_v33  ;;  %v1306_v6 = vsel %vm1279_vm3, %v706_v40, %v930_v59  ;;  %v4413_v7 = vpop.f32.mrf.mxu3  ;;  %v1307_v40 = vsel %vm1279_vm3, %v579_v39, %v932_v49 }
 0x16d   : > { %3053 = vmatmul.msk.f32.gmra.mxu3 %vm1470_vm5, %v4374_v57  ;;  %3092 = vmatmul.msk.f32.gmra.mxu2 %vm1470_vm5, %v1368_v33  ;;  %v789_v16 = vsel %vm724_vm0, %v787_v15, %v5421_v44  ;;  %5456 = vst [vmem:[#allocation16_spill] sm:$0xff] %v4413_v7 }
 0x16e   : > { %1177 = vrot.lane.b32.xlu0 %v789_v16, %s3175_s27  ;;  %963 = vrot.lane.b32.xlu1 %v4383_v22, %s3174_s18  ;;  %v1148_v15 = vpop.permute.xlu2 %1147  ;;  %v264_v16 = vld [vmem:[%s3229_s24 + $0x168] sm:$0xff] }
 0x16f   : > { %v329_v7 = vmul.f32 %v3871_v63, %v264_v16  ;;  %v1370_v39 = vsel %vm1342_vm4, %v1307_v40, %v1148_v15 }
 0x170   : > { %v2144_v14 = vpop.f32.mrf.mxu2 }
 0x171   : > { %v4401_v17 = vadd.f32 %v2144_v14, %v1930_v28  ;;  %v1717_v59 = vpop.f32.mrf.mxu0  ;;  %v784_v28 = vrot.slane %v4328_v37, 1  ;;  %v580_v14 = vrot.slane %v3939_v25, 7  ;;  %v394_v25 = vadd.f32 %v3898_v3, %v329_v7 }
 0x172   : > { %v1146_v33 = vpop.permute.xlu0 %1145  ;;  %v4421_v34 = vpop.f32.mrf.mxu1  ;;  %v1936_v15 = vadd.f32 %v4347_v5, %v1717_v59 }
 0x173   : > { %5455 = vst [vmem:[#allocation15_spill] sm:$0xff] %v4401_v17  ;;  %v1369_v53 = vsel %vm1342_vm4, %v1306_v6, %v1146_v33  ;;  %v263_v6 = vld [vmem:[%s3229_s24 + $0x160] sm:$0xff]  ;;  %v786_v44 = vsel %vm724_vm0, %v784_v28, %v785_v42  ;;  %v707_v42 = vsel %vm538_vm2, 0.0, %v580_v14  ;;  %s216_s24 = scalar_lea.vmem %s5406_s4, %s2935_s17 }
 0x174   : > { %2382 = vst.msk [vmem:[%s4096_s26 + $0x48] sm:$0xff] %vm1279_vm3, %v4401_v17  ;;  %2963 = vmatmul.msk.f32.gmra.mxu0 %vm1470_vm5, %v1369_v53  ;;  %3030 = vmatmul.msk.f32.gmra.mxu1 %vm1470_vm5, %v1369_v53  ;;  %v4452_v40 = vpop.f32.mrf.mxu3 }
 0x175   : > { %3054 = vmatmul.msk.f32.gmra.mxu3 %vm1470_vm5, %v3669_v52  ;;  %3093 = vmatmul.msk.f32.gmra.mxu2 %vm1470_vm5, %v1369_v53  ;;  %v328_v53 = vmul.f32 %v3871_v63, %v263_v6  ;;  %v1150_v63 = vpop.permute.xlu1 %1149  ;;  %5457 = vst [vmem:[#allocation17_spill] sm:$0xff] %v4452_v40 }
 0x176   : > { %1173 = vrot.lane.b32.xlu2 %v786_v44, %s3175_s27  ;;  %v4446_v44 = vmax.f32 %v394_v25, 0.0  ;;  %v936_v5 = vpop.permute.xlu2 %935 }
 0x177   : > { %v393_v48 = vadd.f32 %v3898_v3, %v328_v53 }
 0x178   : > { %v2147_v33 = vpop.f32.mrf.mxu2  ;;  %v791_v6 = vrot.slane %v4446_v44, 1 }
 0x179   : > { %v4429_v49 = vadd.f32 %v2147_v33, %v1933_v4  ;;  %v4441_v28 = vmax.f32 %v393_v48, 0.0  ;;  %v581_v4 = vrot.slane %v3941_v8, 7  ;;  %v1720_v16 = vpop.f32.mrf.mxu0 }
 0x17a   : > { %v934_v46 = vpop.permute.xlu0 %933  ;;  %v4457_v53 = vpop.f32.mrf.mxu1 }
 0x17b   : > { %2383 = vst.msk [vmem:[%s4096_s26 + $0x50] sm:$0xff] %vm1279_vm3, %v4429_v49  ;;  %v1308_v3 = vsel %vm1279_vm3, %v707_v42, %v934_v46  ;;  %965 = vrot.lane.b32.xlu0 %v4441_v28, %s3174_s18  ;;  %v790_v7 = vrot.slane %v4441_v28, 1  ;;  %v582_v8 = vsel %vm538_vm2, %v580_v14, %v581_v4 }
 0x17c   : > { %2964 = vmatmul.msk.f32.gmra.mxu0 %vm1470_vm5, %v1370_v39  ;;  %3031 = vmatmul.msk.f32.gmra.mxu1 %vm1470_vm5, %v1370_v39  ;;  %v1371_v46 = vsel %vm1342_vm4, %v1308_v3, %v1150_v63  ;;  %v1309_v42 = vsel %vm1279_vm3, %v582_v8, %v936_v5  ;;  %v583_v63 = vrot.slane %v3986_v45, 7  ;;  %v870_v3 = vsel %vm724_vm0, %v791_v6, 0.0 }
 0x17d   : > { %3055 = vmatmul.msk.f32.gmra.mxu3 %vm1470_vm5, %v3729_v20  ;;  %3094 = vmatmul.msk.f32.gmra.mxu2 %vm1470_vm5, %v1370_v39  ;;  %v792_v48 = vsel %vm724_vm0, %v790_v7, %v791_v6  ;;  %v938_v25 = vpop.permute.xlu1 %937  ;;  %v4480_v7 = vpop.f32.mrf.mxu3  ;;  %v1939_v8 = vadd.f32 %v4387_v31, %v1720_v16  ;;  %v584_v5 = vrot.slane %v3990_v35, 7 }
 0x17e   : > { %961 = vrot.lane.b32.xlu2 %v4381_v51, %s3174_s18  ;;  %1181 = vrot.lane.b32.xlu1 %v792_v48, %s3175_s27  ;;  %5458 = vst [vmem:[#allocation18_spill] sm:$0xff] %v4480_v7  ;;  %v1154_v6 = vpop.permute.xlu2 %1153 }
 0x17f   : > { %v585_v31 = vsel %vm538_vm2, %v583_v63, %v584_v5 }
 0x180   : > { %v2150_v33 = vpop.f32.mrf.mxu2 }
 0x181   : > { %v4459_v39 = vadd.f32 %v2150_v33, %v1936_v15  ;;  %v1723_v15 = vpop.f32.mrf.mxu0  ;;  %v708_v33 = vsel %vm538_vm2, 0.0, %v583_v63  ;;  %v1411_v63 = vrot.slane %v4048_v12, 7 }
 0x182   : > { %v1152_v59 = vpop.permute.xlu0 %1151  ;;  %v4482_v4 = vpop.f32.mrf.mxu1  ;;  %v1310_v45 = vsel %vm1279_vm3, %v708_v33, %v938_v25 }
 0x183   : > { %2384 = vst.msk [vmem:[%s4096_s26 + $0x58] sm:$0xff] %vm1279_vm3, %v4459_v39  ;;  %1183 = vrot.lane.b32.xlu0 %v870_v3, %s3175_s27  ;;  %v1372_v14 = vsel %vm1342_vm4, %v1309_v42, %v1152_v59  ;;  %v5459_v42 = vrot.slane %v4383_v22, 1  ;;  %v1373_v40 = vsel %vm1342_vm4, %v1310_v45, %v1154_v6  ;;  %v1942_v45 = vadd.f32 %v4421_v34, %v1723_v15 }
 0x184   : > { %2965 = vmatmul.msk.f32.gmra.mxu0 %vm1470_vm5, %v1371_v46  ;;  %3032 = vmatmul.msk.f32.gmra.mxu1 %vm1470_vm5, %v1371_v46 }
 0x185   : > { %3056 = vmatmul.msk.f32.gmra.mxu3 %vm1470_vm5, %v3755_v55  ;;  %3095 = vmatmul.msk.f32.gmra.mxu2 %vm1470_vm5, %v1371_v46  ;;  %v1156_v46 = vpop.permute.xlu1 %1155  ;;  %v869_v3 = vsel %vm724_vm0, %v5459_v42, 0.0 }
 0x186   : > { %1179 = vrot.lane.b32.xlu2 %v869_v3, %s3175_s27  ;;  %v1434_v6 = vpop.permute.xlu2 %1433 }
 0x189   : > { %v1726_v16 = vpop.f32.mrf.mxu0 }
 0x18a   : > { %v940_v48 = vpop.permute.xlu0 %939  ;;  %v4508_v35 = vpop.f32.mrf.mxu1 }
 0x18b   : > { %v1311_v33 = vsel %vm1279_vm3, %v585_v31, %v940_v48  ;;  %v1945_v31 = vadd.f32 %v4457_v53, %v1726_v16  ;;  %v586_v16 = vrot.slane %v4120_v2, 7 }
 0x18c   : > { %2966 = vmatmul.msk.f32.gmra.mxu0 %vm1470_vm5, %v1372_v14  ;;  %3033 = vmatmul.msk.f32.gmra.mxu1 %vm1470_vm5, %v1372_v14  ;;  %v1374_v42 = vsel %vm1342_vm4, %v1311_v33, %v1156_v46  ;;  %v1412_v46 = vrot.slane %v4050_v32, 7 }
 0x18d   : > { %3057 = vmatmul.msk.f32.gmra.mxu3 %vm1470_vm5, %v3797_v30  ;;  %3096 = vmatmul.msk.f32.gmra.mxu2 %vm1470_vm5, %v1372_v14  ;;  %v4500_v14 = vpop.f32.mrf.mxu3  ;;  %v1436_v5 = vpop.permute.xlu1 %1435 }
 0x18e   : > { %5460 = vst [vmem:[#allocation19_spill] sm:$0xff] %v4500_v14  ;;  %967 = vrot.lane.b32.xlu2 %v4446_v44, %s3174_s18 }
 0x190   : > { %v2153_v59 = vpop.f32.mrf.mxu2 }
 0x191   : > { %v4496_v7 = vadd.f32 %v2153_v59, %v1939_v8  ;;  %v1729_v34 = vpop.f32.mrf.mxu0 }
 0x192   : > { %v1448_v25 = vpop.permute.xlu0 %1447  ;;  %v4533_v48 = vpop.f32.mrf.mxu1 }
 0x193   : > { %2385 = vst.msk [vmem:[%s4096_s26 + $0x60] sm:$0xff] %vm1279_vm3, %v4496_v7 }
 0x194   : > { %2967 = vmatmul.msk.f32.gmra.mxu0 %vm1470_vm5, %v1373_v40  ;;  %3034 = vmatmul.msk.f32.gmra.mxu1 %vm1470_vm5, %v1373_v40 }
 0x195   : > { %3058 = vmatmul.msk.f32.gmra.mxu3 %vm1470_vm5, %v3853_v9  ;;  %3097 = vmatmul.msk.f32.gmra.mxu2 %vm1470_vm5, %v1373_v40  ;;  %v1421_v40 = vsel %vm538_vm2, 0.0, %v1411_v63  ;;  %v4527_v12 = vpop.f32.mrf.mxu3  ;;  %v1162_v14 = vpop.permute.xlu1 %1161 }
 0x196   : > { %5462 = vst [vmem:[#allocation21_spill] sm:$0xff] %v4527_v12  ;;  %v1459_v15 = vsel %vm1279_vm3, %v1421_v40, %v1434_v6  ;;  %v709_v40 = vsel %vm538_vm2, 0.0, %v586_v16 }
 0x198   : > { %v2156_v8 = vpop.f32.mrf.mxu2 }
 0x199   : > { %v4516_v59 = vadd.f32 %v2156_v8, %v1942_v45  ;;  %v1463_v45 = vsel %vm1342_vm4, %v1459_v15, %v1448_v25  ;;  %v1450_v8 = vpop.permute.xlu2 %1449 }
 0x19a   : > { %v946_v3 = vpop.permute.xlu0 %945  ;;  %v1732_v25 = vpop.f32.mrf.mxu0 }
 0x19b   : > { %5461 = vst [vmem:[#allocation20_spill] sm:$0xff] %v4516_v59 }
 0x19c   : > { %2386 = vst.msk [vmem:[%s4096_s26 + $0x68] sm:$0xff] %vm1279_vm3, %v4516_v59  ;;  %2968 = vmatmul.msk.f32.gmra.mxu0 %vm1470_vm5, %v1374_v42  ;;  %3035 = vmatmul.msk.f32.gmra.mxu1 %vm1470_vm5, %v1374_v42  ;;  %v1413_v59 = vsel %vm538_vm2, %v1411_v63, %v1412_v46  ;;  %v4554_v63 = vpop.f32.mrf.mxu1 }
 0x19d   : > { %3059 = vmatmul.msk.f32.gmra.mxu3 %vm1470_vm5, %v3875_v18  ;;  %3098 = vmatmul.msk.f32.gmra.mxu2 %vm1470_vm5, %v1374_v42  ;;  %v1460_v32 = vsel %vm1279_vm3, %v1413_v59, %v1436_v5  ;;  %v4551_v53 = vpop.f32.mrf.mxu3  ;;  %v948_v5 = vpop.permute.xlu1 %947  ;;  %v1948_v59 = vadd.f32 %v4482_v4, %v1729_v34  ;;  %v1951_v34 = vadd.f32 %v4508_v35, %v1732_v25 }
 0x19e   : > { %5463 = vst [vmem:[#allocation22_spill] sm:$0xff] %v4551_v53  ;;  %v1464_v6 = vsel %vm1342_vm4, %v1460_v32, %v1450_v8 }
 0x1a1   : > { %v2159_v33 = vpop.f32.mrf.mxu2  ;;  %v942_v15 = vpop.permute.xlu2 %941 }
 0x1a2   : > { %v4538_v12 = vadd.f32 %v2159_v33, %v1945_v31  ;;  %v1158_v42 = vpop.permute.xlu0 %1157  ;;  %v1312_v2 = vsel %vm1279_vm3, %v709_v40, %v942_v15  ;;  %v587_v31 = vrot.slane %v4122_v29, 7 }
 0x1a3   : > { %v1375_v53 = vsel %vm1342_vm4, %v1312_v2, %v1158_v42 }
 0x1a4   : > { %2387 = vst.msk [vmem:[%s4096_s26 + $0x70] sm:$0xff] %vm1279_vm3, %v4538_v12  ;;  %2969 = vmatmul.msk.f32.gmra.mxu0 %vm1470_vm5, %v1463_v45  ;;  %3036 = vmatmul.msk.f32.gmra.mxu1 %vm1470_vm5, %v3491_v60 }
 0x1a5   : > { %3060 = vmatmul.msk.f32.gmra.mxu3 %vm1470_vm5, %v3925_v36  ;;  %3099 = vmatmul.msk.f32.gmra.mxu2 %vm1470_vm5, %v1463_v45  ;;  %v1160_v4 = vpop.permute.xlu1 %1159 }
 0x1a7   : > { %v4566_v46 = vpop.f32.mrf.mxu3 }
 0x1a9   : > { %v1735_v33 = vpop.f32.mrf.mxu0 }
 0x1aa   : > { %v4569_v8 = vpop.f32.mrf.mxu1  ;;  %v944_v40 = vpop.permute.xlu0 %943  ;;  %v1954_v25 = vadd.f32 %v4533_v48, %v1735_v33 }
 0x1ac   : > { %2970 = vmatmul.msk.f32.gmra.mxu0 %vm1470_vm5, %v1464_v6  ;;  %3037 = vmatmul.msk.f32.gmra.mxu1 %vm1470_vm5, %v3511_v10 }
 0x1ad   : > { %3061 = vmatmul.msk.f32.gmra.mxu3 %vm1470_vm5, %v3978_v0  ;;  %3100 = vmatmul.msk.f32.gmra.mxu2 %vm1470_vm5, %v1464_v6  ;;  %v588_v6 = vsel %vm538_vm2, %v586_v16, %v587_v31  ;;  %v589_v16 = vrot.slane %v4054_v54, 7 }
 0x1ae   : > { %v1313_v29 = vsel %vm1279_vm3, %v588_v6, %v944_v40 }
 0x1af   : > { %v4587_v15 = vpop.f32.mrf.mxu3  ;;  %v710_v35 = vsel %vm538_vm2, 0.0, %v589_v16 }
 0x1b0   : > { %v2162_v45 = vpop.f32.mrf.mxu2  ;;  %v1314_v54 = vsel %vm1279_vm3, %v710_v35, %v946_v3 }
 0x1b1   : > { %v4571_v32 = vadd.f32 %v2162_v45, %v1948_v59  ;;  %v1738_v59 = vpop.f32.mrf.mxu0  ;;  %v590_v45 = vrot.slane %v4056_v26, 7  ;;  %v592_v26 = vrot.slane %v4203_v11, 7 }
 0x1b2   : > { %v4592_v31 = vpop.f32.mrf.mxu1 }
 0x1b3   : > { %2388 = vst.msk [vmem:[%s4096_s26 + $0x78] sm:$0xff] %vm1279_vm3, %v4571_v32  ;;  %v591_v48 = vsel %vm538_vm2, %v589_v16, %v590_v45  ;;  %v711_v35 = vsel %vm538_vm2, 0.0, %v592_v26  ;;  %v1957_v45 = vadd.f32 %v4554_v63, %v1738_v59 }
 0x1b4   : > { %2971 = vmatmul.msk.f32.gmra.mxu0 %vm1470_vm5, %v1375_v53  ;;  %3038 = vmatmul.msk.f32.gmra.mxu1 %vm1470_vm5, %v1375_v53  ;;  %v1376_v53 = vsel %vm1342_vm4, %v1313_v29, %v1160_v4  ;;  %v1377_v29 = vsel %vm1342_vm4, %v1314_v54, %v1162_v14  ;;  %v1315_v14 = vsel %vm1279_vm3, %v591_v48, %v948_v5  ;;  %v1166_v5 = vpop.permute.xlu0 %1165 }
 0x1b5   : > { %3062 = vmatmul.msk.f32.gmra.mxu3 %vm1470_vm5, %v3999_v58  ;;  %3101 = vmatmul.msk.f32.gmra.mxu2 %vm1470_vm5, %v3491_v60 }
 0x1b8   : > { %v2165_v42 = vpop.f32.mrf.mxu2 }
 0x1b9   : > { %v4589_v2 = vadd.f32 %v2165_v42, %v1951_v34  ;;  %v4610_v4 = vpop.f32.mrf.mxu3  ;;  %v1164_v34 = vpop.permute.xlu2 %1163 }
 0x1ba   : > { %5464 = vst [vmem:[#allocation23_spill] sm:$0xff] %v4610_v4  ;;  %v1741_v42 = vpop.f32.mrf.mxu0  ;;  %v4618_v3 = vpop.f32.mrf.mxu1 }
 0x1bb   : > { %2389 = vst.msk [vmem:[%s4096_s26 + $0x80] sm:$0xff] %vm1279_vm3, %v4589_v2 }
 0x1bc   : > { %2972 = vmatmul.msk.f32.gmra.mxu0 %vm1470_vm5, %v1376_v53  ;;  %3039 = vmatmul.msk.f32.gmra.mxu1 %vm1470_vm5, %v1376_v53  ;;  %v1378_v53 = vsel %vm1342_vm4, %v1315_v14, %v1164_v34 }
 0x1bd   : > { %3063 = vmatmul.msk.f32.gmra.mxu3 %vm1470_vm5, %v4043_v61  ;;  %3102 = vmatmul.msk.f32.gmra.mxu2 %vm1470_vm5, %v3511_v10 }
 0x1c1   : > { %v2168_v6 = vpop.f32.mrf.mxu2  ;;  %v950_v54 = vpop.permute.xlu2 %949 }
 0x1c2   : > { %v4607_v40 = vadd.f32 %v2168_v6, %v1954_v25  ;;  %v1316_v11 = vsel %vm1279_vm3, %v711_v35, %v950_v54  ;;  %v593_v6 = vrot.slane %v4207_v43, 7  ;;  %v1960_v35 = vadd.f32 %v4569_v8, %v1741_v42 }
 0x1c3   : > { %v1379_v48 = vsel %vm1342_vm4, %v1316_v11, %v1166_v5  ;;  %v595_v54 = vrot.slane %v4262_v24, 7 }
 0x1c4   : > { %2390 = vst.msk [vmem:[%s4096_s26 + $0x88] sm:$0xff] %vm1279_vm3, %v4607_v40  ;;  %2973 = vmatmul.msk.f32.gmra.mxu0 %vm1470_vm5, %v1377_v29  ;;  %3040 = vmatmul.msk.f32.gmra.mxu1 %vm1470_vm5, %v1377_v29  ;;  %v594_v14 = vsel %vm538_vm2, %v592_v26, %v593_v6 }
 0x1c5   : > { %3064 = vmatmul.msk.f32.gmra.mxu3 %vm1470_vm5, %v4116_v56  ;;  %3103 = vmatmul.msk.f32.gmra.mxu2 %vm1470_vm5, %v1377_v29  ;;  %v712_v6 = vsel %vm538_vm2, 0.0, %v595_v54 }
 0x1c7   : > { %v4625_v33 = vpop.f32.mrf.mxu3 }
 0x1c8   : > { %5465 = vst [vmem:[#allocation24_spill] sm:$0xff] %v4625_v33  ;;  %v952_v33 = vpop.permute.xlu1 %951 }
 0x1c9   : > { %v1744_v16 = vpop.f32.mrf.mxu0  ;;  %v1317_v63 = vsel %vm1279_vm3, %v594_v14, %v952_v33  ;;  %v1168_v59 = vpop.permute.xlu2 %1167  ;;  %v596_v33 = vrot.slane %v4264_v21, 7 }
 0x1ca   : > { %v4631_v25 = vpop.f32.mrf.mxu1 }
 0x1cc   : > { %2974 = vmatmul.msk.f32.gmra.mxu0 %vm1470_vm5, %v1378_v53  ;;  %3041 = vmatmul.msk.f32.gmra.mxu1 %vm1470_vm5, %v1378_v53 }
 0x1cd   : > { %3065 = vmatmul.msk.f32.gmra.mxu3 %vm1470_vm5, %v4136_v50  ;;  %3104 = vmatmul.msk.f32.gmra.mxu2 %vm1470_vm5, %v1378_v53 }
 0x1cf   : > { %v4648_v53 = vpop.f32.mrf.mxu3 }
 0x1d0   : > { %v2171_v29 = vpop.f32.mrf.mxu2  ;;  %5467 = vst [vmem:[#allocation26_spill] sm:$0xff] %v4648_v53  ;;  %v1170_v8 = vpop.permute.xlu1 %1169  ;;  %v597_v53 = vsel %vm538_vm2, %v595_v54, %v596_v33  ;;  %v598_v54 = vrot.slane %v4328_v37, 7 }
 0x1d1   : > { %v4639_v34 = vadd.f32 %v2171_v29, %v1957_v45  ;;  %v1747_v43 = vpop.f32.mrf.mxu0  ;;  %v1380_v45 = vsel %vm1342_vm4, %v1317_v63, %v1168_v59  ;;  %v954_v29 = vpop.permute.xlu0 %953 }
 0x1d2   : > { %v4655_v26 = vpop.f32.mrf.mxu1  ;;  %v1318_v24 = vsel %vm1279_vm3, %v712_v6, %v954_v29 }
 0x1d3   : > { %5466 = vst [vmem:[#allocation25_spill] sm:$0xff] %v4639_v34 }
 0x1d4   : > { %2391 = vst.msk [vmem:[%s4096_s26 + $0x90] sm:$0xff] %vm1279_vm3, %v4639_v34  ;;  %2975 = vmatmul.msk.f32.gmra.mxu0 %vm1470_vm5, %v1379_v48  ;;  %3042 = vmatmul.msk.f32.gmra.mxu1 %vm1470_vm5, %v1379_v48 }
 0x1d5   : > { %3066 = vmatmul.msk.f32.gmra.mxu3 %vm1470_vm5, %v4174_v1  ;;  %3105 = vmatmul.msk.f32.gmra.mxu2 %vm1470_vm5, %v1379_v48  ;;  %v1963_v48 = vadd.f32 %v4592_v31, %v1744_v16 }
 0x1d8   : > { %v2174_v11 = vpop.f32.mrf.mxu2  ;;  %v958_v33 = vpop.permute.xlu1 %957 }
 0x1d9   : > { %v4658_v5 = vadd.f32 %v2174_v11, %v1960_v35  ;;  %v4671_v42 = vpop.f32.mrf.mxu3  ;;  %v1381_v35 = vsel %vm1342_vm4, %v1318_v24, %v1170_v8  ;;  %v1172_v31 = vpop.permute.xlu0 %1171  ;;  %v713_v8 = vsel %vm538_vm2, 0.0, %v598_v54 }
 0x1da   : > { %5468 = vst [vmem:[#allocation27_spill] sm:$0xff] %v4671_v42  ;;  %v1750_v14 = vpop.f32.mrf.mxu0  ;;  %v4675_v63 = vpop.f32.mrf.mxu1 }
 0x1db   : > { %2392 = vst.msk [vmem:[%s4096_s26 + $0x98] sm:$0xff] %vm1279_vm3, %v4658_v5 }
 0x1dc   : > { %2976 = vmatmul.msk.f32.gmra.mxu0 %vm1470_vm5, %v1380_v45  ;;  %3043 = vmatmul.msk.f32.gmra.mxu1 %vm1470_vm5, %v1380_v45 }
 0x1dd   : > { %3067 = vmatmul.msk.f32.gmra.mxu3 %vm1470_vm5, %v4232_v41  ;;  %3106 = vmatmul.msk.f32.gmra.mxu2 %vm1470_vm5, %v1380_v45  ;;  %v956_v45 = vpop.permute.xlu2 %955 }
 0x1de   : > { %v1319_v21 = vsel %vm1279_vm3, %v597_v53, %v956_v45  ;;  %v1966_v53 = vadd.f32 %v4618_v3, %v1747_v43  ;;  %v1969_v43 = vadd.f32 %v4631_v25, %v1750_v14 }
 0x1df   : > { %v1382_v24 = vsel %vm1342_vm4, %v1319_v21, %v1172_v31 }
 0x1e0   : > { %v1176_v3 = vpop.permute.xlu1 %1175 }
 0x1e1   : > { %v2177_v59 = vpop.f32.mrf.mxu2 }
 0x1e2   : > { %v4678_v11 = vadd.f32 %v2177_v59, %v1963_v48  ;;  %v599_v48 = vrot.slane %v4356_v19, 7 }
 0x1e4   : > { %2393 = vst.msk [vmem:[%s4096_s26 + $0xa0] sm:$0xff] %vm1279_vm3, %v4678_v11  ;;  %2977 = vmatmul.msk.f32.gmra.mxu0 %vm1470_vm5, %v1381_v35  ;;  %3044 = vmatmul.msk.f32.gmra.mxu1 %vm1470_vm5, %v1381_v35 }
 0x1e5   : > { %3107 = vmatmul.msk.f32.gmra.mxu2 %vm1470_vm5, %v1381_v35  ;;  %3119 = vmatmul.msk.f32.vlgmr.msra.gmra.mxu3 %vm1470_vm5, %v3755_v55  ;;  %v1320_v55 = vsel %vm1279_vm3, %v713_v8, %v958_v33  ;;  %v1174_v37 = vpop.permute.xlu2 %1173  ;;  %v960_v8 = vpop.permute.xlu0 %959  ;;  %v601_v33 = vrot.slane %v4381_v51, 7 }
 0x1e7   : > { %v4690_v16 = vpop.f32.mrf.mxu3 }
 0x1e9   : > { %v1753_v6 = vpop.f32.mrf.mxu0  ;;  %v4693_v29 = vpop.f32.mrf.mxu1 }
 0x1ea   : > { %v1972_v14 = vadd.f32 %v4655_v26, %v1753_v6 }
 0x1ec   : > { %2978 = vmatmul.msk.f32.gmra.mxu0 %vm1470_vm5, %v1382_v24  ;;  %3045 = vmatmul.msk.f32.gmra.mxu1 %vm1470_vm5, %v1382_v24 }
 0x1ed   : > { %3108 = vmatmul.msk.f32.gmra.mxu2 %vm1470_vm5, %v1382_v24  ;;  %3120 = vmatmul.msk.f32.gmra.mxu3 %vm1470_vm5, %v3797_v30  ;;  %v1383_v24 = vsel %vm1342_vm4, %v1320_v55, %v1174_v37  ;;  %v600_v30 = vsel %vm538_vm2, %v598_v54, %v599_v48  ;;  %v1178_v25 = vpop.permute.xlu0 %1177 }
 0x1ee   : > { %v1321_v19 = vsel %vm1279_vm3, %v600_v30, %v960_v8  ;;  %v602_v30 = vrot.slane %v4383_v22, 7 }
 0x1f0   : > { %v4705_v59 = vpop.f32.mrf.mxu3  ;;  %v2180_v35 = vpop.f32.mrf.mxu2 }
 0x1f1   : > { %v4707_v45 = vadd.f32 %v2180_v35, %v1966_v53  ;;  %v1756_v21 = vpop.f32.mrf.mxu0  ;;  %v4709_v31 = vpop.f32.mrf.mxu1  ;;  %v1384_v35 = vsel %vm1342_vm4, %v1321_v19, %v1176_v3 }
 0x1f2   : > { %v1975_v6 = vadd.f32 %v4675_v63, %v1756_v21 }
 0x1f3   : > { %2394 = vst.msk [vmem:[%s4096_s26 + $0xa8] sm:$0xff] %vm1279_vm3, %v4707_v45 }
 0x1f4   : > { %2979 = vmatmul.msk.f32.gmra.mxu0 %vm1470_vm5, %v1383_v24  ;;  %3046 = vmatmul.msk.f32.gmra.mxu1 %vm1470_vm5, %v1383_v24 }
 0x1f5   : > { %3109 = vmatmul.msk.f32.gmra.mxu2 %vm1470_vm5, %v1383_v24  ;;  %3121 = vmatmul.msk.f32.gmra.mxu3 %vm1470_vm5, %v3853_v9  ;;  %v714_v9 = vsel %vm538_vm2, 0.0, %v601_v33  ;;  %v962_v24 = vpop.permute.xlu2 %961 }
 0x1f6   : > { %v1322_v51 = vsel %vm1279_vm3, %v714_v9, %v962_v24  ;;  %v964_v9 = vpop.permute.xlu1 %963  ;;  %v604_v24 = vrot.slane %v4441_v28, 7 }
 0x1f8   : > { %v4724_v55 = vpop.f32.mrf.mxu3  ;;  %v2183_v54 = vpop.f32.mrf.mxu2 }
 0x1f9   : > { %v4726_v37 = vadd.f32 %v2183_v54, %v1969_v43  ;;  %v1759_v53 = vpop.f32.mrf.mxu0  ;;  %v4728_v48 = vpop.f32.mrf.mxu1 }
 0x1fa   : > { %v1978_v21 = vadd.f32 %v4693_v29, %v1759_v53 }
 0x1fb   : > { %2395 = vst.msk [vmem:[%s4096_s26 + $0xb0] sm:$0xff] %vm1279_vm3, %v4726_v37 }
 0x1fc   : > { %2980 = vmatmul.msk.f32.gmra.mxu0 %vm1470_vm5, %v1384_v35  ;;  %3047 = vmatmul.msk.f32.gmra.mxu1 %vm1470_vm5, %v1384_v35 }
 0x1fd   : > { %3110 = vmatmul.msk.f32.gmra.mxu2 %vm1470_vm5, %v1384_v35  ;;  %3122 = vmatmul.msk.f32.gmra.mxu3 %vm1470_vm5, %v3875_v18  ;;  %v1385_v35 = vsel %vm1342_vm4, %v1322_v51, %v1178_v25  ;;  %v603_v18 = vsel %vm538_vm2, %v601_v33, %v602_v30  ;;  %v1180_v26 = vpop.permute.xlu2 %1179 }
 0x1fe   : > { %v1323_v22 = vsel %vm1279_vm3, %v603_v18, %v964_v9  ;;  %v1182_v63 = vpop.permute.xlu1 %1181  ;;  %v605_v18 = vrot.slane %v4446_v44, 7 }
 0x200   : > { %v4743_v8 = vpop.f32.mrf.mxu3  ;;  %v2186_v19 = vpop.f32.mrf.mxu2 }
 0x201   : > { %v4745_v3 = vadd.f32 %v2186_v19, %v1972_v14  ;;  %v1762_v43 = vpop.f32.mrf.mxu0  ;;  %v4747_v54 = vpop.f32.mrf.mxu1  ;;  %v1386_v19 = vsel %vm1342_vm4, %v1323_v22, %v1180_v26 }
 0x202   : > { %v1981_v53 = vadd.f32 %v4709_v31, %v1762_v43 }
 0x203   : > { %2396 = vst.msk [vmem:[%s4096_s26 + $0xb8] sm:$0xff] %vm1279_vm3, %v4745_v3 }
 0x204   : > { %2981 = vmatmul.msk.f32.gmra.mxu0 %vm1470_vm5, %v1385_v35  ;;  %3048 = vmatmul.msk.f32.gmra.mxu1 %vm1470_vm5, %v1385_v35 }
 0x205   : > { %3111 = vmatmul.msk.f32.gmra.mxu2 %vm1470_vm5, %v1385_v35  ;;  %3123 = vmatmul.msk.f32.gmra.mxu3 %vm1470_vm5, %v3925_v36  ;;  %v715_v36 = vsel %vm538_vm2, 0.0, %v604_v24  ;;  %v966_v35 = vpop.permute.xlu0 %965 }
 0x206   : > { %v1324_v28 = vsel %vm1279_vm3, %v715_v36, %v966_v35  ;;  %v968_v36 = vpop.permute.xlu2 %967 }
 0x208   : > { %v4762_v51 = vpop.f32.mrf.mxu3  ;;  %v2189_v33 = vpop.f32.mrf.mxu2 }
 0x209   : > { %v4764_v25 = vadd.f32 %v2189_v33, %v1975_v6  ;;  %v1765_v14 = vpop.f32.mrf.mxu0  ;;  %v1989_v30 = vpop.f32.mrf.mxu1  ;;  %v1387_v33 = vsel %vm1342_vm4, %v1324_v28, %v1182_v63 }
 0x20a   : > { %v1984_v31 = vadd.f32 %v4728_v48, %v1765_v14 }
 0x20b   : > { %2397 = vst.msk [vmem:[%s4096_s26 + $0xc0] sm:$0xff] %vm1279_vm3, %v4764_v25 }
 0x20c   : > { %2982 = vmatmul.msk.f32.gmra.mxu0 %vm1470_vm5, %v1386_v19  ;;  %3049 = vmatmul.msk.f32.gmra.mxu1 %vm1470_vm5, %v1386_v19 }
 0x20d   : > { %3112 = vmatmul.msk.f32.gmra.mxu2 %vm1470_vm5, %v1386_v19  ;;  %3124 = vmatmul.msk.f32.gmra.mxu3 %vm1470_vm5, %v3978_v0  ;;  %v606_v19 = vsel %vm538_vm2, %v604_v24, %v605_v18  ;;  %v1184_v29 = vpop.permute.xlu0 %1183 }
 0x20e   : > { %v1325_v44 = vsel %vm1279_vm3, %v606_v19, %v968_v36 }
 0x210   : > { %v4779_v9 = vpop.f32.mrf.mxu3  ;;  %v2192_v22 = vpop.f32.mrf.mxu2 }
 0x211   : > { %v4781_v26 = vadd.f32 %v2192_v22, %v1978_v21  ;;  %v1768_v6 = vpop.f32.mrf.mxu0  ;;  %v1992_v0 = vpop.f32.mrf.mxu1  ;;  %v1388_v21 = vsel %vm1342_vm4, %v1325_v44, %v1184_v29 }
 0x213   : > { %5469 = vst [vmem:[#allocation28_spill] sm:$0xff] %v4781_v26 }
 0x214   : > { %2398 = vst.msk [vmem:[%s4096_s26 + $0xc8] sm:$0xff] %vm1279_vm3, %v4781_v26  ;;  %2983 = vmatmul.msk.f32.gmra.mxu0 %vm1470_vm5, %v1387_v33  ;;  %3050 = vmatmul.msk.f32.gmra.mxu1 %vm1470_vm5, %v1387_v33 }
 0x215   : > { %3113 = vmatmul.msk.f32.gmra.mxu2 %vm1470_vm5, %v1387_v33  ;;  %3125 = vmatmul.msk.f32.gmra.mxu3 %vm1470_vm5, %v3999_v58 }
 0x218   : > { %v4795_v35 = vpop.f32.mrf.mxu3  ;;  %v2195_v28 = vpop.f32.mrf.mxu2 }
 0x219   : > { %v4797_v24 = vadd.f32 %v2195_v28, %v1981_v53  ;;  %v1771_v63 = vpop.f32.mrf.mxu0  ;;  %v1995_v58 = vpop.f32.mrf.mxu1 }
 0x21b   : > { %2399 = vst.msk [vmem:[%s4096_s26 + $0xd0] sm:$0xff] %vm1279_vm3, %v4797_v24 }
 0x21c   : > { %2984 = vmatmul.msk.f32.gmra.mxu0 %vm1470_vm5, %v1388_v21  ;;  %3051 = vmatmul.msk.f32.gmra.mxu1 %vm1470_vm5, %v1388_v21 }
 0x21d   : > { %3114 = vmatmul.msk.f32.gmra.mxu2 %vm1470_vm5, %v1388_v21  ;;  %3126 = vmatmul.msk.f32.gmra.mxu3 %vm1470_vm5, %v4043_v61  ;;  %v1987_v61 = vadd.f32 %v4747_v54, %v1768_v6 }
 0x220   : > { %v4809_v43 = vpop.f32.mrf.mxu3  ;;  %v2198_v18 = vpop.f32.mrf.mxu2 }
 0x221   : > { %v4811_v22 = vadd.f32 %v2198_v18, %v1984_v31  ;;  %v1774_v33 = vpop.f32.mrf.mxu0  ;;  %v1998_v48 = vpop.f32.mrf.mxu1 }
 0x223   : > { %2400 = vst.msk [vmem:[%s4096_s26 + $0xd8] sm:$0xff] %vm1279_vm3, %v4811_v22 }
 0x224   : > { %2985 = vmatmul.msk.f32.gmra.mxu0 %vm1470_vm5, %v4350_v27 }
 0x225   : > { %3115 = vmatmul.msk.f32.gmra.mxu2 %vm1470_vm5, %v4350_v27  ;;  %3127 = vmatmul.msk.f32.gmra.mxu3 %vm1470_vm5, %v4116_v56  ;;  %v1990_v56 = vadd.f32 %v1989_v30, %v1771_v63 }
 0x228   : > { %v4823_v14 = vpop.f32.mrf.mxu3  ;;  %v2201_v19 = vpop.f32.mrf.mxu2 }
 0x229   : > { %v4825_v36 = vadd.f32 %v2201_v19, %v1987_v61  ;;  %v1777_v44 = vpop.f32.mrf.mxu0  ;;  %v2001_v6 = vpop.f32.mrf.mxu1 }
 0x22b   : > { %2401 = vst.msk [vmem:[%s4096_s26 + $0xe0] sm:$0xff] %vm1279_vm3, %v4825_v36 }
 0x22c   : > { %2986 = vmatmul.msk.f32.gmra.mxu0 %vm1470_vm5, %v4374_v57 }
 0x22d   : > { %3116 = vmatmul.msk.f32.gmra.mxu2 %vm1470_vm5, %v4374_v57  ;;  %3128 = vmatmul.msk.f32.gmra.mxu3 %vm1470_vm5, %v4136_v50  ;;  %v1993_v50 = vadd.f32 %v1992_v0, %v1774_v33 }
 0x230   : > { %v4836_v27 = vpop.f32.mrf.mxu3  ;;  %v2204_v54 = vpop.f32.mrf.mxu2 }
 0x231   : > { %v4838_v29 = vadd.f32 %v2204_v54, %v1990_v56  ;;  %v1780_v53 = vpop.f32.mrf.mxu0  ;;  %v2004_v21 = vpop.f32.mrf.mxu1 }
 0x232   : > { %v1999_v61 = vadd.f32 %v1998_v48, %v1780_v53 }
 0x233   : > { %5470 = vst [vmem:[#allocation29_spill] sm:$0xff] %v4838_v29 }
 0x234   : > { %2402 = vst.msk [vmem:[%s4096_s26 + $0xe8] sm:$0xff] %vm1279_vm3, %v4838_v29 }
 0x235   : > { %3117 = vmatmul.msk.f32.gmra.mxu2 %vm1470_vm5, %v3669_v52  ;;  %3129 = vmatmul.msk.f32.gmra.mxu3 %vm1470_vm5, %v4174_v1  ;;  %v1996_v52 = vadd.f32 %v1995_v58, %v1777_v44 }
 0x238   : > { %v4847_v57 = vpop.f32.mrf.mxu3  ;;  %v2207_v30 = vpop.f32.mrf.mxu2 }
 0x239   : > { %v4849_v28 = vadd.f32 %v2207_v30, %v1993_v50  ;;  %v1783_v63 = vpop.f32.mrf.mxu0  ;;  %v2007_v33 = vpop.f32.mrf.mxu1 }
 0x23a   : > { %v2002_v44 = vadd.f32 %v2001_v6, %v1783_v63 }
 0x23b   : > { %2403 = vst.msk [vmem:[%s4096_s26 + $0xf0] sm:$0xff] %vm1279_vm3, %v4849_v28 }
 0x23d   : > { %3118 = vmatmul.msk.f32.gmra.mxu2 %vm1470_vm5, %v3729_v20  ;;  %3130 = vmatmul.msk.f32.gmra.mxu3 %vm1470_vm5, %v4232_v41 }
 0x240   : > { %v4858_v1 = vpop.f32.mrf.mxu3  ;;  %v2210_v0 = vpop.f32.mrf.mxu2 }
 0x241   : > { %v4860_v31 = vadd.f32 %v2210_v0, %v1996_v52  ;;  %v1786_v18 = vpop.f32.mrf.mxu0  ;;  %v2010_v56 = vpop.f32.mrf.mxu1 }
 0x242   : > { %v2005_v53 = vadd.f32 %v2004_v21, %v1786_v18  ;;  %v2438_v18 = vsel %vm1279_vm3, %v4131_v47, 0.0 }
 0x243   : > { %2404 = vst.msk [vmem:[%s4096_s26 + $0xf8] sm:$0xff] %vm1279_vm3, %v4860_v31 }
 0x245   : > { %3131 = vmatmul.msk.f32.gmra.mxu3 %vm1470_vm5, %v4246_v23 }
 0x248   : > { %v4867_v20 = vpop.f32.mrf.mxu3  ;;  %v2213_v19 = vpop.f32.mrf.mxu2 }
 0x249   : > { %5471 = vst [vmem:[#allocation30_spill] sm:$0xff] %v4867_v20  ;;  %v4869_v41 = vadd.f32 %v2213_v19, %v1999_v61  ;;  %v1789_v58 = vpop.f32.mrf.mxu0  ;;  %v5478_v20 = vld [vmem:[#allocation6_spill] sm:$0xff] }
 0x24a   : > { %v2008_v0 = vadd.f32 %v2007_v33, %v1789_v58  ;;  %v5475_v33 = vld [vmem:[#allocation8_spill] sm:$0xff] }
 0x24b   : > { %2405 = vst.msk [vmem:[%s4096_s26 + $0x100] sm:$0xff] %vm1279_vm3, %v4869_v41  ;;  %v2047_v58 = vadd.f32 %v4690_v16, %v5475_v33  ;;  %v5480_v33 = vld [vmem:[#allocation9_spill] sm:$0xff] }
 0x24d   : > { %3132 = vmatmul.msk.f32.gmra.mxu3 %vm1470_vm5, %v4294_v38  ;;  %v2013_v38 = vpop.f32.mrf.mxu1 }
 0x250   : > { %v4876_v54 = vpop.f32.mrf.mxu3  ;;  %v2216_v50 = vpop.f32.mrf.mxu2 }
 0x251   : > { %5472 = vst [vmem:[#allocation31_spill] sm:$0xff] %v4876_v54  ;;  %v4878_v23 = vadd.f32 %v2216_v50, %v2002_v44  ;;  %v1792_v48 = vpop.f32.mrf.mxu0  ;;  %v2437_v50 = vsel %vm1279_vm3, %v4099_v13, 0.0  ;;  %v2444_v13 = vsel %vm1279_vm3, %v5478_v20, 0.0 }
 0x253   : > { %2406 = vst.msk [vmem:[%s4096_s26 + $0x108] sm:$0xff] %vm1279_vm3, %v4878_v23 }
 0x255   : > { %3133 = vmatmul.msk.f32.gmra.mxu3 %vm1470_vm5, %v3491_v60  ;;  %v2016_v21 = vpop.f32.mrf.mxu1 }
 0x258   : > { %v4885_v30 = vpop.f32.mrf.mxu3  ;;  %v2219_v52 = vpop.f32.mrf.mxu2 }
 0x259   : > { %5473 = vst [vmem:[#allocation32_spill] sm:$0xff] %v4885_v30  ;;  %v4887_v6 = vadd.f32 %v2219_v52, %v2005_v53  ;;  %v1795_v63 = vpop.f32.mrf.mxu0  ;;  %v2011_v53 = vadd.f32 %v2010_v56, %v1792_v48  ;;  %v2439_v52 = vadd.f32 %v2438_v18, %v2437_v50  ;;  %v5479_v56 = vld [vmem:[#allocation7_spill] sm:$0xff] }
 0x25a   : > { %v2446_v48 = vsel %vm1279_vm3, %v5479_v56, 0.0 }
 0x25b   : > { %2407 = vst.msk [vmem:[%s4096_s26 + $0x110] sm:$0xff] %vm1279_vm3, %v4887_v6 }
 0x25d   : > { %3134 = vmatmul.msk.f32.gmra.mxu3 %vm1470_vm5, %v3511_v10  ;;  %v2440_v10 = vsel %vm1279_vm3, %v4164_v62, 0.0  ;;  %v2019_v18 = vpop.f32.mrf.mxu1 }
 0x25e   : > { %v2441_v54 = vadd.f32 %v2440_v10, %v2439_v52  ;;  %v2448_v10 = vsel %vm1279_vm3, %v5480_v33, 0.0  ;;  %v2014_v52 = vadd.f32 %v2013_v38, %v1795_v63 }
 0x260   : > { %v4894_v61 = vpop.f32.mrf.mxu3  ;;  %v2222_v19 = vpop.f32.mrf.mxu2 }
 0x261   : > { %5474 = vst [vmem:[#allocation33_spill] sm:$0xff] %v4894_v61  ;;  %v4896_v44 = vadd.f32 %v2222_v19, %v2008_v0  ;;  %v1798_v60 = vpop.f32.mrf.mxu0  ;;  %v5476_v61 = vld [vmem:[#allocation5_spill] sm:$0xff] }
 0x262   : > { %v2442_v42 = vsel %vm1279_vm3, %v5476_v61, 0.0 }
 0x263   : > { %2408 = vst.msk [vmem:[%s4096_s26 + $0x118] sm:$0xff] %vm1279_vm3, %v4896_v44  ;;  %v2443_v16 = vadd.f32 %v2442_v42, %v2441_v54  ;;  %v5482_v54 = vld [vmem:[#allocation11_spill] sm:$0xff] }
 0x264   : > { %v2450_v20 = vsel %vm1279_vm3, %v5482_v54, 0.0 }
 0x265   : > { %v2445_v50 = vadd.f32 %v2444_v13, %v2443_v16 }
 0x268   : > { %v2225_v0 = vpop.f32.mrf.mxu2  ;;  %v2261_v19 = vpop.f32.mrf.mxu3 }
 0x269   : > { %v4911_v30 = vadd.f32 %v2225_v0, %v2011_v53  ;;  %v4913_v47 = vadd.f32 %v2261_v19, %v2047_v58  ;;  %v1801_v62 = vpop.f32.mrf.mxu0  ;;  %v5481_v58 = vld [vmem:[#allocation10_spill] sm:$0xff]  ;;  %v2447_v0 = vadd.f32 %v2446_v48, %v2445_v50  ;;  %v2456_v48 = vsel %vm1279_vm3, %v4429_v49, 0.0  ;;  %v5484_v50 = vld [vmem:[#allocation13_spill] sm:$0xff] }
 0x26a   : > { %v2050_v53 = vadd.f32 %v4705_v59, %v5481_v58  ;;  %v2454_v59 = vsel %vm1279_vm3, %v4401_v17, 0.0  ;;  %v2017_v58 = vadd.f32 %v2016_v21, %v1798_v60  ;;  %v5485_v60 = vld [vmem:[#allocation20_spill] sm:$0xff] }
 0x26b   : > { %5477 = vst [vmem:[#allocation8_spill] sm:$0xff] %v4913_v47  ;;  %v2449_v56 = vadd.f32 %v2448_v10, %v2447_v0  ;;  %v2053_v10 = vadd.f32 %v4724_v55, %v5484_v50  ;;  %v2458_v0 = vsel %vm1279_vm3, %v4459_v39, 0.0  ;;  %v2462_v21 = vsel %vm1279_vm3, %v5485_v60, 0.0 }
 0x26c   : > { %2409 = vst.msk [vmem:[%s4096_s26 + $0x120] sm:$0xff] %vm1279_vm3, %v4911_v30  ;;  %v2020_v50 = vadd.f32 %v2019_v18, %v1801_v62 }
 0x26d   : > { %2421 = vst.msk [vmem:[%s4096_s26 + $0x180] sm:$0xff] %vm1279_vm3, %v4913_v47  ;;  %v5483_v47 = vld [vmem:[#allocation12_spill] sm:$0xff]  ;;  %v2451_v16 = vadd.f32 %v2450_v20, %v2449_v56 }
 0x26e   : > { %v2452_v13 = vsel %vm1279_vm3, %v5483_v47, 0.0 }
 0x26f   : > { %v2453_v63 = vadd.f32 %v2452_v13, %v2451_v16  ;;  %v2460_v13 = vsel %vm1279_vm3, %v4496_v7, 0.0 }
 0x270   : > { %v2228_v19 = vpop.f32.mrf.mxu2  ;;  %v2264_v42 = vpop.f32.mrf.mxu3 }
 0x271   : > { %v4931_v61 = vadd.f32 %v2228_v19, %v2014_v52  ;;  %v4933_v4 = vadd.f32 %v2264_v42, %v2050_v53  ;;  %v1804_v38 = vpop.f32.mrf.mxu0  ;;  %v2022_v53 = vpop.f32.mrf.mxu1  ;;  %v2455_v52 = vadd.f32 %v2454_v59, %v2453_v63  ;;  %v2464_v59 = vsel %vm1279_vm3, %v4538_v12, 0.0  ;;  %v5486_v63 = vld [vmem:[#allocation14_spill] sm:$0xff] }
 0x273   : > { %2410 = vst.msk [vmem:[%s4096_s26 + $0x128] sm:$0xff] %vm1279_vm3, %v4931_v61  ;;  %v2457_v17 = vadd.f32 %v2456_v48, %v2455_v52  ;;  %v2056_v48 = vadd.f32 %v4743_v8, %v5486_v63  ;;  %v2470_v8 = vsel %vm1279_vm3, %v4607_v40, 0.0  ;;  %v2023_v63 = vadd.f32 %v2022_v53, %v1804_v38 }
 0x274   : > { %2422 = vst.msk [vmem:[%s4096_s26 + $0x188] sm:$0xff] %vm1279_vm3, %v4933_v4  ;;  %v2478_v38 = vsel %vm1279_vm3, %v4707_v45, 0.0 }
 0x275   : > { %v2459_v55 = vadd.f32 %v2458_v0, %v2457_v17 }
 0x277   : > { %v2461_v16 = vadd.f32 %v2460_v13, %v2459_v55  ;;  %v2468_v55 = vsel %vm1279_vm3, %v4589_v2, 0.0 }
 0x278   : > { %v2231_v20 = vpop.f32.mrf.mxu2  ;;  %v2267_v56 = vpop.f32.mrf.mxu3 }
 0x279   : > { %v4951_v19 = vadd.f32 %v2231_v20, %v2017_v58  ;;  %v4953_v42 = vadd.f32 %v2267_v56, %v2053_v10  ;;  %v1807_v10 = vpop.f32.mrf.mxu0  ;;  %v2463_v58 = vadd.f32 %v2462_v21, %v2461_v16  ;;  %v2466_v20 = vsel %vm1279_vm3, %v4571_v32, 0.0  ;;  %v2025_v56 = vpop.f32.mrf.mxu1  ;;  %v5487_v16 = vld [vmem:[#allocation16_spill] sm:$0xff] }
 0x27a   : > { %v2472_v21 = vsel %vm1279_vm3, %v4639_v34, 0.0 }
 0x27b   : > { %2411 = vst.msk [vmem:[%s4096_s26 + $0x130] sm:$0xff] %vm1279_vm3, %v4951_v19  ;;  %v2465_v13 = vadd.f32 %v2464_v59, %v2463_v58  ;;  %v2059_v59 = vadd.f32 %v4762_v51, %v5487_v16  ;;  %v2026_v16 = vadd.f32 %v2025_v56, %v1807_v10  ;;  %v2486_v10 = vsel %vm1279_vm3, %v4781_v26, 0.0 }
 0x27c   : > { %2423 = vst.msk [vmem:[%s4096_s26 + $0x190] sm:$0xff] %vm1279_vm3, %v4953_v42 }
 0x27d   : > { %v2467_v62 = vadd.f32 %v2466_v20, %v2465_v13 }
 0x27f   : > { %v2469_v18 = vadd.f32 %v2468_v55, %v2467_v62  ;;  %v2476_v62 = vsel %vm1279_vm3, %v4678_v11, 0.0 }
 0x280   : > { %v2234_v52 = vpop.f32.mrf.mxu2  ;;  %v2270_v17 = vpop.f32.mrf.mxu3 }
 0x281   : > { %v4971_v0 = vadd.f32 %v2234_v52, %v2020_v50  ;;  %v4973_v60 = vadd.f32 %v2270_v17, %v2056_v48  ;;  %v2471_v48 = vadd.f32 %v2470_v8, %v2469_v18  ;;  %v2474_v52 = vsel %vm1279_vm3, %v4658_v5, 0.0  ;;  %v1810_v17 = vpop.f32.mrf.mxu0  ;;  %v2028_v34 = vpop.f32.mrf.mxu1  ;;  %v5488_v18 = vld [vmem:[#allocation17_spill] sm:$0xff] }
 0x282   : > { %v2480_v8 = vsel %vm1279_vm3, %v4726_v37, 0.0 }
 0x283   : > { %2412 = vst.msk [vmem:[%s4096_s26 + $0x138] sm:$0xff] %vm1279_vm3, %v4971_v0  ;;  %v2473_v55 = vadd.f32 %v2472_v21, %v2471_v48  ;;  %v2062_v21 = vadd.f32 %v4779_v9, %v5488_v18  ;;  %v2488_v18 = vsel %vm1279_vm3, %v4797_v24, 0.0 }
 0x284   : > { %2424 = vst.msk [vmem:[%s4096_s26 + $0x198] sm:$0xff] %vm1279_vm3, %v4973_v60 }
 0x285   : > { %v2475_v51 = vadd.f32 %v2474_v52, %v2473_v55 }
 0x287   : > { %v2477_v53 = vadd.f32 %v2476_v62, %v2475_v51  ;;  %v2484_v62 = vsel %vm1279_vm3, %v4764_v25, 0.0 }
 0x288   : > { %v2237_v50 = vpop.f32.mrf.mxu2  ;;  %v2273_v58 = vpop.f32.mrf.mxu3 }
 0x289   : > { %v4991_v20 = vadd.f32 %v2237_v50, %v2023_v63  ;;  %v4993_v13 = vadd.f32 %v2273_v58, %v2059_v59  ;;  %v2479_v59 = vadd.f32 %v2478_v38, %v2477_v53  ;;  %v2482_v50 = vsel %vm1279_vm3, %v4745_v3, 0.0  ;;  %v1813_v51 = vpop.f32.mrf.mxu0  ;;  %v2031_v56 = vpop.f32.mrf.mxu1  ;;  %v5489_v53 = vld [vmem:[#allocation18_spill] sm:$0xff] }
 0x28b   : > { %2413 = vst.msk [vmem:[%s4096_s26 + $0x140] sm:$0xff] %vm1279_vm3, %v4991_v20  ;;  %v2481_v55 = vadd.f32 %v2480_v8, %v2479_v59  ;;  %v2065_v8 = vadd.f32 %v4795_v35, %v5489_v53  ;;  %v2496_v53 = vsel %vm1279_vm3, %v4849_v28, 0.0 }
 0x28c   : > { %2425 = vst.msk [vmem:[%s4096_s26 + $0x1a0] sm:$0xff] %vm1279_vm3, %v4993_v13 }
 0x28d   : > { %v2483_v9 = vadd.f32 %v2482_v50, %v2481_v55 }
 0x28f   : > { %v2485_v38 = vadd.f32 %v2484_v62, %v2483_v9  ;;  %v2492_v62 = vsel %vm1279_vm3, %v4825_v36, 0.0 }
 0x290   : > { %v2240_v63 = vpop.f32.mrf.mxu2  ;;  %v2276_v48 = vpop.f32.mrf.mxu3 }
 0x291   : > { %v5011_v58 = vadd.f32 %v2240_v63, %v2026_v16  ;;  %v5013_v52 = vadd.f32 %v2276_v48, %v2062_v21  ;;  %v2029_v21 = vadd.f32 %v2028_v34, %v1810_v17  ;;  %v2487_v16 = vadd.f32 %v2486_v10, %v2485_v38  ;;  %v1816_v17 = vpop.f32.mrf.mxu0  ;;  %v5491_v10 = vld [vmem:[#allocation19_spill] sm:$0xff] }
 0x292   : > { %v2490_v48 = vsel %vm1279_vm3, %v4811_v22, 0.0  ;;  %v2494_v34 = vsel %vm1279_vm3, %v4838_v29, 0.0  ;;  %v2068_v38 = vadd.f32 %v4809_v43, %v5491_v10 }
 0x293   : > { %2414 = vst.msk [vmem:[%s4096_s26 + $0x148] sm:$0xff] %vm1279_vm3, %v5011_v58  ;;  %v2489_v26 = vadd.f32 %v2488_v18, %v2487_v16  ;;  %v2032_v18 = vadd.f32 %v2031_v56, %v1813_v51  ;;  %v2502_v51 = vsel %vm1279_vm3, %v4878_v23, 0.0 }
 0x294   : > { %2426 = vst.msk [vmem:[%s4096_s26 + $0x1a8] sm:$0xff] %vm1279_vm3, %v5013_v52 }
 0x295   : > { %v2491_v35 = vadd.f32 %v2490_v48, %v2489_v26 }
 0x297   : > { %v2493_v9 = vadd.f32 %v2492_v62, %v2491_v35  ;;  %v2500_v62 = vsel %vm1279_vm3, %v4869_v41, 0.0  ;;  %v5493_v35 = vld [vmem:[#allocation21_spill] sm:$0xff] }
 0x298   : > { %v2243_v59 = vpop.f32.mrf.mxu2  ;;  %v2279_v63 = vpop.f32.mrf.mxu3 }
 0x299   : > { %v5031_v50 = vadd.f32 %v2243_v59, %v2029_v21  ;;  %v5033_v55 = vadd.f32 %v2279_v63, %v2065_v8  ;;  %v2034_v8 = vpop.f32.mrf.mxu1  ;;  %v2495_v21 = vadd.f32 %v2494_v34, %v2493_v9  ;;  %v2498_v59 = vsel %vm1279_vm3, %v4860_v31, 0.0 }
 0x29a   : > { %v2071_v34 = vadd.f32 %v4823_v14, %v5493_v35  ;;  %v2504_v9 = vsel %vm1279_vm3, %v4887_v6, 0.0  ;;  %v2035_v10 = vadd.f32 %v2034_v8, %v1816_v17  ;;  %v2508_v14 = vsel %vm1279_vm3, %v4911_v30, 0.0 }
 0x29b   : > { %5490 = vst [vmem:[#allocation9_spill] sm:$0xff] %v5033_v55  ;;  %v2497_v29 = vadd.f32 %v2496_v53, %v2495_v21  ;;  %v2506_v21 = vsel %vm1279_vm3, %v4896_v44, 0.0  ;;  %v2510_v8 = vsel %vm1279_vm3, %v4931_v61, 0.0  ;;  %v2512_v35 = vsel %vm1279_vm3, %v4951_v19, 0.0 }
 0x29c   : > { %2415 = vst.msk [vmem:[%s4096_s26 + $0x150] sm:$0xff] %vm1279_vm3, %v5031_v50 }
 0x29d   : > { %2427 = vst.msk [vmem:[%s4096_s26 + $0x1b0] sm:$0xff] %vm1279_vm3, %v5033_v55  ;;  %v2499_v43 = vadd.f32 %v2498_v59, %v2497_v29 }
 0x29f   : > { %v2501_v56 = vadd.f32 %v2500_v62, %v2499_v43 }
 0x2a0   : > { %v2246_v26 = vpop.f32.mrf.mxu2  ;;  %v2282_v16 = vpop.f32.mrf.mxu3 }
 0x2a1   : > { %v5051_v63 = vadd.f32 %v2246_v26, %v2032_v18  ;;  %v5053_v48 = vadd.f32 %v2282_v16, %v2068_v38  ;;  %v1819_v38 = vpop.f32.mrf.mxu0  ;;  %v2503_v53 = vadd.f32 %v2502_v51, %v2501_v56  ;;  %v2037_v62 = vpop.f32.mrf.mxu1  ;;  %v5495_v51 = vld [vmem:[#allocation22_spill] sm:$0xff] }
 0x2a2   : > { %v2074_v56 = vadd.f32 %v4836_v27, %v5495_v51  ;;  %v2520_v51 = vsel %vm1279_vm3, %v5031_v50, 0.0 }
 0x2a3   : > { %5492 = vst [vmem:[#allocation10_spill] sm:$0xff] %v5053_v48  ;;  %v2505_v59 = vadd.f32 %v2504_v9, %v2503_v53 }
 0x2a4   : > { %2416 = vst.msk [vmem:[%s4096_s26 + $0x158] sm:$0xff] %vm1279_vm3, %v5051_v63 }
 0x2a5   : > { %2428 = vst.msk [vmem:[%s4096_s26 + $0x1b8] sm:$0xff] %vm1279_vm3, %v5053_v48  ;;  %v2507_v17 = vadd.f32 %v2506_v21, %v2505_v59 }
 0x2a7   : > { %v2509_v43 = vadd.f32 %v2508_v14, %v2507_v17  ;;  %v2516_v17 = vsel %vm1279_vm3, %v4991_v20, 0.0 }
 0x2a8   : > { %v2249_v18 = vpop.f32.mrf.mxu2  ;;  %v2285_v29 = vpop.f32.mrf.mxu3 }
 0x2a9   : > { %v5071_v26 = vadd.f32 %v2249_v18, %v2035_v10  ;;  %v5073_v16 = vadd.f32 %v2285_v29, %v2071_v34  ;;  %v2038_v34 = vadd.f32 %v2037_v62, %v1819_v38  ;;  %v2511_v9 = vadd.f32 %v2510_v8, %v2509_v43  ;;  %v1822_v14 = vpop.f32.mrf.mxu0  ;;  %v2040_v38 = vpop.f32.mrf.mxu1 }
 0x2aa   : > { %v2514_v18 = vsel %vm1279_vm3, %v4971_v0, 0.0  ;;  %v2518_v62 = vsel %vm1279_vm3, %v5011_v58, 0.0  ;;  %v2077_v43 = vadd.f32 %v4847_v57, %v4566_v46 }
 0x2ab   : > { %5494 = vst [vmem:[#allocation11_spill] sm:$0xff] %v5073_v16  ;;  %v2513_v59 = vadd.f32 %v2512_v35, %v2511_v9 }
 0x2ac   : > { %2417 = vst.msk [vmem:[%s4096_s26 + $0x160] sm:$0xff] %vm1279_vm3, %v5071_v26 }
 0x2ad   : > { %2429 = vst.msk [vmem:[%s4096_s26 + $0x1c0] sm:$0xff] %vm1279_vm3, %v5073_v16  ;;  %v2515_v27 = vadd.f32 %v2514_v18, %v2513_v59 }
 0x2af   : > { %v2517_v8 = vadd.f32 %v2516_v17, %v2515_v27  ;;  %v2524_v17 = vsel %vm1279_vm3, %v5071_v26, 0.0 }
 0x2b0   : > { %v2252_v10 = vpop.f32.mrf.mxu2  ;;  %v2288_v53 = vpop.f32.mrf.mxu3 }
 0x2b1   : > { %v5091_v29 = vadd.f32 %v2252_v10, %v2038_v34  ;;  %v5093_v21 = vadd.f32 %v2288_v53, %v2074_v56  ;;  %v2041_v56 = vadd.f32 %v2040_v38, %v1822_v14  ;;  %v2519_v35 = vadd.f32 %v2518_v62, %v2517_v8  ;;  %v1825_v57 = vpop.f32.mrf.mxu0  ;;  %v2043_v27 = vpop.f32.mrf.mxu1 }
 0x2b2   : > { %v2522_v10 = vsel %vm1279_vm3, %v5051_v63, 0.0  ;;  %v2080_v62 = vadd.f32 %v4858_v1, %v4587_v15  ;;  %v2044_v8 = vadd.f32 %v2043_v27, %v1825_v57  ;;  %v5501_v57 = vld [vmem:[#allocation30_spill] sm:$0xff]  ;;  %v2534_v27 = vsel %vm1279_vm3, %v4933_v4, 0.0 }
 0x2b3   : > { %5496 = vst [vmem:[#allocation12_spill] sm:$0xff] %v5091_v29  ;;  %v2521_v59 = vadd.f32 %v2520_v51, %v2519_v35  ;;  %v2526_v14 = vsel %vm1279_vm3, %v5091_v29, 0.0 }
 0x2b4   : > { %5497 = vst [vmem:[#allocation13_spill] sm:$0xff] %v5093_v21 }
 0x2b5   : > { %2418 = vst.msk [vmem:[%s4096_s26 + $0x168] sm:$0xff] %vm1279_vm3, %v5091_v29  ;;  %v2523_v46 = vadd.f32 %v2522_v10, %v2521_v59 }
 0x2b6   : > { %2430 = vst.msk [vmem:[%s4096_s26 + $0x1c8] sm:$0xff] %vm1279_vm3, %v5093_v21 }
 0x2b7   : > { %v2525_v38 = vadd.f32 %v2524_v17, %v2523_v46  ;;  %v5499_v17 = vld [vmem:[#allocation8_spill] sm:$0xff]  ;;  %v5500_v46 = vld [vmem:[#allocation23_spill] sm:$0xff] }
 0x2b8   : > { %v2255_v34 = vpop.f32.mrf.mxu2  ;;  %v2291_v9 = vpop.f32.mrf.mxu3  ;;  %v2532_v15 = vsel %vm1279_vm3, %v5499_v17, 0.0 }
 0x2b9   : > { %v5111_v53 = vadd.f32 %v2255_v34, %v2041_v56  ;;  %v5113_v18 = vadd.f32 %v2291_v9, %v2077_v43  ;;  %v2527_v51 = vadd.f32 %v2526_v14, %v2525_v38  ;;  %v2083_v14 = vadd.f32 %v5501_v57, %v5500_v46 }
 0x2ba   : > { %v2542_v46 = vsel %vm1279_vm3, %v5013_v52, 0.0 }
 0x2bb   : > { %5498 = vst [vmem:[#allocation14_spill] sm:$0xff] %v5113_v18  ;;  %v2528_v43 = vsel %vm1279_vm3, %v5111_v53, 0.0 }
 0x2bc   : > { %2419 = vst.msk [vmem:[%s4096_s26 + $0x170] sm:$0xff] %vm1279_vm3, %v5111_v53  ;;  %v2529_v10 = vadd.f32 %v2528_v43, %v2527_v51 }
 0x2bd   : > { %2431 = vst.msk [vmem:[%s4096_s26 + $0x1d0] sm:$0xff] %vm1279_vm3, %v5113_v18 }
 0x2c0   : > { %v2258_v56 = vpop.f32.mrf.mxu2  ;;  %v2294_v35 = vpop.f32.mrf.mxu3 }
 0x2c1   : > { %v2356_v34 = vadd.f32 %v2258_v56, %v2044_v8  ;;  %v2368_v9 = vadd.f32 %v2294_v35, %v2080_v62  ;;  %v2536_v8 = vsel %vm1279_vm3, %v4953_v42, 0.0  ;;  %v2538_v56 = vsel %vm1279_vm3, %v4973_v60, 0.0 }
 0x2c2   : > { %v2540_v35 = vsel %vm1279_vm3, %v4993_v13, 0.0 }
 0x2c3   : > { %2420 = vst.msk [vmem:[%s4096_s26 + $0x178] sm:$0xff] %vm1279_vm3, %v2356_v34  ;;  %v2530_v59 = vsel %vm1279_vm3, %v2356_v34, 0.0 }
 0x2c4   : > { %v2531_v29 = vadd.f32 %v2530_v59, %v2529_v10  ;;  %2432 = vst.msk [vmem:[%s4096_s26 + $0x1d8] sm:$0xff] %vm1279_vm3, %v2368_v9  ;;  %v5502_v59 = vld [vmem:[#allocation24_spill] sm:$0xff] }
 0x2c6   : > { %v2533_v1 = vadd.f32 %v2532_v15, %v2531_v29  ;;  %v5503_v15 = vld [vmem:[#allocation31_spill] sm:$0xff] }
 0x2c8   : > { %v2535_v38 = vadd.f32 %v2534_v27, %v2533_v1  ;;  %v2297_v62 = vpop.f32.mrf.mxu3  ;;  %v2086_v1 = vadd.f32 %v5503_v15, %v5502_v59  ;;  %v5505_v59 = vld [vmem:[#allocation32_spill] sm:$0xff]  ;;  %v2550_v15 = vsel %vm1279_vm3, %v5093_v21, 0.0 }
 0x2c9   : > { %v2369_v43 = vadd.f32 %v2297_v62, %v2083_v14  ;;  %v2544_v14 = vsel %vm1279_vm3, %v5033_v55, 0.0 }
 0x2ca   : > { %v2537_v51 = vadd.f32 %v2536_v8, %v2535_v38  ;;  %v2546_v8 = vsel %vm1279_vm3, %v5053_v48, 0.0 }
 0x2cb   : > { %2433 = vst.msk [vmem:[%s4096_s26 + $0x1e0] sm:$0xff] %vm1279_vm3, %v2369_v43 }
 0x2cc   : > { %v2539_v29 = vadd.f32 %v2538_v56, %v2537_v51  ;;  %v2548_v56 = vsel %vm1279_vm3, %v5073_v16, 0.0 }
 0x2ce   : > { %v2541_v10 = vadd.f32 %v2540_v35, %v2539_v29  ;;  %v5504_v35 = vld [vmem:[#allocation26_spill] sm:$0xff] }
 0x2d0   : > { %v2543_v57 = vadd.f32 %v2542_v46, %v2541_v10  ;;  %v2300_v27 = vpop.f32.mrf.mxu3  ;;  %v2089_v10 = vadd.f32 %v5505_v59, %v5504_v35  ;;  %v5507_v35 = vld [vmem:[#allocation33_spill] sm:$0xff] }
 0x2d1   : > { %v2370_v38 = vadd.f32 %v2300_v27, %v2086_v1  ;;  %v2552_v1 = vsel %vm1279_vm3, %v5113_v18, 0.0 }
 0x2d2   : > { %v2545_v62 = vadd.f32 %v2544_v14, %v2543_v57  ;;  %v2554_v14 = vsel %vm1279_vm3, %v2368_v9, 0.0 }
 0x2d3   : > { %2434 = vst.msk [vmem:[%s4096_s26 + $0x1e8] sm:$0xff] %vm1279_vm3, %v2370_v38 }
 0x2d4   : > { %v2547_v51 = vadd.f32 %v2546_v8, %v2545_v62  ;;  %v2556_v8 = vsel %vm1279_vm3, %v2369_v43, 0.0 }
 0x2d6   : > { %v2549_v29 = vadd.f32 %v2548_v56, %v2547_v51  ;;  %v5506_v56 = vld [vmem:[#allocation27_spill] sm:$0xff] }
 0x2d7   : > { %v2092_v59 = vadd.f32 %v5507_v35, %v5506_v56 }
 0x2d8   : > { %v2551_v46 = vadd.f32 %v2550_v15, %v2549_v29  ;;  %v2303_v55 = vpop.f32.mrf.mxu3  ;;  %v2558_v29 = vsel %vm1279_vm3, %v2370_v38, 0.0 }
 0x2d9   : > { %v2371_v57 = vadd.f32 %v2303_v55, %v2089_v10 }
 0x2da   : > { %v2553_v27 = vadd.f32 %v2552_v1, %v2551_v46 }
 0x2db   : > { %2435 = vst.msk [vmem:[%s4096_s26 + $0x1f0] sm:$0xff] %vm1279_vm3, %v2371_v57  ;;  %v2560_v16 = vsel %vm1279_vm3, %v2371_v57, 0.0 }
 0x2dc   : > { %v2555_v62 = vadd.f32 %v2554_v14, %v2553_v27 }
 0x2de   : > { %v2557_v51 = vadd.f32 %v2556_v8, %v2555_v62 }
 0x2e0   : > { %v2559_v15 = vadd.f32 %v2558_v29, %v2557_v51  ;;  %v2306_v21 = vpop.f32.mrf.mxu3 }
 0x2e1   : > { %v2372_v18 = vadd.f32 %v2306_v21, %v2092_v59 }
 0x2e2   : > { %v2561_v55 = vadd.f32 %v2560_v16, %v2559_v15  ;;  %v5511_v15 = vld [vmem:[#allocation2_spill] sm:$0xff] }
 0x2e3   : > { %2436 = vst.msk [vmem:[%s4096_s26 + $0x1f8] sm:$0xff] %vm1279_vm3, %v2372_v18  ;;  %v2562_v10 = vsel %vm1279_vm3, %v2372_v18, 0.0 }
 0x2e4   : > { %v2563_v46 = vadd.f32 %v2562_v10, %v2561_v55 }
 0x2e6   : > { %v2564_v1 = vrot.slane %v2563_v46, 4 }
 0x2e8   : > { %v2565_v27 = vadd.f32 %v2564_v1, %v2563_v46 }
 0x2ea   : > { %v2566_v14 = vrot.slane %v2565_v27, 2 }
 0x2ec   : > { %v2567_v62 = vadd.f32 %v2566_v14, %v2565_v27 }
 0x2ee   : > { %v2568_v8 = vrot.slane %v2567_v62, 1 }
 0x2f0   : > { %v5177_v48 = vadd.f32 %v2568_v8, %v2567_v62 }
 0x2f2   : > { %5508 = vst [vmem:[#allocation16_spill] sm:$0xff] %v5177_v48  ;;  %v5180_v56 = vmul.f32 0.001953125, %v5177_v48 }
 0x2f4   : > { %v5183_v51 = vsub.f32 %v2356_v34, %v5180_v56  ;;  %v5186_v16 = vsub.f32 %v2368_v9, %v5180_v56  ;;  %v5189_v21 = vsub.f32 %v2369_v43, %v5180_v56  ;;  %v5192_v35 = vsub.f32 %v2370_v38, %v5180_v56  ;;  %v5512_v34 = vld [vmem:[#allocation3_spill] sm:$0xff]  ;;  %v5513_v9 = vld [vmem:[#allocation4_spill] sm:$0xff]  ;;  %v5514_v43 = vld [vmem:[#allocation5_spill] sm:$0xff] }
 0x2f5   : > { %v5195_v59 = vsub.f32 %v2371_v57, %v5180_v56  ;;  %v5198_v29 = vsub.f32 %v2372_v18, %v5180_v56  ;;  %v2571_v55 = vsub.f32 %v5511_v15, %v5180_v56  ;;  %v2572_v10 = vsub.f32 %v5512_v34, %v5180_v56  ;;  %v5515_v57 = vld [vmem:[#allocation6_spill] sm:$0xff]  ;;  %v5516_v18 = vld [vmem:[#allocation7_spill] sm:$0xff] }
 0x2f6   : > { %v2573_v46 = vsub.f32 %v5513_v9, %v5180_v56  ;;  %v2574_v1 = vsub.f32 %v5514_v43, %v5180_v56  ;;  %v2575_v14 = vsub.f32 %v5515_v57, %v5180_v56  ;;  %v2576_v8 = vsub.f32 %v5516_v18, %v5180_v56 }
 0x2f7   : > { %5509 = vst [vmem:[#allocation17_spill] sm:$0xff] %v5195_v59  ;;  %v2635_v38 = vmul.f32 %v2571_v55, %v2571_v55  ;;  %v2636_v27 = vmul.f32 %v2572_v10, %v2572_v10  ;;  %v2577_v9 = vsub.f32 %v5480_v33, %v5180_v56  ;;  %v2578_v43 = vsub.f32 %v5482_v54, %v5180_v56  ;;  %v5517_v33 = vld [vmem:[#allocation15_spill] sm:$0xff] }
 0x2f8   : > { %5510 = vst [vmem:[#allocation18_spill] sm:$0xff] %v5198_v29  ;;  %v2637_v62 = vmul.f32 %v2573_v46, %v2573_v46  ;;  %v2638_v48 = vmul.f32 %v2574_v1, %v2574_v1  ;;  %v2639_v59 = vmul.f32 %v2575_v14, %v2575_v14  ;;  %v2640_v46 = vmul.f32 %v2576_v8, %v2576_v8 }
 0x2f9   : > { %v2699_v15 = vsel %vm1279_vm3, %v2635_v38, 0.0  ;;  %v2700_v34 = vsel %vm1279_vm3, %v2636_v27, 0.0  ;;  %v2579_v1 = vsub.f32 %v5483_v47, %v5180_v56  ;;  %v2641_v38 = vmul.f32 %v2577_v9, %v2577_v9 }
 0x2fa   : > { %v2701_v29 = vadd.f32 %v2700_v34, %v2699_v15  ;;  %v2702_v55 = vsel %vm1279_vm3, %v2637_v62, 0.0  ;;  %v2704_v57 = vsel %vm1279_vm3, %v2638_v48, 0.0  ;;  %v2706_v27 = vsel %vm1279_vm3, %v2639_v59, 0.0 }
 0x2fb   : > { %v2580_v14 = vsub.f32 %v5517_v33, %v5180_v56  ;;  %v2642_v34 = vmul.f32 %v2578_v43, %v2578_v43  ;;  %v2581_v54 = vsub.f32 %v4429_v49, %v5180_v56  ;;  %v2643_v8 = vmul.f32 %v2579_v1, %v2579_v1  ;;  %v5518_v49 = vld [vmem:[#allocation20_spill] sm:$0xff] }
 0x2fc   : > { %v2703_v10 = vadd.f32 %v2702_v55, %v2701_v29  ;;  %v2708_v29 = vsel %vm1279_vm3, %v2640_v46, 0.0  ;;  %v2710_v48 = vsel %vm1279_vm3, %v2641_v38, 0.0  ;;  %v2582_v47 = vsub.f32 %v4459_v39, %v5180_v56 }
 0x2fd   : > { %v2644_v9 = vmul.f32 %v2580_v14, %v2580_v14  ;;  %v2712_v59 = vsel %vm1279_vm3, %v2642_v34, 0.0  ;;  %v2583_v43 = vsub.f32 %v4496_v7, %v5180_v56  ;;  %v2714_v46 = vsel %vm1279_vm3, %v2643_v8, 0.0 }
 0x2fe   : > { %v2705_v18 = vadd.f32 %v2704_v57, %v2703_v10  ;;  %v2645_v57 = vmul.f32 %v2581_v54, %v2581_v54  ;;  %v2584_v1 = vsub.f32 %v5518_v49, %v5180_v56  ;;  %v2585_v39 = vsub.f32 %v4538_v12, %v5180_v56 }
 0x2ff   : > { %v2716_v38 = vsel %vm1279_vm3, %v2644_v9, 0.0  ;;  %v2647_v33 = vmul.f32 %v2583_v43, %v2583_v43  ;;  %v2586_v7 = vsub.f32 %v4571_v32, %v5180_v56  ;;  %v2587_v8 = vsub.f32 %v4589_v2, %v5180_v56  ;;  %v5519_v32 = vld [vmem:[#allocation25_spill] sm:$0xff] }
 0x300   : > { %v2707_v15 = vadd.f32 %v2706_v27, %v2705_v18  ;;  %v2646_v27 = vmul.f32 %v2582_v47, %v2582_v47  ;;  %v2718_v14 = vsel %vm1279_vm3, %v2645_v57, 0.0  ;;  %v2588_v12 = vsub.f32 %v4607_v40, %v5180_v56 }
 0x301   : > { %v2650_v9 = vmul.f32 %v2586_v7, %v2586_v7  ;;  %v2589_v43 = vsub.f32 %v5519_v32, %v5180_v56  ;;  %v2651_v57 = vmul.f32 %v2587_v8, %v2587_v8  ;;  %v2590_v2 = vsub.f32 %v4658_v5, %v5180_v56 }
 0x302   : > { %v2709_v62 = vadd.f32 %v2708_v29, %v2707_v15  ;;  %v2648_v29 = vmul.f32 %v2584_v1, %v2584_v1  ;;  %v2652_v49 = vmul.f32 %v2588_v12, %v2588_v12  ;;  %v2591_v40 = vsub.f32 %v4678_v11, %v5180_v56 }
 0x303   : > { %v2728_v1 = vsel %vm1279_vm3, %v2650_v9, 0.0  ;;  %v2593_v5 = vsub.f32 %v4726_v37, %v5180_v56  ;;  %v2594_v11 = vsub.f32 %v4745_v3, %v5180_v56  ;;  %v5520_v37 = vld [vmem:[#allocation28_spill] sm:$0xff]  ;;  %v2597_v3 = vsub.f32 %v4797_v24, %v5180_v56  ;;  %v5521_v24 = vld [vmem:[#allocation29_spill] sm:$0xff] }
 0x304   : > { %v2711_v55 = vadd.f32 %v2710_v48, %v2709_v62  ;;  %v2720_v62 = vsel %vm1279_vm3, %v2646_v27, 0.0  ;;  %v2649_v48 = vmul.f32 %v2585_v39, %v2585_v39 }
 0x306   : > { %v2713_v10 = vadd.f32 %v2712_v59, %v2711_v55  ;;  %v2722_v55 = vsel %vm1279_vm3, %v2647_v33, 0.0  ;;  %v2724_v59 = vsel %vm1279_vm3, %v2648_v29, 0.0  ;;  %v2592_v33 = vsub.f32 %v4707_v45, %v5180_v56 }
 0x307   : > { %v2655_v29 = vmul.f32 %v2591_v40, %v2591_v40  ;;  %v2595_v45 = vsub.f32 %v4764_v25, %v5180_v56  ;;  %v2598_v25 = vsub.f32 %v4811_v22, %v5180_v56  ;;  %v2661_v40 = vmul.f32 %v2597_v3, %v2597_v3 }
 0x308   : > { %v2715_v18 = vadd.f32 %v2714_v46, %v2713_v10  ;;  %v2726_v46 = vsel %vm1279_vm3, %v2649_v48, 0.0  ;;  %v2656_v8 = vmul.f32 %v2592_v33, %v2592_v33  ;;  %v2601_v22 = vsub.f32 %v4849_v28, %v5180_v56 }
 0x309   : > { %v2738_v12 = vsel %vm1279_vm3, %v2655_v29, 0.0  ;;  %v2662_v33 = vmul.f32 %v2598_v25, %v2598_v25  ;;  %v2604_v28 = vsub.f32 %v4878_v23, %v5180_v56  ;;  %v2607_v23 = vsub.f32 %v4911_v30, %v5180_v56 }
 0x30a   : > { %v2717_v15 = vadd.f32 %v2716_v38, %v2715_v18  ;;  %v2653_v38 = vmul.f32 %v2589_v43, %v2589_v43  ;;  %v2740_v32 = vsel %vm1279_vm3, %v2656_v8, 0.0  ;;  %v2603_v8 = vsub.f32 %v4869_v41, %v5180_v56 }
 0x30b   : > { %v2606_v41 = vsub.f32 %v4896_v44, %v5180_v56  ;;  %v2609_v44 = vsub.f32 %v4951_v19, %v5180_v56  ;;  %v2610_v30 = vsub.f32 %v4971_v0, %v5180_v56  ;;  %v2612_v19 = vsub.f32 %v5011_v58, %v5180_v56 }
 0x30c   : > { %v2719_v34 = vadd.f32 %v2718_v14, %v2717_v15  ;;  %v2730_v15 = vsel %vm1279_vm3, %v2651_v57, 0.0  ;;  %v2654_v14 = vmul.f32 %v2590_v2, %v2590_v2  ;;  %v2659_v57 = vmul.f32 %v2595_v45, %v2595_v45 }
 0x30d   : > { %v2670_v25 = vmul.f32 %v2606_v41, %v2606_v41  ;;  %v2613_v0 = vsub.f32 %v5031_v50, %v5180_v56  ;;  %v2615_v58 = vsub.f32 %v5071_v26, %v5180_v56  ;;  %v5522_v50 = vld [vmem:[#allocation12_spill] sm:$0xff]  ;;  %v2619_v41 = vsub.f32 %v5499_v17, %v5180_v56 }
 0x30e   : > { %v2721_v54 = vadd.f32 %v2720_v62, %v2719_v34  ;;  %v2732_v34 = vsel %vm1279_vm3, %v2652_v49, 0.0  ;;  %v2734_v62 = vsel %vm1279_vm3, %v2653_v38, 0.0  ;;  %v2736_v48 = vsel %vm1279_vm3, %v2654_v14, 0.0 }
 0x30f   : > { %v2746_v38 = vsel %vm1279_vm3, %v2659_v57, 0.0 }
 0x310   : > { %v2723_v47 = vadd.f32 %v2722_v55, %v2721_v54 }
 0x312   : > { %v2725_v10 = vadd.f32 %v2724_v59, %v2723_v47  ;;  %v2657_v47 = vmul.f32 %v2593_v5, %v2593_v5  ;;  %v2596_v59 = vsub.f32 %v5520_v37, %v5180_v56  ;;  %v2750_v5 = vsel %vm1279_vm3, %v2661_v40, 0.0 }
 0x313   : > { %v2667_v37 = vmul.f32 %v2603_v8, %v2603_v8  ;;  %v2677_v8 = vmul.f32 %v2613_v0, %v2613_v0 }
 0x314   : > { %v2727_v18 = vadd.f32 %v2726_v46, %v2725_v10  ;;  %v2658_v10 = vmul.f32 %v2594_v11, %v2594_v11  ;;  %v2742_v46 = vsel %vm1279_vm3, %v2657_v47, 0.0  ;;  %v2660_v2 = vmul.f32 %v2596_v59, %v2596_v59 }
 0x316   : > { %v2729_v27 = vadd.f32 %v2728_v1, %v2727_v18  ;;  %v2744_v49 = vsel %vm1279_vm3, %v2658_v10, 0.0  ;;  %v2748_v14 = vsel %vm1279_vm3, %v2660_v2, 0.0 }
 0x318   : > { %v2731_v39 = vadd.f32 %v2730_v15, %v2729_v27  ;;  %v2599_v27 = vsub.f32 %v4825_v36, %v5180_v56  ;;  %v2602_v36 = vsub.f32 %v4860_v31, %v5180_v56  ;;  %v2605_v31 = vsub.f32 %v4887_v6, %v5180_v56 }
 0x319   : > { %v2608_v6 = vsub.f32 %v4931_v61, %v5180_v56  ;;  %v2611_v61 = vsub.f32 %v4991_v20, %v5180_v56  ;;  %v2614_v20 = vsub.f32 %v5051_v63, %v5180_v56  ;;  %v2617_v63 = vsub.f32 %v5111_v53, %v5180_v56 }
 0x31a   : > { %v2733_v7 = vadd.f32 %v2732_v34, %v2731_v39  ;;  %v2600_v39 = vsub.f32 %v5521_v24, %v5180_v56  ;;  %v2666_v47 = vmul.f32 %v2602_v36, %v2602_v36  ;;  %v2669_v57 = vmul.f32 %v2605_v31, %v2605_v31 }
 0x31b   : > { %v2782_v31 = vsel %vm1279_vm3, %v2677_v8, 0.0  ;;  %v2682_v53 = vmul.f32 %v5183_v51, %v5183_v51  ;;  %v2623_v51 = vsub.f32 %v4993_v13, %v5180_v56  ;;  %v5524_v13 = vld [vmem:[#allocation10_spill] sm:$0xff] }
 0x31c   : > { %v2735_v54 = vadd.f32 %v2734_v62, %v2733_v7  ;;  %v2663_v7 = vmul.f32 %v2599_v27, %v2599_v27  ;;  %v2664_v62 = vmul.f32 %v2600_v39, %v2600_v39  ;;  %v2766_v27 = vsel %vm1279_vm3, %v2669_v57, 0.0 }
 0x31d   : > { %v2673_v39 = vmul.f32 %v2609_v44, %v2609_v44  ;;  %v2792_v44 = vsel %vm1279_vm3, %v2682_v53, 0.0 }
 0x31e   : > { %v2737_v55 = vadd.f32 %v2736_v48, %v2735_v54  ;;  %v2752_v54 = vsel %vm1279_vm3, %v2662_v33, 0.0  ;;  %v2665_v48 = vmul.f32 %v2601_v22, %v2601_v22 }
 0x320   : > { %v2739_v9 = vadd.f32 %v2738_v12, %v2737_v55  ;;  %v2754_v55 = vsel %vm1279_vm3, %v2663_v7, 0.0  ;;  %v2756_v12 = vsel %vm1279_vm3, %v2664_v62, 0.0  ;;  %v2758_v59 = vsel %vm1279_vm3, %v2665_v48, 0.0 }
 0x321   : > { %v2676_v62 = vmul.f32 %v2612_v19, %v2612_v19 }
 0x322   : > { %v2741_v43 = vadd.f32 %v2740_v32, %v2739_v9  ;;  %v2668_v32 = vmul.f32 %v2604_v28, %v2604_v28  ;;  %v2678_v28 = vmul.f32 %v2614_v20, %v2614_v20 }
 0x324   : > { %v2743_v18 = vadd.f32 %v2742_v46, %v2741_v43  ;;  %v2760_v43 = vsel %vm1279_vm3, %v2666_v47, 0.0  ;;  %v2762_v46 = vsel %vm1279_vm3, %v2667_v37, 0.0  ;;  %v2764_v2 = vsel %vm1279_vm3, %v2668_v32, 0.0 }
 0x325   : > { %v2780_v47 = vsel %vm1279_vm3, %v2676_v62, 0.0  ;;  %v2784_v26 = vsel %vm1279_vm3, %v2678_v28, 0.0  ;;  %v2681_v32 = vmul.f32 %v2617_v63, %v2617_v63 }
 0x326   : > { %v2745_v1 = vadd.f32 %v2744_v49, %v2743_v18 }
 0x328   : > { %v2747_v15 = vadd.f32 %v2746_v38, %v2745_v1  ;;  %v2671_v1 = vmul.f32 %v2607_v23, %v2607_v23  ;;  %v2672_v38 = vmul.f32 %v2608_v6, %v2608_v6  ;;  %v2620_v23 = vsub.f32 %v4933_v4, %v5180_v56 }
 0x329   : > { %v2683_v6 = vmul.f32 %v2619_v41, %v2619_v41  ;;  %v2696_v41 = vmul.f32 %v5192_v35, %v5192_v35 }
 0x32a   : > { %v2749_v34 = vadd.f32 %v2748_v14, %v2747_v15  ;;  %v2768_v15 = vsel %vm1279_vm3, %v2670_v25, 0.0  ;;  %v2770_v33 = vsel %vm1279_vm3, %v2671_v1, 0.0  ;;  %v2772_v22 = vsel %vm1279_vm3, %v2672_v38, 0.0 }
 0x32b   : > { %v2790_v25 = vsel %vm1279_vm3, %v2681_v32, 0.0 }
 0x32c   : > { %v2751_v29 = vadd.f32 %v2750_v5, %v2749_v34  ;;  %v2674_v34 = vmul.f32 %v2610_v30, %v2610_v30  ;;  %v2675_v5 = vmul.f32 %v2611_v61, %v2611_v61  ;;  %v2687_v61 = vmul.f32 %v2623_v51, %v2623_v51 }
 0x32e   : > { %v2753_v11 = vadd.f32 %v2752_v54, %v2751_v29  ;;  %v2774_v29 = vsel %vm1279_vm3, %v2673_v39, 0.0  ;;  %v2776_v54 = vsel %vm1279_vm3, %v2674_v34, 0.0  ;;  %v2778_v48 = vsel %vm1279_vm3, %v2675_v5, 0.0 }
 0x32f   : > { %v2802_v5 = vsel %vm1279_vm3, %v2687_v61, 0.0 }
 0x330   : > { %v2755_v45 = vadd.f32 %v2754_v55, %v2753_v11 }
 0x332   : > { %v2757_v9 = vadd.f32 %v2756_v12, %v2755_v45  ;;  %v2616_v45 = vsub.f32 %v5522_v50, %v5180_v56 }
 0x334   : > { %v2759_v10 = vadd.f32 %v2758_v59, %v2757_v9  ;;  %v2679_v9 = vmul.f32 %v2615_v58, %v2615_v58  ;;  %v2680_v59 = vmul.f32 %v2616_v45, %v2616_v45  ;;  %v5527_v58 = vld [vmem:[#allocation14_spill] sm:$0xff] }
 0x335   : > { %v2629_v8 = vsub.f32 %v5527_v58, %v5180_v56 }
 0x336   : > { %v2761_v3 = vadd.f32 %v2760_v43, %v2759_v10  ;;  %v2786_v43 = vsel %vm1279_vm3, %v2679_v9, 0.0  ;;  %v2788_v57 = vsel %vm1279_vm3, %v2680_v59, 0.0 }
 0x338   : > { %v2763_v18 = vadd.f32 %v2762_v46, %v2761_v3 }
 0x33a   : > { %v2765_v49 = vadd.f32 %v2764_v2, %v2763_v18  ;;  %v2621_v18 = vsub.f32 %v4953_v42, %v5180_v56  ;;  %v2622_v2 = vsub.f32 %v4973_v60, %v5180_v56  ;;  %v2624_v42 = vsub.f32 %v5013_v52, %v5180_v56  ;;  %v5523_v60 = vld [vmem:[#allocation9_spill] sm:$0xff]  ;;  %v5525_v52 = vld [vmem:[#allocation11_spill] sm:$0xff] }
 0x33c   : > { %v2767_v40 = vadd.f32 %v2766_v27, %v2765_v49  ;;  %v2684_v49 = vmul.f32 %v2620_v23, %v2620_v23  ;;  %v2685_v1 = vmul.f32 %v2621_v18, %v2621_v18  ;;  %v2794_v27 = vsel %vm1279_vm3, %v2683_v6, 0.0 }
 0x33d   : > { %v2686_v30 = vmul.f32 %v2622_v2, %v2622_v2  ;;  %v2688_v19 = vmul.f32 %v2624_v42, %v2624_v42 }
 0x33e   : > { %v2769_v24 = vadd.f32 %v2768_v15, %v2767_v40  ;;  %v2796_v38 = vsel %vm1279_vm3, %v2684_v49, 0.0  ;;  %v2798_v39 = vsel %vm1279_vm3, %v2685_v1, 0.0 }
 0x33f   : > { %v2800_v34 = vsel %vm1279_vm3, %v2686_v30, 0.0 }
 0x340   : > { %v2771_v14 = vadd.f32 %v2770_v33, %v2769_v24  ;;  %v2625_v24 = vsub.f32 %v5523_v60, %v5180_v56 }
 0x342   : > { %v2773_v7 = vadd.f32 %v2772_v22, %v2771_v14  ;;  %v2626_v14 = vsub.f32 %v5524_v13, %v5180_v56  ;;  %v2689_v0 = vmul.f32 %v2625_v24, %v2625_v24 }
 0x344   : > { %v2775_v36 = vadd.f32 %v2774_v29, %v2773_v7  ;;  %v2627_v7 = vsub.f32 %v5525_v52, %v5180_v56  ;;  %v2690_v62 = vmul.f32 %v2626_v14, %v2626_v14 }
 0x346   : > { %v2777_v11 = vadd.f32 %v2776_v54, %v2775_v36  ;;  %v5526_v36 = vld [vmem:[#allocation13_spill] sm:$0xff]  ;;  %v2804_v54 = vsel %vm1279_vm3, %v2688_v19, 0.0  ;;  %v2808_v28 = vsel %vm1279_vm3, %v2690_v62, 0.0 }
 0x347   : > { %v2628_v20 = vsub.f32 %v5526_v36, %v5180_v56  ;;  %v2695_v56 = vmul.f32 %v5189_v21, %v5189_v21 }
 0x348   : > { %v2779_v55 = vadd.f32 %v2778_v48, %v2777_v11  ;;  %v2691_v48 = vmul.f32 %v2627_v7, %v2627_v7 }
 0x349   : > { %v2692_v45 = vmul.f32 %v2628_v20, %v2628_v20  ;;  %v2818_v23 = vsel %vm1279_vm3, %v2695_v56, 0.0 }
 0x34a   : > { %v2781_v12 = vadd.f32 %v2780_v47, %v2779_v55  ;;  %v2806_v55 = vsel %vm1279_vm3, %v2689_v0, 0.0  ;;  %v2810_v63 = vsel %vm1279_vm3, %v2691_v48, 0.0 }
 0x34c   : > { %v2783_v37 = vadd.f32 %v2782_v31, %v2781_v12  ;;  %v2693_v12 = vmul.f32 %v2629_v8, %v2629_v8  ;;  %v2694_v31 = vmul.f32 %v5186_v16, %v5186_v16 }
 0x34e   : > { %v2785_v10 = vadd.f32 %v2784_v26, %v2783_v37  ;;  %v2812_v37 = vsel %vm1279_vm3, %v2692_v45, 0.0  ;;  %v2814_v26 = vsel %vm1279_vm3, %v2693_v12, 0.0  ;;  %v2816_v32 = vsel %vm1279_vm3, %v2694_v31, 0.0 }
 0x350   : > { %v2787_v3 = vadd.f32 %v2786_v43, %v2785_v10 }
 0x352   : > { %v2789_v46 = vadd.f32 %v2788_v57, %v2787_v3  ;;  %v5528_v3 = vld [vmem:[#allocation17_spill] sm:$0xff]  ;;  %v5529_v57 = vld [vmem:[#allocation18_spill] sm:$0xff] }
 0x353   : > { %v2697_v16 = vmul.f32 %v5528_v3, %v5528_v3  ;;  %v2698_v21 = vmul.f32 %v5529_v57, %v5529_v57 }
 0x354   : > { %v2791_v17 = vadd.f32 %v2790_v25, %v2789_v46  ;;  %v2820_v46 = vsel %vm1279_vm3, %v2696_v41, 0.0 }
 0x355   : > { %v2822_v6 = vsel %vm1279_vm3, %v2697_v16, 0.0  ;;  %v2824_v35 = vsel %vm1279_vm3, %v2698_v21, 0.0 }
 0x356   : > { %v2793_v4 = vadd.f32 %v2792_v44, %v2791_v17 }
 0x358   : > { %v2795_v40 = vadd.f32 %v2794_v27, %v2793_v4  ;;  %v5530_v27 = vld [vmem:[#allocation16_spill] sm:$0xff] }
 0x35a   : > { %v2797_v15 = vadd.f32 %v2796_v38, %v2795_v40 }
 0x35c   : > { %v2799_v33 = vadd.f32 %v2798_v39, %v2797_v15 }
 0x35e   : > { %v2801_v22 = vadd.f32 %v2800_v34, %v2799_v33 }
 0x360   : > { %v2803_v29 = vadd.f32 %v2802_v5, %v2801_v22 }
 0x362   : > { %v2805_v11 = vadd.f32 %v2804_v54, %v2803_v29 }
 0x364   : > { %v2807_v50 = vadd.f32 %v2806_v55, %v2805_v11 }
 0x366   : > { %v2809_v47 = vadd.f32 %v2808_v28, %v2807_v50 }
 0x368   : > { %v2811_v9 = vadd.f32 %v2810_v63, %v2809_v47 }
 0x36a   : > { %v2813_v59 = vadd.f32 %v2812_v37, %v2811_v9 }
 0x36c   : > { %v2815_v10 = vadd.f32 %v2814_v26, %v2813_v59 }
 0x36e   : > { %v2817_v43 = vadd.f32 %v2816_v32, %v2815_v10 }
 0x370   : > { %v2819_v53 = vadd.f32 %v2818_v23, %v2817_v43 }
 0x372   : > { %v2821_v18 = vadd.f32 %v2820_v46, %v2819_v53 }
 0x374   : > { %v2823_v25 = vadd.f32 %v2822_v6, %v2821_v18 }
 0x376   : > { %v2825_v17 = vadd.f32 %v2824_v35, %v2823_v25 }
 0x378   : > { %v2826_v2 = vrot.slane %v2825_v17, 4 }
 0x37a   : > { %v2827_v49 = vadd.f32 %v2826_v2, %v2825_v17 }
 0x37c   : > { %v2828_v44 = vrot.slane %v2827_v49, 2 }
 0x37e   : > { %v2829_v4 = vadd.f32 %v2828_v44, %v2827_v49 }
 0x380   : > { %v2830_v51 = vrot.slane %v2829_v4, 1 }
 0x382   : > { %v2831_v1 = vadd.f32 %v2830_v51, %v2829_v4 }
 0x384   : > { %v2832_v40 = vsel %vm538_vm2, %v5530_v27, %v2831_v1 }
 0x385   : > { %2834 = vst.msk [vmem:[%s216_s24] sm:$0x3] %vm2833_vm6, %v2832_v40 }
 0x386 PF: > { %s15_s15 = sadd.s32 1, %s3171_s15  }
 0x387   : > { %p12_p5 = scmp.ge.s32.totalorder %s15_s15, 4  }
 0x389   :  { %14 = sbr.rel (!%p12_p5) target bundleno = 1 (0x1), region = 76 }

</bundles_post_ra>
